<compile_context>
chip_gen: v7x
topology: tpu7x:2x2x1
jax: 0.10.0
libtpu: 0.0.40
codegen_flags: <defaults>
</compile_context>

<pallas_src>
import jax
import jax.numpy as jnp
from jax.experimental import pallas as pl
from jax.experimental.pallas import tpu as pltpu

HIDDEN_DIM = 1024
OUTPUT_DIM = 1024
LN_EPS = 1e-5
# TODO(synk): training-mode Dropout(p=0.1) would need pltpu.prng_seed/prng_random_bits;
#             forward here reproduces eval() semantics (dropout == identity).


def projection_head_kernel(x_ref, w1_ref, b1_ref, w2_ref, ln_ref, o_ref):
    # ---- Linear 1: [tb, D_in] @ [D_in, H] + b1  (bf16 operands, f32 accum) ----
    x_bf = x_ref[...].astype(jnp.bfloat16)
    h = jnp.dot(x_bf, w1_ref[...], preferred_element_type=jnp.float32)
    h = h + b1_ref[...]                       # b1 is (1, H), broadcasts over batch
    # ---- ReLU ----
    h = jnp.maximum(h, 0.0)
    # ---- Dropout (inference: identity) ----
    # ---- Linear 2: [tb, H] @ [H, O] + b2  (bf16 operands, f32 accum) ----
    y = jnp.dot(h.astype(jnp.bfloat16), w2_ref[...],
                preferred_element_type=jnp.float32)
    y = y + ln_ref[0:1, :]                    # b2
    # ---- LayerNorm over last dim (biased variance, eps=1e-5), fused stats ----
    inv_o = 1.0 / y.shape[-1]
    s1 = jnp.sum(y, axis=-1, keepdims=True)
    s2 = jnp.sum(y * y, axis=-1, keepdims=True)
    mean = s1 * inv_o
    var = jnp.maximum(s2 * inv_o - mean * mean, 0.0)
    y_norm = (y - mean) * jax.lax.rsqrt(var + LN_EPS)
    o_ref[...] = (y_norm * ln_ref[1:2, :] + ln_ref[2:3, :]).astype(o_ref.dtype)


def _vmem_limit_bytes(vmem_cap):
    # ~half of physical VMEM: 32 MiB on v7x (64 MiB/TC), 48 MiB on v5e/v6e (128 MiB).
    if vmem_cap <= 64 * 1024 * 1024:
        return 32 * 1024 * 1024
    return 48 * 1024 * 1024


def _pick_batch_tile(B, block_b, vmem_cap):
    if block_b is None:
        big_vmem = vmem_cap > 64 * 1024 * 1024
        block_b = 512 if (big_vmem and B >= 4 * 512) else 256
    tb = max(8, (min(block_b, B) // 8) * 8)            # sublane-aligned
    # Guarantee >=2 grid steps when the batch allows it so the "parallel" batch axis
    # shards across both v7x TensorCores; keep the MXU M-dim >= 128 rows per step.
    if pl.cdiv(B, tb) < 2 and B >= 2 * 128:
        tb = max(128, (pl.cdiv(B, 2) // 8) * 8)
    return tb


def projection_head(x, w1, b1, w2, b2, gamma, beta, *, block_b=None):
    B, D_in = x.shape
    H = w1.shape[1]
    O = w2.shape[1]

    try:
        vmem_cap = pltpu.get_tpu_info().vmem_capacity_bytes
    except Exception:
        vmem_cap = 64 * 1024 * 1024   # conservative (v7x-sized) fallback

    tb = _pick_batch_tile(B, block_b, vmem_cap)
    n_blocks = pl.cdiv(B, tb)
    B_pad = n_blocks * tb
    if B_pad != B:
        x = jnp.pad(x, ((0, B_pad - B), (0, 0)))

    # Matmul operands in bf16 (accumulation stays f32 in-kernel); epilogue params
    # packed into a single (3, O) f32 slab: rows = [b2, gamma, beta].
    w1_bf = w1.astype(jnp.bfloat16)
    w2_bf = w2.astype(jnp.bfloat16)
    b1_2d = b1.reshape(1, H).astype(jnp.float32)
    ln_params = jnp.stack([b2.astype(jnp.float32),
                           gamma.astype(jnp.float32),
                           beta.astype(jnp.float32)], axis=0)

    out_dtype = x.dtype
    itemsize = jnp.dtype(out_dtype).itemsize
    cost = pl.CostEstimate(
        flops=2 * B_pad * D_in * H + 2 * B_pad * H * O,
        transcendentals=B_pad,
        bytes_accessed=(B_pad * D_in * itemsize + w1_bf.size * 2 + w2_bf.size * 2
                        + (H + 3 * O) * 4 + B_pad * O * itemsize),
    )

    def build(single_buffer_params):
        if single_buffer_params:
            def rep_spec(shape):
                return pl.BlockSpec(shape, lambda i: (0, 0),
                                    pipeline_mode=pl.Buffered(1))
        else:
            def rep_spec(shape):
                return pl.BlockSpec(shape, lambda i: (0, 0))
        return pl.pallas_call(
            projection_head_kernel,
            out_shape=jax.ShapeDtypeStruct((B_pad, O), out_dtype),
            grid_spec=pltpu.PrefetchScalarGridSpec(
                num_scalar_prefetch=0,
                grid=(n_blocks,),
                in_specs=[
                    pl.BlockSpec((tb, D_in), lambda i: (i, 0)),  # x tile (double-buffered)
                    rep_spec((D_in, H)),                         # W1 (bf16, single-buffered)
                    rep_spec((1, H)),                            # b1
                    rep_spec((H, O)),                            # W2 (bf16, single-buffered)
                    rep_spec((3, O)),                            # [b2; gamma; beta]
                ],
                # Output keeps default double-buffering so the tb*O store DMA overlaps
                # the matmuls (important at the v6e roofline crossover).
                out_specs=pl.BlockSpec((tb, O), lambda i: (i, 0)),
            ),
            compiler_params=pltpu.CompilerParams(
                dimension_semantics=("parallel",),
                vmem_limit_bytes=_vmem_limit_bytes(vmem_cap),
            ),
            cost_estimate=cost,
        )

    args = (x, w1_bf, b1_2d, w2_bf, ln_params)
    try:
        out = build(True)(*args)
    except Exception:
        # Fallback for jax versions without BlockSpec pipeline_mode support:
        # default double-buffered replicated params (correctness identical).
        out = build(False)(*args)
    return out[:B]


def projection_head_ref(x, w1, b1, w2, b2, gamma, beta):
    h = jnp.maximum(x @ w1 + b1, 0.0)
    y = h @ w2 + b2
    mean = jnp.mean(y, axis=-1, keepdims=True)
    var = jnp.mean(jnp.square(y - mean), axis=-1, keepdims=True)
    return (y - mean) * jax.lax.rsqrt(var + LN_EPS) * gamma + beta


if __name__ == "__main__":
    key = jax.random.PRNGKey(0)
    # Small demo shapes: batch not a multiple of the tile so the padding / cdiv
    # path is exercised, and the grid has 2 "parallel" steps.
    B, D_IN = 36, 64

    k_x, k_w1, k_b1, k_w2, k_b2 = jax.random.split(key, 5)
    x = jax.random.normal(k_x, (B, D_IN), dtype=jnp.float32)

    # Deterministic synthetic parameters (shapes from ProjectionHead.__init__,
    # weights stored transposed vs PyTorch so the kernel does x @ W + b).
    w1 = jax.random.normal(k_w1, (D_IN, HIDDEN_DIM), dtype=jnp.float32) * 0.02
    b1 = jax.random.normal(k_b1, (HIDDEN_DIM,), dtype=jnp.float32) * 0.01
    w2 = jax.random.normal(k_w2, (HIDDEN_DIM, OUTPUT_DIM), dtype=jnp.float32) * 0.02
    b2 = jax.random.normal(k_b2, (OUTPUT_DIM,), dtype=jnp.float32) * 0.01
    gamma = jnp.ones((OUTPUT_DIM,), dtype=jnp.float32)
    beta = jnp.zeros((OUTPUT_DIM,), dtype=jnp.float32)

    out = projection_head(x, w1, b1, w2, b2, gamma, beta, block_b=32)
    out = jax.block_until_ready(out)

    ref = projection_head_ref(x, w1, b1, w2, b2, gamma, beta)
    assert out.shape == (B, OUTPUT_DIM)
    # bf16 matmul operands (f32 accumulation) -> a few 1e-3 post-LayerNorm error;
    # 5e-2 is a comfortable sanity bound for unit-variance inputs.
    assert jnp.allclose(out, ref, atol=5e-2, rtol=5e-2), "mismatch vs reference"

    print("KERNEL_OK")
</pallas_src>

<mosaic_0001>
module attributes {stable_mosaic.version = 11 : i64} {
  func.func @projection_head_kernel(%arg0: i32, %arg1: memref<32x64xf32, #tpu.memory_space<vmem>>, %arg2: memref<64x1024xbf16, #tpu.memory_space<vmem>>, %arg3: memref<1x1024xf32, #tpu.memory_space<vmem>>, %arg4: memref<1024x1024xbf16, #tpu.memory_space<vmem>>, %arg5: memref<3x1024xf32, #tpu.memory_space<vmem>>, %arg6: memref<32x1024xf32, #tpu.memory_space<vmem>>) attributes {dimension_semantics = [#tpu.dimension_semantics<parallel>], iteration_bounds = array<i64: 2>, scalar_prefetch = 0 : i64, scratch_operands = 0 : i64, tpu.core_type = #tpu.core_type<tc>, window_params = [{transform_indices = @transform_0, window_bounds = array<i64: 32, 64>}, {pipeline_mode = #tpu.pipeline_mode<synchronous>, transform_indices = @transform_1, window_bounds = array<i64: 64, 1024>}, {pipeline_mode = #tpu.pipeline_mode<synchronous>, transform_indices = @transform_2, window_bounds = array<i64: 1, 1024>}, {pipeline_mode = #tpu.pipeline_mode<synchronous>, transform_indices = @transform_3, window_bounds = array<i64: 1024, 1024>}, {pipeline_mode = #tpu.pipeline_mode<synchronous>, transform_indices = @transform_4, window_bounds = array<i64: 3, 1024>}, {transform_indices = @transform_5, window_bounds = array<i64: 32, 1024>}]} {
    %c0 = arith.constant 0 : index
    %c0_0 = arith.constant 0 : index
    %0 = vector.load %arg1[%c0, %c0_0] : memref<32x64xf32, #tpu.memory_space<vmem>>, vector<32x64xf32>
    %1 = arith.truncf %0 : vector<32x64xf32> to vector<32x64xbf16>
    %c0_1 = arith.constant 0 : index
    %c0_2 = arith.constant 0 : index
    %2 = vector.load %arg2[%c0_1, %c0_2] : memref<64x1024xbf16, #tpu.memory_space<vmem>>, vector<64x1024xbf16>
    %cst = arith.constant dense<0.000000e+00> : vector<32x1024xf32>
    %3 = tpu.matmul %1, %2, %cst {dimension_numbers = #tpu.dot_dimension_numbers<[1], [0], [0], [1], [0, 0, 1, 1], [], []>} : vector<32x64xbf16>, vector<64x1024xbf16>, vector<32x1024xf32> -> vector<32x1024xf32>
    %c0_3 = arith.constant 0 : index
    %c0_4 = arith.constant 0 : index
    %4 = vector.load %arg3[%c0_3, %c0_4] : memref<1x1024xf32, #tpu.memory_space<vmem>>, vector<1x1024xf32>
    %5 = vector.broadcast %4 : vector<1x1024xf32> to vector<32x1024xf32>
    %6 = arith.addf %3, %5 : vector<32x1024xf32>
    %cst_5 = arith.constant 0.000000e+00 : f32
    %7 = vector.broadcast %cst_5 : f32 to vector<32x1024xf32>
    %8 = arith.maximumf %6, %7 : vector<32x1024xf32>
    %9 = arith.truncf %8 : vector<32x1024xf32> to vector<32x1024xbf16>
    %c0_6 = arith.constant 0 : index
    %c0_7 = arith.constant 0 : index
    %10 = vector.load %arg4[%c0_6, %c0_7] : memref<1024x1024xbf16, #tpu.memory_space<vmem>>, vector<1024x1024xbf16>
    %cst_8 = arith.constant dense<0.000000e+00> : vector<32x1024xf32>
    %11 = tpu.matmul %9, %10, %cst_8 {dimension_numbers = #tpu.dot_dimension_numbers<[1], [0], [0], [1], [0, 0, 1, 1], [], []>} : vector<32x1024xbf16>, vector<1024x1024xbf16>, vector<32x1024xf32> -> vector<32x1024xf32>
    %c0_9 = arith.constant 0 : index
    %c0_10 = arith.constant 0 : index
    %12 = vector.load %arg5[%c0_9, %c0_10] : memref<3x1024xf32, #tpu.memory_space<vmem>>, vector<1x1024xf32>
    %13 = vector.broadcast %12 : vector<1x1024xf32> to vector<32x1024xf32>
    %14 = arith.addf %11, %13 : vector<32x1024xf32>
    %cst_11 = arith.constant dense<0.000000e+00> : vector<32xf32>
    %15 = vector.multi_reduction <add>, %14, %cst_11 [1] : vector<32x1024xf32> to vector<32xf32>
    %16 = vector.shape_cast %15 : vector<32xf32> to vector<32x1xf32>
    %17 = arith.mulf %14, %14 : vector<32x1024xf32>
    %cst_12 = arith.constant dense<0.000000e+00> : vector<32xf32>
    %18 = vector.multi_reduction <add>, %17, %cst_12 [1] : vector<32x1024xf32> to vector<32xf32>
    %19 = vector.shape_cast %18 : vector<32xf32> to vector<32x1xf32>
    %cst_13 = arith.constant 9.765625E-4 : f32
    %20 = vector.broadcast %cst_13 : f32 to vector<32x1xf32>
    %21 = arith.mulf %16, %20 : vector<32x1xf32>
    %cst_14 = arith.constant 9.765625E-4 : f32
    %22 = vector.broadcast %cst_14 : f32 to vector<32x1xf32>
    %23 = arith.mulf %19, %22 : vector<32x1xf32>
    %24 = arith.mulf %21, %21 : vector<32x1xf32>
    %25 = arith.subf %23, %24 : vector<32x1xf32>
    %cst_15 = arith.constant 0.000000e+00 : f32
    %26 = vector.broadcast %cst_15 : f32 to vector<32x1xf32>
    %27 = arith.maximumf %25, %26 : vector<32x1xf32>
    %28 = vector.broadcast %21 : vector<32x1xf32> to vector<32x1024xf32>
    %29 = arith.subf %14, %28 : vector<32x1024xf32>
    %cst_16 = arith.constant 9.99999974E-6 : f32
    %30 = vector.broadcast %cst_16 : f32 to vector<32x1xf32>
    %31 = arith.addf %27, %30 : vector<32x1xf32>
    %32 = math.rsqrt %31 : vector<32x1xf32>
    %33 = vector.broadcast %32 : vector<32x1xf32> to vector<32x1024xf32>
    %34 = arith.mulf %29, %33 : vector<32x1024xf32>
    %c1 = arith.constant 1 : index
    %c0_17 = arith.constant 0 : index
    %35 = vector.load %arg5[%c1, %c0_17] : memref<3x1024xf32, #tpu.memory_space<vmem>>, vector<1x1024xf32>
    %36 = vector.broadcast %35 : vector<1x1024xf32> to vector<32x1024xf32>
    %37 = arith.mulf %34, %36 : vector<32x1024xf32>
    %c2 = arith.constant 2 : index
    %c0_18 = arith.constant 0 : index
    %38 = vector.load %arg5[%c2, %c0_18] : memref<3x1024xf32, #tpu.memory_space<vmem>>, vector<1x1024xf32>
    %39 = vector.broadcast %38 : vector<1x1024xf32> to vector<32x1024xf32>
    %40 = arith.addf %37, %39 : vector<32x1024xf32>
    %c0_19 = arith.constant 0 : index
    %c0_20 = arith.constant 0 : index
    %41 = vector.load %arg6[%c0_19, %c0_20] : memref<32x1024xf32, #tpu.memory_space<vmem>>, vector<32x1024xf32>
    tpu.vector_store %arg6[%c0_19, %c0_20], %40 {strides = array<i32>} : memref<32x1024xf32, #tpu.memory_space<vmem>>, vector<32x1024xf32>,
    return
  }
  func.func @transform_0(%arg0: i32) -> (i32, i32) {
    %c0_i32 = arith.constant 0 : i32
    %c0_i32_0 = arith.constant 0 : i32
    return %arg0, %c0_i32 : i32, i32
  }
  func.func @transform_1(%arg0: i32) -> (i32, i32) {
    %c0_i32 = arith.constant 0 : i32
    %c0_i32_0 = arith.constant 0 : i32
    %c0_i32_1 = arith.constant 0 : i32
    return %c0_i32, %c0_i32_0 : i32, i32
  }
  func.func @transform_2(%arg0: i32) -> (i32, i32) {
    %c0_i32 = arith.constant 0 : i32
    %c0_i32_0 = arith.constant 0 : i32
    %c0_i32_1 = arith.constant 0 : i32
    return %c0_i32, %c0_i32_0 : i32, i32
  }
  func.func @transform_3(%arg0: i32) -> (i32, i32) {
    %c0_i32 = arith.constant 0 : i32
    %c0_i32_0 = arith.constant 0 : i32
    %c0_i32_1 = arith.constant 0 : i32
    return %c0_i32, %c0_i32_0 : i32, i32
  }
  func.func @transform_4(%arg0: i32) -> (i32, i32) {
    %c0_i32 = arith.constant 0 : i32
    %c0_i32_0 = arith.constant 0 : i32
    %c0_i32_1 = arith.constant 0 : i32
    return %c0_i32, %c0_i32_0 : i32, i32
  }
  func.func @transform_5(%arg0: i32) -> (i32, i32) {
    %c0_i32 = arith.constant 0 : i32
    %c0_i32_0 = arith.constant 0 : i32
    return %arg0, %c0_i32 : i32, i32
  }
}

module attributes {stable_mosaic.version = 11 : i64} {
  func.func @projection_head_kernel(%arg0: i32, %arg1: memref<32x64xf32, #tpu.memory_space<vmem>>, %arg2: memref<64x1024xbf16, #tpu.memory_space<vmem>>, %arg3: memref<1x1024xf32, #tpu.memory_space<vmem>>, %arg4: memref<1024x1024xbf16, #tpu.memory_space<vmem>>, %arg5: memref<3x1024xf32, #tpu.memory_space<vmem>>, %arg6: memref<32x1024xf32, #tpu.memory_space<vmem>>) attributes {dimension_semantics = [#tpu.dimension_semantics<parallel>], iteration_bounds = array<i64: 2>, scalar_prefetch = 0 : i64, scratch_operands = 0 : i64, tpu.core_type = #tpu.core_type<tc>, window_params = [{transform_indices = @transform_0, window_bounds = array<i64: 32, 64>}, {pipeline_mode = #tpu.pipeline_mode<synchronous>, transform_indices = @transform_1, window_bounds = array<i64: 64, 1024>}, {pipeline_mode = #tpu.pipeline_mode<synchronous>, transform_indices = @transform_2, window_bounds = array<i64: 1, 1024>}, {pipeline_mode = #tpu.pipeline_mode<synchronous>, transform_indices = @transform_3, window_bounds = array<i64: 1024, 1024>}, {pipeline_mode = #tpu.pipeline_mode<synchronous>, transform_indices = @transform_4, window_bounds = array<i64: 3, 1024>}, {transform_indices = @transform_5, window_bounds = array<i64: 32, 1024>}]} {
    %c0 = arith.constant 0 : index
    %c0_0 = arith.constant 0 : index
    %0 = vector.load %arg1[%c0, %c0_0] : memref<32x64xf32, #tpu.memory_space<vmem>>, vector<32x64xf32>
    %1 = arith.truncf %0 : vector<32x64xf32> to vector<32x64xbf16>
    %c0_1 = arith.constant 0 : index
    %c0_2 = arith.constant 0 : index
    %2 = vector.load %arg2[%c0_1, %c0_2] : memref<64x1024xbf16, #tpu.memory_space<vmem>>, vector<64x1024xbf16>
    %cst = arith.constant dense<0.000000e+00> : vector<32x1024xf32>
    %3 = tpu.matmul %1, %2, %cst {dimension_numbers = #tpu.dot_dimension_numbers<[1], [0], [0], [1], [0, 0, 1, 1], [], []>} : vector<32x64xbf16>, vector<64x1024xbf16>, vector<32x1024xf32> -> vector<32x1024xf32>
    %c0_3 = arith.constant 0 : index
    %c0_4 = arith.constant 0 : index
    %4 = vector.load %arg3[%c0_3, %c0_4] : memref<1x1024xf32, #tpu.memory_space<vmem>>, vector<1x1024xf32>
    %5 = vector.broadcast %4 : vector<1x1024xf32> to vector<32x1024xf32>
    %6 = arith.addf %3, %5 : vector<32x1024xf32>
    %cst_5 = arith.constant 0.000000e+00 : f32
    %7 = vector.broadcast %cst_5 : f32 to vector<32x1024xf32>
    %8 = arith.maximumf %6, %7 : vector<32x1024xf32>
    %9 = arith.truncf %8 : vector<32x1024xf32> to vector<32x1024xbf16>
    %c0_6 = arith.constant 0 : index
    %c0_7 = arith.constant 0 : index
    %10 = vector.load %arg4[%c0_6, %c0_7] : memref<1024x1024xbf16, #tpu.memory_space<vmem>>, vector<1024x1024xbf16>
    %cst_8 = arith.constant dense<0.000000e+00> : vector<32x1024xf32>
    %11 = tpu.matmul %9, %10, %cst_8 {dimension_numbers = #tpu.dot_dimension_numbers<[1], [0], [0], [1], [0, 0, 1, 1], [], []>} : vector<32x1024xbf16>, vector<1024x1024xbf16>, vector<32x1024xf32> -> vector<32x1024xf32>
    %c0_9 = arith.constant 0 : index
    %c0_10 = arith.constant 0 : index
    %12 = vector.load %arg5[%c0_9, %c0_10] : memref<3x1024xf32, #tpu.memory_space<vmem>>, vector<1x1024xf32>
    %13 = vector.broadcast %12 : vector<1x1024xf32> to vector<32x1024xf32>
    %14 = arith.addf %11, %13 : vector<32x1024xf32>
    %cst_11 = arith.constant dense<0.000000e+00> : vector<32xf32>
    %15 = vector.multi_reduction <add>, %14, %cst_11 [1] : vector<32x1024xf32> to vector<32xf32>
    %16 = vector.shape_cast %15 : vector<32xf32> to vector<32x1xf32>
    %17 = arith.mulf %14, %14 : vector<32x1024xf32>
    %cst_12 = arith.constant dense<0.000000e+00> : vector<32xf32>
    %18 = vector.multi_reduction <add>, %17, %cst_12 [1] : vector<32x1024xf32> to vector<32xf32>
    %19 = vector.shape_cast %18 : vector<32xf32> to vector<32x1xf32>
    %cst_13 = arith.constant 9.765625E-4 : f32
    %20 = vector.broadcast %cst_13 : f32 to vector<32x1xf32>
    %21 = arith.mulf %16, %20 : vector<32x1xf32>
    %cst_14 = arith.constant 9.765625E-4 : f32
    %22 = vector.broadcast %cst_14 : f32 to vector<32x1xf32>
    %23 = arith.mulf %19, %22 : vector<32x1xf32>
    %24 = arith.mulf %21, %21 : vector<32x1xf32>
    %25 = arith.subf %23, %24 : vector<32x1xf32>
    %cst_15 = arith.constant 0.000000e+00 : f32
    %26 = vector.broadcast %cst_15 : f32 to vector<32x1xf32>
    %27 = arith.maximumf %25, %26 : vector<32x1xf32>
    %28 = vector.broadcast %21 : vector<32x1xf32> to vector<32x1024xf32>
    %29 = arith.subf %14, %28 : vector<32x1024xf32>
    %cst_16 = arith.constant 9.99999974E-6 : f32
    %30 = vector.broadcast %cst_16 : f32 to vector<32x1xf32>
    %31 = arith.addf %27, %30 : vector<32x1xf32>
    %32 = math.rsqrt %31 : vector<32x1xf32>
    %33 = vector.broadcast %32 : vector<32x1xf32> to vector<32x1024xf32>
    %34 = arith.mulf %29, %33 : vector<32x1024xf32>
    %c1 = arith.constant 1 : index
    %c0_17 = arith.constant 0 : index
    %35 = vector.load %arg5[%c1, %c0_17] : memref<3x1024xf32, #tpu.memory_space<vmem>>, vector<1x1024xf32>
    %36 = vector.broadcast %35 : vector<1x1024xf32> to vector<32x1024xf32>
    %37 = arith.mulf %34, %36 : vector<32x1024xf32>
    %c2 = arith.constant 2 : index
    %c0_18 = arith.constant 0 : index
    %38 = vector.load %arg5[%c2, %c0_18] : memref<3x1024xf32, #tpu.memory_space<vmem>>, vector<1x1024xf32>
    %39 = vector.broadcast %38 : vector<1x1024xf32> to vector<32x1024xf32>
    %40 = arith.addf %37, %39 : vector<32x1024xf32>
    %c0_19 = arith.constant 0 : index
    %c0_20 = arith.constant 0 : index
    %41 = vector.load %arg6[%c0_19, %c0_20] : memref<32x1024xf32, #tpu.memory_space<vmem>>, vector<32x1024xf32>
    tpu.vector_store %arg6[%c0_19, %c0_20], %40 {strides = array<i32>} : memref<32x1024xf32, #tpu.memory_space<vmem>>, vector<32x1024xf32>,
    return
  }
  func.func @transform_0(%arg0: i32) -> (i32, i32) {
    %c0_i32 = arith.constant 0 : i32
    %c0_i32_0 = arith.constant 0 : i32
    return %arg0, %c0_i32 : i32, i32
  }
  func.func @transform_1(%arg0: i32) -> (i32, i32) {
    %c0_i32 = arith.constant 0 : i32
    %c0_i32_0 = arith.constant 0 : i32
    %c0_i32_1 = arith.constant 0 : i32
    return %c0_i32, %c0_i32_0 : i32, i32
  }
  func.func @transform_2(%arg0: i32) -> (i32, i32) {
    %c0_i32 = arith.constant 0 : i32
    %c0_i32_0 = arith.constant 0 : i32
    %c0_i32_1 = arith.constant 0 : i32
    return %c0_i32, %c0_i32_0 : i32, i32
  }
  func.func @transform_3(%arg0: i32) -> (i32, i32) {
    %c0_i32 = arith.constant 0 : i32
    %c0_i32_0 = arith.constant 0 : i32
    %c0_i32_1 = arith.constant 0 : i32
    return %c0_i32, %c0_i32_0 : i32, i32
  }
  func.func @transform_4(%arg0: i32) -> (i32, i32) {
    %c0_i32 = arith.constant 0 : i32
    %c0_i32_0 = arith.constant 0 : i32
    %c0_i32_1 = arith.constant 0 : i32
    return %c0_i32, %c0_i32_0 : i32, i32
  }
  func.func @transform_5(%arg0: i32) -> (i32, i32) {
    %c0_i32 = arith.constant 0 : i32
    %c0_i32_0 = arith.constant 0 : i32
    return %arg0, %c0_i32 : i32, i32
  }
}

</mosaic_0001>

<bundles_post_ra>
// kernel: tpu_custom_call.1
= control target key start
LH: loop header
LB: loop body
LE: loop exit
PB: predicated region body
PF: predicated region fallthrough
CT: control target
= control target key end

     0   :  { %10 = vsyncpa [#allocation3], 0  ;;  %s7416_s0 = inlined_call_operand.hbm [shape: f32[64,64], index: 0, kind: input, shape index: {}]   ;;  %s7417_s1 = inlined_call_operand.hbm [shape: bf16[64,1024], index: 1, kind: input, shape index: {}]   ;;  %s7418_s2 = inlined_call_operand.hbm [shape: f32[1,1024], index: 2, kind: input, shape index: {}]   ;;  %s7419_s3 = inlined_call_operand.hbm [shape: bf16[1024,1024], index: 3, kind: input, shape index: {}]   ;;  %s7420_s4 = inlined_call_operand.hbm [shape: f32[3,1024], index: 4, kind: input, shape index: {}]   ;;  %s7421_s5 = inlined_call_operand.hbm [shape: f32[64,1024], index: 5, kind: output, shape index: {}]  }
   0x1   :  { %12 = vsyncpa [#allocation3 + $0x1], 0 }
   0x2   :  { %13 = vsyncpa [#allocation6], 0 }
   0x3   :  { %14 = vsyncpa [#allocation9], 0 }
   0x4   :  { %15 = vsyncpa [#allocation4], 0 }
   0x5   :  { %17 = vsyncpa [#allocation4 + $0x1], 0  ;;  %s6342_s18 = smov 0   ;;  %s6344_s19 = smov 0  }
   0x6   :  { %s6346_s20 = smov 0   ;;  %s6348_s21 = smov 0  }
   0x7 LB: > { %s6363_s22 = sadd.s32 4294967295, %s6297_s21   ;;  %s5273_s23 = sadd.s32 4294967294, %s6297_s21   ;;  %s6297_s21 = sphi %s6348_s21, %s7469_s21   ;;  %s6293_s20 = sphi %s6346_s20, %s7468_s20   ;;  %s6289_s19 = sphi %s6344_s19, %s7467_s19   ;;  %s6285_s18 = sphi %s6342_s18, %s7466_s18  }
   0x8   : > { %p43_p0 = scmp.ne.s32.totalorder %s6289_s19, %s6285_s18  ;;  %p7422_p1 = scmp.eq.s32.totalorder %s6363_s22, 0 }
   0x9   : > { %p157_p3 = scmp.eq.s32.totalorder %s5273_s23, 1  ;;  %p5274_p5 = scmp.ge.s32.totalorder %s6297_s21, 1 }
   0xa   : > { %p6372_p4 = por %p7422_p1, %p43_p0  ;;  %p164_p7 = scmp.lt.s32.totalorder %s6297_s21, 3 }
   0xb   : > { %p6377_p6 = por %p157_p3, %p43_p0  ;;  %s6299_s27 = smov [#allocation5]  }
   0xc   : > { %s7428_s24 = scalar_select %p6372_p4, 1, 0 }
   0xd   : > { %s7429_s25 = scalar_select %p6377_p6, 1, 0 }
   0xe   : > { %p6382_p8 = pnand %p5274_p5, %p164_p7  ;;  %s176_s28 = sshll.u32 %s6299_s27, 4  ;;  %s6386_s28 = int_to_ptr.vmem [resolvable:$true] %s176_s28 }
   0xf   : > { %s6300_s30 = smov [#allocation8]   ;;  %s6301_s7 = smov [#allocation7]  }
  0x10   : > { %s7430_s26 = scalar_select %p6382_p8, 1, 0 }
  0x11   : > { %p5999_p9 = pneg %p6382_p8  ;;  %s200_s6 = sshll.u32 %s6300_s30, 4  ;;  %s6397_s6 = int_to_ptr.vmem [resolvable:$true] %s200_s6 }
  0x12   : > { %s6399_s8 = sshll.u32 %s6301_s7, 4  ;;  %s6081_s11 = scalar_lea.hbm %s7417_s1, 4096  ;;  %s191_s8 = int_to_ptr.vmem [resolvable:$true] %s6399_s8 }
  0x13   : > { %p6393_p11 = pnand %p5999_p9, %p7422_p1  ;;  %p6082_p12 = scmp.ne.s32.totalorder %s7417_s1, %s6081_s11 }
  0x14   : > { %p6088_p5 = scmp.lt.u32.totalorder %s6081_s11, %s7417_s1 }
  0x15   : > { %p6409_p13 = pneg %p6393_p11 }
  0x17   : > { %p6084_p0 = pnand %p6409_p13, %p6082_p12 }
  0x19   : > { %p6085_p3 = pneg %p6084_p0 }
  0x1b   : > { %p6090_p7 = pnand %p6088_p5, %p6085_p3 }
  0x1d   : > { %6093 = shalt.err (!%p6090_p7)
}
  0x1e   : > { %s6094_s17 = scalar_lea.vmem %s6386_s28, 4096  ;;  %p6102_p2 = scmp.lt.s32.totalorder %s6386_s28, %s6386_s28 }
  0x1f   : > { %p6095_p9 = scmp.ne.s32.totalorder %s6386_s28, %s6094_s17  ;;  %p6103_p6 = scmp.lt.s32.totalorder %s6094_s17, %s6094_s17 }
  0x21   : > { %p6097_p10 = pnand %p6095_p9, %p6409_p13  ;;  %p6104_p12 = por %p6103_p6, %p6102_p2 }
  0x23   : > { %p6098_p1 = pneg %p6097_p10 }
  0x25   : > { %p6105_p0 = pnand %p6104_p12, %p6098_p1 }
  0x27   : > { %6108 = shalt.err (!%p6105_p0)
}
  0x28   : > { %s6302_s23 = smov 512   ;;  %s6303_s27 = smov 32  }
  0x29   : > { %6002 = dma.hbm_to_vmem [thread:$0]  (!%p6393_p11), %s7417_s1, 4096, %s6386_s28, [#allocation6], %s6302_s23, %s6302_s23, %s6303_s27  }
  0x2a   : > { %s6109_s11 = scalar_lea.hbm %s7419_s3, 65536 }
  0x2b   : > { %p6110_p2 = scmp.ne.s32.totalorder %s7419_s3, %s6109_s11  ;;  %p6116_p10 = scmp.lt.u32.totalorder %s6109_s11, %s7419_s3 }
  0x2d   : > { %p6112_p1 = pnand %p6110_p2, %p6409_p13 }
  0x2f   : > { %p6113_p6 = pneg %p6112_p1 }
  0x31   : > { %p6118_p3 = pnand %p6116_p10, %p6113_p6 }
  0x33   : > { %6121 = shalt.err (!%p6118_p3)
}
  0x34   : > { %s6122_s28 = scalar_lea.vmem %s6397_s6, 65536  ;;  %p6130_p12 = scmp.lt.s32.totalorder %s6397_s6, %s6397_s6 }
  0x35   : > { %p6123_p5 = scmp.ne.s32.totalorder %s6397_s6, %s6122_s28  ;;  %p6131_p0 = scmp.lt.s32.totalorder %s6122_s28, %s6122_s28 }
  0x37   : > { %p6125_p7 = pnand %p6123_p5, %p6409_p13  ;;  %p6132_p2 = por %p6131_p0, %p6130_p12 }
  0x39   : > { %p6126_p9 = pneg %p6125_p7 }
  0x3b   : > { %p6133_p1 = pnand %p6132_p2, %p6126_p9 }
  0x3d   : > { %6136 = shalt.err (!%p6133_p1)
}
  0x3e   : > { %6008 = dma.hbm_to_vmem [thread:$0]  (!%p6393_p11), %s7419_s3, 65536, %s6397_s6, [#allocation9], %s6302_s23, %s6302_s23, %s6303_s27  }
  0x3f   : > { %s6137_s10 = scalar_lea.hbm %s7418_s2, 128 }
  0x40   : > { %p6138_p6 = scmp.ne.s32.totalorder %s7418_s2, %s6137_s10  ;;  %p6144_p5 = scmp.lt.u32.totalorder %s6137_s10, %s7418_s2 }
  0x42   : > { %p6140_p10 = pnand %p6138_p6, %p6409_p13 }
  0x44   : > { %p6141_p3 = pneg %p6140_p10 }
  0x46   : > { %p6146_p7 = pnand %p6144_p5, %p6141_p3 }
  0x48   : > { %6149 = shalt.err (!%p6146_p7)
}
  0x49   : > { %s6150_s16 = scalar_lea.vmem %s191_s8, 128  ;;  %p6158_p2 = scmp.lt.s32.totalorder %s191_s8, %s191_s8 }
  0x4a   : > { %p6151_p9 = scmp.ne.s32.totalorder %s191_s8, %s6150_s16  ;;  %p6159_p1 = scmp.lt.s32.totalorder %s6150_s16, %s6150_s16 }
  0x4c   : > { %p6153_p12 = pnand %p6151_p9, %p6409_p13  ;;  %p6160_p4 = por %p6159_p1, %p6158_p2 }
  0x4e   : > { %p6154_p0 = pneg %p6153_p12 }
  0x50   : > { %p6161_p8 = pnand %p6160_p4, %p6154_p0 }
  0x52   : > { %6164 = shalt.err (!%p6161_p8)
}
  0x53   : > { %6005 = dma.hbm_to_vmem [thread:$0]  (!%p6393_p11), %s7418_s2, 128, %s191_s8, [#allocation6]  }
  0x54   : > { %s6304_s27 = smov [#allocation10]   ;;  %s6165_s7 = scalar_lea.hbm %s7420_s4, 512 }
  0x55   : > { %s214_s28 = sshll.u32 %s6304_s27, 4  ;;  %p6166_p6 = scmp.ne.s32.totalorder %s7420_s4, %s6165_s7  ;;  %s215_s28 = int_to_ptr.vmem [resolvable:$true] %s214_s28 }
  0x56   : > { %p6172_p10 = scmp.lt.u32.totalorder %s6165_s7, %s7420_s4 }
  0x57   : > { %p6168_p4 = pnand %p6166_p6, %p6409_p13 }
  0x59   : > { %p6169_p8 = pneg %p6168_p4 }
  0x5b   : > { %p6174_p3 = pnand %p6172_p10, %p6169_p8 }
  0x5d   : > { %6177 = shalt.err (!%p6174_p3)
}
  0x5e   : > { %s6178_s8 = scalar_lea.vmem %s215_s28, 512  ;;  %p6186_p12 = scmp.lt.s32.totalorder %s215_s28, %s215_s28 }
  0x5f   : > { %p6179_p5 = scmp.ne.s32.totalorder %s215_s28, %s6178_s8  ;;  %p6187_p0 = scmp.lt.s32.totalorder %s6178_s8, %s6178_s8 }
  0x61   : > { %p6181_p7 = pnand %p6179_p5, %p6409_p13  ;;  %p6188_p2 = por %p6187_p0, %p6186_p12 }
  0x63   : > { %p6182_p9 = pneg %p6181_p7 }
  0x65   : > { %p6189_p1 = pnand %p6188_p2, %p6182_p9 }
  0x67   : > { %6192 = shalt.err (!%p6189_p1)
}
  0x68   : > { %6011 = dma.hbm_to_vmem [thread:$0]  (!%p6393_p11), %s7420_s4, 512, %s215_s28, [#allocation9]  }
  0x69   : > { %s6491_s14 = sadd.s32 1, %s6297_s21   ;;  %s30_s16 = sadd.s32 1, %s6293_s20 }
  0x6a   : > { %s27_s29 = ssub.s32 %s6297_s21, %s6491_s14  ;;  %p37_p13 = scmp.ne.s32.totalorder %s6293_s20, %s6289_s19 }
  0x6b   : > { %p28_p6 = scmp.eq.s32.totalorder %s27_s29, 0  ;;  %p38_p4 = scmp.eq.s32.totalorder %s6297_s21, 0 }
  0x6c   : > { %p7433_p8 = scmp.eq.s32.totalorder %s6363_s22, 1  ;;  %p6024_p3 = scmp.lt.s32.totalorder %s6297_s21, 2 }
  0x6d   : > { %s6507_s23 = scalar_select %p28_p6, %s6293_s20, %s30_s16  }
  0x6e   : > { %p6501_p10 = por %p7433_p8, %p37_p13  ;;  %p39_p5 = por %p38_p4, %p37_p13 }
  0x6f   : > { %s225_s27 = sand.u32 1, %s6293_s20   ;;  %s5848_s28 = sshll.u32 %s6297_s21, 9 }
  0x70   : > { %s5280_s17 = sshll.u32 %s225_s27, 5  ;;  %s6514_s9 = scalar_lea.hbm %s7416_s0, %s5848_s28 }
  0x71   : > { %s229_s10 = scalar_lea.vmem [#allocation2], %s5280_s17  ;;  %p6518_p11 = pnand %p6024_p3, %p39_p5 }
  0x72   : > { %s236_s11 = sshll.u32 %s229_s10, 4  ;;  %s6522_s8 = scalar_lea.sflag [#allocation3], %s225_s27  ;;  %s6516_s11 = int_to_ptr.vmem [resolvable:$true] %s236_s11 }
  0x73   : > { %s6193_s13 = scalar_lea.hbm %s6514_s9, 512  ;;  %p6195_p9 = pneg %p6518_p11 }
  0x74   : > { %p6194_p7 = scmp.ne.s32.totalorder %s6514_s9, %s6193_s13  ;;  %s6198_s29 = scalar_lea.hbm %s7416_s0, 1024 }
  0x75   : > { %p6199_p2 = scmp.lt.u32.totalorder %s6514_s9, %s7416_s0  ;;  %p6200_p1 = scmp.lt.u32.totalorder %s6198_s29, %s6193_s13 }
  0x76   : > { %p6196_p12 = pnand %p6195_p9, %p6194_p7  ;;  %p6202_p6 = scmp.lt.u32.totalorder %s6193_s13, %s6514_s9 }
  0x77   : > { %p6201_p13 = por %p6200_p1, %p6199_p2 }
  0x78   : > { %p6197_p0 = pneg %p6196_p12 }
  0x79   : > { %p6203_p4 = por %p6202_p6, %p6201_p13 }
  0x7b   : > { %p6204_p8 = pnand %p6203_p4, %p6197_p0 }
  0x7d   : > { %6207 = shalt.err (!%p6204_p8)
}
  0x7e   : > { %s6208_s27 = scalar_lea.vmem %s6516_s11, 512  ;;  %s6305_s30 = smov [#allocation2]  }
  0x7f   : > { %p6209_p3 = scmp.ne.s32.totalorder %s6516_s11, %s6208_s27  ;;  %s6213_s7 = sshll.u32 %s6305_s30, 4  ;;  %s6214_s7 = int_to_ptr.vmem [resolvable:$false] %s6213_s7 }
  0x80   : > { %s6215_s10 = scalar_lea.vmem %s6214_s7, 1024  ;;  %p6216_p12 = scmp.lt.s32.totalorder %s6516_s11, %s6214_s7 }
  0x81   : > { %p6211_p5 = pnand %p6209_p3, %p6195_p9  ;;  %p6217_p2 = scmp.lt.s32.totalorder %s6215_s10, %s6208_s27 }
  0x83   : > { %p6212_p7 = pneg %p6211_p5  ;;  %p6218_p1 = por %p6217_p2, %p6216_p12 }
  0x85   : > { %p6219_p13 = pnand %p6218_p1, %p6212_p7 }
  0x87   : > { %6222 = shalt.err (!%p6219_p13)
}
  0x88   : > { %s6306_s13 = smov 128   ;;  %s6307_s15 = smov 8  }
  0x89   : > { %6015 = dma.hbm_to_vmem [thread:$0]  (!%p6518_p11), %s6514_s9, 512, %s6516_s11, %s6522_s8, %s6306_s13, %s6306_s13, %s6307_s15  }
  0x8a   : > { %p7436_p9 = scmp.ne.s32.totalorder %s7430_s26, 0 }
  0x8c   : > { %248 = sbr.rel (%p7436_p9) target bundleno = 1292 (0x50c), region = 40 }
  0x93   : > { %s6553_s16 = sand.u32 1, %s6289_s19   ;;  %p7437_p0 = scmp.ne.s32.totalorder %s7428_s24, 0 }
  0x94   : > { %s5284_s29 = sshll.u32 %s6553_s16, 5  ;;  %s251_s17 = scalar_lea.sflag [#allocation3], %s6553_s16 }
  0x95   : > { %s6557_s28 = scalar_lea.vmem [#allocation2], %s5284_s29 }
  0x96   : > { %6268 = dma.done.wait (%p7437_p0), %s251_s17, 512  }
  0x97   : > { %6270 = vsyncadd (%p7437_p0), %s251_s17, 4294966784  ;;  %p7438_p11 = scmp.eq.s32.totalorder %s6363_s22, 0 }
  0x99   : > { %6272 = dma.done.wait (%p7438_p11), [#allocation6], 4224   ;;  %p7439_p6 = pmov %p7438_p11 }
  0x9b   : > { %6274 = vsyncadd (%p7439_p6), [#allocation6], 4294963072  ;;  %p7440_p4 = pmov %p7439_p6 }
  0x9d   : > { %6276 = dma.done.wait (%p7440_p4), [#allocation9], 66048   ;;  %p7441_p8 = pmov %p7440_p4 }
  0x9e   : > { %v6308_v0 = vmov 0   ;;  %v306_v1 = vld [vmem:[#allocation5] sm:$0xff]  ;;  %v307_v10 = vld [vmem:[#allocation5 + $0x8] sm:$0xff]  ;;  %v308_v29 = vld [vmem:[#allocation5 + $0x10] sm:$0xff]  ;;  %vm540_vm0 = vcmask 523264   ;;  %s5289_s24 = sshll.u32 %s6553_s16, 8 }
  0x9f   : > { %6278 = vsyncadd (%p7441_p8), [#allocation9], 4294901248  ;;  %579 = vmatprep.mubr.bf16.mxu0 %v6308_v0  ;;  %632 = vmatprep.mubr.bf16.mxu1 %v6308_v0  ;;  %v310_v2 = vld [vmem:[#allocation5 + $0x20] sm:$0xff]  ;;  %v311_v11 = vld [vmem:[#allocation5 + $0x28] sm:$0xff]  ;;  %s7218_s26 = scalar_lea.vmem [#allocation11], %s5289_s24  ;;  %s5850_s9 = sshll.u32 %s6363_s22, 12 }
  0xa0   : > { %v314_v3 = vld [vmem:[#allocation5 + $0x40] sm:$0xff]  ;;  %v5291_v4 = vcombine.high %v306_v1, %v310_v2  ;;  %v5290_v5 = vcombine.low %v306_v1, %v310_v2  ;;  %v5293_v13 = vcombine.high %v307_v10, %v311_v11  ;;  %v5292_v14 = vcombine.low %v307_v10, %v311_v11  ;;  %v315_v15 = vld [vmem:[#allocation5 + $0x48] sm:$0xff]  ;;  %v312_v30 = vld [vmem:[#allocation5 + $0x30] sm:$0xff]  ;;  %s5162_s11 = sshll.u32 %s7218_s26, 4  ;;  %s7358_s8 = scalar_lea.hbm %s7421_s5, %s5850_s9  ;;  %s7360_s11 = int_to_ptr.vmem [resolvable:$true] %s5162_s11 }
  0xa1   : > { %v318_v6 = vld [vmem:[#allocation5 + $0x60] sm:$0xff]  ;;  %v319_v16 = vld [vmem:[#allocation5 + $0x68] sm:$0xff]  ;;  %v5295_v36 = vcombine.high %v308_v29, %v312_v30  ;;  %v316_v37 = vld [vmem:[#allocation5 + $0x50] sm:$0xff]  ;;  %v5294_v43 = vcombine.low %v308_v29, %v312_v30  ;;  %s5148_s27 = scalar_lea.sflag [#allocation4], %s6553_s16  ;;  %s6223_s30 = scalar_lea.vmem %s7360_s11, 4096 }
  0xa2   : > { %v5299_v7 = vcombine.high %v314_v3, %v318_v6  ;;  %v322_v8 = vld [vmem:[#allocation5 + $0x80] sm:$0xff]  ;;  %547 = vmatprep.subr.bf16.mxu0 %v5291_v4  ;;  %v5298_v12 = vcombine.low %v314_v3, %v318_v6  ;;  %v5301_v18 = vcombine.high %v315_v15, %v319_v16  ;;  %v323_v19 = vld [vmem:[#allocation5 + $0x88] sm:$0xff]  ;;  %600 = vmatprep.subr.bf16.mxu1 %v5293_v13  ;;  %v320_v38 = vld [vmem:[#allocation5 + $0x70] sm:$0xff]  ;;  %p6224_p3 = scmp.ne.s32.totalorder %s7360_s11, %s6223_s30  ;;  %s6309_s7 = smov [#allocation11]  }
  0xa3   : > { %v326_v9 = vld [vmem:[#allocation5 + $0xa0] sm:$0xff]  ;;  %548 = vmatpush1.bf16.msra.mxu0 %v5290_v5  ;;  %v327_v20 = vld [vmem:[#allocation5 + $0xa8] sm:$0xff]  ;;  %601 = vmatpush1.bf16.msra.mxu1 %v5292_v14  ;;  %v5300_v23 = vcombine.low %v315_v15, %v319_v16  ;;  %v309_v39 = vld [vmem:[#allocation5 + $0x18] sm:$0xff]  ;;  %v5303_v44 = vcombine.high %v316_v37, %v320_v38  ;;  %v5302_v53 = vcombine.low %v316_v37, %v320_v38  ;;  %s6227_s10 = sshll.u32 %s6309_s7, 4  ;;  %s6228_s10 = int_to_ptr.vmem [resolvable:$false] %s6227_s10 }
  0xa4   : > { %549 = vmatprep.subr.bf16.mxu0 %v5299_v7  ;;  %v5307_v17 = vcombine.high %v322_v8, %v326_v9  ;;  %v330_v21 = vld [vmem:[#allocation5 + $0xc0] sm:$0xff]  ;;  %v5306_v24 = vcombine.low %v322_v8, %v326_v9  ;;  %602 = vmatprep.subr.bf16.mxu1 %v5301_v18  ;;  %v5309_v25 = vcombine.high %v323_v19, %v327_v20  ;;  %v331_v27 = vld [vmem:[#allocation5 + $0xc8] sm:$0xff]  ;;  %v313_v40 = vld [vmem:[#allocation5 + $0x38] sm:$0xff]  ;;  %p6225_p5 = pnand %p6224_p3, %p6501_p10  ;;  %s6229_s13 = scalar_lea.vmem %s6228_s10, 8192 }
  0xa5   : > { %v334_v22 = vld [vmem:[#allocation5 + $0xe0] sm:$0xff]  ;;  %v335_v28 = vld [vmem:[#allocation5 + $0xe8] sm:$0xff]  ;;  %v5308_v31 = vcombine.low %v323_v19, %v327_v20  ;;  %v5297_v45 = vcombine.high %v309_v39, %v313_v40  ;;  %v317_v46 = vld [vmem:[#allocation5 + $0x58] sm:$0xff]  ;;  %v5296_v50 = vcombine.low %v309_v39, %v313_v40  ;;  %p6230_p12 = scmp.lt.s32.totalorder %s7360_s11, %s6228_s10  ;;  %p6231_p2 = scmp.lt.s32.totalorder %s6229_s13, %s6223_s30 }
  0xa6   : > { %v5315_v26 = vcombine.high %v330_v21, %v334_v22  ;;  %v5314_v32 = vcombine.low %v330_v21, %v334_v22  ;;  %v300_v33 = vld [vmem:[%s6557_s28] sm:$0xff]  ;;  %v301_v34 = vld [vmem:[%s6557_s28 + $0x8] sm:$0xff]  ;;  %v5317_v35 = vcombine.high %v331_v27, %v335_v28  ;;  %v5316_v42 = vcombine.low %v331_v27, %v335_v28  ;;  %v321_v47 = vld [vmem:[#allocation5 + $0x78] sm:$0xff]  ;;  %p6226_p7 = pneg %p6225_p5 }
  0xa7   : > { %550 = vmatpush1.bf16.msra.mxu0 %v5298_v12  ;;  %603 = vmatpush1.bf16.msra.mxu1 %v5300_v23  ;;  %v6575_v41 = vpack.c.bf16 %v301_v34, %v300_v33  ;;  %v324_v48 = vld [vmem:[#allocation5 + $0x90] sm:$0xff]  ;;  %v303_v52 = vld [vmem:[%s6557_s28 + $0x18] sm:$0xff]  ;;  %v5305_v54 = vcombine.high %v317_v46, %v321_v47  ;;  %v5304_v61 = vcombine.low %v317_v46, %v321_v47  ;;  %v807_v4 = vld [vmem:[#allocation8] sm:$0xff]  ;;  %p6232_p1 = por %p6231_p2, %p6230_p12 }
  0xa8   : > { %551 = vmatprep.subr.bf16.mxu0 %v5307_v17  ;;  %604 = vmatprep.subr.bf16.mxu1 %v5309_v25  ;;  %v328_v49 = vld [vmem:[#allocation5 + $0xb0] sm:$0xff]  ;;  %v325_v58 = vld [vmem:[#allocation5 + $0x98] sm:$0xff]  ;;  %v811_v5 = vld [vmem:[#allocation8 + $0x20] sm:$0xff] }
  0xa9   : > { %v302_v51 = vld [vmem:[%s6557_s28 + $0x10] sm:$0xff]  ;;  %v5311_v55 = vcombine.high %v324_v48, %v328_v49  ;;  %v329_v59 = vld [vmem:[#allocation5 + $0xb8] sm:$0xff]  ;;  %v5310_v62 = vcombine.low %v324_v48, %v328_v49  ;;  %v5331_v9 = vcombine.high %v807_v4, %v811_v5  ;;  %v815_v13 = vld [vmem:[#allocation8 + $0x40] sm:$0xff]  ;;  %v5330_v16 = vcombine.low %v807_v4, %v811_v5  ;;  %p6233_p13 = pnand %p6232_p1, %p6226_p7 }
  0xaa   : > { %v332_v56 = vld [vmem:[#allocation5 + $0xd0] sm:$0xff]  ;;  %v6584_v60 = vpack.c.bf16 %v303_v52, %v302_v51  ;;  %v5313_v1 = vcombine.high %v325_v58, %v329_v59  ;;  %v333_v2 = vld [vmem:[#allocation5 + $0xd8] sm:$0xff]  ;;  %v5312_v6 = vcombine.low %v325_v58, %v329_v59  ;;  %v819_v14 = vld [vmem:[#allocation8 + $0x60] sm:$0xff] }
  0xab   : > { %552 = vmatpush1.bf16.msra.mxu0 %v5306_v24  ;;  %605 = vmatpush1.bf16.msra.mxu1 %v5308_v31  ;;  %v336_v57 = vld [vmem:[#allocation5 + $0xf0] sm:$0xff]  ;;  %v337_v3 = vld [vmem:[#allocation5 + $0xf8] sm:$0xff]  ;;  %v5339_v19 = vcombine.high %v815_v13, %v819_v14  ;;  %v823_v21 = vld [vmem:[#allocation8 + $0x80] sm:$0xff]  ;;  %v5338_v24 = vcombine.low %v815_v13, %v819_v14 }
  0xac   : > { %553 = vmatprep.subr.bf16.mxu0 %v5315_v26  ;;  %606 = vmatprep.subr.bf16.mxu1 %v5317_v35  ;;  %v5319_v63 = vcombine.high %v332_v56, %v336_v57  ;;  %v5318_v7 = vcombine.low %v332_v56, %v336_v57  ;;  %v5321_v8 = vcombine.high %v333_v2, %v337_v3  ;;  %v808_v10 = vld [vmem:[#allocation8 + $0x8] sm:$0xff]  ;;  %v827_v22 = vld [vmem:[#allocation8 + $0xa0] sm:$0xff] }
  0xad   : > { %v812_v11 = vld [vmem:[#allocation8 + $0x28] sm:$0xff]  ;;  %v5320_v12 = vcombine.low %v333_v2, %v337_v3  ;;  %v5347_v27 = vcombine.high %v823_v21, %v827_v22  ;;  %v831_v29 = vld [vmem:[#allocation8 + $0xc0] sm:$0xff] }
  0xae   : > { %v5333_v15 = vcombine.high %v808_v10, %v812_v11  ;;  %v816_v17 = vld [vmem:[#allocation8 + $0x48] sm:$0xff]  ;;  %v5332_v20 = vcombine.low %v808_v10, %v812_v11  ;;  %v835_v30 = vld [vmem:[#allocation8 + $0xe0] sm:$0xff] }
  0xaf   : > { %554 = vmatpush1.bf16.msra.mxu0 %v5314_v32  ;;  %607 = vmatpush1.bf16.msra.mxu1 %v5316_v42  ;;  %v820_v18 = vld [vmem:[#allocation8 + $0x68] sm:$0xff]  ;;  %v5346_v32 = vcombine.low %v823_v21, %v827_v22  ;;  %v5355_v35 = vcombine.high %v831_v29, %v835_v30  ;;  %v839_v37 = vld [vmem:[#allocation8 + $0x100] sm:$0xff]  ;;  %v5354_v40 = vcombine.low %v831_v29, %v835_v30 }
  0xb0   : > { %653 = vmatprep.subr.bf16.mxu0 %v5295_v36  ;;  %706 = vmatprep.subr.bf16.mxu1 %v5297_v45  ;;  %v5341_v23 = vcombine.high %v816_v17, %v820_v18  ;;  %v824_v25 = vld [vmem:[#allocation8 + $0x88] sm:$0xff]  ;;  %v5340_v28 = vcombine.low %v816_v17, %v820_v18  ;;  %v843_v38 = vld [vmem:[#allocation8 + $0x120] sm:$0xff] }
  0xb1   : > { %v828_v26 = vld [vmem:[#allocation8 + $0xa8] sm:$0xff]  ;;  %v5363_v42 = vcombine.high %v839_v37, %v843_v38  ;;  %v851_v45 = vld [vmem:[#allocation8 + $0x160] sm:$0xff]  ;;  %v5362_v47 = vcombine.low %v839_v37, %v843_v38 }
  0xb2   : > { %5322 = vmatmul.mubr.msk.bf16.vlgmr.msra.gmra.mrb[0].mxu0 %vm540_vm0, %v6575_v41  ;;  %5324 = vmatmul.mubr.msk.bf16.vlgmr.msra.gmra.mrb[0].mxu1 %vm540_vm0, %v6575_v41  ;;  %v5349_v31 = vcombine.high %v824_v25, %v828_v26  ;;  %v832_v33 = vld [vmem:[#allocation8 + $0xc8] sm:$0xff]  ;;  %v5348_v36 = vcombine.low %v824_v25, %v828_v26  ;;  %v855_v52 = vld [vmem:[#allocation8 + $0x180] sm:$0xff] }
  0xb3   : > { %589 = vmatprep.mubr.bf16.mxu0 %v6308_v0  ;;  %654 = vmatpush1.bf16.msra.mxu0 %v5294_v43  ;;  %v836_v34 = vld [vmem:[#allocation8 + $0xe8] sm:$0xff]  ;;  %v871_v5 = vld [vmem:[#allocation8 + $0x200] sm:$0xff] }
  0xb4   : > { %655 = vmatprep.subr.bf16.mxu0 %v5303_v44  ;;  %642 = vmatprep.mubr.bf16.mxu1 %v6308_v0  ;;  %v5357_v39 = vcombine.high %v832_v33, %v836_v34  ;;  %v5356_v43 = vcombine.low %v832_v33, %v836_v34  ;;  %v847_v44 = vld [vmem:[#allocation8 + $0x140] sm:$0xff]  ;;  %v848_v48 = vld [vmem:[#allocation8 + $0x148] sm:$0xff] }
  0xb5   : > { %707 = vmatpush1.bf16.msra.mxu1 %v5296_v50  ;;  %v852_v49 = vld [vmem:[#allocation8 + $0x168] sm:$0xff]  ;;  %v5371_v50 = vcombine.high %v847_v44, %v851_v45  ;;  %v879_v13 = vld [vmem:[#allocation8 + $0x240] sm:$0xff] }
  0xb6   : > { %708 = vmatprep.subr.bf16.mxu1 %v5305_v54  ;;  %v5373_v54 = vcombine.high %v848_v48, %v852_v49  ;;  %v856_v56 = vld [vmem:[#allocation8 + $0x188] sm:$0xff]  ;;  %v5372_v59 = vcombine.low %v848_v48, %v852_v49  ;;  %v883_v14 = vld [vmem:[#allocation8 + $0x260] sm:$0xff] }
  0xb7   : > { %656 = vmatpush1.bf16.msra.mxu0 %v5302_v53  ;;  %v859_v53 = vld [vmem:[#allocation8 + $0x1a0] sm:$0xff]  ;;  %v860_v57 = vld [vmem:[#allocation8 + $0x1a8] sm:$0xff] }
  0xb8   : > { %657 = vmatprep.subr.bf16.mxu0 %v5311_v55  ;;  %v5370_v55 = vcombine.low %v847_v44, %v851_v45  ;;  %v5379_v58 = vcombine.high %v855_v52, %v859_v53  ;;  %v868_v2 = vld [vmem:[#allocation8 + $0x1e8] sm:$0xff]  ;;  %v5380_v4 = vcombine.low %v856_v56, %v860_v57  ;;  %v887_v21 = vld [vmem:[#allocation8 + $0x280] sm:$0xff] }
  0xb9   : > { %709 = vmatpush1.bf16.msra.mxu1 %v5304_v61  ;;  %v867_v61 = vld [vmem:[#allocation8 + $0x1e0] sm:$0xff]  ;;  %v876_v10 = vld [vmem:[#allocation8 + $0x228] sm:$0xff] }
  0xba   : > { %5323 = vmatmul.mubr.msk.bf16.gmra.mrb[4].mxu0 %vm540_vm0, %v6584_v60  ;;  %710 = vmatprep.subr.bf16.mxu1 %v5313_v1  ;;  %v864_v1 = vld [vmem:[#allocation8 + $0x1c8] sm:$0xff]  ;;  %v891_v22 = vld [vmem:[#allocation8 + $0x2a0] sm:$0xff] }
  0xbb   : > { %658 = vmatpush1.bf16.msra.mxu0 %v5310_v62  ;;  %685 = vmatprep.mubr.bf16.mxu0 %v6308_v0  ;;  %v5381_v62 = vcombine.high %v856_v56, %v860_v57  ;;  %v880_v17 = vld [vmem:[#allocation8 + $0x248] sm:$0xff]  ;;  %v895_v29 = vld [vmem:[#allocation8 + $0x2c0] sm:$0xff] }
  0xbc   : > { %659 = vmatprep.subr.bf16.mxu0 %v5319_v63  ;;  %5325 = vmatmul.mubr.msk.bf16.gmra.mrb[4].mxu1 %vm540_vm0, %v6584_v60  ;;  %v5378_v63 = vcombine.low %v855_v52, %v859_v53  ;;  %v884_v18 = vld [vmem:[#allocation8 + $0x268] sm:$0xff]  ;;  %v899_v30 = vld [vmem:[#allocation8 + $0x2e0] sm:$0xff] }
  0xbd   : > { %711 = vmatpush1.bf16.msra.mxu1 %v5312_v6  ;;  %738 = vmatprep.mubr.bf16.mxu1 %v6308_v0  ;;  %v875_v6 = vld [vmem:[#allocation8 + $0x220] sm:$0xff]  ;;  %v888_v25 = vld [vmem:[#allocation8 + $0x288] sm:$0xff] }
  0xbe   : > { %712 = vmatprep.subr.bf16.mxu1 %v5321_v8  ;;  %v5395_v11 = vcombine.high %v871_v5, %v875_v6  ;;  %v892_v26 = vld [vmem:[#allocation8 + $0x2a8] sm:$0xff]  ;;  %v903_v37 = vld [vmem:[#allocation8 + $0x300] sm:$0xff] }
  0xbf   : > { %660 = vmatpush1.bf16.msra.mxu0 %v5318_v7  ;;  %v5389_v7 = vcombine.high %v864_v1, %v868_v2  ;;  %v896_v33 = vld [vmem:[#allocation8 + $0x2c8] sm:$0xff]  ;;  %v907_v38 = vld [vmem:[#allocation8 + $0x320] sm:$0xff] }
  0xc0   : > { %3921 = vmatprep.subr.bf16.mxu0 %v5331_v9  ;;  %v872_v9 = vld [vmem:[#allocation8 + $0x208] sm:$0xff]  ;;  %v911_v44 = vld [vmem:[#allocation8 + $0x340] sm:$0xff] }
  0xc1   : > { %713 = vmatpush1.bf16.msra.mxu1 %v5320_v12  ;;  %v5388_v12 = vcombine.low %v864_v1, %v868_v2  ;;  %v900_v34 = vld [vmem:[#allocation8 + $0x2e8] sm:$0xff]  ;;  %v915_v45 = vld [vmem:[#allocation8 + $0x360] sm:$0xff] }
  0xc2   : > { %5326 = vmatmul.mubr.msk.bf16.vlgmr.msra.gmra.mrb[8].mxu0 %vm540_vm0, %v6575_v41  ;;  %4133 = vmatprep.subr.bf16.mxu1 %v5333_v15  ;;  %v5397_v15 = vcombine.high %v872_v9, %v876_v10  ;;  %v912_v48 = vld [vmem:[#allocation8 + $0x348] sm:$0xff]  ;;  %v5434_v53 = vcombine.low %v911_v44, %v915_v45  ;;  %v923_v56 = vld [vmem:[#allocation8 + $0x3a0] sm:$0xff] }
  0xc3   : > { %695 = vmatprep.mubr.bf16.mxu0 %v6308_v0  ;;  %3922 = vmatpush1.bf16.msra.mxu0 %v5330_v16  ;;  %v5394_v16 = vcombine.low %v871_v5, %v875_v6  ;;  %v916_v49 = vld [vmem:[#allocation8 + $0x368] sm:$0xff]  ;;  %v931_v1 = vld [vmem:[#allocation8 + $0x3e0] sm:$0xff] }
  0xc4   : > { %5328 = vmatmul.mubr.msk.bf16.vlgmr.msra.gmra.mrb[8].mxu1 %vm540_vm0, %v6575_v41  ;;  %3923 = vmatprep.subr.bf16.mxu0 %v5339_v19  ;;  %v844_v41 = vld [vmem:[#allocation8 + $0x128] sm:$0xff]  ;;  %v5403_v19 = vcombine.high %v879_v13, %v883_v14  ;;  %v5437_v52 = vcombine.high %v912_v48, %v916_v49 }
  0xc5   : > { %4134 = vmatpush1.bf16.msra.mxu1 %v5332_v20  ;;  %748 = vmatprep.mubr.bf16.mxu1 %v6308_v0  ;;  %v840_v0 = vld [vmem:[#allocation8 + $0x108] sm:$0xff]  ;;  %v5396_v20 = vcombine.low %v872_v9, %v876_v10  ;;  %v6605_v9 = vld [vmem:[#allocation8 + $0x420] sm:$0xff] }
  0xc6   : > { %4135 = vmatprep.subr.bf16.mxu1 %v5341_v23  ;;  %v5365_v46 = vcombine.high %v840_v0, %v844_v41  ;;  %v5364_v51 = vcombine.low %v840_v0, %v844_v41  ;;  %v5405_v23 = vcombine.high %v880_v17, %v884_v18  ;;  %v904_v0 = vld [vmem:[#allocation8 + $0x308] sm:$0xff] }
  0xc7   : > { %3924 = vmatpush1.bf16.msra.mxu0 %v5338_v24  ;;  %v5402_v24 = vcombine.low %v879_v13, %v883_v14  ;;  %v908_v41 = vld [vmem:[#allocation8 + $0x328] sm:$0xff] }
  0xc8   : > { %3925 = vmatprep.subr.bf16.mxu0 %v5347_v27  ;;  %v5411_v27 = vcombine.high %v887_v21, %v891_v22  ;;  %v920_v57 = vld [vmem:[#allocation8 + $0x388] sm:$0xff] }
  0xc9   : > { %4136 = vmatpush1.bf16.msra.mxu1 %v5340_v28  ;;  %v5404_v28 = vcombine.low %v880_v17, %v884_v18  ;;  %v928_v2 = vld [vmem:[#allocation8 + $0x3c8] sm:$0xff] }
  0xca   : > { %5327 = vmatmul.mubr.msk.bf16.gmra.mrb[12].mxu0 %vm540_vm0, %v6584_v60  ;;  %4137 = vmatprep.subr.bf16.mxu1 %v5349_v31  ;;  %v5413_v31 = vcombine.high %v888_v25, %v892_v26  ;;  %v6607_v10 = vld [vmem:[#allocation8 + $0x408] sm:$0xff] }
  0xcb   : > { %3926 = vmatpush1.bf16.msra.mxu0 %v5346_v32  ;;  %v5410_v32 = vcombine.low %v887_v21, %v891_v22 }
  0xcc   : > { %3927 = vmatprep.subr.bf16.mxu0 %v5355_v35  ;;  %5329 = vmatmul.mubr.msk.bf16.gmra.mrb[12].mxu1 %vm540_vm0, %v6584_v60  ;;  %v863_v60 = vld [vmem:[#allocation8 + $0x1c0] sm:$0xff]  ;;  %v5419_v35 = vcombine.high %v895_v29, %v899_v30 }
  0xcd   : > { %4138 = vmatpush1.bf16.msra.mxu1 %v5348_v36  ;;  %v5387_v3 = vcombine.high %v863_v60, %v867_v61  ;;  %v5386_v8 = vcombine.low %v863_v60, %v867_v61  ;;  %v5412_v36 = vcombine.low %v888_v25, %v892_v26 }
  0xce   : > { %4139 = vmatprep.subr.bf16.mxu1 %v5357_v39  ;;  %v5421_v39 = vcombine.high %v896_v33, %v900_v34 }
  0xcf   : > { %3928 = vmatpush1.bf16.msra.mxu0 %v5354_v40  ;;  %v5418_v40 = vcombine.low %v895_v29, %v899_v30 }
  0xd0   : > { %3929 = vmatprep.subr.bf16.mxu0 %v5363_v42  ;;  %v5427_v42 = vcombine.high %v903_v37, %v907_v38 }
  0xd1   : > { %4140 = vmatpush1.bf16.msra.mxu1 %v5356_v43  ;;  %v5420_v43 = vcombine.low %v896_v33, %v900_v34 }
  0xd2   : > { %4141 = vmatprep.subr.bf16.mxu1 %v5365_v46  ;;  %v5429_v46 = vcombine.high %v904_v0, %v908_v41 }
  0xd3   : > { %3930 = vmatpush1.bf16.msra.mxu0 %v5362_v47  ;;  %v5426_v47 = vcombine.low %v903_v37, %v907_v38 }
  0xd4   : > { %3931 = vmatprep.subr.bf16.mxu0 %v5371_v50  ;;  %v5435_v50 = vcombine.high %v911_v44, %v915_v45  ;;  %v6653_v45 = vld [vmem:[#allocation8 + $0x448] sm:$0xff] }
  0xd5   : > { %4142 = vmatpush1.bf16.msra.mxu1 %v5364_v51  ;;  %v5428_v51 = vcombine.low %v904_v0, %v908_v41  ;;  %v6650_v0 = vld [vmem:[#allocation8 + $0x460] sm:$0xff] }
  0xd6   : > { %4143 = vmatprep.subr.bf16.mxu1 %v5373_v54  ;;  %v5436_v54 = vcombine.low %v912_v48, %v916_v49 }
  0xd7   : > { %3932 = vmatpush1.bf16.msra.mxu0 %v5370_v55  ;;  %v919_v55 = vld [vmem:[#allocation8 + $0x380] sm:$0xff] }
  0xd8   : > { %3933 = vmatprep.subr.bf16.mxu0 %v5379_v58  ;;  %v5443_v58 = vcombine.high %v919_v55, %v923_v56  ;;  %v5442_v60 = vcombine.low %v919_v55, %v923_v56 }
  0xd9   : > { %4144 = vmatpush1.bf16.msra.mxu1 %v5372_v59  ;;  %v924_v59 = vld [vmem:[#allocation8 + $0x3a8] sm:$0xff] }
  0xda   : > { %4145 = vmatprep.subr.bf16.mxu1 %v5381_v62  ;;  %v5444_v61 = vcombine.low %v920_v57, %v924_v59  ;;  %v5445_v62 = vcombine.high %v920_v57, %v924_v59  ;;  %v6666_v59 = vld [vmem:[#allocation8 + $0x4a0] sm:$0xff] }
  0xdb   : > { %3934 = vmatpush1.bf16.msra.mxu0 %v5378_v63  ;;  %v927_v63 = vld [vmem:[#allocation8 + $0x3c0] sm:$0xff] }
  0xdc   : > { %3935 = vmatprep.subr.bf16.mxu0 %v5387_v3  ;;  %v932_v3 = vld [vmem:[#allocation8 + $0x3e8] sm:$0xff]  ;;  %v5451_v5 = vcombine.high %v927_v63, %v931_v1 }
  0xdd   : > { %4146 = vmatpush1.bf16.msra.mxu1 %v5380_v4  ;;  %v5450_v4 = vcombine.low %v927_v63, %v931_v1  ;;  %v5452_v6 = vcombine.low %v928_v2, %v932_v3 }
  0xde   : > { %4147 = vmatprep.subr.bf16.mxu1 %v5389_v7  ;;  %v5453_v7 = vcombine.high %v928_v2, %v932_v3  ;;  %v6675_v2 = vld [vmem:[#allocation8 + $0x488] sm:$0xff] }
  0xdf   : > { %3936 = vmatpush1.bf16.msra.mxu0 %v5386_v8  ;;  %v6603_v8 = vld [vmem:[#allocation8 + $0x400] sm:$0xff]  ;;  %v6677_v3 = vld [vmem:[#allocation8 + $0x4a8] sm:$0xff] }
  0xe0   : > { %3937 = vmatprep.subr.bf16.mxu0 %v5395_v11  ;;  %v5459_v11 = vcombine.high %v6603_v8, %v6605_v9  ;;  %v5458_v13 = vcombine.low %v6603_v8, %v6605_v9 }
  0xe1   : > { %4148 = vmatpush1.bf16.msra.mxu1 %v5388_v12  ;;  %v6611_v12 = vld [vmem:[#allocation8 + $0x428] sm:$0xff] }
  0xe2   : > { %4149 = vmatprep.subr.bf16.mxu1 %v5397_v15  ;;  %v5460_v14 = vcombine.low %v6607_v10, %v6611_v12  ;;  %v5461_v15 = vcombine.high %v6607_v10, %v6611_v12 }
  0xe3   : > { %3938 = vmatpush1.bf16.msra.mxu0 %v5394_v16  ;;  %v340_v16 = vlaneseq }
  0xe4   : > { %3939 = vmatprep.subr.bf16.mxu0 %v5403_v19  ;;  %v6624_v19 = vld [vmem:[#allocation7] sm:$0xff] }
  0xe5   : > { %4150 = vmatpush1.bf16.msra.mxu1 %v5396_v20  ;;  %v6619_v17 = vshrl.u32 %v340_v16, 7 }
  0xe6   : > { %4151 = vmatprep.subr.bf16.mxu1 %v5405_v23 }
  0xe7   : > { %3940 = vmatpush1.bf16.msra.mxu0 %v5402_v24  ;;  %v6622_v18 = vsub.s32 0, %v6619_v17  ;;  %v6627_v20 = vsub.s32 1, %v6619_v17  ;;  %v6630_v21 = vsub.s32 2, %v6619_v17  ;;  %v6635_v23 = vsub.s32 3, %v6619_v17 }
  0xe8   : > { %3941 = vmatprep.subr.bf16.mxu0 %v5411_v27  ;;  %v6669_v63 = vsub.s32 4, %v6619_v17 }
  0xe9   : > { %4152 = vmatpush1.bf16.msra.mxu1 %v5404_v28  ;;  %v343_v22 = vrot.slane %v6624_v19, %v6622_v18  ;;  %v347_v24 = vrot.slane %v6624_v19, %v6627_v20  ;;  %v6641_v26 = vrot.slane %v6624_v19, %v6630_v21  ;;  %v6645_v29 = vrot.slane %v6624_v19, %v6635_v23 }
  0xea   : > { %4153 = vmatprep.subr.bf16.mxu1 %v5413_v31  ;;  %v6705_v12 = vrot.slane %v6624_v19, %v6669_v63 }
  0xeb   : > { %3942 = vmatpush1.bf16.msra.mxu0 %v5410_v32 }
  0xec   : > { %3943 = vmatprep.subr.bf16.mxu0 %v5419_v35 }
  0xed   : > { %4154 = vmatpush1.bf16.msra.mxu1 %v5412_v36 }
  0xee   : > { %4155 = vmatprep.subr.bf16.mxu1 %v5421_v39 }
  0xef   : > { %3944 = vmatpush1.bf16.msra.mxu0 %v5418_v40  ;;  %v6648_v40 = vld [vmem:[#allocation8 + $0x440] sm:$0xff] }
  0xf0   : > { %3945 = vmatprep.subr.bf16.mxu0 %v5427_v42  ;;  %v5466_v1 = vcombine.low %v6648_v40, %v6650_v0 }
  0xf1   : > { %4156 = vmatpush1.bf16.msra.mxu1 %v5420_v43 }
  0xf2   : > { %4157 = vmatprep.subr.bf16.mxu1 %v5429_v46  ;;  %v948_v46 = vld [vmem:[#allocation8 + $0x468] sm:$0xff] }
  0xf3   : > { %3946 = vmatpush1.bf16.msra.mxu0 %v5426_v47  ;;  %v5469_v57 = vcombine.high %v6653_v45, %v948_v46 }
  0xf4   : > { %3947 = vmatprep.subr.bf16.mxu0 %v5435_v50 }
  0xf5   : > { %4158 = vmatpush1.bf16.msra.mxu1 %v5428_v51 }
  0xf6   : > { %4159 = vmatprep.subr.bf16.mxu1 %v5437_v52 }
  0xf7   : > { %3948 = vmatpush1.bf16.msra.mxu0 %v5434_v53 }
  0xf8   : > { %3949 = vmatprep.subr.bf16.mxu0 %v5443_v58  ;;  %v6664_v58 = vld [vmem:[#allocation8 + $0x480] sm:$0xff] }
  0xf9   : > { %4160 = vmatpush1.bf16.msra.mxu1 %v5436_v54  ;;  %v5467_v54 = vcombine.high %v6648_v40, %v6650_v0 }
  0xfa   : > { %4161 = vmatprep.subr.bf16.mxu1 %v5445_v62 }
  0xfb   : > { %3950 = vmatpush1.bf16.msra.mxu0 %v5442_v60 }
  0xfc   : > { %3951 = vmatprep.subr.bf16.mxu0 %v5451_v5 }
  0xfd   : > { %4162 = vmatpush1.bf16.msra.mxu1 %v5444_v61 }
  0xfe   : > { %4163 = vmatprep.subr.bf16.mxu1 %v5453_v7  ;;  %v6682_v7 = vsub.s32 5, %v6619_v17 }
  0xff   : > { %3952 = vmatpush1.bf16.msra.mxu0 %v5450_v4 }
 0x100   : > { %3974 = vmatprep.subr.bf16.mxu0 %v5459_v11  ;;  %v5468_v11 = vcombine.low %v6653_v45, %v948_v46  ;;  %v6710_v40 = vrot.slane %v6624_v19, %v6682_v7 }
 0x101   : > { %4164 = vmatpush1.bf16.msra.mxu1 %v5452_v6 }
 0x102   : > { %4186 = vmatprep.subr.bf16.mxu1 %v5461_v15 }
 0x185   : > { %v581_v25 = vpop.f32.mrb[0].mxu0  ;;  %v634_v34 = vpop.f32.mrb[0].mxu1 }
 0x186   : > { %v582_v27 = vadd.f32 %v581_v25, %v343_v22  ;;  %v583_v28 = vpop.f32.mrb[1].mxu0  ;;  %v635_v36 = vadd.f32 %v634_v34, %v6641_v26  ;;  %v636_v37 = vpop.f32.mrb[1].mxu1  ;;  %v5477_v34 = vcombine.high %v6675_v2, %v6677_v3 }
 0x187   : > { %v584_v30 = vadd.f32 %v583_v28, %v347_v24  ;;  %v585_v31 = vpop.f32.mrb[2].mxu0  ;;  %v637_v41 = vadd.f32 %v636_v37, %v6645_v29  ;;  %v638_v42 = vpop.f32.mrb[2].mxu1 }
 0x188   : > { %v586_v32 = vadd.f32 %v585_v31, %v343_v22  ;;  %v587_v33 = vpop.f32.mrb[3].mxu0  ;;  %v759_v38 = vmax.f32 %v582_v27, 0.0  ;;  %v761_v47 = vmax.f32 %v635_v36, 0.0  ;;  %v639_v48 = vadd.f32 %v638_v42, %v6641_v26  ;;  %v640_v49 = vpop.f32.mrb[3].mxu1 }
 0x189   : > { %v588_v35 = vadd.f32 %v587_v33, %v347_v24  ;;  %v760_v43 = vmax.f32 %v584_v30, 0.0  ;;  %v762_v51 = vmax.f32 %v637_v41, 0.0  ;;  %v641_v52 = vadd.f32 %v640_v49, %v6645_v29  ;;  %v967_v49 = vld [vmem:[#allocation8 + $0x500] sm:$0xff] }
 0x18a   : > { %v767_v39 = vmax.f32 %v586_v32, 0.0  ;;  %v769_v56 = vmax.f32 %v639_v48, 0.0  ;;  %v5475_v30 = vcombine.high %v6664_v58, %v6666_v59 }
 0x18b   : > { %v768_v44 = vmax.f32 %v588_v35, 0.0  ;;  %v770_v62 = vmax.f32 %v641_v52, 0.0  ;;  %v6700_v35 = vld [vmem:[#allocation8 + $0x4c0] sm:$0xff] }
 0x18c   : > { %v6656_v50 = vpack.c.bf16 %v767_v39, %v759_v38  ;;  %v6679_v6 = vpack.c.bf16 %v769_v56, %v761_v47  ;;  %v972_v56 = vld [vmem:[#allocation8 + $0x528] sm:$0xff] }
 0x18d   : > { %v6659_v53 = vpack.c.bf16 %v768_v44, %v760_v43  ;;  %v591_v55 = vpop.f32.mrb[4].mxu0  ;;  %v6687_v27 = vpack.c.bf16 %v770_v62, %v762_v51  ;;  %v5474_v43 = vcombine.low %v6664_v58, %v6666_v59  ;;  %v5476_v44 = vcombine.low %v6675_v2, %v6677_v3 }
 0x18e   : > { %v592_v60 = vadd.f32 %v591_v55, %v343_v22  ;;  %v593_v61 = vpop.f32.mrb[5].mxu0  ;;  %v968_v55 = vld [vmem:[#allocation8 + $0x508] sm:$0xff] }
 0x18f   : > { %3953 = vmatprep.mubr.bf16.mxu0 %v6659_v53  ;;  %4165 = vmatprep.mubr.bf16.mxu1 %v6659_v53  ;;  %v594_v4 = vadd.f32 %v593_v61, %v347_v24  ;;  %v595_v5 = vpop.f32.mrb[6].mxu0  ;;  %v644_v28 = vpop.f32.mrb[4].mxu1 }
 0x190   : > { %3954 = vmatmul.mubr.bf16.vlgmr.msra.gmra.mrb[16].mxu0 %v6656_v50  ;;  %4166 = vmatmul.mubr.bf16.vlgmr.msra.gmra.mrb[16].mxu1 %v6656_v50  ;;  %v775_v15 = vmax.f32 %v592_v60, 0.0  ;;  %v596_v16 = vadd.f32 %v595_v5, %v343_v22  ;;  %v597_v25 = vpop.f32.mrb[7].mxu0  ;;  %v645_v33 = vadd.f32 %v644_v28, %v6641_v26  ;;  %v646_v22 = vpop.f32.mrb[5].mxu1  ;;  %v979_v28 = vld [vmem:[#allocation8 + $0x560] sm:$0xff] }
 0x191   : > { %3975 = vmatpush1.bf16.msra.mxu0 %v5458_v13  ;;  %4187 = vmatpush1.bf16.msra.mxu1 %v5460_v14  ;;  %v776_v31 = vmax.f32 %v594_v4, 0.0  ;;  %v598_v32 = vadd.f32 %v597_v25, %v347_v24  ;;  %v647_v9 = vadd.f32 %v646_v22, %v6645_v29  ;;  %v648_v10 = vpop.f32.mrb[6].mxu1  ;;  %v963_v13 = vld [vmem:[#allocation8 + $0x4e0] sm:$0xff]  ;;  %v960_v14 = vld [vmem:[#allocation8 + $0x4c8] sm:$0xff] }
 0x192   : > { %3976 = vmatprep.subr.bf16.mxu0 %v5467_v54  ;;  %4188 = vmatprep.subr.bf16.mxu1 %v5469_v57  ;;  %v783_v8 = vmax.f32 %v596_v16, 0.0  ;;  %v964_v24 = vld [vmem:[#allocation8 + $0x4e8] sm:$0xff]  ;;  %v777_v37 = vmax.f32 %v645_v33, 0.0  ;;  %v649_v38 = vadd.f32 %v648_v10, %v6641_v26  ;;  %v650_v39 = vpop.f32.mrb[7].mxu1  ;;  %v5483_v47 = vcombine.high %v6700_v35, %v963_v13  ;;  %v971_v54 = vld [vmem:[#allocation8 + $0x520] sm:$0xff] }
 0x193   : > { %v784_v36 = vmax.f32 %v598_v32, 0.0  ;;  %v778_v41 = vmax.f32 %v647_v9, 0.0  ;;  %v651_v42 = vadd.f32 %v650_v39, %v6645_v29  ;;  %v5485_v48 = vcombine.high %v960_v14, %v964_v24  ;;  %v975_v16 = vld [vmem:[#allocation8 + $0x540] sm:$0xff] }
 0x194   : > { %v6712_v0 = vpack.c.bf16 %v783_v8, %v775_v15  ;;  %v785_v26 = vmax.f32 %v649_v38, 0.0  ;;  %v5482_v2 = vcombine.low %v6700_v35, %v963_v13  ;;  %v5484_v3 = vcombine.low %v960_v14, %v964_v24  ;;  %v983_v10 = vld [vmem:[#allocation8 + $0x580] sm:$0xff]  ;;  %v984_v14 = vld [vmem:[#allocation8 + $0x588] sm:$0xff] }
 0x195   : > { %3977 = vmatpush1.bf16.msra.mxu0 %v5466_v1  ;;  %4189 = vmatpush1.bf16.msra.mxu1 %v5468_v11  ;;  %v6719_v45 = vpack.c.bf16 %v784_v36, %v776_v31  ;;  %v687_v46 = vpop.f32.mrb[8].mxu0  ;;  %v786_v51 = vmax.f32 %v651_v42, 0.0  ;;  %v5491_v11 = vcombine.high %v967_v49, %v971_v54  ;;  %v5493_v15 = vcombine.high %v968_v55, %v972_v56  ;;  %v980_v31 = vld [vmem:[#allocation8 + $0x568] sm:$0xff]  ;;  %v987_v13 = vld [vmem:[#allocation8 + $0x5a0] sm:$0xff] }
 0x196   : > { %3978 = vmatprep.subr.bf16.mxu0 %v5475_v30  ;;  %4190 = vmatprep.subr.bf16.mxu1 %v5477_v34  ;;  %v688_v29 = vadd.f32 %v687_v46, %v6705_v12  ;;  %v689_v52 = vpop.f32.mrb[9].mxu0  ;;  %v6725_v57 = vpack.c.bf16 %v785_v26, %v777_v37  ;;  %v976_v30 = vld [vmem:[#allocation8 + $0x548] sm:$0xff]  ;;  %v5490_v22 = vcombine.low %v967_v49, %v971_v54  ;;  %v6741_v38 = vld [vmem:[#allocation8 + $0x5c0] sm:$0xff] }
 0x197   : > { %3963 = vmatprep.mubr.bf16.mxu0 %v6719_v45  ;;  %4175 = vmatprep.mubr.bf16.mxu1 %v6719_v45  ;;  %v690_v58 = vadd.f32 %v689_v52, %v6710_v40  ;;  %v691_v59 = vpop.f32.mrb[10].mxu0  ;;  %v6730_v60 = vpack.c.bf16 %v786_v51, %v778_v41  ;;  %v5492_v34 = vcombine.low %v968_v55, %v972_v56  ;;  %v988_v24 = vld [vmem:[#allocation8 + $0x5a8] sm:$0xff]  ;;  %v740_v49 = vpop.f32.mrb[8].mxu1 }
 0x198   : > { %3964 = vmatmul.mubr.bf16.gmra.mrb[20].mxu0 %v6712_v0  ;;  %4176 = vmatmul.mubr.bf16.gmra.mrb[20].mxu1 %v6712_v0  ;;  %v763_v61 = vmax.f32 %v688_v29, 0.0  ;;  %v692_v62 = vadd.f32 %v691_v59, %v6705_v12  ;;  %v693_v1 = vpop.f32.mrb[11].mxu0  ;;  %v5499_v8 = vcombine.high %v975_v16, %v979_v28  ;;  %v5501_v9 = vcombine.high %v976_v30, %v980_v31  ;;  %v996_v26 = vld [vmem:[#allocation8 + $0x5e8] sm:$0xff] }
 0x199   : > { %3979 = vmatpush1.bf16.msra.mxu0 %v5474_v43  ;;  %4191 = vmatpush1.bf16.msra.mxu1 %v5476_v44  ;;  %v764_v4 = vmax.f32 %v690_v58, 0.0  ;;  %v694_v5 = vadd.f32 %v693_v1, %v6710_v40  ;;  %v5498_v36 = vcombine.low %v975_v16, %v979_v28  ;;  %v5500_v37 = vcombine.low %v976_v30, %v980_v31  ;;  %v995_v43 = vld [vmem:[#allocation8 + $0x5e0] sm:$0xff]  ;;  %v992_v44 = vld [vmem:[#allocation8 + $0x5c8] sm:$0xff] }
 0x19a   : > { %3980 = vmatprep.subr.bf16.mxu0 %v5483_v47  ;;  %4192 = vmatprep.subr.bf16.mxu1 %v5485_v48  ;;  %v771_v25 = vmax.f32 %v692_v62, 0.0  ;;  %v5507_v41 = vcombine.high %v983_v10, %v987_v13  ;;  %v5509_v42 = vcombine.high %v984_v14, %v988_v24  ;;  %v6745_v48 = vsub.s32 6, %v6619_v17  ;;  %v1003_v16 = vld [vmem:[#allocation8 + $0x620] sm:$0xff]  ;;  %v1004_v28 = vld [vmem:[#allocation8 + $0x628] sm:$0xff] }
 0x19b   : > { %4006 = vmatprep.mubr.bf16.mxu0 %v6687_v27  ;;  %4218 = vmatprep.mubr.bf16.mxu1 %v6687_v27  ;;  %v772_v32 = vmax.f32 %v694_v5, 0.0  ;;  %v5506_v52 = vcombine.low %v983_v10, %v987_v13  ;;  %v5508_v58 = vcombine.low %v984_v14, %v988_v24  ;;  %v5515_v59 = vcombine.high %v6741_v38, %v995_v43  ;;  %v1007_v24 = vld [vmem:[#allocation8 + $0x640] sm:$0xff] }
 0x19c   : > { %v6737_v33 = vpack.c.bf16 %v771_v25, %v763_v61  ;;  %v6751_v56 = vrot.slane %v6624_v19, %v6745_v48  ;;  %v5517_v61 = vcombine.high %v992_v44, %v996_v26  ;;  %v6755_v1 = vsub.s32 7, %v6619_v17  ;;  %v1000_v25 = vld [vmem:[#allocation8 + $0x608] sm:$0xff] }
 0x19d   : > { %3981 = vmatpush1.bf16.msra.mxu0 %v5482_v2  ;;  %4193 = vmatpush1.bf16.msra.mxu1 %v5484_v3  ;;  %v6739_v35 = vpack.c.bf16 %v772_v32, %v764_v4  ;;  %v697_v39 = vpop.f32.mrb[12].mxu0  ;;  %v742_v2 = vpop.f32.mrb[9].mxu1  ;;  %v999_v3 = vld [vmem:[#allocation8 + $0x600] sm:$0xff]  ;;  %v5514_v32 = vcombine.low %v6741_v38, %v995_v43  ;;  %v5525_v14 = vcombine.high %v1000_v25, %v1004_v28  ;;  %v1008_v38 = vld [vmem:[#allocation8 + $0x648] sm:$0xff] }
 0x19e   : > { %3982 = vmatprep.subr.bf16.mxu0 %v5491_v11  ;;  %4194 = vmatprep.subr.bf16.mxu1 %v5493_v15  ;;  %v698_v46 = vadd.f32 %v697_v39, %v6705_v12  ;;  %v699_v47 = vpop.f32.mrb[13].mxu0  ;;  %v741_v5 = vadd.f32 %v740_v49, %v6751_v56  ;;  %v744_v15 = vpop.f32.mrb[10].mxu1  ;;  %v6761_v30 = vrot.slane %v6624_v19, %v6755_v1  ;;  %v1012_v39 = vld [vmem:[#allocation8 + $0x668] sm:$0xff] }
 0x19f   : > { %v700_v51 = vadd.f32 %v699_v47, %v6710_v40  ;;  %v701_v29 = vpop.f32.mrb[14].mxu0  ;;  %v745_v17 = vadd.f32 %v744_v15, %v6751_v56  ;;  %v746_v31 = vpop.f32.mrb[11].mxu1  ;;  %v5523_v19 = vcombine.high %v999_v3, %v1003_v16  ;;  %v5533_v49 = vcombine.high %v1008_v38, %v1012_v39 }
 0x1a0   : > { %v779_v54 = vmax.f32 %v698_v46, 0.0  ;;  %v702_v55 = vadd.f32 %v701_v29, %v6705_v12  ;;  %v703_v62 = vpop.f32.mrb[15].mxu0  ;;  %v747_v13 = vadd.f32 %v746_v31, %v6761_v30  ;;  %v1019_v29 = vld [vmem:[#allocation8 + $0x6a0] sm:$0xff] }
 0x1a1   : > { %3983 = vmatpush1.bf16.msra.mxu0 %v5490_v22  ;;  %4195 = vmatpush1.bf16.msra.mxu1 %v5492_v34  ;;  %v780_v4 = vmax.f32 %v700_v51, 0.0  ;;  %v704_v11 = vadd.f32 %v703_v62, %v6710_v40  ;;  %v765_v34 = vmax.f32 %v741_v5, 0.0  ;;  %v5516_v40 = vcombine.low %v992_v44, %v996_v26  ;;  %v1015_v51 = vld [vmem:[#allocation8 + $0x680] sm:$0xff] }
 0x1a2   : > { %3984 = vmatprep.subr.bf16.mxu0 %v5499_v8  ;;  %4196 = vmatprep.subr.bf16.mxu1 %v5501_v9  ;;  %v787_v12 = vmax.f32 %v702_v55, 0.0  ;;  %v743_v9 = vadd.f32 %v742_v2, %v6761_v30  ;;  %v773_v10 = vmax.f32 %v745_v17, 0.0  ;;  %v774_v43 = vmax.f32 %v747_v13, 0.0  ;;  %v1023_v62 = vld [vmem:[#allocation8 + $0x6c0] sm:$0xff]  ;;  %v1036_v17 = vld [vmem:[#allocation8 + $0x728] sm:$0xff] }
 0x1a3   : > { %v788_v8 = vmax.f32 %v704_v11, 0.0  ;;  %v5522_v44 = vcombine.low %v999_v3, %v1003_v16  ;;  %v5524_v26 = vcombine.low %v1000_v25, %v1004_v28  ;;  %v1027_v2 = vld [vmem:[#allocation8 + $0x6e0] sm:$0xff]  ;;  %v1024_v3 = vld [vmem:[#allocation8 + $0x6c8] sm:$0xff] }
 0x1a4   : > { %v6765_v22 = vpack.c.bf16 %v787_v12, %v779_v54  ;;  %v1020_v54 = vld [vmem:[#allocation8 + $0x6a8] sm:$0xff]  ;;  %v5538_v12 = vcombine.low %v1015_v51, %v1019_v29  ;;  %v5547_v11 = vcombine.high %v1023_v62, %v1027_v2  ;;  %v1031_v16 = vld [vmem:[#allocation8 + $0x700] sm:$0xff]  ;;  %v5546_v31 = vcombine.low %v1023_v62, %v1027_v2 }
 0x1a5   : > { %3985 = vmatpush1.bf16.msra.mxu0 %v5498_v36  ;;  %4197 = vmatpush1.bf16.msra.mxu1 %v5500_v37  ;;  %v6769_v36 = vpack.c.bf16 %v788_v8, %v780_v4  ;;  %v1011_v37 = vld [vmem:[#allocation8 + $0x660] sm:$0xff]  ;;  %v1028_v4 = vld [vmem:[#allocation8 + $0x6e8] sm:$0xff] }
 0x1a6   : > { %3986 = vmatprep.subr.bf16.mxu0 %v5507_v41  ;;  %4198 = vmatprep.subr.bf16.mxu1 %v5509_v42  ;;  %v766_v41 = vmax.f32 %v743_v9, 0.0  ;;  %v6771_v42 = vpack.c.bf16 %v773_v10, %v765_v34  ;;  %v5531_v47 = vcombine.high %v1007_v24, %v1011_v37  ;;  %v5530_v55 = vcombine.low %v1007_v24, %v1011_v37  ;;  %v1035_v25 = vld [vmem:[#allocation8 + $0x720] sm:$0xff]  ;;  %v1032_v28 = vld [vmem:[#allocation8 + $0x708] sm:$0xff] }
 0x1a7   : > { %v5549_v15 = vcombine.high %v1024_v3, %v1028_v4  ;;  %v5555_v34 = vcombine.high %v1031_v16, %v1035_v25  ;;  %v5557_v8 = vcombine.high %v1032_v28, %v1036_v17  ;;  %v1043_v9 = vld [vmem:[#allocation8 + $0x760] sm:$0xff]  ;;  %v1040_v10 = vld [vmem:[#allocation8 + $0x748] sm:$0xff] }
 0x1a8   : > { %v6773_v46 = vpack.c.bf16 %v774_v43, %v766_v41  ;;  %v1044_v13 = vld [vmem:[#allocation8 + $0x768] sm:$0xff]  ;;  %v1063_v62 = vld [vmem:[#allocation8 + $0x800] sm:$0xff] }
 0x1a9   : > { %3987 = vmatpush1.bf16.msra.mxu0 %v5506_v52  ;;  %4199 = vmatpush1.bf16.msra.mxu1 %v5508_v58  ;;  %v1016_v52 = vld [vmem:[#allocation8 + $0x688] sm:$0xff]  ;;  %v5532_v58 = vcombine.low %v1008_v38, %v1012_v39  ;;  %v5565_v37 = vcombine.high %v1040_v10, %v1044_v13  ;;  %v1047_v38 = vld [vmem:[#allocation8 + $0x780] sm:$0xff] }
 0x1aa   : > { %3988 = vmatprep.subr.bf16.mxu0 %v5515_v59  ;;  %4200 = vmatprep.subr.bf16.mxu1 %v5517_v61  ;;  %v5539_v59 = vcombine.high %v1015_v51, %v1019_v29  ;;  %v5541_v61 = vcombine.high %v1016_v52, %v1020_v54  ;;  %v5540_v5 = vcombine.low %v1016_v52, %v1020_v54  ;;  %v1051_v39 = vld [vmem:[#allocation8 + $0x7a0] sm:$0xff]  ;;  %v1048_v41 = vld [vmem:[#allocation8 + $0x788] sm:$0xff] }
 0x1ab   : > { %v1052_v43 = vld [vmem:[#allocation8 + $0x7a8] sm:$0xff]  ;;  %v1055_v51 = vld [vmem:[#allocation8 + $0x7c0] sm:$0xff] }
 0x1ac   : > { %v1059_v29 = vld [vmem:[#allocation8 + $0x7e0] sm:$0xff]  ;;  %v1056_v52 = vld [vmem:[#allocation8 + $0x7c8] sm:$0xff] }
 0x1ad   : > { %3989 = vmatpush1.bf16.msra.mxu0 %v5514_v32  ;;  %4201 = vmatpush1.bf16.msra.mxu1 %v5516_v40  ;;  %v5548_v32 = vcombine.low %v1024_v3, %v1028_v4  ;;  %v1039_v40 = vld [vmem:[#allocation8 + $0x740] sm:$0xff]  ;;  %v1060_v54 = vld [vmem:[#allocation8 + $0x7e8] sm:$0xff] }
 0x1ae   : > { %3990 = vmatprep.subr.bf16.mxu0 %v5523_v19  ;;  %4202 = vmatprep.subr.bf16.mxu1 %v5525_v14  ;;  %v5554_v19 = vcombine.low %v1031_v16, %v1035_v25  ;;  %v5556_v14 = vcombine.low %v1032_v28, %v1036_v17  ;;  %v5563_v24 = vcombine.high %v1039_v40, %v1043_v9  ;;  %v1067_v2 = vld [vmem:[#allocation8 + $0x820] sm:$0xff]  ;;  %v1064_v3 = vld [vmem:[#allocation8 + $0x808] sm:$0xff]  ;;  %v750_v25 = vpop.f32.mrb[12].mxu1 }
 0x1af   : > { %v1068_v4 = vld [vmem:[#allocation8 + $0x828] sm:$0xff]  ;;  %v1071_v16 = vld [vmem:[#allocation8 + $0x840] sm:$0xff] }
 0x1b0   : > { %v1075_v28 = vld [vmem:[#allocation8 + $0x860] sm:$0xff]  ;;  %v1072_v17 = vld [vmem:[#allocation8 + $0x848] sm:$0xff] }
 0x1b1   : > { %3991 = vmatpush1.bf16.msra.mxu0 %v5522_v44  ;;  %4203 = vmatpush1.bf16.msra.mxu1 %v5524_v26  ;;  %v5562_v44 = vcombine.low %v1039_v40, %v1043_v9  ;;  %v5564_v26 = vcombine.low %v1040_v10, %v1044_v13  ;;  %v752_v40 = vpop.f32.mrb[13].mxu1  ;;  %v5595_v9 = vcombine.high %v1071_v16, %v1075_v28  ;;  %v1079_v13 = vld [vmem:[#allocation8 + $0x880] sm:$0xff] }
 0x1b2   : > { %3992 = vmatprep.subr.bf16.mxu0 %v5531_v47  ;;  %4204 = vmatprep.subr.bf16.mxu1 %v5533_v49  ;;  %v5571_v47 = vcombine.high %v1047_v38, %v1051_v39  ;;  %v5573_v49 = vcombine.high %v1048_v41, %v1052_v43 }
 0x1b5   : > { %3993 = vmatpush1.bf16.msra.mxu0 %v5530_v55  ;;  %4205 = vmatpush1.bf16.msra.mxu1 %v5532_v58  ;;  %v5570_v55 = vcombine.low %v1047_v38, %v1051_v39  ;;  %v5572_v58 = vcombine.low %v1048_v41, %v1052_v43  ;;  %v1084_v38 = vld [vmem:[#allocation8 + $0x8a8] sm:$0xff] }
 0x1b6   : > { %3994 = vmatprep.subr.bf16.mxu0 %v5539_v59  ;;  %4206 = vmatprep.subr.bf16.mxu1 %v5541_v61  ;;  %v5579_v59 = vcombine.high %v1055_v51, %v1059_v29  ;;  %v5581_v61 = vcombine.high %v1056_v52, %v1060_v54 }
 0x1b9   : > { %3995 = vmatpush1.bf16.msra.mxu0 %v5538_v12  ;;  %4207 = vmatpush1.bf16.msra.mxu1 %v5540_v5  ;;  %v5578_v12 = vcombine.low %v1055_v51, %v1059_v29  ;;  %v5580_v5 = vcombine.low %v1056_v52, %v1060_v54  ;;  %v1087_v54 = vld [vmem:[#allocation8 + $0x8c0] sm:$0xff] }
 0x1ba   : > { %3996 = vmatprep.subr.bf16.mxu0 %v5547_v11  ;;  %4208 = vmatprep.subr.bf16.mxu1 %v5549_v15  ;;  %v5587_v11 = vcombine.high %v1063_v62, %v1067_v2  ;;  %v5589_v15 = vcombine.high %v1064_v3, %v1068_v4 }
 0x1bd   : > { %3997 = vmatpush1.bf16.msra.mxu0 %v5546_v31  ;;  %4209 = vmatpush1.bf16.msra.mxu1 %v5548_v32  ;;  %v1076_v31 = vld [vmem:[#allocation8 + $0x868] sm:$0xff]  ;;  %v751_v32 = vadd.f32 %v750_v25, %v6751_v56 }
 0x1be   : > { %3998 = vmatprep.subr.bf16.mxu0 %v5555_v34  ;;  %4210 = vmatprep.subr.bf16.mxu1 %v5557_v8  ;;  %v5586_v34 = vcombine.low %v1063_v62, %v1067_v2  ;;  %v5588_v8 = vcombine.low %v1064_v3, %v1068_v4  ;;  %v5597_v10 = vcombine.high %v1072_v17, %v1076_v31 }
 0x1bf   : > { %v781_v39 = vmax.f32 %v751_v32, 0.0  ;;  %v1107_v32 = vld [vmem:[#allocation8 + $0x960] sm:$0xff] }
 0x1c1   : > { %3999 = vmatpush1.bf16.msra.mxu0 %v5554_v19  ;;  %4211 = vmatpush1.bf16.msra.mxu1 %v5556_v14  ;;  %v753_v19 = vadd.f32 %v752_v40, %v6761_v30  ;;  %v754_v14 = vpop.f32.mrb[14].mxu1 }
 0x1c2   : > { %4000 = vmatprep.subr.bf16.mxu0 %v5563_v24  ;;  %4212 = vmatprep.subr.bf16.mxu1 %v5565_v37  ;;  %v1083_v24 = vld [vmem:[#allocation8 + $0x8a0] sm:$0xff]  ;;  %v1080_v37 = vld [vmem:[#allocation8 + $0x888] sm:$0xff]  ;;  %v755_v41 = vadd.f32 %v754_v14, %v6751_v56  ;;  %v756_v43 = vpop.f32.mrb[15].mxu1 }
 0x1c3   : > { %v5603_v29 = vcombine.high %v1079_v13, %v1083_v24  ;;  %v5605_v52 = vcombine.high %v1080_v37, %v1084_v38  ;;  %v1091_v56 = vld [vmem:[#allocation8 + $0x8e0] sm:$0xff]  ;;  %v5602_v62 = vcombine.low %v1079_v13, %v1083_v24  ;;  %v5604_v2 = vcombine.low %v1080_v37, %v1084_v38  ;;  %v1112_v24 = vld [vmem:[#allocation8 + $0x988] sm:$0xff] }
 0x1c4   : > { %v789_v51 = vmax.f32 %v755_v41, 0.0  ;;  %v5611_v3 = vcombine.high %v1087_v54, %v1091_v56  ;;  %v1115_v14 = vld [vmem:[#allocation8 + $0x9a0] sm:$0xff]  ;;  %v1116_v37 = vld [vmem:[#allocation8 + $0x9a8] sm:$0xff] }
 0x1c5   : > { %4001 = vmatpush1.bf16.msra.mxu0 %v5562_v44  ;;  %4213 = vmatpush1.bf16.msra.mxu1 %v5564_v26  ;;  %v782_v44 = vmax.f32 %v753_v19, 0.0  ;;  %v757_v26 = vadd.f32 %v756_v43, %v6761_v30  ;;  %v1111_v19 = vld [vmem:[#allocation8 + $0x980] sm:$0xff]  ;;  %v5637_v43 = vcombine.high %v1112_v24, %v1116_v37 }
 0x1c6   : > { %4002 = vmatprep.subr.bf16.mxu0 %v5571_v47  ;;  %4214 = vmatprep.subr.bf16.mxu1 %v5573_v49  ;;  %v5594_v47 = vcombine.low %v1071_v16, %v1075_v28  ;;  %v5596_v49 = vcombine.low %v1072_v17, %v1076_v31  ;;  %v5610_v16 = vcombine.low %v1087_v54, %v1091_v56  ;;  %v1103_v31 = vld [vmem:[#allocation8 + $0x940] sm:$0xff] }
 0x1c7   : > { %v5626_v38 = vcombine.low %v1103_v31, %v1107_v32  ;;  %v5635_v41 = vcombine.high %v1111_v19, %v1115_v14  ;;  %v1131_v56 = vld [vmem:[#allocation8 + $0xa20] sm:$0xff] }
 0x1c9   : > { %4003 = vmatpush1.bf16.msra.mxu0 %v5570_v55  ;;  %4215 = vmatpush1.bf16.msra.mxu1 %v5572_v58  ;;  %v790_v55 = vmax.f32 %v757_v26, 0.0  ;;  %v1088_v58 = vld [vmem:[#allocation8 + $0x8c8] sm:$0xff]  ;;  %v1123_v26 = vld [vmem:[#allocation8 + $0x9e0] sm:$0xff] }
 0x1ca   : > { %4004 = vmatprep.subr.bf16.mxu0 %v5579_v59  ;;  %4216 = vmatprep.subr.bf16.mxu1 %v5581_v61  ;;  %v1092_v59 = vld [vmem:[#allocation8 + $0x8e8] sm:$0xff]  ;;  %v6783_v61 = vpack.c.bf16 %v789_v51, %v781_v39  ;;  %v5634_v51 = vcombine.low %v1111_v19, %v1115_v14  ;;  %v1151_v19 = vld [vmem:[#allocation8 + $0xac0] sm:$0xff] }
 0x1cb   : > { %v6785_v30 = vpack.c.bf16 %v790_v55, %v782_v44  ;;  %v5613_v4 = vcombine.high %v1088_v58, %v1092_v59  ;;  %v5612_v25 = vcombine.low %v1088_v58, %v1092_v59  ;;  %v1119_v44 = vld [vmem:[#allocation8 + $0x9c0] sm:$0xff]  ;;  %v1128_v58 = vld [vmem:[#allocation8 + $0xa08] sm:$0xff] }
 0x1cc   : > { %v1127_v55 = vld [vmem:[#allocation8 + $0xa00] sm:$0xff]  ;;  %v1132_v59 = vld [vmem:[#allocation8 + $0xa28] sm:$0xff] }
 0x1cd   : > { %4005 = vmatpush1.bf16.msra.mxu0 %v5578_v12  ;;  %4217 = vmatpush1.bf16.msra.mxu1 %v5580_v5  ;;  %v1095_v12 = vld [vmem:[#allocation8 + $0x900] sm:$0xff] }
 0x1ce   : > { %4027 = vmatprep.subr.bf16.mxu0 %v5587_v11  ;;  %4239 = vmatprep.subr.bf16.mxu1 %v5589_v15  ;;  %v1099_v5 = vld [vmem:[#allocation8 + $0x920] sm:$0xff]  ;;  %v1096_v11 = vld [vmem:[#allocation8 + $0x908] sm:$0xff] }
 0x1cf   : > { %v1100_v15 = vld [vmem:[#allocation8 + $0x928] sm:$0xff]  ;;  %v5619_v28 = vcombine.high %v1095_v12, %v1099_v5  ;;  %v5618_v40 = vcombine.low %v1095_v12, %v1099_v5  ;;  %v1135_v12 = vld [vmem:[#allocation8 + $0xa40] sm:$0xff] }
 0x1d0   : > { %4007 = vmatmul.mubr.bf16.vlgmr.msra.gmra.mrb[16].mxu0 %v6679_v6  ;;  %4219 = vmatmul.mubr.bf16.vlgmr.msra.gmra.mrb[16].mxu1 %v6679_v6  ;;  %v5621_v17 = vcombine.high %v1096_v11, %v1100_v15  ;;  %v1139_v5 = vld [vmem:[#allocation8 + $0xa60] sm:$0xff] }
 0x1d1   : > { %4028 = vmatpush1.bf16.msra.mxu0 %v5586_v34  ;;  %4240 = vmatpush1.bf16.msra.mxu1 %v5588_v8  ;;  %v1104_v34 = vld [vmem:[#allocation8 + $0x948] sm:$0xff]  ;;  %v1155_v14 = vld [vmem:[#allocation8 + $0xae0] sm:$0xff] }
 0x1d2   : > { %4029 = vmatprep.subr.bf16.mxu0 %v5595_v9  ;;  %4241 = vmatprep.subr.bf16.mxu1 %v5597_v10  ;;  %v1108_v8 = vld [vmem:[#allocation8 + $0x968] sm:$0xff]  ;;  %v5620_v9 = vcombine.low %v1096_v11, %v1100_v15  ;;  %v5627_v10 = vcombine.high %v1103_v31, %v1107_v32  ;;  %v1143_v31 = vld [vmem:[#allocation8 + $0xa80] sm:$0xff] }
 0x1d3   : > { %4016 = vmatprep.mubr.bf16.mxu0 %v6730_v60  ;;  %4228 = vmatprep.mubr.bf16.mxu1 %v6730_v60  ;;  %v5629_v13 = vcombine.high %v1104_v34, %v1108_v8  ;;  %v5628_v39 = vcombine.low %v1104_v34, %v1108_v8  ;;  %v1136_v11 = vld [vmem:[#allocation8 + $0xa48] sm:$0xff]  ;;  %v1147_v32 = vld [vmem:[#allocation8 + $0xaa0] sm:$0xff] }
 0x1d4   : > { %v1140_v15 = vld [vmem:[#allocation8 + $0xa68] sm:$0xff] }
 0x1d5   : > { %4030 = vmatpush1.bf16.msra.mxu0 %v5594_v47  ;;  %4242 = vmatpush1.bf16.msra.mxu1 %v5596_v49  ;;  %v1120_v47 = vld [vmem:[#allocation8 + $0x9c8] sm:$0xff] }
 0x1d6   : > { %4031 = vmatprep.subr.bf16.mxu0 %v5603_v29  ;;  %4243 = vmatprep.subr.bf16.mxu1 %v5605_v52  ;;  %v1124_v49 = vld [vmem:[#allocation8 + $0x9e8] sm:$0xff]  ;;  %v5636_v29 = vcombine.low %v1112_v24, %v1116_v37  ;;  %v5643_v52 = vcombine.high %v1119_v44, %v1123_v26 }
 0x1d7   : > { %v5645_v54 = vcombine.high %v1120_v47, %v1124_v49  ;;  %v1144_v34 = vld [vmem:[#allocation8 + $0xa88] sm:$0xff] }
 0x1d8   : > { %4017 = vmatmul.mubr.bf16.gmra.mrb[20].mxu0 %v6725_v57  ;;  %4229 = vmatmul.mubr.bf16.gmra.mrb[20].mxu1 %v6725_v57  ;;  %v1148_v8 = vld [vmem:[#allocation8 + $0xaa8] sm:$0xff] }
 0x1d9   : > { %4032 = vmatpush1.bf16.msra.mxu0 %v5602_v62  ;;  %4244 = vmatpush1.bf16.msra.mxu1 %v5604_v2  ;;  %v5642_v62 = vcombine.low %v1119_v44, %v1123_v26  ;;  %v5644_v2 = vcombine.low %v1120_v47, %v1124_v49  ;;  %v1152_v24 = vld [vmem:[#allocation8 + $0xac8] sm:$0xff]  ;;  %v1159_v44 = vld [vmem:[#allocation8 + $0xb00] sm:$0xff] }
 0x1da   : > { %4033 = vmatprep.subr.bf16.mxu0 %v5611_v3  ;;  %4245 = vmatprep.subr.bf16.mxu1 %v5613_v4  ;;  %v5651_v3 = vcombine.high %v1127_v55, %v1131_v56  ;;  %v5653_v4 = vcombine.high %v1128_v58, %v1132_v59  ;;  %v1156_v37 = vld [vmem:[#allocation8 + $0xae8] sm:$0xff]  ;;  %v1163_v26 = vld [vmem:[#allocation8 + $0xb20] sm:$0xff] }
 0x1db   : > { %4059 = vmatprep.mubr.bf16.mxu0 %v6739_v35  ;;  %4271 = vmatprep.mubr.bf16.mxu1 %v6739_v35  ;;  %v1160_v47 = vld [vmem:[#allocation8 + $0xb08] sm:$0xff] }
 0x1dc   : > { %v1164_v49 = vld [vmem:[#allocation8 + $0xb28] sm:$0xff] }
 0x1dd   : > { %4034 = vmatpush1.bf16.msra.mxu0 %v5610_v16  ;;  %4246 = vmatpush1.bf16.msra.mxu1 %v5612_v25  ;;  %v5650_v16 = vcombine.low %v1127_v55, %v1131_v56  ;;  %v5652_v25 = vcombine.low %v1128_v58, %v1132_v59  ;;  %v1167_v55 = vld [vmem:[#allocation8 + $0xb40] sm:$0xff]  ;;  %v1168_v58 = vld [vmem:[#allocation8 + $0xb48] sm:$0xff] }
 0x1de   : > { %4035 = vmatprep.subr.bf16.mxu0 %v5619_v28  ;;  %4247 = vmatprep.subr.bf16.mxu1 %v5621_v17  ;;  %v5659_v28 = vcombine.high %v1135_v12, %v1139_v5  ;;  %v5661_v17 = vcombine.high %v1136_v11, %v1140_v15  ;;  %v1171_v56 = vld [vmem:[#allocation8 + $0xb60] sm:$0xff]  ;;  %v1172_v59 = vld [vmem:[#allocation8 + $0xb68] sm:$0xff] }
 0x1e1   : > { %4036 = vmatpush1.bf16.msra.mxu0 %v5618_v40  ;;  %4248 = vmatpush1.bf16.msra.mxu1 %v5620_v9  ;;  %v5658_v40 = vcombine.low %v1135_v12, %v1139_v5  ;;  %v5660_v9 = vcombine.low %v1136_v11, %v1140_v15  ;;  %v1175_v12 = vld [vmem:[#allocation8 + $0xb80] sm:$0xff]  ;;  %v1176_v11 = vld [vmem:[#allocation8 + $0xb88] sm:$0xff] }
 0x1e2   : > { %4037 = vmatprep.subr.bf16.mxu0 %v5627_v10  ;;  %4249 = vmatprep.subr.bf16.mxu1 %v5629_v13  ;;  %v5667_v10 = vcombine.high %v1143_v31, %v1147_v32  ;;  %v5669_v13 = vcombine.high %v1144_v34, %v1148_v8  ;;  %v1179_v5 = vld [vmem:[#allocation8 + $0xba0] sm:$0xff]  ;;  %v1180_v15 = vld [vmem:[#allocation8 + $0xba8] sm:$0xff] }
 0x1e5   : > { %4038 = vmatpush1.bf16.msra.mxu0 %v5626_v38  ;;  %4250 = vmatpush1.bf16.msra.mxu1 %v5628_v39  ;;  %v5666_v38 = vcombine.low %v1143_v31, %v1147_v32  ;;  %v5668_v39 = vcombine.low %v1144_v34, %v1148_v8  ;;  %v1183_v31 = vld [vmem:[#allocation8 + $0xbc0] sm:$0xff]  ;;  %v1184_v34 = vld [vmem:[#allocation8 + $0xbc8] sm:$0xff] }
 0x1e6   : > { %4039 = vmatprep.subr.bf16.mxu0 %v5635_v41  ;;  %4251 = vmatprep.subr.bf16.mxu1 %v5637_v43  ;;  %v5675_v41 = vcombine.high %v1151_v19, %v1155_v14  ;;  %v5677_v43 = vcombine.high %v1152_v24, %v1156_v37  ;;  %v1187_v32 = vld [vmem:[#allocation8 + $0xbe0] sm:$0xff]  ;;  %v1188_v8 = vld [vmem:[#allocation8 + $0xbe8] sm:$0xff] }
 0x1e9   : > { %4040 = vmatpush1.bf16.msra.mxu0 %v5634_v51  ;;  %4252 = vmatpush1.bf16.msra.mxu1 %v5636_v29  ;;  %v5674_v51 = vcombine.low %v1151_v19, %v1155_v14  ;;  %v5676_v29 = vcombine.low %v1152_v24, %v1156_v37  ;;  %v1191_v19 = vld [vmem:[#allocation8 + $0xc00] sm:$0xff]  ;;  %v1192_v24 = vld [vmem:[#allocation8 + $0xc08] sm:$0xff] }
 0x1ea   : > { %4041 = vmatprep.subr.bf16.mxu0 %v5643_v52  ;;  %4253 = vmatprep.subr.bf16.mxu1 %v5645_v54  ;;  %v5683_v52 = vcombine.high %v1159_v44, %v1163_v26  ;;  %v5685_v54 = vcombine.high %v1160_v47, %v1164_v49  ;;  %v1195_v14 = vld [vmem:[#allocation8 + $0xc20] sm:$0xff]  ;;  %v1196_v37 = vld [vmem:[#allocation8 + $0xc28] sm:$0xff] }
 0x1ed   : > { %4042 = vmatpush1.bf16.msra.mxu0 %v5642_v62  ;;  %4254 = vmatpush1.bf16.msra.mxu1 %v5644_v2  ;;  %v5682_v62 = vcombine.low %v1159_v44, %v1163_v26  ;;  %v5684_v2 = vcombine.low %v1160_v47, %v1164_v49  ;;  %v1199_v44 = vld [vmem:[#allocation8 + $0xc40] sm:$0xff]  ;;  %v1200_v47 = vld [vmem:[#allocation8 + $0xc48] sm:$0xff] }
 0x1ee   : > { %4043 = vmatprep.subr.bf16.mxu0 %v5651_v3  ;;  %4255 = vmatprep.subr.bf16.mxu1 %v5653_v4  ;;  %v5691_v3 = vcombine.high %v1167_v55, %v1171_v56  ;;  %v5693_v4 = vcombine.high %v1168_v58, %v1172_v59  ;;  %v1203_v26 = vld [vmem:[#allocation8 + $0xc60] sm:$0xff]  ;;  %v1204_v49 = vld [vmem:[#allocation8 + $0xc68] sm:$0xff] }
 0x1f1   : > { %4044 = vmatpush1.bf16.msra.mxu0 %v5650_v16  ;;  %4256 = vmatpush1.bf16.msra.mxu1 %v5652_v25  ;;  %v5690_v16 = vcombine.low %v1167_v55, %v1171_v56  ;;  %v5692_v25 = vcombine.low %v1168_v58, %v1172_v59  ;;  %v1207_v55 = vld [vmem:[#allocation8 + $0xc80] sm:$0xff]  ;;  %v1208_v58 = vld [vmem:[#allocation8 + $0xc88] sm:$0xff] }
 0x1f2   : > { %4045 = vmatprep.subr.bf16.mxu0 %v5659_v28  ;;  %4257 = vmatprep.subr.bf16.mxu1 %v5661_v17  ;;  %v5699_v28 = vcombine.high %v1175_v12, %v1179_v5  ;;  %v5701_v17 = vcombine.high %v1176_v11, %v1180_v15  ;;  %v1211_v56 = vld [vmem:[#allocation8 + $0xca0] sm:$0xff]  ;;  %v1212_v59 = vld [vmem:[#allocation8 + $0xca8] sm:$0xff] }
 0x1f5   : > { %4046 = vmatpush1.bf16.msra.mxu0 %v5658_v40  ;;  %4258 = vmatpush1.bf16.msra.mxu1 %v5660_v9  ;;  %v5698_v40 = vcombine.low %v1175_v12, %v1179_v5  ;;  %v5700_v9 = vcombine.low %v1176_v11, %v1180_v15  ;;  %v1215_v12 = vld [vmem:[#allocation8 + $0xcc0] sm:$0xff]  ;;  %v1216_v11 = vld [vmem:[#allocation8 + $0xcc8] sm:$0xff] }
 0x1f6   : > { %4047 = vmatprep.subr.bf16.mxu0 %v5667_v10  ;;  %4259 = vmatprep.subr.bf16.mxu1 %v5669_v13  ;;  %v5707_v10 = vcombine.high %v1183_v31, %v1187_v32  ;;  %v5709_v13 = vcombine.high %v1184_v34, %v1188_v8  ;;  %v1219_v5 = vld [vmem:[#allocation8 + $0xce0] sm:$0xff]  ;;  %v1220_v15 = vld [vmem:[#allocation8 + $0xce8] sm:$0xff] }
 0x1f9   : > { %4048 = vmatpush1.bf16.msra.mxu0 %v5666_v38  ;;  %4260 = vmatpush1.bf16.msra.mxu1 %v5668_v39  ;;  %v5706_v38 = vcombine.low %v1183_v31, %v1187_v32  ;;  %v5708_v39 = vcombine.low %v1184_v34, %v1188_v8  ;;  %v1223_v31 = vld [vmem:[#allocation8 + $0xd00] sm:$0xff]  ;;  %v1224_v34 = vld [vmem:[#allocation8 + $0xd08] sm:$0xff] }
 0x1fa   : > { %4049 = vmatprep.subr.bf16.mxu0 %v5675_v41  ;;  %4261 = vmatprep.subr.bf16.mxu1 %v5677_v43  ;;  %v5715_v41 = vcombine.high %v1191_v19, %v1195_v14  ;;  %v5717_v43 = vcombine.high %v1192_v24, %v1196_v37  ;;  %v1227_v32 = vld [vmem:[#allocation8 + $0xd20] sm:$0xff]  ;;  %v1228_v8 = vld [vmem:[#allocation8 + $0xd28] sm:$0xff] }
 0x1fd   : > { %4050 = vmatpush1.bf16.msra.mxu0 %v5674_v51  ;;  %4262 = vmatpush1.bf16.msra.mxu1 %v5676_v29  ;;  %v5714_v51 = vcombine.low %v1191_v19, %v1195_v14  ;;  %v5716_v29 = vcombine.low %v1192_v24, %v1196_v37  ;;  %v1231_v19 = vld [vmem:[#allocation8 + $0xd40] sm:$0xff]  ;;  %v1232_v24 = vld [vmem:[#allocation8 + $0xd48] sm:$0xff] }
 0x1fe   : > { %4051 = vmatprep.subr.bf16.mxu0 %v5683_v52  ;;  %4263 = vmatprep.subr.bf16.mxu1 %v5685_v54  ;;  %v5723_v52 = vcombine.high %v1199_v44, %v1203_v26  ;;  %v5725_v54 = vcombine.high %v1200_v47, %v1204_v49  ;;  %v1235_v14 = vld [vmem:[#allocation8 + $0xd60] sm:$0xff]  ;;  %v1236_v37 = vld [vmem:[#allocation8 + $0xd68] sm:$0xff] }
 0x201   : > { %4052 = vmatpush1.bf16.msra.mxu0 %v5682_v62  ;;  %4264 = vmatpush1.bf16.msra.mxu1 %v5684_v2  ;;  %v5722_v62 = vcombine.low %v1199_v44, %v1203_v26  ;;  %v5724_v2 = vcombine.low %v1200_v47, %v1204_v49  ;;  %v1239_v44 = vld [vmem:[#allocation8 + $0xd80] sm:$0xff]  ;;  %v1240_v47 = vld [vmem:[#allocation8 + $0xd88] sm:$0xff] }
 0x202   : > { %4053 = vmatprep.subr.bf16.mxu0 %v5691_v3  ;;  %4265 = vmatprep.subr.bf16.mxu1 %v5693_v4  ;;  %v5731_v3 = vcombine.high %v1207_v55, %v1211_v56  ;;  %v5733_v4 = vcombine.high %v1208_v58, %v1212_v59  ;;  %v1243_v26 = vld [vmem:[#allocation8 + $0xda0] sm:$0xff]  ;;  %v1244_v49 = vld [vmem:[#allocation8 + $0xda8] sm:$0xff] }
 0x205   : > { %4054 = vmatpush1.bf16.msra.mxu0 %v5690_v16  ;;  %4266 = vmatpush1.bf16.msra.mxu1 %v5692_v25  ;;  %v5730_v16 = vcombine.low %v1207_v55, %v1211_v56  ;;  %v5732_v25 = vcombine.low %v1208_v58, %v1212_v59  ;;  %v1247_v55 = vld [vmem:[#allocation8 + $0xdc0] sm:$0xff]  ;;  %v1248_v58 = vld [vmem:[#allocation8 + $0xdc8] sm:$0xff] }
 0x206   : > { %4055 = vmatprep.subr.bf16.mxu0 %v5699_v28  ;;  %4267 = vmatprep.subr.bf16.mxu1 %v5701_v17  ;;  %v5739_v28 = vcombine.high %v1215_v12, %v1219_v5  ;;  %v5741_v17 = vcombine.high %v1216_v11, %v1220_v15  ;;  %v1251_v56 = vld [vmem:[#allocation8 + $0xde0] sm:$0xff]  ;;  %v1252_v59 = vld [vmem:[#allocation8 + $0xde8] sm:$0xff] }
 0x209   : > { %4056 = vmatpush1.bf16.msra.mxu0 %v5698_v40  ;;  %4268 = vmatpush1.bf16.msra.mxu1 %v5700_v9  ;;  %v5738_v40 = vcombine.low %v1215_v12, %v1219_v5  ;;  %v5740_v9 = vcombine.low %v1216_v11, %v1220_v15  ;;  %v1255_v12 = vld [vmem:[#allocation8 + $0xe00] sm:$0xff]  ;;  %v1256_v11 = vld [vmem:[#allocation8 + $0xe08] sm:$0xff] }
 0x20a   : > { %4057 = vmatprep.subr.bf16.mxu0 %v5707_v10  ;;  %4269 = vmatprep.subr.bf16.mxu1 %v5709_v13  ;;  %v5747_v10 = vcombine.high %v1223_v31, %v1227_v32  ;;  %v5749_v13 = vcombine.high %v1224_v34, %v1228_v8  ;;  %v1259_v5 = vld [vmem:[#allocation8 + $0xe20] sm:$0xff]  ;;  %v1260_v15 = vld [vmem:[#allocation8 + $0xe28] sm:$0xff] }
 0x20d   : > { %4058 = vmatpush1.bf16.msra.mxu0 %v5706_v38  ;;  %4270 = vmatpush1.bf16.msra.mxu1 %v5708_v39  ;;  %v5746_v38 = vcombine.low %v1223_v31, %v1227_v32  ;;  %v5748_v39 = vcombine.low %v1224_v34, %v1228_v8  ;;  %v1263_v31 = vld [vmem:[#allocation8 + $0xe40] sm:$0xff]  ;;  %v1264_v34 = vld [vmem:[#allocation8 + $0xe48] sm:$0xff] }
 0x20e   : > { %4080 = vmatprep.subr.bf16.mxu0 %v5715_v41  ;;  %4292 = vmatprep.subr.bf16.mxu1 %v5717_v43  ;;  %v5755_v41 = vcombine.high %v1231_v19, %v1235_v14  ;;  %v5757_v43 = vcombine.high %v1232_v24, %v1236_v37  ;;  %v1267_v32 = vld [vmem:[#allocation8 + $0xe60] sm:$0xff]  ;;  %v1268_v8 = vld [vmem:[#allocation8 + $0xe68] sm:$0xff] }
 0x210   : > { %4060 = vmatmul.mubr.bf16.vlgmr.msra.gmra.mrb[16].mxu0 %v6737_v33  ;;  %4272 = vmatmul.mubr.bf16.vlgmr.msra.gmra.mrb[16].mxu1 %v6737_v33 }
 0x211   : > { %4081 = vmatpush1.bf16.msra.mxu0 %v5714_v51  ;;  %4293 = vmatpush1.bf16.msra.mxu1 %v5716_v29  ;;  %v5754_v51 = vcombine.low %v1231_v19, %v1235_v14  ;;  %v5756_v29 = vcombine.low %v1232_v24, %v1236_v37  ;;  %v1271_v19 = vld [vmem:[#allocation8 + $0xe80] sm:$0xff]  ;;  %v1272_v24 = vld [vmem:[#allocation8 + $0xe88] sm:$0xff] }
 0x212   : > { %4082 = vmatprep.subr.bf16.mxu0 %v5723_v52  ;;  %4294 = vmatprep.subr.bf16.mxu1 %v5725_v54  ;;  %v5763_v52 = vcombine.high %v1239_v44, %v1243_v26  ;;  %v5765_v54 = vcombine.high %v1240_v47, %v1244_v49  ;;  %v1275_v14 = vld [vmem:[#allocation8 + $0xea0] sm:$0xff]  ;;  %v1276_v37 = vld [vmem:[#allocation8 + $0xea8] sm:$0xff] }
 0x213   : > { %4069 = vmatprep.mubr.bf16.mxu0 %v6769_v36  ;;  %4281 = vmatprep.mubr.bf16.mxu1 %v6769_v36 }
 0x215   : > { %4083 = vmatpush1.bf16.msra.mxu0 %v5722_v62  ;;  %4295 = vmatpush1.bf16.msra.mxu1 %v5724_v2  ;;  %v5762_v62 = vcombine.low %v1239_v44, %v1243_v26  ;;  %v5764_v2 = vcombine.low %v1240_v47, %v1244_v49  ;;  %v1279_v44 = vld [vmem:[#allocation8 + $0xec0] sm:$0xff]  ;;  %v1280_v47 = vld [vmem:[#allocation8 + $0xec8] sm:$0xff] }
 0x216   : > { %4084 = vmatprep.subr.bf16.mxu0 %v5731_v3  ;;  %4296 = vmatprep.subr.bf16.mxu1 %v5733_v4  ;;  %v5771_v3 = vcombine.high %v1247_v55, %v1251_v56  ;;  %v5773_v4 = vcombine.high %v1248_v58, %v1252_v59  ;;  %v1283_v26 = vld [vmem:[#allocation8 + $0xee0] sm:$0xff]  ;;  %v1284_v49 = vld [vmem:[#allocation8 + $0xee8] sm:$0xff] }
 0x218   : > { %4070 = vmatmul.mubr.bf16.gmra.mrb[20].mxu0 %v6765_v22  ;;  %4282 = vmatmul.mubr.bf16.gmra.mrb[20].mxu1 %v6765_v22 }
 0x219   : > { %4085 = vmatpush1.bf16.msra.mxu0 %v5730_v16  ;;  %4297 = vmatpush1.bf16.msra.mxu1 %v5732_v25  ;;  %v5770_v16 = vcombine.low %v1247_v55, %v1251_v56  ;;  %v5772_v25 = vcombine.low %v1248_v58, %v1252_v59  ;;  %v1287_v55 = vld [vmem:[#allocation8 + $0xf00] sm:$0xff]  ;;  %v1288_v58 = vld [vmem:[#allocation8 + $0xf08] sm:$0xff] }
 0x21a   : > { %4086 = vmatprep.subr.bf16.mxu0 %v5739_v28  ;;  %4298 = vmatprep.subr.bf16.mxu1 %v5741_v17  ;;  %v5779_v28 = vcombine.high %v1255_v12, %v1259_v5  ;;  %v5781_v17 = vcombine.high %v1256_v11, %v1260_v15  ;;  %v1291_v56 = vld [vmem:[#allocation8 + $0xf20] sm:$0xff]  ;;  %v1292_v59 = vld [vmem:[#allocation8 + $0xf28] sm:$0xff] }
 0x21b   : > { %4112 = vmatprep.mubr.bf16.mxu0 %v6773_v46  ;;  %4324 = vmatprep.mubr.bf16.mxu1 %v6773_v46 }
 0x21d   : > { %4087 = vmatpush1.bf16.msra.mxu0 %v5738_v40  ;;  %4299 = vmatpush1.bf16.msra.mxu1 %v5740_v9  ;;  %v5778_v40 = vcombine.low %v1255_v12, %v1259_v5  ;;  %v5780_v9 = vcombine.low %v1256_v11, %v1260_v15  ;;  %v1295_v12 = vld [vmem:[#allocation8 + $0xf40] sm:$0xff]  ;;  %v1296_v11 = vld [vmem:[#allocation8 + $0xf48] sm:$0xff] }
 0x21e   : > { %4088 = vmatprep.subr.bf16.mxu0 %v5747_v10  ;;  %4300 = vmatprep.subr.bf16.mxu1 %v5749_v13  ;;  %v5787_v10 = vcombine.high %v1263_v31, %v1267_v32  ;;  %v5789_v13 = vcombine.high %v1264_v34, %v1268_v8  ;;  %v1299_v5 = vld [vmem:[#allocation8 + $0xf60] sm:$0xff]  ;;  %v1300_v15 = vld [vmem:[#allocation8 + $0xf68] sm:$0xff] }
 0x221   : > { %4089 = vmatpush1.bf16.msra.mxu0 %v5746_v38  ;;  %4301 = vmatpush1.bf16.msra.mxu1 %v5748_v39  ;;  %v5786_v38 = vcombine.low %v1263_v31, %v1267_v32  ;;  %v5788_v39 = vcombine.low %v1264_v34, %v1268_v8  ;;  %v1303_v31 = vld [vmem:[#allocation8 + $0xf80] sm:$0xff]  ;;  %v1304_v34 = vld [vmem:[#allocation8 + $0xf88] sm:$0xff] }
 0x222   : > { %4090 = vmatprep.subr.bf16.mxu0 %v5755_v41  ;;  %4302 = vmatprep.subr.bf16.mxu1 %v5757_v43  ;;  %v5795_v41 = vcombine.high %v1271_v19, %v1275_v14  ;;  %v5797_v43 = vcombine.high %v1272_v24, %v1276_v37  ;;  %v1307_v32 = vld [vmem:[#allocation8 + $0xfa0] sm:$0xff]  ;;  %v1308_v8 = vld [vmem:[#allocation8 + $0xfa8] sm:$0xff] }
 0x225   : > { %4091 = vmatpush1.bf16.msra.mxu0 %v5754_v51  ;;  %4303 = vmatpush1.bf16.msra.mxu1 %v5756_v29  ;;  %v5794_v51 = vcombine.low %v1271_v19, %v1275_v14  ;;  %v5796_v29 = vcombine.low %v1272_v24, %v1276_v37  ;;  %v1311_v19 = vld [vmem:[#allocation8 + $0xfc0] sm:$0xff]  ;;  %v1312_v24 = vld [vmem:[#allocation8 + $0xfc8] sm:$0xff] }
 0x226   : > { %4092 = vmatprep.subr.bf16.mxu0 %v5763_v52  ;;  %4304 = vmatprep.subr.bf16.mxu1 %v5765_v54  ;;  %v5803_v52 = vcombine.high %v1279_v44, %v1283_v26  ;;  %v5805_v54 = vcombine.high %v1280_v47, %v1284_v49  ;;  %v1315_v14 = vld [vmem:[#allocation8 + $0xfe0] sm:$0xff]  ;;  %v1316_v37 = vld [vmem:[#allocation8 + $0xfe8] sm:$0xff] }
 0x229   : > { %4093 = vmatpush1.bf16.msra.mxu0 %v5762_v62  ;;  %4305 = vmatpush1.bf16.msra.mxu1 %v5764_v2  ;;  %v5802_v62 = vcombine.low %v1279_v44, %v1283_v26  ;;  %v5804_v2 = vcombine.low %v1280_v47, %v1284_v49  ;;  %v809_v44 = vld [vmem:[#allocation8 + $0x10] sm:$0xff]  ;;  %v810_v47 = vld [vmem:[#allocation8 + $0x18] sm:$0xff] }
 0x22a   : > { %4094 = vmatprep.subr.bf16.mxu0 %v5771_v3  ;;  %4306 = vmatprep.subr.bf16.mxu1 %v5773_v4  ;;  %v5811_v3 = vcombine.high %v1287_v55, %v1291_v56  ;;  %v5813_v4 = vcombine.high %v1288_v58, %v1292_v59  ;;  %v813_v26 = vld [vmem:[#allocation8 + $0x30] sm:$0xff]  ;;  %v814_v49 = vld [vmem:[#allocation8 + $0x38] sm:$0xff] }
 0x22d   : > { %4095 = vmatpush1.bf16.msra.mxu0 %v5770_v16  ;;  %4307 = vmatpush1.bf16.msra.mxu1 %v5772_v25  ;;  %v5810_v16 = vcombine.low %v1287_v55, %v1291_v56  ;;  %v5812_v25 = vcombine.low %v1288_v58, %v1292_v59  ;;  %v817_v55 = vld [vmem:[#allocation8 + $0x50] sm:$0xff]  ;;  %v818_v58 = vld [vmem:[#allocation8 + $0x58] sm:$0xff] }
 0x22e   : > { %4096 = vmatprep.subr.bf16.mxu0 %v5779_v28  ;;  %4308 = vmatprep.subr.bf16.mxu1 %v5781_v17  ;;  %v5819_v28 = vcombine.high %v1295_v12, %v1299_v5  ;;  %v5821_v17 = vcombine.high %v1296_v11, %v1300_v15  ;;  %v821_v56 = vld [vmem:[#allocation8 + $0x70] sm:$0xff]  ;;  %v822_v59 = vld [vmem:[#allocation8 + $0x78] sm:$0xff] }
 0x231   : > { %4097 = vmatpush1.bf16.msra.mxu0 %v5778_v40  ;;  %4309 = vmatpush1.bf16.msra.mxu1 %v5780_v9  ;;  %v5818_v40 = vcombine.low %v1295_v12, %v1299_v5  ;;  %v5820_v9 = vcombine.low %v1296_v11, %v1300_v15  ;;  %v825_v12 = vld [vmem:[#allocation8 + $0x90] sm:$0xff]  ;;  %v826_v11 = vld [vmem:[#allocation8 + $0x98] sm:$0xff] }
 0x232   : > { %4098 = vmatprep.subr.bf16.mxu0 %v5787_v10  ;;  %4310 = vmatprep.subr.bf16.mxu1 %v5789_v13  ;;  %v5827_v10 = vcombine.high %v1303_v31, %v1307_v32  ;;  %v5829_v13 = vcombine.high %v1304_v34, %v1308_v8  ;;  %v829_v5 = vld [vmem:[#allocation8 + $0xb0] sm:$0xff]  ;;  %v830_v15 = vld [vmem:[#allocation8 + $0xb8] sm:$0xff] }
 0x235   : > { %4099 = vmatpush1.bf16.msra.mxu0 %v5786_v38  ;;  %4311 = vmatpush1.bf16.msra.mxu1 %v5788_v39  ;;  %v5826_v38 = vcombine.low %v1303_v31, %v1307_v32  ;;  %v5828_v39 = vcombine.low %v1304_v34, %v1308_v8  ;;  %v833_v31 = vld [vmem:[#allocation8 + $0xd0] sm:$0xff]  ;;  %v834_v34 = vld [vmem:[#allocation8 + $0xd8] sm:$0xff] }
 0x236   : > { %4100 = vmatprep.subr.bf16.mxu0 %v5795_v41  ;;  %4312 = vmatprep.subr.bf16.mxu1 %v5797_v43  ;;  %v5835_v41 = vcombine.high %v1311_v19, %v1315_v14  ;;  %v5837_v43 = vcombine.high %v1312_v24, %v1316_v37  ;;  %v837_v32 = vld [vmem:[#allocation8 + $0xf0] sm:$0xff]  ;;  %v838_v8 = vld [vmem:[#allocation8 + $0xf8] sm:$0xff] }
 0x239   : > { %4101 = vmatpush1.bf16.msra.mxu0 %v5794_v51  ;;  %4313 = vmatpush1.bf16.msra.mxu1 %v5796_v29  ;;  %v5834_v51 = vcombine.low %v1311_v19, %v1315_v14  ;;  %v5836_v29 = vcombine.low %v1312_v24, %v1316_v37  ;;  %v841_v19 = vld [vmem:[#allocation8 + $0x110] sm:$0xff]  ;;  %v842_v24 = vld [vmem:[#allocation8 + $0x118] sm:$0xff] }
 0x23a   : > { %4102 = vmatprep.subr.bf16.mxu0 %v5803_v52  ;;  %4314 = vmatprep.subr.bf16.mxu1 %v5805_v54  ;;  %v5335_v52 = vcombine.high %v809_v44, %v813_v26  ;;  %v5337_v54 = vcombine.high %v810_v47, %v814_v49  ;;  %v845_v14 = vld [vmem:[#allocation8 + $0x130] sm:$0xff]  ;;  %v846_v37 = vld [vmem:[#allocation8 + $0x138] sm:$0xff] }
 0x23d   : > { %4103 = vmatpush1.bf16.msra.mxu0 %v5802_v62  ;;  %4315 = vmatpush1.bf16.msra.mxu1 %v5804_v2  ;;  %v5334_v62 = vcombine.low %v809_v44, %v813_v26  ;;  %v5336_v2 = vcombine.low %v810_v47, %v814_v49  ;;  %v849_v44 = vld [vmem:[#allocation8 + $0x150] sm:$0xff]  ;;  %v850_v47 = vld [vmem:[#allocation8 + $0x158] sm:$0xff] }
 0x23e   : > { %4104 = vmatprep.subr.bf16.mxu0 %v5811_v3  ;;  %4316 = vmatprep.subr.bf16.mxu1 %v5813_v4  ;;  %v5343_v3 = vcombine.high %v817_v55, %v821_v56  ;;  %v5345_v4 = vcombine.high %v818_v58, %v822_v59  ;;  %v853_v26 = vld [vmem:[#allocation8 + $0x170] sm:$0xff]  ;;  %v854_v49 = vld [vmem:[#allocation8 + $0x178] sm:$0xff] }
 0x241   : > { %4105 = vmatpush1.bf16.msra.mxu0 %v5810_v16  ;;  %4317 = vmatpush1.bf16.msra.mxu1 %v5812_v25  ;;  %v5342_v16 = vcombine.low %v817_v55, %v821_v56  ;;  %v5344_v25 = vcombine.low %v818_v58, %v822_v59  ;;  %v857_v55 = vld [vmem:[#allocation8 + $0x190] sm:$0xff]  ;;  %v862_v58 = vld [vmem:[#allocation8 + $0x1b8] sm:$0xff]  ;;  %v5374_v59 = vcombine.low %v849_v44, %v853_v26 }
 0x242   : > { %4106 = vmatprep.subr.bf16.mxu0 %v5819_v28  ;;  %4318 = vmatprep.subr.bf16.mxu1 %v5821_v17  ;;  %v5351_v28 = vcombine.high %v825_v12, %v829_v5  ;;  %v5353_v17 = vcombine.high %v826_v11, %v830_v15  ;;  %v861_v56 = vld [vmem:[#allocation8 + $0x1b0] sm:$0xff] }
 0x245   : > { %4107 = vmatpush1.bf16.msra.mxu0 %v5818_v40  ;;  %4319 = vmatpush1.bf16.msra.mxu1 %v5820_v9  ;;  %v5350_v40 = vcombine.low %v825_v12, %v829_v5  ;;  %v5352_v9 = vcombine.low %v826_v11, %v830_v15  ;;  %v869_v12 = vld [vmem:[#allocation8 + $0x1f0] sm:$0xff]  ;;  %v866_v5 = vld [vmem:[#allocation8 + $0x1d8] sm:$0xff]  ;;  %v5382_v15 = vcombine.low %v857_v55, %v861_v56 }
 0x246   : > { %4108 = vmatprep.subr.bf16.mxu0 %v5827_v10  ;;  %4320 = vmatprep.subr.bf16.mxu1 %v5829_v13  ;;  %v5359_v10 = vcombine.high %v833_v31, %v837_v32  ;;  %v5361_v13 = vcombine.high %v834_v34, %v838_v8  ;;  %v870_v11 = vld [vmem:[#allocation8 + $0x1f8] sm:$0xff] }
 0x249   : > { %4109 = vmatpush1.bf16.msra.mxu0 %v5826_v38  ;;  %4321 = vmatpush1.bf16.msra.mxu1 %v5828_v39  ;;  %v5358_v38 = vcombine.low %v833_v31, %v837_v32  ;;  %v5360_v39 = vcombine.low %v834_v34, %v838_v8  ;;  %v877_v31 = vld [vmem:[#allocation8 + $0x230] sm:$0xff]  ;;  %v874_v32 = vld [vmem:[#allocation8 + $0x218] sm:$0xff] }
 0x24a   : > { %4110 = vmatprep.subr.bf16.mxu0 %v5835_v41  ;;  %4322 = vmatprep.subr.bf16.mxu1 %v5837_v43  ;;  %v5367_v41 = vcombine.high %v841_v19, %v845_v14  ;;  %v5369_v43 = vcombine.high %v842_v24, %v846_v37  ;;  %v878_v34 = vld [vmem:[#allocation8 + $0x238] sm:$0xff] }
 0x24d   : > { %4111 = vmatpush1.bf16.msra.mxu0 %v5834_v51  ;;  %4323 = vmatpush1.bf16.msra.mxu1 %v5836_v29  ;;  %v5366_v51 = vcombine.low %v841_v19, %v845_v14  ;;  %v5368_v29 = vcombine.low %v842_v24, %v846_v37  ;;  %v885_v19 = vld [vmem:[#allocation8 + $0x270] sm:$0xff]  ;;  %v882_v14 = vld [vmem:[#allocation8 + $0x258] sm:$0xff] }
 0x24e   : > { %4345 = vmatprep.subr.bf16.mxu0 %v5335_v52  ;;  %4557 = vmatprep.subr.bf16.mxu1 %v5337_v54  ;;  %v5375_v52 = vcombine.high %v849_v44, %v853_v26  ;;  %v5377_v54 = vcombine.high %v850_v47, %v854_v49  ;;  %v886_v24 = vld [vmem:[#allocation8 + $0x278] sm:$0xff]  ;;  %v893_v44 = vld [vmem:[#allocation8 + $0x2b0] sm:$0xff] }
 0x24f   : > { %v890_v26 = vld [vmem:[#allocation8 + $0x298] sm:$0xff] }
 0x250   : > { %4113 = vmatmul.mubr.bf16.vlgmr.msra.gmra.mrb[16].mxu0 %v6771_v42  ;;  %4325 = vmatmul.mubr.bf16.vlgmr.msra.gmra.mrb[16].mxu1 %v6771_v42 }
 0x251   : > { %4346 = vmatpush1.bf16.msra.mxu0 %v5334_v62  ;;  %4558 = vmatpush1.bf16.msra.mxu1 %v5336_v2  ;;  %v5376_v62 = vcombine.low %v850_v47, %v854_v49  ;;  %v5383_v2 = vcombine.high %v857_v55, %v861_v56  ;;  %v894_v47 = vld [vmem:[#allocation8 + $0x2b8] sm:$0xff]  ;;  %v901_v55 = vld [vmem:[#allocation8 + $0x2f0] sm:$0xff] }
 0x252   : > { %4347 = vmatprep.subr.bf16.mxu0 %v5343_v3  ;;  %4559 = vmatprep.subr.bf16.mxu1 %v5345_v4  ;;  %v865_v4 = vld [vmem:[#allocation8 + $0x1d0] sm:$0xff]  ;;  %v898_v56 = vld [vmem:[#allocation8 + $0x2d8] sm:$0xff] }
 0x253   : > { %4122 = vmatprep.mubr.bf16.mxu0 %v6785_v30  ;;  %4334 = vmatprep.mubr.bf16.mxu1 %v6785_v30  ;;  %v5390_v8 = vcombine.low %v865_v4, %v869_v12 }
 0x255   : > { %4348 = vmatpush1.bf16.msra.mxu0 %v5342_v16  ;;  %4560 = vmatpush1.bf16.msra.mxu1 %v5344_v25  ;;  %v5391_v25 = vcombine.high %v865_v4, %v869_v12  ;;  %v909_v4 = vld [vmem:[#allocation8 + $0x330] sm:$0xff]  ;;  %v906_v12 = vld [vmem:[#allocation8 + $0x318] sm:$0xff] }
 0x256   : > { %4349 = vmatprep.subr.bf16.mxu0 %v5351_v28  ;;  %4561 = vmatprep.subr.bf16.mxu1 %v5353_v17  ;;  %v5393_v28 = vcombine.high %v866_v5, %v870_v11  ;;  %v873_v17 = vld [vmem:[#allocation8 + $0x210] sm:$0xff] }
 0x257   : > { %v5398_v37 = vcombine.low %v873_v17, %v877_v31 }
 0x258   : > { %4123 = vmatmul.mubr.bf16.gmra.mrb[20].mxu0 %v6783_v61  ;;  %4335 = vmatmul.mubr.bf16.gmra.mrb[20].mxu1 %v6783_v61 }
 0x259   : > { %4350 = vmatpush1.bf16.msra.mxu0 %v5350_v40  ;;  %4377 = vmatprep.mubr.bf16.mxu0 %v6659_v53  ;;  %v5392_v40 = vcombine.low %v866_v5, %v870_v11  ;;  %v910_v5 = vld [vmem:[#allocation8 + $0x338] sm:$0xff] }
 0x25a   : > { %4562 = vmatpush1.bf16.msra.mxu1 %v5352_v9  ;;  %4589 = vmatprep.mubr.bf16.mxu1 %v6659_v53  ;;  %v858_v53 = vld [vmem:[#allocation8 + $0x198] sm:$0xff]  ;;  %v5399_v9 = vcombine.high %v873_v17, %v877_v31  ;;  %v917_v17 = vld [vmem:[#allocation8 + $0x370] sm:$0xff] }
 0x25b   : > { %4351 = vmatprep.subr.bf16.mxu0 %v5359_v10  ;;  %4563 = vmatprep.subr.bf16.mxu1 %v5361_v13  ;;  %v5385_v3 = vcombine.high %v858_v53, %v862_v58  ;;  %v5384_v16 = vcombine.low %v858_v53, %v862_v58  ;;  %v5401_v10 = vcombine.high %v874_v32, %v878_v34  ;;  %v881_v13 = vld [vmem:[#allocation8 + $0x250] sm:$0xff]  ;;  %v902_v53 = vld [vmem:[#allocation8 + $0x2f8] sm:$0xff] }
 0x25c   : > { %v5406_v49 = vcombine.low %v881_v13, %v885_v19  ;;  %v914_v31 = vld [vmem:[#allocation8 + $0x358] sm:$0xff] }
 0x25d   : > { %4352 = vmatpush1.bf16.msra.mxu0 %v5358_v38  ;;  %v5400_v38 = vcombine.low %v874_v32, %v878_v34  ;;  %v918_v32 = vld [vmem:[#allocation8 + $0x378] sm:$0xff] }
 0x25e   : > { %4564 = vmatpush1.bf16.msra.mxu1 %v5360_v39  ;;  %4353 = vmatprep.subr.bf16.mxu0 %v5367_v41  ;;  %v5407_v39 = vcombine.high %v881_v13, %v885_v19  ;;  %v5409_v41 = vcombine.high %v882_v14, %v886_v24  ;;  %v925_v13 = vld [vmem:[#allocation8 + $0x3b0] sm:$0xff]  ;;  %v922_v19 = vld [vmem:[#allocation8 + $0x398] sm:$0xff] }
 0x25f   : > { %4565 = vmatprep.subr.bf16.mxu1 %v5369_v43  ;;  %v889_v43 = vld [vmem:[#allocation8 + $0x290] sm:$0xff] }
 0x260   : > { %v5414_v58 = vcombine.low %v889_v43, %v893_v44 }
 0x261   : > { %4354 = vmatpush1.bf16.msra.mxu0 %v5366_v51  ;;  %v5408_v51 = vcombine.low %v882_v14, %v886_v24  ;;  %v926_v14 = vld [vmem:[#allocation8 + $0x3b8] sm:$0xff] }
 0x262   : > { %4566 = vmatpush1.bf16.msra.mxu1 %v5368_v29  ;;  %4355 = vmatprep.subr.bf16.mxu0 %v5375_v52  ;;  %v5415_v29 = vcombine.high %v889_v43, %v893_v44  ;;  %v5417_v52 = vcombine.high %v890_v26, %v894_v47  ;;  %v933_v43 = vld [vmem:[#allocation8 + $0x3f0] sm:$0xff]  ;;  %v930_v44 = vld [vmem:[#allocation8 + $0x3d8] sm:$0xff] }
 0x263   : > { %4567 = vmatprep.subr.bf16.mxu1 %v5377_v54  ;;  %v897_v54 = vld [vmem:[#allocation8 + $0x2d0] sm:$0xff] }
 0x264   : > { %v5422_v11 = vcombine.low %v897_v54, %v901_v55 }
 0x265   : > { %4356 = vmatpush1.bf16.msra.mxu0 %v5374_v59  ;;  %v5416_v59 = vcombine.low %v890_v26, %v894_v47  ;;  %v934_v26 = vld [vmem:[#allocation8 + $0x3f8] sm:$0xff] }
 0x266   : > { %4568 = vmatpush1.bf16.msra.mxu1 %v5376_v62  ;;  %4357 = vmatprep.subr.bf16.mxu0 %v5383_v2  ;;  %v5423_v62 = vcombine.high %v897_v54, %v901_v55  ;;  %v5425_v2 = vcombine.high %v898_v56, %v902_v53  ;;  %v941_v54 = vld [vmem:[#allocation8 + $0x430] sm:$0xff]  ;;  %v938_v55 = vld [vmem:[#allocation8 + $0x418] sm:$0xff] }
 0x267   : > { %4569 = vmatprep.subr.bf16.mxu1 %v5385_v3  ;;  %v905_v3 = vld [vmem:[#allocation8 + $0x310] sm:$0xff] }
 0x268   : > { %v5430_v34 = vcombine.low %v905_v3, %v909_v4 }
 0x269   : > { %4358 = vmatpush1.bf16.msra.mxu0 %v5382_v15  ;;  %v5424_v15 = vcombine.low %v898_v56, %v902_v53  ;;  %v942_v56 = vld [vmem:[#allocation8 + $0x438] sm:$0xff] }
 0x26a   : > { %4570 = vmatpush1.bf16.msra.mxu1 %v5384_v16  ;;  %4359 = vmatprep.subr.bf16.mxu0 %v5391_v25  ;;  %v5431_v16 = vcombine.high %v905_v3, %v909_v4  ;;  %v5433_v25 = vcombine.high %v906_v12, %v910_v5  ;;  %v949_v3 = vld [vmem:[#allocation8 + $0x470] sm:$0xff]  ;;  %v946_v4 = vld [vmem:[#allocation8 + $0x458] sm:$0xff] }
 0x26b   : > { %4571 = vmatprep.subr.bf16.mxu1 %v5393_v28  ;;  %v913_v28 = vld [vmem:[#allocation8 + $0x350] sm:$0xff] }
 0x26c   : > { %v5438_v24 = vcombine.low %v913_v28, %v917_v17 }
 0x26d   : > { %4360 = vmatpush1.bf16.msra.mxu0 %v5390_v8  ;;  %v5432_v8 = vcombine.low %v906_v12, %v910_v5  ;;  %v950_v12 = vld [vmem:[#allocation8 + $0x478] sm:$0xff] }
 0x26e   : > { %4572 = vmatpush1.bf16.msra.mxu1 %v5392_v40  ;;  %4361 = vmatprep.subr.bf16.mxu0 %v5399_v9  ;;  %v5439_v40 = vcombine.high %v913_v28, %v917_v17  ;;  %v5441_v9 = vcombine.high %v914_v31, %v918_v32  ;;  %v957_v28 = vld [vmem:[#allocation8 + $0x4b0] sm:$0xff]  ;;  %v954_v17 = vld [vmem:[#allocation8 + $0x498] sm:$0xff] }
 0x26f   : > { %4573 = vmatprep.subr.bf16.mxu1 %v5401_v10  ;;  %v921_v10 = vld [vmem:[#allocation8 + $0x390] sm:$0xff] }
 0x270   : > { %v5446_v47 = vcombine.low %v921_v10, %v925_v13 }
 0x271   : > { %4362 = vmatpush1.bf16.msra.mxu0 %v5398_v37  ;;  %v5440_v37 = vcombine.low %v914_v31, %v918_v32  ;;  %v958_v31 = vld [vmem:[#allocation8 + $0x4b8] sm:$0xff] }
 0x272   : > { %4574 = vmatpush1.bf16.msra.mxu1 %v5400_v38  ;;  %4363 = vmatprep.subr.bf16.mxu0 %v5407_v39  ;;  %v5447_v38 = vcombine.high %v921_v10, %v925_v13  ;;  %v5449_v39 = vcombine.high %v922_v19, %v926_v14  ;;  %v965_v10 = vld [vmem:[#allocation8 + $0x4f0] sm:$0xff]  ;;  %v962_v13 = vld [vmem:[#allocation8 + $0x4d8] sm:$0xff] }
 0x273   : > { %4575 = vmatprep.subr.bf16.mxu1 %v5409_v41  ;;  %v929_v41 = vld [vmem:[#allocation8 + $0x3d0] sm:$0xff] }
 0x274   : > { %v5454_v53 = vcombine.low %v929_v41, %v933_v43 }
 0x275   : > { %4364 = vmatpush1.bf16.msra.mxu0 %v5406_v49  ;;  %v5448_v49 = vcombine.low %v922_v19, %v926_v14  ;;  %v966_v19 = vld [vmem:[#allocation8 + $0x4f8] sm:$0xff]  ;;  %v5480_v14 = vcombine.low %v954_v17, %v958_v31 }
 0x276   : > { %4576 = vmatpush1.bf16.msra.mxu1 %v5408_v51  ;;  %4365 = vmatprep.subr.bf16.mxu0 %v5415_v29  ;;  %v5455_v51 = vcombine.high %v929_v41, %v933_v43  ;;  %v5457_v29 = vcombine.high %v930_v44, %v934_v26  ;;  %v974_v41 = vld [vmem:[#allocation8 + $0x538] sm:$0xff] }
 0x277   : > { %4577 = vmatprep.subr.bf16.mxu1 %v5417_v52  ;;  %v937_v52 = vld [vmem:[#allocation8 + $0x410] sm:$0xff] }
 0x278   : > { %v5462_v5 = vcombine.low %v937_v52, %v941_v54 }
 0x279   : > { %4366 = vmatpush1.bf16.msra.mxu0 %v5414_v58  ;;  %v5456_v58 = vcombine.low %v930_v44, %v934_v26  ;;  %v5488_v44 = vcombine.low %v962_v13, %v966_v19 }
 0x27a   : > { %4578 = vmatpush1.bf16.msra.mxu1 %v5416_v59  ;;  %4367 = vmatprep.subr.bf16.mxu0 %v5423_v62  ;;  %v5463_v59 = vcombine.high %v937_v52, %v941_v54  ;;  %v5465_v62 = vcombine.high %v938_v55, %v942_v56  ;;  %v982_v52 = vld [vmem:[#allocation8 + $0x578] sm:$0xff] }
 0x27b   : > { %4579 = vmatprep.subr.bf16.mxu1 %v5425_v2  ;;  %v945_v2 = vld [vmem:[#allocation8 + $0x450] sm:$0xff] }
 0x27c   : > { %v5470_v32 = vcombine.low %v945_v2, %v949_v3 }
 0x27d   : > { %4368 = vmatpush1.bf16.msra.mxu0 %v5422_v11  ;;  %v5464_v11 = vcombine.low %v938_v55, %v942_v56 }
 0x27e   : > { %4580 = vmatpush1.bf16.msra.mxu1 %v5424_v15  ;;  %4369 = vmatprep.subr.bf16.mxu0 %v5431_v16  ;;  %v5471_v15 = vcombine.high %v945_v2, %v949_v3  ;;  %v5473_v16 = vcombine.high %v946_v4, %v950_v12 }
 0x27f   : > { %4581 = vmatprep.subr.bf16.mxu1 %v5433_v25  ;;  %v953_v25 = vld [vmem:[#allocation8 + $0x490] sm:$0xff] }
 0x281   : > { %4370 = vmatpush1.bf16.msra.mxu0 %v5430_v34  ;;  %v5472_v34 = vcombine.low %v946_v4, %v950_v12  ;;  %v993_v12 = vld [vmem:[#allocation8 + $0x5d0] sm:$0xff] }
 0x282   : > { %4582 = vmatpush1.bf16.msra.mxu1 %v5432_v8  ;;  %4371 = vmatprep.subr.bf16.mxu0 %v5439_v40  ;;  %v5479_v8 = vcombine.high %v953_v25, %v957_v28  ;;  %v5481_v40 = vcombine.high %v954_v17, %v958_v31  ;;  %v1001_v31 = vld [vmem:[#allocation8 + $0x610] sm:$0xff] }
 0x283   : > { %4583 = vmatprep.subr.bf16.mxu1 %v5441_v9  ;;  %v961_v9 = vld [vmem:[#allocation8 + $0x4d0] sm:$0xff] }
 0x284   : > { %v5486_v43 = vcombine.low %v961_v9, %v965_v10 }
 0x285   : > { %4372 = vmatpush1.bf16.msra.mxu0 %v5438_v24  ;;  %v5487_v24 = vcombine.high %v961_v9, %v965_v10 }
 0x286   : > { %4584 = vmatpush1.bf16.msra.mxu1 %v5440_v37  ;;  %4373 = vmatprep.subr.bf16.mxu0 %v5447_v38  ;;  %v969_v37 = vld [vmem:[#allocation8 + $0x510] sm:$0xff] }
 0x287   : > { %4585 = vmatprep.subr.bf16.mxu1 %v5449_v39  ;;  %v973_v38 = vld [vmem:[#allocation8 + $0x530] sm:$0xff]  ;;  %v970_v39 = vld [vmem:[#allocation8 + $0x518] sm:$0xff] }
 0x288   : > { %v5495_v26 = vcombine.high %v969_v37, %v973_v38  ;;  %v5496_v54 = vcombine.low %v970_v39, %v974_v41 }
 0x289   : > { %4374 = vmatpush1.bf16.msra.mxu0 %v5446_v47  ;;  %v5497_v47 = vcombine.high %v970_v39, %v974_v41  ;;  %v1017_v41 = vld [vmem:[#allocation8 + $0x690] sm:$0xff] }
 0x28a   : > { %4586 = vmatpush1.bf16.msra.mxu1 %v5448_v49  ;;  %4375 = vmatprep.subr.bf16.mxu0 %v5455_v51  ;;  %v977_v49 = vld [vmem:[#allocation8 + $0x550] sm:$0xff] }
 0x28b   : > { %4587 = vmatprep.subr.bf16.mxu1 %v5457_v29  ;;  %v981_v51 = vld [vmem:[#allocation8 + $0x570] sm:$0xff]  ;;  %v978_v29 = vld [vmem:[#allocation8 + $0x558] sm:$0xff] }
 0x28c   : > { %v5503_v55 = vcombine.high %v977_v49, %v981_v51  ;;  %v5505_v56 = vcombine.high %v978_v29, %v982_v52  ;;  %v5504_v2 = vcombine.low %v978_v29, %v982_v52  ;;  %v1025_v52 = vld [vmem:[#allocation8 + $0x6d0] sm:$0xff] }
 0x28d   : > { %4376 = vmatpush1.bf16.msra.mxu0 %v5454_v53  ;;  %v989_v53 = vld [vmem:[#allocation8 + $0x5b0] sm:$0xff] }
 0x28e   : > { %4588 = vmatpush1.bf16.msra.mxu1 %v5456_v58  ;;  %4398 = vmatprep.subr.bf16.mxu0 %v5463_v59  ;;  %v986_v58 = vld [vmem:[#allocation8 + $0x598] sm:$0xff] }
 0x28f   : > { %4610 = vmatprep.subr.bf16.mxu1 %v5465_v62  ;;  %v990_v59 = vld [vmem:[#allocation8 + $0x5b8] sm:$0xff]  ;;  %v5502_v62 = vcombine.low %v977_v49, %v981_v51 }
 0x290   : > { %4378 = vmatmul.mubr.bf16.vlgmr.msra.gmra.mrb[24].mxu0 %v6656_v50  ;;  %v5513_v4 = vcombine.high %v986_v58, %v990_v59 }
 0x291   : > { %4590 = vmatmul.mubr.bf16.vlgmr.msra.gmra.mrb[24].mxu1 %v6656_v50  ;;  %4387 = vmatprep.mubr.bf16.mxu0 %v6719_v45  ;;  %v5478_v50 = vcombine.low %v953_v25, %v957_v28  ;;  %v5512_v25 = vcombine.low %v986_v58, %v990_v59  ;;  %v1033_v59 = vld [vmem:[#allocation8 + $0x710] sm:$0xff] }
 0x292   : > { %4399 = vmatpush1.bf16.msra.mxu0 %v5462_v5  ;;  %4599 = vmatprep.mubr.bf16.mxu1 %v6719_v45  ;;  %v5489_v45 = vcombine.high %v962_v13, %v966_v19  ;;  %v997_v5 = vld [vmem:[#allocation8 + $0x5f0] sm:$0xff] }
 0x293   : > { %4611 = vmatpush1.bf16.msra.mxu1 %v5464_v11  ;;  %4400 = vmatprep.subr.bf16.mxu0 %v5471_v15  ;;  %v994_v11 = vld [vmem:[#allocation8 + $0x5d8] sm:$0xff]  ;;  %v5519_v28 = vcombine.high %v993_v12, %v997_v5  ;;  %v1009_v19 = vld [vmem:[#allocation8 + $0x650] sm:$0xff] }
 0x294   : > { %4612 = vmatprep.subr.bf16.mxu1 %v5473_v16  ;;  %v998_v15 = vld [vmem:[#allocation8 + $0x5f8] sm:$0xff] }
 0x295   : > { %v5521_v17 = vcombine.high %v994_v11, %v998_v15  ;;  %v5520_v9 = vcombine.low %v994_v11, %v998_v15  ;;  %v1041_v15 = vld [vmem:[#allocation8 + $0x750] sm:$0xff] }
 0x296   : > { %4401 = vmatpush1.bf16.msra.mxu0 %v5470_v32  ;;  %v1005_v32 = vld [vmem:[#allocation8 + $0x630] sm:$0xff] }
 0x297   : > { %4613 = vmatpush1.bf16.msra.mxu1 %v5472_v34  ;;  %4402 = vmatprep.subr.bf16.mxu0 %v5479_v8  ;;  %v1002_v34 = vld [vmem:[#allocation8 + $0x618] sm:$0xff]  ;;  %v5527_v10 = vcombine.high %v1001_v31, %v1005_v32 }
 0x298   : > { %4388 = vmatmul.mubr.bf16.gmra.mrb[28].mxu0 %v6712_v0  ;;  %4614 = vmatprep.subr.bf16.mxu1 %v5481_v40  ;;  %v1006_v8 = vld [vmem:[#allocation8 + $0x638] sm:$0xff]  ;;  %v5518_v40 = vcombine.low %v993_v12, %v997_v5 }
 0x299   : > { %4600 = vmatmul.mubr.bf16.gmra.mrb[28].mxu1 %v6712_v0  ;;  %4430 = vmatprep.mubr.bf16.mxu0 %v6687_v27  ;;  %v5494_v0 = vcombine.low %v969_v37, %v973_v38  ;;  %v5529_v13 = vcombine.high %v1002_v34, %v1006_v8  ;;  %v5528_v37 = vcombine.low %v1002_v34, %v1006_v8  ;;  %v1049_v8 = vld [vmem:[#allocation8 + $0x790] sm:$0xff] }
 0x29a   : > { %4403 = vmatpush1.bf16.msra.mxu0 %v5478_v50  ;;  %4642 = vmatprep.mubr.bf16.mxu1 %v6687_v27  ;;  %v985_v27 = vld [vmem:[#allocation8 + $0x590] sm:$0xff] }
 0x29b   : > { %4615 = vmatpush1.bf16.msra.mxu1 %v5480_v14  ;;  %4404 = vmatprep.subr.bf16.mxu0 %v5487_v24  ;;  %v5511_v3 = vcombine.high %v985_v27, %v989_v53  ;;  %v5510_v16 = vcombine.low %v985_v27, %v989_v53  ;;  %v1013_v50 = vld [vmem:[#allocation8 + $0x670] sm:$0xff]  ;;  %v1010_v14 = vld [vmem:[#allocation8 + $0x658] sm:$0xff] }
 0x29c   : > { %4616 = vmatprep.subr.bf16.mxu1 %v5489_v45  ;;  %v1014_v24 = vld [vmem:[#allocation8 + $0x678] sm:$0xff]  ;;  %v5526_v45 = vcombine.low %v1001_v31, %v1005_v32  ;;  %v5535_v38 = vcombine.high %v1009_v19, %v1013_v50 }
 0x29d   : > { %v5537_v39 = vcombine.high %v1010_v14, %v1014_v24  ;;  %v5536_v49 = vcombine.low %v1010_v14, %v1014_v24  ;;  %v1057_v24 = vld [vmem:[#allocation8 + $0x7d0] sm:$0xff] }
 0x29e   : > { %4405 = vmatpush1.bf16.msra.mxu0 %v5486_v43  ;;  %v1021_v43 = vld [vmem:[#allocation8 + $0x6b0] sm:$0xff] }
 0x29f   : > { %4617 = vmatpush1.bf16.msra.mxu1 %v5488_v44  ;;  %4406 = vmatprep.subr.bf16.mxu0 %v5495_v26  ;;  %v1018_v44 = vld [vmem:[#allocation8 + $0x698] sm:$0xff]  ;;  %v5543_v51 = vcombine.high %v1017_v41, %v1021_v43 }
 0x2a0   : > { %4618 = vmatprep.subr.bf16.mxu1 %v5497_v47  ;;  %v1022_v26 = vld [vmem:[#allocation8 + $0x6b8] sm:$0xff]  ;;  %v5534_v47 = vcombine.low %v1009_v19, %v1013_v50 }
 0x2a1   : > { %v5545_v29 = vcombine.high %v1018_v44, %v1022_v26  ;;  %v5544_v27 = vcombine.low %v1018_v44, %v1022_v26  ;;  %v1065_v26 = vld [vmem:[#allocation8 + $0x810] sm:$0xff] }
 0x2a2   : > { %4407 = vmatpush1.bf16.msra.mxu0 %v5494_v0  ;;  %v1029_v0 = vld [vmem:[#allocation8 + $0x6f0] sm:$0xff] }
 0x2a3   : > { %4619 = vmatpush1.bf16.msra.mxu1 %v5496_v54  ;;  %4408 = vmatprep.subr.bf16.mxu0 %v5503_v55  ;;  %v1026_v54 = vld [vmem:[#allocation8 + $0x6d8] sm:$0xff]  ;;  %v5551_v53 = vcombine.high %v1025_v52, %v1029_v0 }
 0x2a4   : > { %4620 = vmatprep.subr.bf16.mxu1 %v5505_v56  ;;  %v1030_v55 = vld [vmem:[#allocation8 + $0x6f8] sm:$0xff]  ;;  %v5542_v56 = vcombine.low %v1017_v41, %v1021_v43 }
 0x2a5   : > { %v5553_v58 = vcombine.high %v1026_v54, %v1030_v55  ;;  %v5552_v12 = vcombine.low %v1026_v54, %v1030_v55  ;;  %v1073_v55 = vld [vmem:[#allocation8 + $0x850] sm:$0xff] }
 0x2a6   : > { %4409 = vmatpush1.bf16.msra.mxu0 %v5502_v62  ;;  %v1037_v62 = vld [vmem:[#allocation8 + $0x730] sm:$0xff] }
 0x2a7   : > { %4621 = vmatpush1.bf16.msra.mxu1 %v5504_v2  ;;  %4410 = vmatprep.subr.bf16.mxu0 %v5511_v3  ;;  %v1034_v2 = vld [vmem:[#allocation8 + $0x718] sm:$0xff]  ;;  %v5559_v5 = vcombine.high %v1033_v59, %v1037_v62 }
 0x2a8   : > { %4622 = vmatprep.subr.bf16.mxu1 %v5513_v4  ;;  %v1038_v3 = vld [vmem:[#allocation8 + $0x738] sm:$0xff]  ;;  %v5550_v4 = vcombine.low %v1025_v52, %v1029_v0 }
 0x2a9   : > { %v5561_v11 = vcombine.high %v1034_v2, %v1038_v3  ;;  %v5560_v31 = vcombine.low %v1034_v2, %v1038_v3  ;;  %v1081_v3 = vld [vmem:[#allocation8 + $0x890] sm:$0xff] }
 0x2aa   : > { %4411 = vmatpush1.bf16.msra.mxu0 %v5510_v16  ;;  %v1045_v16 = vld [vmem:[#allocation8 + $0x770] sm:$0xff] }
 0x2ab   : > { %4623 = vmatpush1.bf16.msra.mxu1 %v5512_v25  ;;  %4412 = vmatprep.subr.bf16.mxu0 %v5519_v28  ;;  %v1042_v25 = vld [vmem:[#allocation8 + $0x758] sm:$0xff]  ;;  %v5567_v32 = vcombine.high %v1041_v15, %v1045_v16 }
 0x2ac   : > { %4624 = vmatprep.subr.bf16.mxu1 %v5521_v17  ;;  %v1046_v28 = vld [vmem:[#allocation8 + $0x778] sm:$0xff]  ;;  %v5558_v17 = vcombine.low %v1033_v59, %v1037_v62 }
 0x2ad   : > { %v5569_v34 = vcombine.high %v1042_v25, %v1046_v28  ;;  %v5568_v19 = vcombine.low %v1042_v25, %v1046_v28  ;;  %v1089_v28 = vld [vmem:[#allocation8 + $0x8d0] sm:$0xff] }
 0x2ae   : > { %4413 = vmatpush1.bf16.msra.mxu0 %v5518_v40  ;;  %v1053_v40 = vld [vmem:[#allocation8 + $0x7b0] sm:$0xff] }
 0x2af   : > { %4625 = vmatpush1.bf16.msra.mxu1 %v5520_v9  ;;  %4414 = vmatprep.subr.bf16.mxu0 %v5527_v10  ;;  %v1050_v9 = vld [vmem:[#allocation8 + $0x798] sm:$0xff]  ;;  %v5575_v50 = vcombine.high %v1049_v8, %v1053_v40 }
 0x2b0   : > { %4626 = vmatprep.subr.bf16.mxu1 %v5529_v13  ;;  %v1054_v10 = vld [vmem:[#allocation8 + $0x7b8] sm:$0xff]  ;;  %v5566_v13 = vcombine.low %v1041_v15, %v1045_v16 }
 0x2b1   : > { %v5577_v14 = vcombine.high %v1050_v9, %v1054_v10  ;;  %v5576_v41 = vcombine.low %v1050_v9, %v1054_v10  ;;  %v1101_v9 = vld [vmem:[#allocation8 + $0x930] sm:$0xff]  ;;  %v1098_v10 = vld [vmem:[#allocation8 + $0x918] sm:$0xff] }
 0x2b2   : > { %4415 = vmatpush1.bf16.msra.mxu0 %v5526_v45  ;;  %v1061_v45 = vld [vmem:[#allocation8 + $0x7f0] sm:$0xff] }
 0x2b3   : > { %4627 = vmatpush1.bf16.msra.mxu1 %v5528_v37  ;;  %4416 = vmatprep.subr.bf16.mxu0 %v5535_v38  ;;  %v1058_v37 = vld [vmem:[#allocation8 + $0x7d8] sm:$0xff]  ;;  %v5583_v43 = vcombine.high %v1057_v24, %v1061_v45 }
 0x2b4   : > { %4628 = vmatprep.subr.bf16.mxu1 %v5537_v39  ;;  %v1062_v38 = vld [vmem:[#allocation8 + $0x7f8] sm:$0xff]  ;;  %v5574_v39 = vcombine.low %v1049_v8, %v1053_v40  ;;  %v1097_v40 = vld [vmem:[#allocation8 + $0x910] sm:$0xff] }
 0x2b5   : > { %v5585_v44 = vcombine.high %v1058_v37, %v1062_v38  ;;  %v5584_v52 = vcombine.low %v1058_v37, %v1062_v38  ;;  %v1109_v37 = vld [vmem:[#allocation8 + $0x970] sm:$0xff]  ;;  %v1106_v38 = vld [vmem:[#allocation8 + $0x958] sm:$0xff] }
 0x2b6   : > { %4417 = vmatpush1.bf16.msra.mxu0 %v5534_v47  ;;  %v1069_v47 = vld [vmem:[#allocation8 + $0x830] sm:$0xff] }
 0x2b7   : > { %4629 = vmatpush1.bf16.msra.mxu1 %v5536_v49  ;;  %4418 = vmatprep.subr.bf16.mxu0 %v5543_v51  ;;  %v1066_v49 = vld [vmem:[#allocation8 + $0x818] sm:$0xff]  ;;  %v5591_v0 = vcombine.high %v1065_v26, %v1069_v47 }
 0x2b8   : > { %4630 = vmatprep.subr.bf16.mxu1 %v5545_v29  ;;  %v1070_v51 = vld [vmem:[#allocation8 + $0x838] sm:$0xff]  ;;  %v5582_v29 = vcombine.low %v1057_v24, %v1061_v45  ;;  %v1105_v45 = vld [vmem:[#allocation8 + $0x950] sm:$0xff] }
 0x2b9   : > { %v5593_v54 = vcombine.high %v1066_v49, %v1070_v51  ;;  %v5592_v59 = vcombine.low %v1066_v49, %v1070_v51  ;;  %v1118_v49 = vld [vmem:[#allocation8 + $0x9b8] sm:$0xff]  ;;  %v5630_v51 = vcombine.low %v1105_v45, %v1109_v37 }
 0x2ba   : > { %4419 = vmatpush1.bf16.msra.mxu0 %v5542_v56  ;;  %v1077_v56 = vld [vmem:[#allocation8 + $0x870] sm:$0xff] }
 0x2bb   : > { %4631 = vmatpush1.bf16.msra.mxu1 %v5544_v27  ;;  %4420 = vmatprep.subr.bf16.mxu0 %v5551_v53  ;;  %v1074_v27 = vld [vmem:[#allocation8 + $0x858] sm:$0xff]  ;;  %v5599_v62 = vcombine.high %v1073_v55, %v1077_v56 }
 0x2bc   : > { %4632 = vmatprep.subr.bf16.mxu1 %v5553_v58  ;;  %v1078_v53 = vld [vmem:[#allocation8 + $0x878] sm:$0xff]  ;;  %v5590_v58 = vcombine.low %v1065_v26, %v1069_v47  ;;  %v1117_v26 = vld [vmem:[#allocation8 + $0x9b0] sm:$0xff] }
 0x2bd   : > { %v5601_v2 = vcombine.high %v1074_v27, %v1078_v53  ;;  %v5600_v15 = vcombine.low %v1074_v27, %v1078_v53  ;;  %v1114_v47 = vld [vmem:[#allocation8 + $0x998] sm:$0xff] }
 0x2be   : > { %4421 = vmatpush1.bf16.msra.mxu0 %v5550_v4  ;;  %v1085_v4 = vld [vmem:[#allocation8 + $0x8b0] sm:$0xff]  ;;  %v1126_v27 = vld [vmem:[#allocation8 + $0x9f8] sm:$0xff] }
 0x2bf   : > { %4633 = vmatpush1.bf16.msra.mxu1 %v5552_v12  ;;  %4422 = vmatprep.subr.bf16.mxu0 %v5559_v5  ;;  %v1082_v12 = vld [vmem:[#allocation8 + $0x898] sm:$0xff]  ;;  %v5607_v16 = vcombine.high %v1081_v3, %v1085_v4 }
 0x2c0   : > { %4634 = vmatprep.subr.bf16.mxu1 %v5561_v11  ;;  %v1086_v5 = vld [vmem:[#allocation8 + $0x8b8] sm:$0xff]  ;;  %v5598_v11 = vcombine.low %v1073_v55, %v1077_v56  ;;  %v1125_v55 = vld [vmem:[#allocation8 + $0x9f0] sm:$0xff] }
 0x2c1   : > { %v5609_v25 = vcombine.high %v1082_v12, %v1086_v5  ;;  %v1122_v56 = vld [vmem:[#allocation8 + $0x9d8] sm:$0xff] }
 0x2c2   : > { %4423 = vmatpush1.bf16.msra.mxu0 %v5558_v17  ;;  %v1093_v17 = vld [vmem:[#allocation8 + $0x8f0] sm:$0xff] }
 0x2c3   : > { %4635 = vmatpush1.bf16.msra.mxu1 %v5560_v31  ;;  %4424 = vmatprep.subr.bf16.mxu0 %v5567_v32  ;;  %v1090_v31 = vld [vmem:[#allocation8 + $0x8d8] sm:$0xff]  ;;  %v5615_v8 = vcombine.high %v1089_v28, %v1093_v17 }
 0x2c4   : > { %4636 = vmatprep.subr.bf16.mxu1 %v5569_v34  ;;  %v1094_v32 = vld [vmem:[#allocation8 + $0x8f8] sm:$0xff]  ;;  %v5608_v34 = vcombine.low %v1082_v12, %v1086_v5 }
 0x2c5   : > { %v1134_v12 = vld [vmem:[#allocation8 + $0xa38] sm:$0xff] }
 0x2c6   : > { %4425 = vmatpush1.bf16.msra.mxu0 %v5566_v13  ;;  %v1102_v13 = vld [vmem:[#allocation8 + $0x938] sm:$0xff] }
 0x2c7   : > { %4637 = vmatpush1.bf16.msra.mxu1 %v5568_v19  ;;  %4426 = vmatprep.subr.bf16.mxu0 %v5575_v50  ;;  %v5614_v19 = vcombine.low %v1089_v28, %v1093_v17  ;;  %v5616_v50 = vcombine.low %v1090_v31, %v1094_v32  ;;  %v5625_v24 = vcombine.high %v1098_v10, %v1102_v13  ;;  %v1141_v28 = vld [vmem:[#allocation8 + $0xa70] sm:$0xff]  ;;  %v1138_v17 = vld [vmem:[#allocation8 + $0xa58] sm:$0xff] }
 0x2c8   : > { %4638 = vmatprep.subr.bf16.mxu1 %v5577_v14  ;;  %v5623_v14 = vcombine.high %v1097_v40, %v1101_v9 }
 0x2ca   : > { %4427 = vmatpush1.bf16.msra.mxu0 %v5574_v39  ;;  %v1110_v39 = vld [vmem:[#allocation8 + $0x978] sm:$0xff] }
 0x2cb   : > { %4639 = vmatpush1.bf16.msra.mxu1 %v5576_v41  ;;  %4428 = vmatprep.subr.bf16.mxu0 %v5583_v43  ;;  %v5624_v41 = vcombine.low %v1098_v10, %v1102_v13  ;;  %v5631_v43 = vcombine.high %v1105_v45, %v1109_v37  ;;  %v1150_v10 = vld [vmem:[#allocation8 + $0xab8] sm:$0xff]  ;;  %v1157_v45 = vld [vmem:[#allocation8 + $0xaf0] sm:$0xff] }
 0x2cc   : > { %4640 = vmatprep.subr.bf16.mxu1 %v5585_v44  ;;  %v5633_v44 = vcombine.high %v1106_v38, %v1110_v39  ;;  %v1154_v37 = vld [vmem:[#allocation8 + $0xad8] sm:$0xff] }
 0x2ce   : > { %4429 = vmatpush1.bf16.msra.mxu0 %v5582_v29  ;;  %v5632_v29 = vcombine.low %v1106_v38, %v1110_v39  ;;  %v1158_v38 = vld [vmem:[#allocation8 + $0xaf8] sm:$0xff] }
 0x2cf   : > { %4641 = vmatpush1.bf16.msra.mxu1 %v5584_v52  ;;  %4451 = vmatprep.subr.bf16.mxu0 %v5591_v0  ;;  %v5641_v0 = vcombine.high %v1114_v47, %v1118_v49 }
 0x2d0   : > { %4663 = vmatprep.subr.bf16.mxu1 %v5593_v54  ;;  %v1121_v54 = vld [vmem:[#allocation8 + $0x9d0] sm:$0xff] }
 0x2d1   : > { %4431 = vmatmul.mubr.bf16.vlgmr.msra.gmra.mrb[24].mxu0 %v6679_v6  ;;  %v5646_v5 = vcombine.low %v1121_v54, %v1125_v55 }
 0x2d2   : > { %4643 = vmatmul.mubr.bf16.vlgmr.msra.gmra.mrb[24].mxu1 %v6679_v6  ;;  %4440 = vmatprep.mubr.bf16.mxu0 %v6730_v60  ;;  %v5606_v6 = vcombine.low %v1081_v3, %v1085_v4  ;;  %v1133_v3 = vld [vmem:[#allocation8 + $0xa30] sm:$0xff]  ;;  %v1130_v4 = vld [vmem:[#allocation8 + $0xa18] sm:$0xff] }
 0x2d3   : > { %4452 = vmatpush1.bf16.msra.mxu0 %v5590_v58  ;;  %4652 = vmatprep.mubr.bf16.mxu1 %v6730_v60  ;;  %v5617_v60 = vcombine.high %v1090_v31, %v1094_v32  ;;  %v5640_v58 = vcombine.low %v1114_v47, %v1118_v49  ;;  %v1142_v31 = vld [vmem:[#allocation8 + $0xa78] sm:$0xff] }
 0x2d4   : > { %4664 = vmatpush1.bf16.msra.mxu1 %v5592_v59  ;;  %4453 = vmatprep.subr.bf16.mxu0 %v5599_v62  ;;  %v5647_v59 = vcombine.high %v1121_v54, %v1125_v55  ;;  %v5649_v62 = vcombine.high %v1122_v56, %v1126_v27  ;;  %v1166_v47 = vld [vmem:[#allocation8 + $0xb38] sm:$0xff]  ;;  %v1173_v54 = vld [vmem:[#allocation8 + $0xb70] sm:$0xff] }
 0x2d5   : > { %4665 = vmatprep.subr.bf16.mxu1 %v5601_v2  ;;  %v1129_v2 = vld [vmem:[#allocation8 + $0xa10] sm:$0xff]  ;;  %v1170_v55 = vld [vmem:[#allocation8 + $0xb58] sm:$0xff] }
 0x2d6   : > { %v5654_v32 = vcombine.low %v1129_v2, %v1133_v3 }
 0x2d7   : > { %4454 = vmatpush1.bf16.msra.mxu0 %v5598_v11  ;;  %v5648_v11 = vcombine.low %v1122_v56, %v1126_v27  ;;  %v1174_v56 = vld [vmem:[#allocation8 + $0xb78] sm:$0xff] }
 0x2d8   : > { %4666 = vmatpush1.bf16.msra.mxu1 %v5600_v15  ;;  %4455 = vmatprep.subr.bf16.mxu0 %v5607_v16  ;;  %v5655_v15 = vcombine.high %v1129_v2, %v1133_v3  ;;  %v5657_v16 = vcombine.high %v1130_v4, %v1134_v12  ;;  %v1181_v2 = vld [vmem:[#allocation8 + $0xbb0] sm:$0xff]  ;;  %v1178_v3 = vld [vmem:[#allocation8 + $0xb98] sm:$0xff] }
 0x2d9   : > { %4441 = vmatmul.mubr.bf16.gmra.mrb[28].mxu0 %v6725_v57  ;;  %4667 = vmatprep.subr.bf16.mxu1 %v5609_v25  ;;  %v1137_v25 = vld [vmem:[#allocation8 + $0xa50] sm:$0xff] }
 0x2da   : > { %4653 = vmatmul.mubr.bf16.gmra.mrb[28].mxu1 %v6725_v57  ;;  %4483 = vmatprep.mubr.bf16.mxu0 %v6739_v35  ;;  %v5622_v57 = vcombine.low %v1097_v40, %v1101_v9  ;;  %v1149_v40 = vld [vmem:[#allocation8 + $0xab0] sm:$0xff]  ;;  %v1146_v9 = vld [vmem:[#allocation8 + $0xa98] sm:$0xff]  ;;  %v5662_v13 = vcombine.low %v1137_v25, %v1141_v28 }
 0x2db   : > { %4456 = vmatpush1.bf16.msra.mxu0 %v5606_v6  ;;  %4695 = vmatprep.mubr.bf16.mxu1 %v6739_v35  ;;  %v1113_v35 = vld [vmem:[#allocation8 + $0x990] sm:$0xff]  ;;  %v5656_v6 = vcombine.low %v1130_v4, %v1134_v12  ;;  %v1182_v4 = vld [vmem:[#allocation8 + $0xbb8] sm:$0xff] }
 0x2dc   : > { %4668 = vmatpush1.bf16.msra.mxu1 %v5608_v34  ;;  %4457 = vmatprep.subr.bf16.mxu0 %v5615_v8  ;;  %v5639_v52 = vcombine.high %v1113_v35, %v1117_v26  ;;  %v5638_v53 = vcombine.low %v1113_v35, %v1117_v26  ;;  %v5663_v34 = vcombine.high %v1137_v25, %v1141_v28  ;;  %v1165_v35 = vld [vmem:[#allocation8 + $0xb30] sm:$0xff]  ;;  %v1162_v26 = vld [vmem:[#allocation8 + $0xb18] sm:$0xff] }
 0x2dd   : > { %4669 = vmatprep.subr.bf16.mxu1 %v5617_v60  ;;  %v5665_v8 = vcombine.high %v1138_v17, %v1142_v31  ;;  %v1145_v60 = vld [vmem:[#allocation8 + $0xa90] sm:$0xff]  ;;  %v1186_v28 = vld [vmem:[#allocation8 + $0xbd8] sm:$0xff] }
 0x2de   : > { %v5670_v39 = vcombine.low %v1145_v60, %v1149_v40  ;;  %v1189_v25 = vld [vmem:[#allocation8 + $0xbf0] sm:$0xff] }
 0x2df   : > { %4458 = vmatpush1.bf16.msra.mxu0 %v5614_v19  ;;  %v5664_v19 = vcombine.low %v1138_v17, %v1142_v31  ;;  %v1190_v17 = vld [vmem:[#allocation8 + $0xbf8] sm:$0xff] }
 0x2e0   : > { %4670 = vmatpush1.bf16.msra.mxu1 %v5616_v50  ;;  %4459 = vmatprep.subr.bf16.mxu0 %v5623_v14  ;;  %v5671_v50 = vcombine.high %v1145_v60, %v1149_v40  ;;  %v5673_v14 = vcombine.high %v1146_v9, %v1150_v10  ;;  %v1197_v60 = vld [vmem:[#allocation8 + $0xc30] sm:$0xff]  ;;  %v1194_v40 = vld [vmem:[#allocation8 + $0xc18] sm:$0xff] }
 0x2e1   : > { %4671 = vmatprep.subr.bf16.mxu1 %v5625_v24  ;;  %v1153_v24 = vld [vmem:[#allocation8 + $0xad0] sm:$0xff] }
 0x2e2   : > { %v5678_v49 = vcombine.low %v1153_v24, %v1157_v45 }
 0x2e3   : > { %4460 = vmatpush1.bf16.msra.mxu0 %v5622_v57  ;;  %v5672_v57 = vcombine.low %v1146_v9, %v1150_v10  ;;  %v1198_v9 = vld [vmem:[#allocation8 + $0xc38] sm:$0xff] }
 0x2e4   : > { %4672 = vmatpush1.bf16.msra.mxu1 %v5624_v41  ;;  %4461 = vmatprep.subr.bf16.mxu0 %v5631_v43  ;;  %v5679_v41 = vcombine.high %v1153_v24, %v1157_v45  ;;  %v5681_v43 = vcombine.high %v1154_v37, %v1158_v38  ;;  %v1205_v24 = vld [vmem:[#allocation8 + $0xc70] sm:$0xff]  ;;  %v1202_v45 = vld [vmem:[#allocation8 + $0xc58] sm:$0xff] }
 0x2e5   : > { %4673 = vmatprep.subr.bf16.mxu1 %v5633_v44  ;;  %v1161_v44 = vld [vmem:[#allocation8 + $0xb10] sm:$0xff] }
 0x2e6   : > { %v5686_v27 = vcombine.low %v1161_v44, %v1165_v35 }
 0x2e7   : > { %4462 = vmatpush1.bf16.msra.mxu0 %v5630_v51  ;;  %v5680_v51 = vcombine.low %v1154_v37, %v1158_v38  ;;  %v1206_v37 = vld [vmem:[#allocation8 + $0xc78] sm:$0xff] }
 0x2e8   : > { %4674 = vmatpush1.bf16.msra.mxu1 %v5632_v29  ;;  %4463 = vmatprep.subr.bf16.mxu0 %v5639_v52  ;;  %v5687_v29 = vcombine.high %v1161_v44, %v1165_v35  ;;  %v5689_v52 = vcombine.high %v1162_v26, %v1166_v47  ;;  %v1213_v44 = vld [vmem:[#allocation8 + $0xcb0] sm:$0xff]  ;;  %v1210_v35 = vld [vmem:[#allocation8 + $0xc98] sm:$0xff] }
 0x2e9   : > { %4675 = vmatprep.subr.bf16.mxu1 %v5641_v0  ;;  %v1169_v0 = vld [vmem:[#allocation8 + $0xb50] sm:$0xff] }
 0x2ea   : > { %v5694_v12 = vcombine.low %v1169_v0, %v1173_v54 }
 0x2eb   : > { %4464 = vmatpush1.bf16.msra.mxu0 %v5638_v53  ;;  %v5688_v53 = vcombine.low %v1162_v26, %v1166_v47  ;;  %v1214_v26 = vld [vmem:[#allocation8 + $0xcb8] sm:$0xff] }
 0x2ec   : > { %4676 = vmatpush1.bf16.msra.mxu1 %v5640_v58  ;;  %4465 = vmatprep.subr.bf16.mxu0 %v5647_v59  ;;  %v5695_v58 = vcombine.high %v1169_v0, %v1173_v54  ;;  %v5697_v59 = vcombine.high %v1170_v55, %v1174_v56  ;;  %v1221_v0 = vld [vmem:[#allocation8 + $0xcf0] sm:$0xff]  ;;  %v1218_v54 = vld [vmem:[#allocation8 + $0xcd8] sm:$0xff] }
 0x2ed   : > { %4677 = vmatprep.subr.bf16.mxu1 %v5649_v62  ;;  %v1177_v62 = vld [vmem:[#allocation8 + $0xb90] sm:$0xff] }
 0x2ee   : > { %v5702_v31 = vcombine.low %v1177_v62, %v1181_v2 }
 0x2ef   : > { %4466 = vmatpush1.bf16.msra.mxu0 %v5646_v5  ;;  %v5696_v5 = vcombine.low %v1170_v55, %v1174_v56  ;;  %v1222_v55 = vld [vmem:[#allocation8 + $0xcf8] sm:$0xff]  ;;  %v5736_v56 = vcombine.low %v1210_v35, %v1214_v26 }
 0x2f0   : > { %4678 = vmatpush1.bf16.msra.mxu1 %v5648_v11  ;;  %4467 = vmatprep.subr.bf16.mxu0 %v5655_v15  ;;  %v5703_v11 = vcombine.high %v1177_v62, %v1181_v2  ;;  %v5705_v15 = vcombine.high %v1178_v3, %v1182_v4  ;;  %v1230_v62 = vld [vmem:[#allocation8 + $0xd38] sm:$0xff] }
 0x2f1   : > { %4679 = vmatprep.subr.bf16.mxu1 %v5657_v16  ;;  %v1185_v16 = vld [vmem:[#allocation8 + $0xbd0] sm:$0xff] }
 0x2f2   : > { %v5710_v10 = vcombine.low %v1185_v16, %v1189_v25 }
 0x2f3   : > { %4468 = vmatpush1.bf16.msra.mxu0 %v5654_v32  ;;  %v5704_v32 = vcombine.low %v1178_v3, %v1182_v4  ;;  %v5744_v3 = vcombine.low %v1218_v54, %v1222_v55 }
 0x2f4   : > { %4680 = vmatpush1.bf16.msra.mxu1 %v5656_v6  ;;  %4469 = vmatprep.subr.bf16.mxu0 %v5663_v34  ;;  %v5711_v6 = vcombine.high %v1185_v16, %v1189_v25  ;;  %v5713_v34 = vcombine.high %v1186_v28, %v1190_v17  ;;  %v1238_v16 = vld [vmem:[#allocation8 + $0xd78] sm:$0xff] }
 0x2f5   : > { %4681 = vmatprep.subr.bf16.mxu1 %v5665_v8  ;;  %v1193_v8 = vld [vmem:[#allocation8 + $0xc10] sm:$0xff] }
 0x2f6   : > { %v5718_v38 = vcombine.low %v1193_v8, %v1197_v60 }
 0x2f7   : > { %4470 = vmatpush1.bf16.msra.mxu0 %v5662_v13  ;;  %v5712_v13 = vcombine.low %v1186_v28, %v1190_v17 }
 0x2f8   : > { %4682 = vmatpush1.bf16.msra.mxu1 %v5664_v19  ;;  %4471 = vmatprep.subr.bf16.mxu0 %v5671_v50  ;;  %v5719_v19 = vcombine.high %v1193_v8, %v1197_v60  ;;  %v5721_v50 = vcombine.high %v1194_v40, %v1198_v9  ;;  %v1246_v8 = vld [vmem:[#allocation8 + $0xdb8] sm:$0xff] }
 0x2f9   : > { %4683 = vmatprep.subr.bf16.mxu1 %v5673_v14  ;;  %v1201_v14 = vld [vmem:[#allocation8 + $0xc50] sm:$0xff] }
 0x2fa   : > { %v5726_v47 = vcombine.low %v1201_v14, %v1205_v24 }
 0x2fb   : > { %4472 = vmatpush1.bf16.msra.mxu0 %v5670_v39  ;;  %v5720_v39 = vcombine.low %v1194_v40, %v1198_v9 }
 0x2fc   : > { %4684 = vmatpush1.bf16.msra.mxu1 %v5672_v57  ;;  %4473 = vmatprep.subr.bf16.mxu0 %v5679_v41  ;;  %v5727_v57 = vcombine.high %v1201_v14, %v1205_v24  ;;  %v5729_v41 = vcombine.high %v1202_v45, %v1206_v37 }
 0x2fd   : > { %4685 = vmatprep.subr.bf16.mxu1 %v5681_v43  ;;  %v1209_v43 = vld [vmem:[#allocation8 + $0xc90] sm:$0xff] }
 0x2ff   : > { %4474 = vmatpush1.bf16.msra.mxu0 %v5678_v49  ;;  %v5728_v49 = vcombine.low %v1202_v45, %v1206_v37  ;;  %v1249_v37 = vld [vmem:[#allocation8 + $0xdd0] sm:$0xff] }
 0x300   : > { %4686 = vmatpush1.bf16.msra.mxu1 %v5680_v51  ;;  %4475 = vmatprep.subr.bf16.mxu0 %v5687_v29  ;;  %v5735_v51 = vcombine.high %v1209_v43, %v1213_v44  ;;  %v5737_v29 = vcombine.high %v1210_v35, %v1214_v26  ;;  %v1257_v26 = vld [vmem:[#allocation8 + $0xe10] sm:$0xff] }
 0x301   : > { %4687 = vmatprep.subr.bf16.mxu1 %v5689_v52  ;;  %v1217_v52 = vld [vmem:[#allocation8 + $0xcd0] sm:$0xff] }
 0x302   : > { %v5742_v2 = vcombine.low %v1217_v52, %v1221_v0 }
 0x303   : > { %4476 = vmatpush1.bf16.msra.mxu0 %v5686_v27  ;;  %v5743_v27 = vcombine.high %v1217_v52, %v1221_v0  ;;  %v1262_v52 = vld [vmem:[#allocation8 + $0xe38] sm:$0xff] }
 0x304   : > { %4688 = vmatpush1.bf16.msra.mxu1 %v5688_v53  ;;  %4477 = vmatprep.subr.bf16.mxu0 %v5695_v58  ;;  %v1225_v53 = vld [vmem:[#allocation8 + $0xd10] sm:$0xff] }
 0x305   : > { %4689 = vmatprep.subr.bf16.mxu1 %v5697_v59  ;;  %v1229_v58 = vld [vmem:[#allocation8 + $0xd30] sm:$0xff]  ;;  %v1226_v59 = vld [vmem:[#allocation8 + $0xd18] sm:$0xff] }
 0x306   : > { %v5751_v4 = vcombine.high %v1225_v53, %v1229_v58  ;;  %v5752_v25 = vcombine.low %v1226_v59, %v1230_v62 }
 0x307   : > { %4478 = vmatpush1.bf16.msra.mxu0 %v5694_v12  ;;  %v5753_v12 = vcombine.high %v1226_v59, %v1230_v62  ;;  %v1265_v62 = vld [vmem:[#allocation8 + $0xe50] sm:$0xff] }
 0x308   : > { %4690 = vmatpush1.bf16.msra.mxu1 %v5696_v5  ;;  %4479 = vmatprep.subr.bf16.mxu0 %v5703_v11  ;;  %v1233_v5 = vld [vmem:[#allocation8 + $0xd50] sm:$0xff] }
 0x309   : > { %4691 = vmatprep.subr.bf16.mxu1 %v5705_v15  ;;  %v1237_v11 = vld [vmem:[#allocation8 + $0xd70] sm:$0xff]  ;;  %v1234_v15 = vld [vmem:[#allocation8 + $0xd58] sm:$0xff] }
 0x30a   : > { %v5759_v28 = vcombine.high %v1233_v5, %v1237_v11  ;;  %v5761_v17 = vcombine.high %v1234_v15, %v1238_v16  ;;  %v5758_v9 = vcombine.low %v1233_v5, %v1237_v11 }
 0x30b   : > { %4480 = vmatpush1.bf16.msra.mxu0 %v5702_v31 }
 0x30c   : > { %4692 = vmatpush1.bf16.msra.mxu1 %v5704_v32  ;;  %4481 = vmatprep.subr.bf16.mxu0 %v5711_v6  ;;  %v1245_v6 = vld [vmem:[#allocation8 + $0xdb0] sm:$0xff] }
 0x30d   : > { %4693 = vmatprep.subr.bf16.mxu1 %v5713_v34  ;;  %v1242_v34 = vld [vmem:[#allocation8 + $0xd98] sm:$0xff] }
 0x30e   : > { %v5769_v45 = vcombine.high %v1242_v34, %v1246_v8 }
 0x30f   : > { %4482 = vmatpush1.bf16.msra.mxu0 %v5710_v10  ;;  %v5760_v10 = vcombine.low %v1234_v15, %v1238_v16  ;;  %v1273_v16 = vld [vmem:[#allocation8 + $0xe90] sm:$0xff] }
 0x310   : > { %4694 = vmatpush1.bf16.msra.mxu1 %v5712_v13  ;;  %4504 = vmatprep.subr.bf16.mxu0 %v5719_v19 }
 0x311   : > { %4716 = vmatprep.subr.bf16.mxu1 %v5721_v50 }
 0x312   : > { %4484 = vmatmul.mubr.bf16.vlgmr.msra.gmra.mrb[24].mxu0 %v6737_v33 }
 0x313   : > { %4696 = vmatmul.mubr.bf16.vlgmr.msra.gmra.mrb[24].mxu1 %v6737_v33  ;;  %4493 = vmatprep.mubr.bf16.mxu0 %v6769_v36  ;;  %v5734_v33 = vcombine.low %v1209_v43, %v1213_v44  ;;  %v5768_v43 = vcombine.low %v1242_v34, %v1246_v8  ;;  %v1281_v8 = vld [vmem:[#allocation8 + $0xed0] sm:$0xff] }
 0x314   : > { %4505 = vmatpush1.bf16.msra.mxu0 %v5718_v38  ;;  %4705 = vmatprep.mubr.bf16.mxu1 %v6769_v36  ;;  %v5745_v36 = vcombine.high %v1218_v54, %v1222_v55  ;;  %v1253_v38 = vld [vmem:[#allocation8 + $0xdf0] sm:$0xff] }
 0x315   : > { %4717 = vmatpush1.bf16.msra.mxu1 %v5720_v39  ;;  %4506 = vmatprep.subr.bf16.mxu0 %v5727_v57  ;;  %v1250_v39 = vld [vmem:[#allocation8 + $0xdd8] sm:$0xff]  ;;  %v5775_v44 = vcombine.high %v1249_v37, %v1253_v38  ;;  %v5774_v55 = vcombine.low %v1249_v37, %v1253_v38 }
 0x316   : > { %4718 = vmatprep.subr.bf16.mxu1 %v5729_v41  ;;  %v1254_v57 = vld [vmem:[#allocation8 + $0xdf8] sm:$0xff] }
 0x317   : > { %v5777_v35 = vcombine.high %v1250_v39, %v1254_v57 }
 0x318   : > { %4507 = vmatpush1.bf16.msra.mxu0 %v5726_v47  ;;  %v1261_v47 = vld [vmem:[#allocation8 + $0xe30] sm:$0xff] }
 0x319   : > { %4719 = vmatpush1.bf16.msra.mxu1 %v5728_v49  ;;  %4508 = vmatprep.subr.bf16.mxu0 %v5735_v51 }
 0x31a   : > { %4494 = vmatmul.mubr.bf16.gmra.mrb[28].mxu0 %v6765_v22  ;;  %4720 = vmatprep.subr.bf16.mxu1 %v5737_v29  ;;  %v1258_v29 = vld [vmem:[#allocation8 + $0xe18] sm:$0xff] }
 0x31b   : > { %4706 = vmatmul.mubr.bf16.gmra.mrb[28].mxu1 %v6765_v22  ;;  %4536 = vmatprep.mubr.bf16.mxu0 %v6773_v46  ;;  %v5750_v22 = vcombine.low %v1225_v53, %v1229_v58  ;;  %v5785_v59 = vcombine.high %v1258_v29, %v1262_v52  ;;  %v5784_v5 = vcombine.low %v1258_v29, %v1262_v52  ;;  %v1297_v52 = vld [vmem:[#allocation8 + $0xf50] sm:$0xff] }
 0x31c   : > { %4509 = vmatpush1.bf16.msra.mxu0 %v5734_v33  ;;  %4748 = vmatprep.mubr.bf16.mxu1 %v6773_v46  ;;  %v1241_v46 = vld [vmem:[#allocation8 + $0xd90] sm:$0xff]  ;;  %v5776_v33 = vcombine.low %v1250_v39, %v1254_v57 }
 0x31d   : > { %4721 = vmatpush1.bf16.msra.mxu1 %v5736_v56  ;;  %4510 = vmatprep.subr.bf16.mxu0 %v5743_v27  ;;  %v5767_v24 = vcombine.high %v1241_v46, %v1245_v6  ;;  %v5766_v41 = vcombine.low %v1241_v46, %v1245_v6  ;;  %v1289_v57 = vld [vmem:[#allocation8 + $0xf10] sm:$0xff] }
 0x31e   : > { %4722 = vmatprep.subr.bf16.mxu1 %v5745_v36  ;;  %v5783_v36 = vcombine.high %v1257_v26, %v1261_v47 }
 0x320   : > { %4511 = vmatpush1.bf16.msra.mxu0 %v5742_v2  ;;  %v1269_v2 = vld [vmem:[#allocation8 + $0xe70] sm:$0xff] }
 0x321   : > { %4723 = vmatpush1.bf16.msra.mxu1 %v5744_v3  ;;  %4512 = vmatprep.subr.bf16.mxu0 %v5751_v4  ;;  %v1266_v3 = vld [vmem:[#allocation8 + $0xe58] sm:$0xff]  ;;  %v5791_v11 = vcombine.high %v1265_v62, %v1269_v2 }
 0x322   : > { %4724 = vmatprep.subr.bf16.mxu1 %v5753_v12  ;;  %v1270_v4 = vld [vmem:[#allocation8 + $0xe78] sm:$0xff]  ;;  %v5782_v12 = vcombine.low %v1257_v26, %v1261_v47 }
 0x323   : > { %v6831_v31 = vpop.f32.mrb[16].mxu0  ;;  %v6833_v32 = vpop.f32.mrb[16].mxu1  ;;  %v5793_v15 = vcombine.high %v1266_v3, %v1270_v4  ;;  %v5792_v46 = vcombine.low %v1266_v3, %v1270_v4  ;;  %v1305_v4 = vld [vmem:[#allocation8 + $0xf90] sm:$0xff] }
 0x324   : > { %4513 = vmatpush1.bf16.msra.mxu0 %v5750_v22  ;;  %v6835_v60 = vpop.f32.mrb[17].mxu0  ;;  %v6837_v40 = vpop.f32.mrb[17].mxu1  ;;  %v1277_v22 = vld [vmem:[#allocation8 + $0xeb0] sm:$0xff] }
 0x325   : > { %4725 = vmatpush1.bf16.msra.mxu1 %v5752_v25  ;;  %4514 = vmatprep.subr.bf16.mxu0 %v5759_v28  ;;  %v6839_v13 = vpop.f32.mrb[18].mxu0  ;;  %v6841_v19 = vpop.f32.mrb[18].mxu1  ;;  %v1274_v25 = vld [vmem:[#allocation8 + $0xe98] sm:$0xff]  ;;  %v5799_v6 = vcombine.high %v1273_v16, %v1277_v22 }
 0x326   : > { %4726 = vmatprep.subr.bf16.mxu1 %v5761_v17  ;;  %v6843_v50 = vpop.f32.mrb[19].mxu0  ;;  %v6845_v14 = vpop.f32.mrb[19].mxu1  ;;  %v1278_v28 = vld [vmem:[#allocation8 + $0xeb8] sm:$0xff]  ;;  %v5790_v17 = vcombine.low %v1265_v62, %v1269_v2 }
 0x327   : > { %v5801_v34 = vcombine.high %v1274_v25, %v1278_v28  ;;  %v5800_v37 = vcombine.low %v1274_v25, %v1278_v28  ;;  %v1313_v28 = vld [vmem:[#allocation8 + $0xfd0] sm:$0xff] }
 0x328   : > { %4515 = vmatpush1.bf16.msra.mxu0 %v5758_v9  ;;  %v1285_v9 = vld [vmem:[#allocation8 + $0xef0] sm:$0xff] }
 0x329   : > { %4727 = vmatpush1.bf16.msra.mxu1 %v5760_v10  ;;  %4516 = vmatprep.subr.bf16.mxu0 %v5767_v24  ;;  %v1282_v10 = vld [vmem:[#allocation8 + $0xed8] sm:$0xff]  ;;  %v5807_v38 = vcombine.high %v1281_v8, %v1285_v9 }
 0x32a   : > { %4728 = vmatprep.subr.bf16.mxu1 %v5769_v45  ;;  %v1286_v24 = vld [vmem:[#allocation8 + $0xef8] sm:$0xff]  ;;  %v5798_v45 = vcombine.low %v1273_v16, %v1277_v22 }
 0x32b   : > { %v6847_v49 = vpop.f32.mrb[20].mxu0  ;;  %v6849_v51 = vpop.f32.mrb[20].mxu1  ;;  %v5809_v39 = vcombine.high %v1282_v10, %v1286_v24  ;;  %v5808_v26 = vcombine.low %v1282_v10, %v1286_v24 }
 0x32c   : > { %4517 = vmatpush1.bf16.msra.mxu0 %v5766_v41  ;;  %v6851_v0 = vpop.f32.mrb[21].mxu0  ;;  %v6853_v54 = vpop.f32.mrb[21].mxu1  ;;  %v1293_v41 = vld [vmem:[#allocation8 + $0xf30] sm:$0xff] }
 0x32d   : > { %4729 = vmatpush1.bf16.msra.mxu1 %v5768_v43  ;;  %v6855_v56 = vpop.f32.mrb[22].mxu0  ;;  %v6857_v27 = vpop.f32.mrb[22].mxu1  ;;  %4518 = vmatprep.subr.bf16.mxu0 %v5775_v44  ;;  %v1290_v43 = vld [vmem:[#allocation8 + $0xf18] sm:$0xff]  ;;  %v5815_v47 = vcombine.high %v1289_v57, %v1293_v41 }
 0x32e   : > { %4730 = vmatprep.subr.bf16.mxu1 %v5777_v35  ;;  %v6859_v53 = vpop.f32.mrb[23].mxu0  ;;  %v6861_v58 = vpop.f32.mrb[23].mxu1  ;;  %v1294_v44 = vld [vmem:[#allocation8 + $0xf38] sm:$0xff]  ;;  %v5806_v35 = vcombine.low %v1281_v8, %v1285_v9 }
 0x32f   : > { %v5817_v29 = vcombine.high %v1290_v43, %v1294_v44  ;;  %v5816_v62 = vcombine.low %v1290_v43, %v1294_v44 }
 0x330   : > { %4519 = vmatpush1.bf16.msra.mxu0 %v5774_v55  ;;  %v1301_v55 = vld [vmem:[#allocation8 + $0xf70] sm:$0xff] }
 0x331   : > { %4731 = vmatpush1.bf16.msra.mxu1 %v5776_v33  ;;  %4520 = vmatprep.subr.bf16.mxu0 %v5783_v36  ;;  %v1298_v33 = vld [vmem:[#allocation8 + $0xf58] sm:$0xff]  ;;  %v5823_v2 = vcombine.high %v1297_v52, %v1301_v55 }
 0x332   : > { %4732 = vmatprep.subr.bf16.mxu1 %v5785_v59  ;;  %v1302_v36 = vld [vmem:[#allocation8 + $0xf78] sm:$0xff]  ;;  %v5814_v59 = vcombine.low %v1289_v57, %v1293_v41 }
 0x333   : > { %v5825_v3 = vcombine.high %v1298_v33, %v1302_v36  ;;  %v5824_v16 = vcombine.low %v1298_v33, %v1302_v36 }
 0x334   : > { %4521 = vmatpush1.bf16.msra.mxu0 %v5782_v12  ;;  %v1309_v12 = vld [vmem:[#allocation8 + $0xfb0] sm:$0xff] }
 0x335   : > { %4733 = vmatpush1.bf16.msra.mxu1 %v5784_v5  ;;  %4522 = vmatprep.subr.bf16.mxu0 %v5791_v11  ;;  %v1306_v5 = vld [vmem:[#allocation8 + $0xf98] sm:$0xff]  ;;  %v5831_v22 = vcombine.high %v1305_v4, %v1309_v12 }
 0x336   : > { %4734 = vmatprep.subr.bf16.mxu1 %v5793_v15  ;;  %v1310_v11 = vld [vmem:[#allocation8 + $0xfb8] sm:$0xff]  ;;  %v5822_v15 = vcombine.low %v1297_v52, %v1301_v55 }
 0x337   : > { %v5833_v25 = vcombine.high %v1306_v5, %v1310_v11  ;;  %v5832_v8 = vcombine.low %v1306_v5, %v1310_v11 }
 0x338   : > { %4523 = vmatpush1.bf16.msra.mxu0 %v5790_v17  ;;  %v1317_v17 = vld [vmem:[#allocation8 + $0xff0] sm:$0xff] }
 0x339   : > { %4735 = vmatpush1.bf16.msra.mxu1 %v5792_v46  ;;  %4524 = vmatprep.subr.bf16.mxu0 %v5799_v6  ;;  %v1314_v46 = vld [vmem:[#allocation8 + $0xfd8] sm:$0xff]  ;;  %v5839_v9 = vcombine.high %v1313_v28, %v1317_v17  ;;  %v5838_v24 = vcombine.low %v1313_v28, %v1317_v17 }
 0x33a   : > { %4736 = vmatprep.subr.bf16.mxu1 %v5801_v34  ;;  %v1318_v6 = vld [vmem:[#allocation8 + $0xff8] sm:$0xff]  ;;  %v5830_v34 = vcombine.low %v1305_v4, %v1309_v12 }
 0x33b   : > { %v5841_v10 = vcombine.high %v1314_v46, %v1318_v6 }
 0x33c   : > { %4525 = vmatpush1.bf16.msra.mxu0 %v5798_v45  ;;  %v5840_v45 = vcombine.low %v1314_v46, %v1318_v6 }
 0x33d   : > { %4737 = vmatpush1.bf16.msra.mxu1 %v5800_v37  ;;  %4526 = vmatprep.subr.bf16.mxu0 %v5807_v38  ;;  %v6869_v37 = vld [vmem:[#allocation10] ss:$4 sm:$0xff] }
 0x33e   : > { %4738 = vmatprep.subr.bf16.mxu1 %v5809_v39  ;;  %v1324_v38 = vrot.slane %v6869_v37, %v6622_v18  ;;  %v1328_v39 = vrot.slane %v6869_v37, %v6627_v20 }
 0x340   : > { %4527 = vmatpush1.bf16.msra.mxu0 %v5806_v35  ;;  %v6876_v57 = vadd.f32 %v6831_v31, %v1324_v38  ;;  %v6885_v41 = vadd.f32 %v6843_v50, %v1328_v39  ;;  %v1336_v50 = vrot.slane %v6869_v37, %v6635_v23  ;;  %v6910_v52 = vadd.f32 %v6847_v49, %v1324_v38 }
 0x341   : > { %4739 = vmatpush1.bf16.msra.mxu1 %v5808_v26  ;;  %4528 = vmatprep.subr.bf16.mxu0 %v5815_v47  ;;  %v6913_v55 = vadd.f32 %v6851_v0, %v1328_v39  ;;  %v6938_v12 = vadd.f32 %v6859_v53, %v1328_v39  ;;  %v6958_v53 = vrot.slane %v6869_v37, %v6682_v7 }
 0x342   : > { %4740 = vmatprep.subr.bf16.mxu1 %v5817_v29  ;;  %v4805_v43 = vmul.f32 %v6876_v57, %v6876_v57  ;;  %v6918_v36 = vadd.f32 %v6837_v40, %v1336_v50  ;;  %v4821_v0 = vmul.f32 %v6910_v52, %v6910_v52 }
 0x344   : > { %4529 = vmatpush1.bf16.msra.mxu0 %v5814_v59  ;;  %v4808_v5 = vmul.f32 %v6918_v36, %v6918_v36 }
 0x345   : > { %4741 = vmatpush1.bf16.msra.mxu1 %v5816_v62  ;;  %4530 = vmatprep.subr.bf16.mxu0 %v5823_v2 }
 0x346   : > { %4742 = vmatprep.subr.bf16.mxu1 %v5825_v3  ;;  %v4822_v3 = vmul.f32 %v6913_v55, %v6913_v55 }
 0x348   : > { %4531 = vmatpush1.bf16.msra.mxu0 %v5822_v15  ;;  %v6946_v15 = vrot.slane %v6869_v37, %v6669_v63  ;;  %v4855_v17 = vadd.f32 %v4822_v3, %v4821_v0 }
 0x349   : > { %4743 = vmatpush1.bf16.msra.mxu1 %v5824_v16  ;;  %4532 = vmatprep.subr.bf16.mxu0 %v5831_v22  ;;  %v6951_v16 = vadd.f32 %v6853_v54, %v1336_v50 }
 0x34a   : > { %4744 = vmatprep.subr.bf16.mxu1 %v5833_v25 }
 0x34c   : > { %4533 = vmatpush1.bf16.msra.mxu0 %v5830_v34 }
 0x34d   : > { %4745 = vmatpush1.bf16.msra.mxu1 %v5832_v8  ;;  %4534 = vmatprep.subr.bf16.mxu0 %v5839_v9  ;;  %v4830_v9 = vmul.f32 %v6938_v12, %v6938_v12 }
 0x34e   : > { %4746 = vmatprep.subr.bf16.mxu1 %v5841_v10 }
 0x350   : > { %4535 = vmatpush1.bf16.msra.mxu0 %v5838_v24  ;;  %v6978_v24 = vrot.slane %v6869_v37, %v6745_v48 }
 0x351   : > { %4747 = vmatpush1.bf16.msra.mxu1 %v5840_v45 }
 0x353   : > { %4537 = vmatmul.mubr.bf16.vlgmr.msra.gmra.mrb[24].mxu0 %v6771_v42 }
 0x354   : > { %4749 = vmatmul.mubr.bf16.vlgmr.msra.gmra.mrb[24].mxu1 %v6771_v42  ;;  %4546 = vmatprep.mubr.bf16.mxu0 %v6785_v30  ;;  %v6879_v42 = vadd.f32 %v6835_v60, %v1328_v39  ;;  %v4814_v60 = vmul.f32 %v6885_v41, %v6885_v41 }
 0x355   : > { %4758 = vmatprep.mubr.bf16.mxu1 %v6785_v30  ;;  %v6882_v30 = vadd.f32 %v6839_v13, %v1324_v38 }
 0x356   : > { %v4806_v44 = vmul.f32 %v6879_v42, %v6879_v42  ;;  %v4769_v35 = vadd.f32 %v6879_v42, %v6876_v57 }
 0x357   : > { %v4813_v31 = vmul.f32 %v6882_v30, %v6882_v30  ;;  %v4778_v29 = vadd.f32 %v6885_v41, %v6882_v30 }
 0x358   : > { %v4837_v47 = vadd.f32 %v4806_v44, %v4805_v43 }
 0x35b   : > { %4547 = vmatmul.mubr.bf16.gmra.mrb[28].mxu0 %v6783_v61 }
 0x35c   : > { %4759 = vmatmul.mubr.bf16.gmra.mrb[28].mxu1 %v6783_v61  ;;  %v1332_v61 = vrot.slane %v6869_v37, %v6630_v21 }
 0x35e   : > { %v6898_v13 = vadd.f32 %v6833_v32, %v1332_v61  ;;  %v6905_v26 = vadd.f32 %v6841_v19, %v1332_v61  ;;  %v4846_v32 = vadd.f32 %v4814_v60, %v4813_v31  ;;  %v6921_v19 = vadd.f32 %v6845_v14, %v1336_v50 }
 0x35f   : > { %v6932_v40 = vadd.f32 %v6849_v51, %v1332_v61  ;;  %v6935_v14 = vadd.f32 %v6855_v56, %v1324_v38  ;;  %v4787_v51 = vadd.f32 %v6913_v55, %v6910_v52  ;;  %v6954_v56 = vadd.f32 %v6857_v27, %v1332_v61 }
 0x360   : > { %v4807_v33 = vmul.f32 %v6898_v13, %v6898_v13  ;;  %v4770_v59 = vadd.f32 %v6898_v13, %v4769_v35  ;;  %v4815_v62 = vmul.f32 %v6905_v26, %v6905_v26  ;;  %v4779_v2 = vadd.f32 %v6905_v26, %v4778_v29 }
 0x361   : > { %v4816_v11 = vmul.f32 %v6921_v19, %v6921_v19  ;;  %v4823_v6 = vmul.f32 %v6932_v40, %v6932_v40  ;;  %v4796_v54 = vadd.f32 %v6938_v12, %v6935_v14  ;;  %v6967_v27 = vadd.f32 %v6861_v58, %v1336_v50 }
 0x362   : > { %v4838_v49 = vadd.f32 %v4837_v47, %v4807_v33  ;;  %v4847_v4 = vadd.f32 %v4846_v32, %v4815_v62  ;;  %v4771_v22 = vadd.f32 %v6918_v36, %v4770_v59  ;;  %v4780_v28 = vadd.f32 %v6921_v19, %v4779_v2 }
 0x363   : > { %v4829_v8 = vmul.f32 %v6935_v14, %v6935_v14  ;;  %v4788_v39 = vadd.f32 %v6932_v40, %v4787_v51  ;;  %v4824_v58 = vmul.f32 %v6951_v16, %v6951_v16  ;;  %v4831_v61 = vmul.f32 %v6954_v56, %v6954_v56 }
 0x364   : > { %v4839_v25 = vadd.f32 %v4838_v49, %v4808_v5  ;;  %v4848_v46 = vadd.f32 %v4847_v4, %v4816_v11  ;;  %v4856_v60 = vadd.f32 %v4855_v17, %v4823_v6  ;;  %v4797_v33 = vadd.f32 %v6954_v56, %v4796_v54 }
 0x365   : > { %v4832_v59 = vmul.f32 %v6967_v27, %v6967_v27  ;;  %v6999_v62 = vrot.slane %v6869_v37, %v6755_v1  ;;  %v4864_v0 = vadd.f32 %v4830_v9, %v4829_v8  ;;  %v4789_v17 = vadd.f32 %v6951_v16, %v4788_v39 }
 0x366   : > { %v4857_v6 = vadd.f32 %v4856_v60, %v4824_v58 }
 0x426   : > { %v4538_v34 = vpop.f32.mrb[24].mxu0 }
 0x427   : > { %v6974_v10 = vadd.f32 %v4538_v34, %v6946_v15  ;;  %v4750_v45 = vpop.f32.mrb[24].mxu1  ;;  %v4540_v38 = vpop.f32.mrb[25].mxu0 }
 0x428   : > { %v6986_v43 = vadd.f32 %v4540_v38, %v6958_v53  ;;  %v4752_v44 = vpop.f32.mrb[25].mxu1  ;;  %v4542_v31 = vpop.f32.mrb[26].mxu0  ;;  %v7005_v3 = vadd.f32 %v4750_v45, %v6978_v24  ;;  %v4865_v38 = vadd.f32 %v4864_v0, %v4831_v61 }
 0x429   : > { %v4772_v50 = vadd.f32 %v6974_v10, %v4771_v22  ;;  %v4809_v35 = vmul.f32 %v6974_v10, %v6974_v10  ;;  %v6992_v47 = vadd.f32 %v4542_v31, %v6946_v15  ;;  %v4754_v29 = vpop.f32.mrb[26].mxu1  ;;  %v4544_v32 = vpop.f32.mrb[27].mxu0  ;;  %v7019_v8 = vadd.f32 %v4752_v44, %v6999_v62 }
 0x42a   : > { %v7002_v49 = vadd.f32 %v4544_v32, %v6958_v53  ;;  %v4756_v2 = vpop.f32.mrb[27].mxu1  ;;  %v4810_v51 = vmul.f32 %v6986_v43, %v6986_v43  ;;  %v4811_v31 = vmul.f32 %v7005_v3, %v7005_v3 }
 0x42b   : > { %v4781_v4 = vadd.f32 %v6992_v47, %v4780_v28  ;;  %v4817_v5 = vmul.f32 %v6992_v47, %v6992_v47  ;;  %v4840_v11 = vadd.f32 %v4839_v25, %v4809_v35  ;;  %v4773_v22 = vadd.f32 %v6986_v43, %v4772_v50 }
 0x42c   : > { %v4818_v37 = vmul.f32 %v7002_v49, %v7002_v49  ;;  %v4798_v28 = vadd.f32 %v6967_v27, %v4797_v33  ;;  %v7022_v25 = vadd.f32 %v4754_v29, %v6978_v24  ;;  %v7028_v39 = vadd.f32 %v4756_v2, %v6999_v62 }
 0x42d   : > { %v4782_v54 = vadd.f32 %v7002_v49, %v4781_v4  ;;  %v4849_v34 = vadd.f32 %v4848_v46, %v4817_v5  ;;  %v4774_v45 = vadd.f32 %v7005_v3, %v4773_v22  ;;  %v4841_v61 = vadd.f32 %v4840_v11, %v4810_v51 }
 0x42e   : > { %v4548_v9 = vpop.f32.mrb[28].mxu0 }
 0x42f   : > { %v7031_v46 = vadd.f32 %v4548_v9, %v6946_v15  ;;  %v4760_v58 = vpop.f32.mrb[28].mxu1  ;;  %v4550_v60 = vpop.f32.mrb[29].mxu0  ;;  %v4775_v29 = vadd.f32 %v7019_v8, %v4774_v45  ;;  %v4850_v32 = vadd.f32 %v4849_v34, %v4818_v37  ;;  %v4783_v22 = vadd.f32 %v7022_v25, %v4782_v54 }
 0x430   : > { %v7034_v44 = vadd.f32 %v4550_v60, %v6958_v53  ;;  %v4762_v50 = vpop.f32.mrb[29].mxu1  ;;  %v4552_v35 = vpop.f32.mrb[30].mxu0  ;;  %v7045_v9 = vadd.f32 %v4760_v58, %v6978_v24  ;;  %v4819_v37 = vmul.f32 %v7022_v25, %v7022_v25  ;;  %v4866_v58 = vadd.f32 %v4865_v38, %v4832_v59 }
 0x431   : > { %v4790_v33 = vadd.f32 %v7031_v46, %v4789_v17  ;;  %v4825_v2 = vmul.f32 %v7031_v46, %v7031_v46  ;;  %v7041_v0 = vadd.f32 %v4552_v35, %v6946_v15  ;;  %v4764_v4 = vpop.f32.mrb[30].mxu1  ;;  %v4554_v5 = vpop.f32.mrb[31].mxu0  ;;  %4776 = vadd.xlane.f32.xlu0 %v4775_v29  ;;  %v4820_v60 = vmul.f32 %v7028_v39, %v7028_v39 }
 0x432   : > { %v4826_v45 = vmul.f32 %v7034_v44, %v7034_v44  ;;  %v7050_v11 = vadd.f32 %v4554_v5, %v6958_v53  ;;  %v4766_v51 = vpop.f32.mrb[31].mxu1  ;;  %v4851_v35 = vadd.f32 %v4850_v32, %v4819_v37  ;;  %v4842_v53 = vadd.f32 %v4841_v61, %v4811_v31 }
 0x433   : > { %7442 = vst [vmem:[#allocation16_spill] sm:$0xff] %v7041_v0  ;;  %v4858_v15 = vadd.f32 %v4857_v6, %v4825_v2  ;;  %v4791_v17 = vadd.f32 %v7034_v44, %v4790_v33  ;;  %v4799_v34 = vadd.f32 %v7041_v0, %v4798_v28  ;;  %v4833_v54 = vmul.f32 %v7041_v0, %v7041_v0 }
 0x434   : > { %v7061_v5 = vadd.f32 %v4762_v50, %v6999_v62  ;;  %v4834_v29 = vmul.f32 %v7050_v11, %v7050_v11  ;;  %v4784_v6 = vadd.f32 %v7028_v39, %v4783_v22  ;;  %v4852_v0 = vadd.f32 %v4851_v35, %v4820_v60 }
 0x435   : > { %v4792_v33 = vadd.f32 %v7045_v9, %v4791_v17  ;;  %v4867_v28 = vadd.f32 %v4866_v58, %v4833_v54  ;;  %v4800_v2 = vadd.f32 %v7050_v11, %v4799_v34  ;;  %v4859_v59 = vadd.f32 %v4858_v15, %v4826_v45 }
 0x436   : > { %v4827_v38 = vmul.f32 %v7045_v9, %v7045_v9  ;;  %4785 = vadd.xlane.f32.xlu0 %v4784_v6  ;;  %v4812_v31 = vmul.f32 %v7019_v8, %v7019_v8  ;;  %v7073_v50 = vadd.f32 %v4764_v4, %v6978_v24  ;;  %4853 = vadd.xlane.f32.xlu1 %v4852_v0 }
 0x437   : > { %v4793_v32 = vadd.f32 %v7061_v5, %v4792_v33  ;;  %v4868_v17 = vadd.f32 %v4867_v28, %v4834_v29  ;;  %v4828_v45 = vmul.f32 %v7061_v5, %v7061_v5  ;;  %v7082_v34 = vadd.f32 %v4766_v51, %v6999_v62  ;;  %v4966_v33 = vld [vmem:[#allocation10 + $0x1] ss:$4 sm:$0xff]  ;;  %v5041_v28 = vld [vmem:[#allocation10 + $0x2] ss:$4 sm:$0xff] }
 0x438   : > { %7443 = vst [vmem:[#allocation17_spill] sm:$0xff] %v7073_v50  ;;  %v4843_v61 = vadd.f32 %v4842_v53, %v4812_v31  ;;  %v4860_v22 = vadd.f32 %v4859_v59, %v4827_v38  ;;  %v4801_v37 = vadd.f32 %v7073_v50, %v4800_v2  ;;  %v4835_v15 = vmul.f32 %v7073_v50, %v7073_v50 }
 0x439   : > { %7444 = vst [vmem:[#allocation18_spill] sm:$0xff] %v7082_v34  ;;  %v4836_v54 = vmul.f32 %v7082_v34, %v7082_v34 }
 0x43a   : > { %4844 = vadd.xlane.f32.xlu0 %v4843_v61  ;;  %4794 = vadd.xlane.f32.xlu1 %v4793_v32  ;;  %v4861_v24 = vadd.f32 %v4860_v22, %v4828_v45  ;;  %v4802_v0 = vadd.f32 %v7082_v34, %v4801_v37  ;;  %v4869_v4 = vadd.f32 %v4868_v17, %v4835_v15 }
 0x43b   : > { %v7096_v61 = vrot.slane %v4966_v33, %v6622_v18  ;;  %v7099_v22 = vrot.slane %v5041_v28, %v6622_v18  ;;  %v7102_v45 = vrot.slane %v4966_v33, %v6627_v20  ;;  %v7105_v15 = vrot.slane %v5041_v28, %v6627_v20 }
 0x43c   : > { %v4870_v58 = vadd.f32 %v4869_v4, %v4836_v54  ;;  %v7113_v54 = vrot.slane %v5041_v28, %v6630_v21  ;;  %v7116_v18 = vrot.slane %v4966_v33, %v6635_v23  ;;  %v7122_v20 = vrot.slane %v4966_v33, %v6669_v63 }
 0x43e   : > { %4862 = vadd.xlane.f32.xlu0 %v4861_v24  ;;  %4803 = vadd.xlane.f32.xlu1 %v4802_v0  ;;  %v7108_v24 = vrot.slane %v4966_v33, %v6630_v21  ;;  %v7131_v21 = vrot.slane %v5041_v28, %v6682_v7 }
 0x442   : > { %4871 = vadd.xlane.f32.xlu1 %v4870_v58  ;;  %v7119_v58 = vrot.slane %v5041_v28, %v6635_v23 }
 0x4be   : > { %v4777_v60 = vpop.xlane.xlu0 %4776 }
 0x4bf   : > { %v7087_v53 = vmul.f32 0.0009765625, %v4777_v60 }
 0x4c1   : > { %v4881_v31 = vmul.f32 %v7087_v53, %v7087_v53 }
 0x4c3   : > { %v4786_v35 = vpop.xlane.xlu0 %4785  ;;  %v4854_v29 = vpop.xlane.xlu1 %4853 }
 0x4c4   : > { %v7089_v6 = vmul.f32 0.0009765625, %v4786_v35  ;;  %v4878_v62 = vmul.f32 0.0009765625, %v4854_v29  ;;  %v7125_v29 = vrot.slane %v5041_v28, %v6669_v63 }
 0x4c6   : > { %v4882_v51 = vmul.f32 %v7089_v6, %v7089_v6 }
 0x4c7   : > { %v4845_v2 = vpop.xlane.xlu0 %4844  ;;  %v4795_v38 = vpop.xlane.xlu1 %4794 }
 0x4c8   : > { %v4886_v59 = vsub.f32 %v4878_v62, %v4882_v51  ;;  %v4877_v32 = vmul.f32 0.0009765625, %v4845_v2  ;;  %v7110_v0 = vmul.f32 0.0009765625, %v4795_v38  ;;  %v7128_v62 = vrot.slane %v4966_v33, %v6682_v7 }
 0x4c9   : > { %v7139_v38 = vrot.slane %v5041_v28, %v6745_v48  ;;  %v7147_v7 = vrot.slane %v5041_v28, %v6755_v1 }
 0x4ca   : > { %v4890_v37 = vmax.f32 %v4886_v59, 0.0  ;;  %v4885_v17 = vsub.f32 %v4877_v32, %v4881_v31  ;;  %v7136_v59 = vrot.slane %v4966_v33, %v6745_v48  ;;  %v4883_v63 = vmul.f32 %v7110_v0, %v7110_v0 }
 0x4cb   : > { %v4863_v4 = vpop.xlane.xlu0 %4862  ;;  %v4804_v35 = vpop.xlane.xlu1 %4803  ;;  %v7144_v32 = vrot.slane %v4966_v33, %v6755_v1  ;;  %v4906_v48 = vsub.f32 %v7002_v49, %v7089_v6 }
 0x4cc   : > { %v4926_v60 = vadd.f32 1e-05, %v4890_v37  ;;  %v4889_v51 = vmax.f32 %v4885_v17, 0.0  ;;  %v7133_v2 = vmul.f32 0.0009765625, %v4804_v35  ;;  %v4879_v23 = vmul.f32 0.0009765625, %v4863_v4 }
 0x4cd   : > { %v4905_v17 = vsub.f32 %v6992_v47, %v7089_v6 }
 0x4ce   : > { %6073 = vrsqrt.f32 %v4926_v60  ;;  %v4925_v31 = vadd.f32 1e-05, %v4889_v51  ;;  %v4887_v35 = vsub.f32 %v4879_v23, %v4883_v63  ;;  %v4884_v28 = vmul.f32 %v7133_v2, %v7133_v2 }
 0x4cf   : > { %v4872_v4 = vpop.xlane.xlu1 %4871  ;;  %v4901_v60 = vsub.f32 %v6882_v30, %v7089_v6  ;;  %v4902_v23 = vsub.f32 %v6885_v41, %v7089_v6  ;;  %v4904_v63 = vsub.f32 %v6921_v19, %v7089_v6  ;;  %v4907_v30 = vsub.f32 %v7022_v25, %v7089_v6 }
 0x4d0   : > { %6075 = vrsqrt.f32 %v4925_v31  ;;  %v4880_v51 = vmul.f32 0.0009765625, %v4872_v4  ;;  %v4891_v37 = vmax.f32 %v4887_v35, 0.0  ;;  %v4903_v31 = vsub.f32 %v6905_v26, %v7089_v6 }
 0x4d1   : > { %v4908_v41 = vsub.f32 %v7028_v39, %v7089_v6 }
 0x4d2   : > { %v4888_v4 = vsub.f32 %v4880_v51, %v4884_v28  ;;  %v4927_v35 = vadd.f32 1e-05, %v4891_v37 }
 0x4d4   : > { %v4892_v28 = vmax.f32 %v4888_v4, 0.0  ;;  %6077 = vrsqrt.f32 %v4927_v35 }
 0x4d6   : > { %v7199_v4 = vadd.f32 1e-05, %v4892_v28 }
 0x4d8   : > { %v6074_v39 = vpop.eup %6073  ;;  %6079 = vrsqrt.f32 %v7199_v4  ;;  %v7461_v4 = vld [vmem:[#allocation16_spill] sm:$0xff] }
 0x4d9   : > { %v4941_v47 = vmul.f32 %v6074_v39, %v4901_v60  ;;  %v4942_v19 = vmul.f32 %v6074_v39, %v4902_v23  ;;  %v4943_v49 = vmul.f32 %v6074_v39, %v4903_v31  ;;  %v4944_v26 = vmul.f32 %v6074_v39, %v4904_v63 }
 0x4da   : > { %v4945_v1 = vmul.f32 %v6074_v39, %v4905_v17  ;;  %v4946_v25 = vmul.f32 %v6074_v39, %v4906_v48  ;;  %v4947_v33 = vmul.f32 %v6074_v39, %v4907_v30  ;;  %v4948_v34 = vmul.f32 %v6074_v39, %v4908_v41  ;;  %v6076_v35 = vpop.eup %6075 }
 0x4db   : > { %v5016_v37 = vmul.f32 %v7096_v61, %v4941_v47  ;;  %v5017_v50 = vmul.f32 %v7102_v45, %v4942_v19  ;;  %v5018_v6 = vmul.f32 %v7108_v24, %v4943_v49  ;;  %v5019_v51 = vmul.f32 %v7116_v18, %v4944_v26 }
 0x4dc   : > { %v5020_v28 = vmul.f32 %v7122_v20, %v4945_v1  ;;  %v5021_v60 = vmul.f32 %v7128_v62, %v4946_v25  ;;  %v5022_v23 = vmul.f32 %v7136_v59, %v4947_v33  ;;  %v5023_v17 = vmul.f32 %v7144_v32, %v4948_v34 }
 0x4dd   : > { %v5091_v48 = vadd.f32 %v7099_v22, %v5016_v37  ;;  %v5092_v31 = vadd.f32 %v7105_v15, %v5017_v50  ;;  %v5093_v63 = vadd.f32 %v7113_v54, %v5018_v6  ;;  %v5094_v30 = vadd.f32 %v7119_v58, %v5019_v51 }
 0x4de   : > { %v5095_v41 = vadd.f32 %v7125_v29, %v5020_v28  ;;  %v5096_v26 = vadd.f32 %v7131_v21, %v5021_v60  ;;  %v5097_v1 = vadd.f32 %v7139_v38, %v5022_v23  ;;  %v5098_v19 = vadd.f32 %v7147_v7, %v5023_v17 }
 0x4df   : > { %5123 = vst [vmem:[%s7218_s26 + $0x40] sm:$0xff] %v5091_v48  ;;  %5124 = vst [vmem:[%s7218_s26 + $0x48] sm:$0xff] %v5092_v31  ;;  %v7445_v50 = vsub.f32 %v6876_v57, %v7087_v53  ;;  %v7446_v33 = vsub.f32 %v6879_v42, %v7087_v53  ;;  %v7447_v49 = vsub.f32 %v6898_v13, %v7087_v53 }
 0x4e0   : > { %5125 = vst [vmem:[%s7218_s26 + $0x50] sm:$0xff] %v5093_v63  ;;  %5126 = vst [vmem:[%s7218_s26 + $0x58] sm:$0xff] %v5094_v30  ;;  %v7448_v37 = vsub.f32 %v6918_v36, %v7087_v53  ;;  %v7449_v57 = vsub.f32 %v6974_v10, %v7087_v53  ;;  %v7450_v42 = vsub.f32 %v6986_v43, %v7087_v53  ;;  %v6078_v43 = vpop.eup %6077 }
 0x4e1   : > { %v4933_v34 = vmul.f32 %v6076_v35, %v7445_v50  ;;  %v4934_v47 = vmul.f32 %v6076_v35, %v7446_v33  ;;  %v4935_v25 = vmul.f32 %v6076_v35, %v7447_v49  ;;  %5127 = vst [vmem:[%s7218_s26 + $0x60] sm:$0xff] %v5095_v41  ;;  %5128 = vst [vmem:[%s7218_s26 + $0x68] sm:$0xff] %v5096_v26 }
 0x4e2   : > { %v4936_v39 = vmul.f32 %v6076_v35, %v7448_v37  ;;  %5129 = vst [vmem:[%s7218_s26 + $0x70] sm:$0xff] %v5097_v1  ;;  %5130 = vst [vmem:[%s7218_s26 + $0x78] sm:$0xff] %v5098_v19  ;;  %v4937_v6 = vmul.f32 %v6076_v35, %v7449_v57  ;;  %v4938_v51 = vmul.f32 %v6076_v35, %v7450_v42 }
 0x4e3   : > { %v7451_v13 = vsub.f32 %v7005_v3, %v7087_v53  ;;  %v7452_v36 = vsub.f32 %v7019_v8, %v7087_v53  ;;  %v5008_v23 = vmul.f32 %v7096_v61, %v4933_v34  ;;  %v5009_v17 = vmul.f32 %v7102_v45, %v4934_v47 }
 0x4e4   : > { %v5010_v10 = vmul.f32 %v7108_v24, %v4935_v25  ;;  %v5011_v48 = vmul.f32 %v7116_v18, %v4936_v39  ;;  %v5012_v3 = vmul.f32 %v7122_v20, %v4937_v6  ;;  %v5013_v31 = vmul.f32 %v7128_v62, %v4938_v51 }
 0x4e5   : > { %v4939_v28 = vmul.f32 %v6076_v35, %v7451_v13  ;;  %v4940_v60 = vmul.f32 %v6076_v35, %v7452_v36  ;;  %v5083_v35 = vadd.f32 %v7099_v22, %v5008_v23  ;;  %v5084_v63 = vadd.f32 %v7105_v15, %v5009_v17 }
 0x4e6   : > { %v5085_v30 = vadd.f32 %v7113_v54, %v5010_v10  ;;  %v5086_v41 = vadd.f32 %v7119_v58, %v5011_v48  ;;  %v5087_v26 = vadd.f32 %v7125_v29, %v5012_v3  ;;  %v5088_v1 = vadd.f32 %v7131_v21, %v5013_v31 }
 0x4e7   : > { %v5014_v8 = vmul.f32 %v7136_v59, %v4939_v28  ;;  %v5015_v53 = vmul.f32 %v7144_v32, %v4940_v60  ;;  %5115 = vst [vmem:[%s7218_s26] sm:$0xff] %v5083_v35  ;;  %5116 = vst [vmem:[%s7218_s26 + $0x8] sm:$0xff] %v5084_v63  ;;  %v7453_v34 = vsub.f32 %v6910_v52, %v7110_v0 }
 0x4e8   : > { %5117 = vst [vmem:[%s7218_s26 + $0x10] sm:$0xff] %v5085_v30  ;;  %5118 = vst [vmem:[%s7218_s26 + $0x18] sm:$0xff] %v5086_v41  ;;  %v7454_v47 = vsub.f32 %v6913_v55, %v7110_v0  ;;  %v7455_v25 = vsub.f32 %v6932_v40, %v7110_v0  ;;  %v7456_v39 = vsub.f32 %v6951_v16, %v7110_v0  ;;  %v6080_v41 = vpop.eup %6079 }
 0x4e9   : > { %v5089_v19 = vadd.f32 %v7139_v38, %v5014_v8  ;;  %v5090_v50 = vadd.f32 %v7147_v7, %v5015_v53  ;;  %v4949_v33 = vmul.f32 %v6078_v43, %v7453_v34  ;;  %5119 = vst [vmem:[%s7218_s26 + $0x20] sm:$0xff] %v5087_v26  ;;  %5120 = vst [vmem:[%s7218_s26 + $0x28] sm:$0xff] %v5088_v1 }
 0x4ea   : > { %v4950_v49 = vmul.f32 %v6078_v43, %v7454_v47  ;;  %v4951_v37 = vmul.f32 %v6078_v43, %v7455_v25  ;;  %v4952_v57 = vmul.f32 %v6078_v43, %v7456_v39  ;;  %v7457_v52 = vsub.f32 %v7031_v46, %v7110_v0 }
 0x4eb   : > { %5121 = vst [vmem:[%s7218_s26 + $0x30] sm:$0xff] %v5089_v19  ;;  %5122 = vst [vmem:[%s7218_s26 + $0x38] sm:$0xff] %v5090_v50  ;;  %v7458_v55 = vsub.f32 %v7034_v44, %v7110_v0  ;;  %v7459_v40 = vsub.f32 %v7045_v9, %v7110_v0  ;;  %v7460_v16 = vsub.f32 %v7061_v5, %v7110_v0 }
 0x4ec   : > { %v4953_v6 = vmul.f32 %v6078_v43, %v7457_v52  ;;  %v5024_v28 = vmul.f32 %v7096_v61, %v4949_v33  ;;  %v5025_v36 = vmul.f32 %v7102_v45, %v4950_v49  ;;  %v5026_v46 = vmul.f32 %v7108_v24, %v4951_v37 }
 0x4ed   : > { %v4954_v42 = vmul.f32 %v6078_v43, %v7458_v55  ;;  %v4955_v51 = vmul.f32 %v6078_v43, %v7459_v40  ;;  %v4956_v13 = vmul.f32 %v6078_v43, %v7460_v16  ;;  %v5027_v44 = vmul.f32 %v7116_v18, %v4952_v57 }
 0x4ee   : > { %v5028_v60 = vmul.f32 %v7122_v20, %v4953_v6  ;;  %v5099_v23 = vadd.f32 %v7099_v22, %v5024_v28  ;;  %v5100_v17 = vadd.f32 %v7105_v15, %v5025_v36  ;;  %v5101_v10 = vadd.f32 %v7113_v54, %v5026_v46 }
 0x4ef   : > { %v5029_v9 = vmul.f32 %v7128_v62, %v4954_v42  ;;  %v5030_v5 = vmul.f32 %v7136_v59, %v4955_v51  ;;  %v5031_v0 = vmul.f32 %v7144_v32, %v4956_v13  ;;  %v5102_v48 = vadd.f32 %v7119_v58, %v5027_v44 }
 0x4f0   : > { %v5103_v43 = vadd.f32 %v7125_v29, %v5028_v60  ;;  %5131 = vst [vmem:[%s7218_s26 + $0x80] sm:$0xff] %v5099_v23  ;;  %5132 = vst [vmem:[%s7218_s26 + $0x88] sm:$0xff] %v5100_v17  ;;  %v4917_v53 = vsub.f32 %v6935_v14, %v7133_v2  ;;  %v4918_v35 = vsub.f32 %v6938_v12, %v7133_v2  ;;  %v7462_v14 = vld [vmem:[#allocation17_spill] sm:$0xff]  ;;  %v7463_v12 = vld [vmem:[#allocation18_spill] sm:$0xff] }
 0x4f1   : > { %v5104_v3 = vadd.f32 %v7131_v21, %v5029_v9  ;;  %v5105_v31 = vadd.f32 %v7139_v38, %v5030_v5  ;;  %v5106_v8 = vadd.f32 %v7147_v7, %v5031_v0  ;;  %5133 = vst [vmem:[%s7218_s26 + $0x90] sm:$0xff] %v5101_v10  ;;  %5134 = vst [vmem:[%s7218_s26 + $0x98] sm:$0xff] %v5102_v48 }
 0x4f2   : > { %5135 = vst [vmem:[%s7218_s26 + $0xa0] sm:$0xff] %v5103_v43  ;;  %v4919_v63 = vsub.f32 %v6954_v56, %v7133_v2  ;;  %v4920_v30 = vsub.f32 %v6967_v27, %v7133_v2  ;;  %v4921_v26 = vsub.f32 %v7461_v4, %v7133_v2  ;;  %v4922_v1 = vsub.f32 %v7050_v11, %v7133_v2 }
 0x4f3   : > { %5136 = vst [vmem:[%s7218_s26 + $0xa8] sm:$0xff] %v5104_v3  ;;  %5137 = vst [vmem:[%s7218_s26 + $0xb0] sm:$0xff] %v5105_v31  ;;  %v4923_v19 = vsub.f32 %v7462_v14, %v7133_v2  ;;  %v4924_v50 = vsub.f32 %v7463_v12, %v7133_v2  ;;  %v4957_v34 = vmul.f32 %v6080_v41, %v4917_v53 }
 0x4f4   : > { %5138 = vst [vmem:[%s7218_s26 + $0xb8] sm:$0xff] %v5106_v8  ;;  %v4958_v33 = vmul.f32 %v6080_v41, %v4918_v35  ;;  %v4959_v56 = vmul.f32 %v6080_v41, %v4919_v63  ;;  %v4960_v47 = vmul.f32 %v6080_v41, %v4920_v30  ;;  %v4961_v49 = vmul.f32 %v6080_v41, %v4921_v26 }
 0x4f5   : > { %v4962_v25 = vmul.f32 %v6080_v41, %v4922_v1  ;;  %v4963_v27 = vmul.f32 %v6080_v41, %v4923_v19  ;;  %v4964_v37 = vmul.f32 %v6080_v41, %v4924_v50  ;;  %v5032_v39 = vmul.f32 %v7096_v61, %v4957_v34 }
 0x4f6   : > { %v5033_v11 = vmul.f32 %v7102_v45, %v4958_v33  ;;  %v5034_v57 = vmul.f32 %v7108_v24, %v4959_v56  ;;  %v5035_v52 = vmul.f32 %v7116_v18, %v4960_v47  ;;  %v5036_v2 = vmul.f32 %v7122_v20, %v4961_v49 }
 0x4f7   : > { %v5037_v6 = vmul.f32 %v7128_v62, %v4962_v25  ;;  %v5038_v55 = vmul.f32 %v7136_v59, %v4963_v27  ;;  %v5039_v42 = vmul.f32 %v7144_v32, %v4964_v37  ;;  %v5107_v61 = vadd.f32 %v7099_v22, %v5032_v39 }
 0x4f8   : > { %v5108_v45 = vadd.f32 %v7105_v15, %v5033_v11  ;;  %v5109_v24 = vadd.f32 %v7113_v54, %v5034_v57  ;;  %v5110_v18 = vadd.f32 %v7119_v58, %v5035_v52  ;;  %v5111_v22 = vadd.f32 %v7125_v29, %v5036_v2 }
 0x4f9   : > { %v5112_v15 = vadd.f32 %v7131_v21, %v5037_v6  ;;  %v5113_v20 = vadd.f32 %v7139_v38, %v5038_v55  ;;  %v5114_v54 = vadd.f32 %v7147_v7, %v5039_v42  ;;  %5139 = vst [vmem:[%s7218_s26 + $0xc0] sm:$0xff] %v5107_v61 }
 0x4fa   : > { %5140 = vst [vmem:[%s7218_s26 + $0xc8] sm:$0xff] %v5108_v45  ;;  %5141 = vst [vmem:[%s7218_s26 + $0xd0] sm:$0xff] %v5109_v24 }
 0x4fb   : > { %5142 = vst [vmem:[%s7218_s26 + $0xd8] sm:$0xff] %v5110_v18  ;;  %5143 = vst [vmem:[%s7218_s26 + $0xe0] sm:$0xff] %v5111_v22 }
 0x4fc   : > { %5144 = vst [vmem:[%s7218_s26 + $0xe8] sm:$0xff] %v5112_v15  ;;  %5145 = vst [vmem:[%s7218_s26 + $0xf0] sm:$0xff] %v5113_v20 }
 0x4fd   : > { %5146 = vst [vmem:[%s7218_s26 + $0xf8] sm:$0xff] %v5114_v54 }
 0x4fe   : > { %6236 = shalt.err (!%p6233_p13)
}
 0x4ff   : > { %s6237_s15 = scalar_lea.hbm %s7358_s8, 4096  ;;  %s6241_s28 = scalar_lea.hbm %s7421_s5, 8192 }
 0x500   : > { %p6238_p9 = scmp.ne.s32.totalorder %s7358_s8, %s6237_s15  ;;  %p6242_p6 = scmp.lt.u32.totalorder %s7358_s8, %s7421_s5 }
 0x501   : > { %p6243_p4 = scmp.lt.u32.totalorder %s6241_s28, %s6237_s15  ;;  %p6245_p3 = scmp.lt.u32.totalorder %s6237_s15, %s7358_s8 }
 0x502   : > { %p6239_p0 = pnand %p6238_p9, %p6501_p10 }
 0x503   : > { %p6244_p8 = por %p6243_p4, %p6242_p6 }
 0x504   : > { %p6240_p11 = pneg %p6239_p0 }
 0x505   : > { %p6246_p5 = por %p6245_p3, %p6244_p8 }
 0x507   : > { %p6247_p7 = pnand %p6246_p5, %p6240_p11 }
 0x509   : > { %6250 = shalt.err (!%p6247_p7)
}
 0x50a   : > { %s6310_s9 = smov 1024   ;;  %s6311_s22 = smov 64  }
 0x50b   : > { %5997 = dma.vmem_to_hbm [thread:$0]  (%p6501_p10), %s7360_s11, 4096, %s7358_s8, %s5148_s27, %s6310_s9, %s6310_s9, %s6311_s22  }
 0x50c PF: > { %s5177_s12 = sand.u32 1, %s6285_s18   ;;  %p7464_p12 = scmp.ne.s32.totalorder %s7429_s25, 0 }
 0x50d   : > { %p7465_p2 = scmp.ge.s32.totalorder %s6297_s21, 2  ;;  %s5178_s30 = scalar_lea.sflag [#allocation4], %s5177_s12 }
 0x50f   : > { %p6017_p1 = pnand %p7465_p2, %p7464_p12 }
 0x511   : > { %6280 = dma.done.wait (!%p6017_p1), %s5178_s30, 4096  }
 0x512   : > { %6282 = vsyncadd (!%p6017_p1), %s5178_s30, 4294963200  ;;  %p20_p13 = scmp.ge.s32.totalorder %s6491_s14, 4   ;;  %s7466_s18 = smov %s6289_s19 }
 0x513   : > { %s7467_s19 = smov %s6293_s20  ;;  %s7468_s20 = smov %s6507_s23 }
 0x514   : > { %s7469_s21 = smov %s6491_s14  ;;  %22 = sbr.rel (!%p20_p13) target bundleno = 7 (0x7), region = 103 }
 0x51b   :  { %5183 = vsyncpa [#allocation3], 1 }
 0x51c   :  { %5185 = vsyncpa [#allocation3 + $0x1], 1 }
 0x51d   :  { %5186 = vsyncpa [#allocation6], 1 }
 0x51e   :  { %5187 = vsyncpa [#allocation9], 1 }
 0x51f   :  { %5188 = vsyncpa [#allocation4], 1 }
 0x520   :  { %5190 = vsyncpa [#allocation4 + $0x1], 1 }

// kernel: tpu_custom_call.1
= control target key start
LH: loop header
LB: loop body
LE: loop exit
PB: predicated region body
PF: predicated region fallthrough
CT: control target
= control target key end

     0   :  { %10 = vsyncpa [#allocation3], 0  ;;  %s7416_s0 = inlined_call_operand.hbm [shape: f32[64,64], index: 0, kind: input, shape index: {}]   ;;  %s7417_s1 = inlined_call_operand.hbm [shape: bf16[64,1024], index: 1, kind: input, shape index: {}]   ;;  %s7418_s2 = inlined_call_operand.hbm [shape: f32[1,1024], index: 2, kind: input, shape index: {}]   ;;  %s7419_s3 = inlined_call_operand.hbm [shape: bf16[1024,1024], index: 3, kind: input, shape index: {}]   ;;  %s7420_s4 = inlined_call_operand.hbm [shape: f32[3,1024], index: 4, kind: input, shape index: {}]   ;;  %s7421_s5 = inlined_call_operand.hbm [shape: f32[64,1024], index: 5, kind: output, shape index: {}]  }
   0x1   :  { %12 = vsyncpa [#allocation3 + $0x1], 0 }
   0x2   :  { %13 = vsyncpa [#allocation6], 0 }
   0x3   :  { %14 = vsyncpa [#allocation9], 0 }
   0x4   :  { %15 = vsyncpa [#allocation4], 0 }
   0x5   :  { %17 = vsyncpa [#allocation4 + $0x1], 0  ;;  %s6342_s18 = smov 0   ;;  %s6344_s19 = smov 0  }
   0x6   :  { %s6346_s20 = smov 0   ;;  %s6348_s21 = smov 0  }
   0x7 LB: > { %s6363_s22 = sadd.s32 4294967295, %s6297_s21   ;;  %s5273_s23 = sadd.s32 4294967294, %s6297_s21   ;;  %s6297_s21 = sphi %s6348_s21, %s7469_s21   ;;  %s6293_s20 = sphi %s6346_s20, %s7468_s20   ;;  %s6289_s19 = sphi %s6344_s19, %s7467_s19   ;;  %s6285_s18 = sphi %s6342_s18, %s7466_s18  }
   0x8   : > { %p43_p0 = scmp.ne.s32.totalorder %s6289_s19, %s6285_s18  ;;  %p7422_p1 = scmp.eq.s32.totalorder %s6363_s22, 0 }
   0x9   : > { %p157_p3 = scmp.eq.s32.totalorder %s5273_s23, 1  ;;  %p5274_p5 = scmp.ge.s32.totalorder %s6297_s21, 1 }
   0xa   : > { %p6372_p4 = por %p7422_p1, %p43_p0  ;;  %p164_p7 = scmp.lt.s32.totalorder %s6297_s21, 3 }
   0xb   : > { %p6377_p6 = por %p157_p3, %p43_p0  ;;  %s6299_s27 = smov [#allocation5]  }
   0xc   : > { %s7428_s24 = scalar_select %p6372_p4, 1, 0 }
   0xd   : > { %s7429_s25 = scalar_select %p6377_p6, 1, 0 }
   0xe   : > { %p6382_p8 = pnand %p5274_p5, %p164_p7  ;;  %s176_s28 = sshll.u32 %s6299_s27, 4  ;;  %s6386_s28 = int_to_ptr.vmem [resolvable:$true] %s176_s28 }
   0xf   : > { %s6300_s30 = smov [#allocation8]   ;;  %s6301_s7 = smov [#allocation7]  }
  0x10   : > { %s7430_s26 = scalar_select %p6382_p8, 1, 0 }
  0x11   : > { %p5999_p9 = pneg %p6382_p8  ;;  %s200_s6 = sshll.u32 %s6300_s30, 4  ;;  %s6397_s6 = int_to_ptr.vmem [resolvable:$true] %s200_s6 }
  0x12   : > { %s6399_s8 = sshll.u32 %s6301_s7, 4  ;;  %s6081_s11 = scalar_lea.hbm %s7417_s1, 4096  ;;  %s191_s8 = int_to_ptr.vmem [resolvable:$true] %s6399_s8 }
  0x13   : > { %p6393_p11 = pnand %p5999_p9, %p7422_p1  ;;  %p6082_p12 = scmp.ne.s32.totalorder %s7417_s1, %s6081_s11 }
  0x14   : > { %p6088_p5 = scmp.lt.u32.totalorder %s6081_s11, %s7417_s1 }
  0x15   : > { %p6409_p13 = pneg %p6393_p11 }
  0x17   : > { %p6084_p0 = pnand %p6409_p13, %p6082_p12 }
  0x19   : > { %p6085_p3 = pneg %p6084_p0 }
  0x1b   : > { %p6090_p7 = pnand %p6088_p5, %p6085_p3 }
  0x1d   : > { %6093 = shalt.err (!%p6090_p7)
}
  0x1e   : > { %s6094_s17 = scalar_lea.vmem %s6386_s28, 4096  ;;  %p6102_p2 = scmp.lt.s32.totalorder %s6386_s28, %s6386_s28 }
  0x1f   : > { %p6095_p9 = scmp.ne.s32.totalorder %s6386_s28, %s6094_s17  ;;  %p6103_p6 = scmp.lt.s32.totalorder %s6094_s17, %s6094_s17 }
  0x21   : > { %p6097_p10 = pnand %p6095_p9, %p6409_p13  ;;  %p6104_p12 = por %p6103_p6, %p6102_p2 }
  0x23   : > { %p6098_p1 = pneg %p6097_p10 }
  0x25   : > { %p6105_p0 = pnand %p6104_p12, %p6098_p1 }
  0x27   : > { %6108 = shalt.err (!%p6105_p0)
}
  0x28   : > { %s6302_s23 = smov 512   ;;  %s6303_s27 = smov 32  }
  0x29   : > { %6002 = dma.hbm_to_vmem [thread:$0]  (!%p6393_p11), %s7417_s1, 4096, %s6386_s28, [#allocation6], %s6302_s23, %s6302_s23, %s6303_s27  }
  0x2a   : > { %s6109_s11 = scalar_lea.hbm %s7419_s3, 65536 }
  0x2b   : > { %p6110_p2 = scmp.ne.s32.totalorder %s7419_s3, %s6109_s11  ;;  %p6116_p10 = scmp.lt.u32.totalorder %s6109_s11, %s7419_s3 }
  0x2d   : > { %p6112_p1 = pnand %p6110_p2, %p6409_p13 }
  0x2f   : > { %p6113_p6 = pneg %p6112_p1 }
  0x31   : > { %p6118_p3 = pnand %p6116_p10, %p6113_p6 }
  0x33   : > { %6121 = shalt.err (!%p6118_p3)
}
  0x34   : > { %s6122_s28 = scalar_lea.vmem %s6397_s6, 65536  ;;  %p6130_p12 = scmp.lt.s32.totalorder %s6397_s6, %s6397_s6 }
  0x35   : > { %p6123_p5 = scmp.ne.s32.totalorder %s6397_s6, %s6122_s28  ;;  %p6131_p0 = scmp.lt.s32.totalorder %s6122_s28, %s6122_s28 }
  0x37   : > { %p6125_p7 = pnand %p6123_p5, %p6409_p13  ;;  %p6132_p2 = por %p6131_p0, %p6130_p12 }
  0x39   : > { %p6126_p9 = pneg %p6125_p7 }
  0x3b   : > { %p6133_p1 = pnand %p6132_p2, %p6126_p9 }
  0x3d   : > { %6136 = shalt.err (!%p6133_p1)
}
  0x3e   : > { %6008 = dma.hbm_to_vmem [thread:$0]  (!%p6393_p11), %s7419_s3, 65536, %s6397_s6, [#allocation9], %s6302_s23, %s6302_s23, %s6303_s27  }
  0x3f   : > { %s6137_s10 = scalar_lea.hbm %s7418_s2, 128 }
  0x40   : > { %p6138_p6 = scmp.ne.s32.totalorder %s7418_s2, %s6137_s10  ;;  %p6144_p5 = scmp.lt.u32.totalorder %s6137_s10, %s7418_s2 }
  0x42   : > { %p6140_p10 = pnand %p6138_p6, %p6409_p13 }
  0x44   : > { %p6141_p3 = pneg %p6140_p10 }
  0x46   : > { %p6146_p7 = pnand %p6144_p5, %p6141_p3 }
  0x48   : > { %6149 = shalt.err (!%p6146_p7)
}
  0x49   : > { %s6150_s16 = scalar_lea.vmem %s191_s8, 128  ;;  %p6158_p2 = scmp.lt.s32.totalorder %s191_s8, %s191_s8 }
  0x4a   : > { %p6151_p9 = scmp.ne.s32.totalorder %s191_s8, %s6150_s16  ;;  %p6159_p1 = scmp.lt.s32.totalorder %s6150_s16, %s6150_s16 }
  0x4c   : > { %p6153_p12 = pnand %p6151_p9, %p6409_p13  ;;  %p6160_p4 = por %p6159_p1, %p6158_p2 }
  0x4e   : > { %p6154_p0 = pneg %p6153_p12 }
  0x50   : > { %p6161_p8 = pnand %p6160_p4, %p6154_p0 }
  0x52   : > { %6164 = shalt.err (!%p6161_p8)
}
  0x53   : > { %6005 = dma.hbm_to_vmem [thread:$0]  (!%p6393_p11), %s7418_s2, 128, %s191_s8, [#allocation6]  }
  0x54   : > { %s6304_s27 = smov [#allocation10]   ;;  %s6165_s7 = scalar_lea.hbm %s7420_s4, 512 }
  0x55   : > { %s214_s28 = sshll.u32 %s6304_s27, 4  ;;  %p6166_p6 = scmp.ne.s32.totalorder %s7420_s4, %s6165_s7  ;;  %s215_s28 = int_to_ptr.vmem [resolvable:$true] %s214_s28 }
  0x56   : > { %p6172_p10 = scmp.lt.u32.totalorder %s6165_s7, %s7420_s4 }
  0x57   : > { %p6168_p4 = pnand %p6166_p6, %p6409_p13 }
  0x59   : > { %p6169_p8 = pneg %p6168_p4 }
  0x5b   : > { %p6174_p3 = pnand %p6172_p10, %p6169_p8 }
  0x5d   : > { %6177 = shalt.err (!%p6174_p3)
}
  0x5e   : > { %s6178_s8 = scalar_lea.vmem %s215_s28, 512  ;;  %p6186_p12 = scmp.lt.s32.totalorder %s215_s28, %s215_s28 }
  0x5f   : > { %p6179_p5 = scmp.ne.s32.totalorder %s215_s28, %s6178_s8  ;;  %p6187_p0 = scmp.lt.s32.totalorder %s6178_s8, %s6178_s8 }
  0x61   : > { %p6181_p7 = pnand %p6179_p5, %p6409_p13  ;;  %p6188_p2 = por %p6187_p0, %p6186_p12 }
  0x63   : > { %p6182_p9 = pneg %p6181_p7 }
  0x65   : > { %p6189_p1 = pnand %p6188_p2, %p6182_p9 }
  0x67   : > { %6192 = shalt.err (!%p6189_p1)
}
  0x68   : > { %6011 = dma.hbm_to_vmem [thread:$0]  (!%p6393_p11), %s7420_s4, 512, %s215_s28, [#allocation9]  }
  0x69   : > { %s6491_s14 = sadd.s32 1, %s6297_s21   ;;  %s30_s16 = sadd.s32 1, %s6293_s20 }
  0x6a   : > { %s27_s29 = ssub.s32 %s6297_s21, %s6491_s14  ;;  %p37_p13 = scmp.ne.s32.totalorder %s6293_s20, %s6289_s19 }
  0x6b   : > { %p28_p6 = scmp.eq.s32.totalorder %s27_s29, 0  ;;  %p38_p4 = scmp.eq.s32.totalorder %s6297_s21, 0 }
  0x6c   : > { %p7433_p8 = scmp.eq.s32.totalorder %s6363_s22, 1  ;;  %p6024_p3 = scmp.lt.s32.totalorder %s6297_s21, 2 }
  0x6d   : > { %s6507_s23 = scalar_select %p28_p6, %s6293_s20, %s30_s16  }
  0x6e   : > { %p6501_p10 = por %p7433_p8, %p37_p13  ;;  %p39_p5 = por %p38_p4, %p37_p13 }
  0x6f   : > { %s225_s27 = sand.u32 1, %s6293_s20   ;;  %s5848_s28 = sshll.u32 %s6297_s21, 9 }
  0x70   : > { %s5280_s17 = sshll.u32 %s225_s27, 5  ;;  %s6514_s9 = scalar_lea.hbm %s7416_s0, %s5848_s28 }
  0x71   : > { %s229_s10 = scalar_lea.vmem [#allocation2], %s5280_s17  ;;  %p6518_p11 = pnand %p6024_p3, %p39_p5 }
  0x72   : > { %s236_s11 = sshll.u32 %s229_s10, 4  ;;  %s6522_s8 = scalar_lea.sflag [#allocation3], %s225_s27  ;;  %s6516_s11 = int_to_ptr.vmem [resolvable:$true] %s236_s11 }
  0x73   : > { %s6193_s13 = scalar_lea.hbm %s6514_s9, 512  ;;  %p6195_p9 = pneg %p6518_p11 }
  0x74   : > { %p6194_p7 = scmp.ne.s32.totalorder %s6514_s9, %s6193_s13  ;;  %s6198_s29 = scalar_lea.hbm %s7416_s0, 1024 }
  0x75   : > { %p6199_p2 = scmp.lt.u32.totalorder %s6514_s9, %s7416_s0  ;;  %p6200_p1 = scmp.lt.u32.totalorder %s6198_s29, %s6193_s13 }
  0x76   : > { %p6196_p12 = pnand %p6195_p9, %p6194_p7  ;;  %p6202_p6 = scmp.lt.u32.totalorder %s6193_s13, %s6514_s9 }
  0x77   : > { %p6201_p13 = por %p6200_p1, %p6199_p2 }
  0x78   : > { %p6197_p0 = pneg %p6196_p12 }
  0x79   : > { %p6203_p4 = por %p6202_p6, %p6201_p13 }
  0x7b   : > { %p6204_p8 = pnand %p6203_p4, %p6197_p0 }
  0x7d   : > { %6207 = shalt.err (!%p6204_p8)
}
  0x7e   : > { %s6208_s27 = scalar_lea.vmem %s6516_s11, 512  ;;  %s6305_s30 = smov [#allocation2]  }
  0x7f   : > { %p6209_p3 = scmp.ne.s32.totalorder %s6516_s11, %s6208_s27  ;;  %s6213_s7 = sshll.u32 %s6305_s30, 4  ;;  %s6214_s7 = int_to_ptr.vmem [resolvable:$false] %s6213_s7 }
  0x80   : > { %s6215_s10 = scalar_lea.vmem %s6214_s7, 1024  ;;  %p6216_p12 = scmp.lt.s32.totalorder %s6516_s11, %s6214_s7 }
  0x81   : > { %p6211_p5 = pnand %p6209_p3, %p6195_p9  ;;  %p6217_p2 = scmp.lt.s32.totalorder %s6215_s10, %s6208_s27 }
  0x83   : > { %p6212_p7 = pneg %p6211_p5  ;;  %p6218_p1 = por %p6217_p2, %p6216_p12 }
  0x85   : > { %p6219_p13 = pnand %p6218_p1, %p6212_p7 }
  0x87   : > { %6222 = shalt.err (!%p6219_p13)
}
  0x88   : > { %s6306_s13 = smov 128   ;;  %s6307_s15 = smov 8  }
  0x89   : > { %6015 = dma.hbm_to_vmem [thread:$0]  (!%p6518_p11), %s6514_s9, 512, %s6516_s11, %s6522_s8, %s6306_s13, %s6306_s13, %s6307_s15  }
  0x8a   : > { %p7436_p9 = scmp.ne.s32.totalorder %s7430_s26, 0 }
  0x8c   : > { %248 = sbr.rel (%p7436_p9) target bundleno = 1292 (0x50c), region = 40 }
  0x93   : > { %s6553_s16 = sand.u32 1, %s6289_s19   ;;  %p7437_p0 = scmp.ne.s32.totalorder %s7428_s24, 0 }
  0x94   : > { %s5284_s29 = sshll.u32 %s6553_s16, 5  ;;  %s251_s17 = scalar_lea.sflag [#allocation3], %s6553_s16 }
  0x95   : > { %s6557_s28 = scalar_lea.vmem [#allocation2], %s5284_s29 }
  0x96   : > { %6268 = dma.done.wait (%p7437_p0), %s251_s17, 512  }
  0x97   : > { %6270 = vsyncadd (%p7437_p0), %s251_s17, 4294966784  ;;  %p7438_p11 = scmp.eq.s32.totalorder %s6363_s22, 0 }
  0x99   : > { %6272 = dma.done.wait (%p7438_p11), [#allocation6], 4224   ;;  %p7439_p6 = pmov %p7438_p11 }
  0x9b   : > { %6274 = vsyncadd (%p7439_p6), [#allocation6], 4294963072  ;;  %p7440_p4 = pmov %p7439_p6 }
  0x9d   : > { %6276 = dma.done.wait (%p7440_p4), [#allocation9], 66048   ;;  %p7441_p8 = pmov %p7440_p4 }
  0x9e   : > { %v6308_v0 = vmov 0   ;;  %v306_v1 = vld [vmem:[#allocation5] sm:$0xff]  ;;  %v307_v10 = vld [vmem:[#allocation5 + $0x8] sm:$0xff]  ;;  %v308_v29 = vld [vmem:[#allocation5 + $0x10] sm:$0xff]  ;;  %vm540_vm0 = vcmask 523264   ;;  %s5289_s24 = sshll.u32 %s6553_s16, 8 }
  0x9f   : > { %6278 = vsyncadd (%p7441_p8), [#allocation9], 4294901248  ;;  %579 = vmatprep.mubr.bf16.mxu0 %v6308_v0  ;;  %632 = vmatprep.mubr.bf16.mxu1 %v6308_v0  ;;  %v310_v2 = vld [vmem:[#allocation5 + $0x20] sm:$0xff]  ;;  %v311_v11 = vld [vmem:[#allocation5 + $0x28] sm:$0xff]  ;;  %s7218_s26 = scalar_lea.vmem [#allocation11], %s5289_s24  ;;  %s5850_s9 = sshll.u32 %s6363_s22, 12 }
  0xa0   : > { %v314_v3 = vld [vmem:[#allocation5 + $0x40] sm:$0xff]  ;;  %v5291_v4 = vcombine.high %v306_v1, %v310_v2  ;;  %v5290_v5 = vcombine.low %v306_v1, %v310_v2  ;;  %v5293_v13 = vcombine.high %v307_v10, %v311_v11  ;;  %v5292_v14 = vcombine.low %v307_v10, %v311_v11  ;;  %v315_v15 = vld [vmem:[#allocation5 + $0x48] sm:$0xff]  ;;  %v312_v30 = vld [vmem:[#allocation5 + $0x30] sm:$0xff]  ;;  %s5162_s11 = sshll.u32 %s7218_s26, 4  ;;  %s7358_s8 = scalar_lea.hbm %s7421_s5, %s5850_s9  ;;  %s7360_s11 = int_to_ptr.vmem [resolvable:$true] %s5162_s11 }
  0xa1   : > { %v318_v6 = vld [vmem:[#allocation5 + $0x60] sm:$0xff]  ;;  %v319_v16 = vld [vmem:[#allocation5 + $0x68] sm:$0xff]  ;;  %v5295_v36 = vcombine.high %v308_v29, %v312_v30  ;;  %v316_v37 = vld [vmem:[#allocation5 + $0x50] sm:$0xff]  ;;  %v5294_v43 = vcombine.low %v308_v29, %v312_v30  ;;  %s5148_s27 = scalar_lea.sflag [#allocation4], %s6553_s16  ;;  %s6223_s30 = scalar_lea.vmem %s7360_s11, 4096 }
  0xa2   : > { %v5299_v7 = vcombine.high %v314_v3, %v318_v6  ;;  %v322_v8 = vld [vmem:[#allocation5 + $0x80] sm:$0xff]  ;;  %547 = vmatprep.subr.bf16.mxu0 %v5291_v4  ;;  %v5298_v12 = vcombine.low %v314_v3, %v318_v6  ;;  %v5301_v18 = vcombine.high %v315_v15, %v319_v16  ;;  %v323_v19 = vld [vmem:[#allocation5 + $0x88] sm:$0xff]  ;;  %600 = vmatprep.subr.bf16.mxu1 %v5293_v13  ;;  %v320_v38 = vld [vmem:[#allocation5 + $0x70] sm:$0xff]  ;;  %p6224_p3 = scmp.ne.s32.totalorder %s7360_s11, %s6223_s30  ;;  %s6309_s7 = smov [#allocation11]  }
  0xa3   : > { %v326_v9 = vld [vmem:[#allocation5 + $0xa0] sm:$0xff]  ;;  %548 = vmatpush1.bf16.msra.mxu0 %v5290_v5  ;;  %v327_v20 = vld [vmem:[#allocation5 + $0xa8] sm:$0xff]  ;;  %601 = vmatpush1.bf16.msra.mxu1 %v5292_v14  ;;  %v5300_v23 = vcombine.low %v315_v15, %v319_v16  ;;  %v309_v39 = vld [vmem:[#allocation5 + $0x18] sm:$0xff]  ;;  %v5303_v44 = vcombine.high %v316_v37, %v320_v38  ;;  %v5302_v53 = vcombine.low %v316_v37, %v320_v38  ;;  %s6227_s10 = sshll.u32 %s6309_s7, 4  ;;  %s6228_s10 = int_to_ptr.vmem [resolvable:$false] %s6227_s10 }
  0xa4   : > { %549 = vmatprep.subr.bf16.mxu0 %v5299_v7  ;;  %v5307_v17 = vcombine.high %v322_v8, %v326_v9  ;;  %v330_v21 = vld [vmem:[#allocation5 + $0xc0] sm:$0xff]  ;;  %v5306_v24 = vcombine.low %v322_v8, %v326_v9  ;;  %602 = vmatprep.subr.bf16.mxu1 %v5301_v18  ;;  %v5309_v25 = vcombine.high %v323_v19, %v327_v20  ;;  %v331_v27 = vld [vmem:[#allocation5 + $0xc8] sm:$0xff]  ;;  %v313_v40 = vld [vmem:[#allocation5 + $0x38] sm:$0xff]  ;;  %p6225_p5 = pnand %p6224_p3, %p6501_p10  ;;  %s6229_s13 = scalar_lea.vmem %s6228_s10, 8192 }
  0xa5   : > { %v334_v22 = vld [vmem:[#allocation5 + $0xe0] sm:$0xff]  ;;  %v335_v28 = vld [vmem:[#allocation5 + $0xe8] sm:$0xff]  ;;  %v5308_v31 = vcombine.low %v323_v19, %v327_v20  ;;  %v5297_v45 = vcombine.high %v309_v39, %v313_v40  ;;  %v317_v46 = vld [vmem:[#allocation5 + $0x58] sm:$0xff]  ;;  %v5296_v50 = vcombine.low %v309_v39, %v313_v40  ;;  %p6230_p12 = scmp.lt.s32.totalorder %s7360_s11, %s6228_s10  ;;  %p6231_p2 = scmp.lt.s32.totalorder %s6229_s13, %s6223_s30 }
  0xa6   : > { %v5315_v26 = vcombine.high %v330_v21, %v334_v22  ;;  %v5314_v32 = vcombine.low %v330_v21, %v334_v22  ;;  %v300_v33 = vld [vmem:[%s6557_s28] sm:$0xff]  ;;  %v301_v34 = vld [vmem:[%s6557_s28 + $0x8] sm:$0xff]  ;;  %v5317_v35 = vcombine.high %v331_v27, %v335_v28  ;;  %v5316_v42 = vcombine.low %v331_v27, %v335_v28  ;;  %v321_v47 = vld [vmem:[#allocation5 + $0x78] sm:$0xff]  ;;  %p6226_p7 = pneg %p6225_p5 }
  0xa7   : > { %550 = vmatpush1.bf16.msra.mxu0 %v5298_v12  ;;  %603 = vmatpush1.bf16.msra.mxu1 %v5300_v23  ;;  %v6575_v41 = vpack.c.bf16 %v301_v34, %v300_v33  ;;  %v324_v48 = vld [vmem:[#allocation5 + $0x90] sm:$0xff]  ;;  %v303_v52 = vld [vmem:[%s6557_s28 + $0x18] sm:$0xff]  ;;  %v5305_v54 = vcombine.high %v317_v46, %v321_v47  ;;  %v5304_v61 = vcombine.low %v317_v46, %v321_v47  ;;  %v807_v4 = vld [vmem:[#allocation8] sm:$0xff]  ;;  %p6232_p1 = por %p6231_p2, %p6230_p12 }
  0xa8   : > { %551 = vmatprep.subr.bf16.mxu0 %v5307_v17  ;;  %604 = vmatprep.subr.bf16.mxu1 %v5309_v25  ;;  %v328_v49 = vld [vmem:[#allocation5 + $0xb0] sm:$0xff]  ;;  %v325_v58 = vld [vmem:[#allocation5 + $0x98] sm:$0xff]  ;;  %v811_v5 = vld [vmem:[#allocation8 + $0x20] sm:$0xff] }
  0xa9   : > { %v302_v51 = vld [vmem:[%s6557_s28 + $0x10] sm:$0xff]  ;;  %v5311_v55 = vcombine.high %v324_v48, %v328_v49  ;;  %v329_v59 = vld [vmem:[#allocation5 + $0xb8] sm:$0xff]  ;;  %v5310_v62 = vcombine.low %v324_v48, %v328_v49  ;;  %v5331_v9 = vcombine.high %v807_v4, %v811_v5  ;;  %v815_v13 = vld [vmem:[#allocation8 + $0x40] sm:$0xff]  ;;  %v5330_v16 = vcombine.low %v807_v4, %v811_v5  ;;  %p6233_p13 = pnand %p6232_p1, %p6226_p7 }
  0xaa   : > { %v332_v56 = vld [vmem:[#allocation5 + $0xd0] sm:$0xff]  ;;  %v6584_v60 = vpack.c.bf16 %v303_v52, %v302_v51  ;;  %v5313_v1 = vcombine.high %v325_v58, %v329_v59  ;;  %v333_v2 = vld [vmem:[#allocation5 + $0xd8] sm:$0xff]  ;;  %v5312_v6 = vcombine.low %v325_v58, %v329_v59  ;;  %v819_v14 = vld [vmem:[#allocation8 + $0x60] sm:$0xff] }
  0xab   : > { %552 = vmatpush1.bf16.msra.mxu0 %v5306_v24  ;;  %605 = vmatpush1.bf16.msra.mxu1 %v5308_v31  ;;  %v336_v57 = vld [vmem:[#allocation5 + $0xf0] sm:$0xff]  ;;  %v337_v3 = vld [vmem:[#allocation5 + $0xf8] sm:$0xff]  ;;  %v5339_v19 = vcombine.high %v815_v13, %v819_v14  ;;  %v823_v21 = vld [vmem:[#allocation8 + $0x80] sm:$0xff]  ;;  %v5338_v24 = vcombine.low %v815_v13, %v819_v14 }
  0xac   : > { %553 = vmatprep.subr.bf16.mxu0 %v5315_v26  ;;  %606 = vmatprep.subr.bf16.mxu1 %v5317_v35  ;;  %v5319_v63 = vcombine.high %v332_v56, %v336_v57  ;;  %v5318_v7 = vcombine.low %v332_v56, %v336_v57  ;;  %v5321_v8 = vcombine.high %v333_v2, %v337_v3  ;;  %v808_v10 = vld [vmem:[#allocation8 + $0x8] sm:$0xff]  ;;  %v827_v22 = vld [vmem:[#allocation8 + $0xa0] sm:$0xff] }
  0xad   : > { %v812_v11 = vld [vmem:[#allocation8 + $0x28] sm:$0xff]  ;;  %v5320_v12 = vcombine.low %v333_v2, %v337_v3  ;;  %v5347_v27 = vcombine.high %v823_v21, %v827_v22  ;;  %v831_v29 = vld [vmem:[#allocation8 + $0xc0] sm:$0xff] }
  0xae   : > { %v5333_v15 = vcombine.high %v808_v10, %v812_v11  ;;  %v816_v17 = vld [vmem:[#allocation8 + $0x48] sm:$0xff]  ;;  %v5332_v20 = vcombine.low %v808_v10, %v812_v11  ;;  %v835_v30 = vld [vmem:[#allocation8 + $0xe0] sm:$0xff] }
  0xaf   : > { %554 = vmatpush1.bf16.msra.mxu0 %v5314_v32  ;;  %607 = vmatpush1.bf16.msra.mxu1 %v5316_v42  ;;  %v820_v18 = vld [vmem:[#allocation8 + $0x68] sm:$0xff]  ;;  %v5346_v32 = vcombine.low %v823_v21, %v827_v22  ;;  %v5355_v35 = vcombine.high %v831_v29, %v835_v30  ;;  %v839_v37 = vld [vmem:[#allocation8 + $0x100] sm:$0xff]  ;;  %v5354_v40 = vcombine.low %v831_v29, %v835_v30 }
  0xb0   : > { %653 = vmatprep.subr.bf16.mxu0 %v5295_v36  ;;  %706 = vmatprep.subr.bf16.mxu1 %v5297_v45  ;;  %v5341_v23 = vcombine.high %v816_v17, %v820_v18  ;;  %v824_v25 = vld [vmem:[#allocation8 + $0x88] sm:$0xff]  ;;  %v5340_v28 = vcombine.low %v816_v17, %v820_v18  ;;  %v843_v38 = vld [vmem:[#allocation8 + $0x120] sm:$0xff] }
  0xb1   : > { %v828_v26 = vld [vmem:[#allocation8 + $0xa8] sm:$0xff]  ;;  %v5363_v42 = vcombine.high %v839_v37, %v843_v38  ;;  %v851_v45 = vld [vmem:[#allocation8 + $0x160] sm:$0xff]  ;;  %v5362_v47 = vcombine.low %v839_v37, %v843_v38 }
  0xb2   : > { %5322 = vmatmul.mubr.msk.bf16.vlgmr.msra.gmra.mrb[0].mxu0 %vm540_vm0, %v6575_v41  ;;  %5324 = vmatmul.mubr.msk.bf16.vlgmr.msra.gmra.mrb[0].mxu1 %vm540_vm0, %v6575_v41  ;;  %v5349_v31 = vcombine.high %v824_v25, %v828_v26  ;;  %v832_v33 = vld [vmem:[#allocation8 + $0xc8] sm:$0xff]  ;;  %v5348_v36 = vcombine.low %v824_v25, %v828_v26  ;;  %v855_v52 = vld [vmem:[#allocation8 + $0x180] sm:$0xff] }
  0xb3   : > { %589 = vmatprep.mubr.bf16.mxu0 %v6308_v0  ;;  %654 = vmatpush1.bf16.msra.mxu0 %v5294_v43  ;;  %v836_v34 = vld [vmem:[#allocation8 + $0xe8] sm:$0xff]  ;;  %v871_v5 = vld [vmem:[#allocation8 + $0x200] sm:$0xff] }
  0xb4   : > { %655 = vmatprep.subr.bf16.mxu0 %v5303_v44  ;;  %642 = vmatprep.mubr.bf16.mxu1 %v6308_v0  ;;  %v5357_v39 = vcombine.high %v832_v33, %v836_v34  ;;  %v5356_v43 = vcombine.low %v832_v33, %v836_v34  ;;  %v847_v44 = vld [vmem:[#allocation8 + $0x140] sm:$0xff]  ;;  %v848_v48 = vld [vmem:[#allocation8 + $0x148] sm:$0xff] }
  0xb5   : > { %707 = vmatpush1.bf16.msra.mxu1 %v5296_v50  ;;  %v852_v49 = vld [vmem:[#allocation8 + $0x168] sm:$0xff]  ;;  %v5371_v50 = vcombine.high %v847_v44, %v851_v45  ;;  %v879_v13 = vld [vmem:[#allocation8 + $0x240] sm:$0xff] }
  0xb6   : > { %708 = vmatprep.subr.bf16.mxu1 %v5305_v54  ;;  %v5373_v54 = vcombine.high %v848_v48, %v852_v49  ;;  %v856_v56 = vld [vmem:[#allocation8 + $0x188] sm:$0xff]  ;;  %v5372_v59 = vcombine.low %v848_v48, %v852_v49  ;;  %v883_v14 = vld [vmem:[#allocation8 + $0x260] sm:$0xff] }
  0xb7   : > { %656 = vmatpush1.bf16.msra.mxu0 %v5302_v53  ;;  %v859_v53 = vld [vmem:[#allocation8 + $0x1a0] sm:$0xff]  ;;  %v860_v57 = vld [vmem:[#allocation8 + $0x1a8] sm:$0xff] }
  0xb8   : > { %657 = vmatprep.subr.bf16.mxu0 %v5311_v55  ;;  %v5370_v55 = vcombine.low %v847_v44, %v851_v45  ;;  %v5379_v58 = vcombine.high %v855_v52, %v859_v53  ;;  %v868_v2 = vld [vmem:[#allocation8 + $0x1e8] sm:$0xff]  ;;  %v5380_v4 = vcombine.low %v856_v56, %v860_v57  ;;  %v887_v21 = vld [vmem:[#allocation8 + $0x280] sm:$0xff] }
  0xb9   : > { %709 = vmatpush1.bf16.msra.mxu1 %v5304_v61  ;;  %v867_v61 = vld [vmem:[#allocation8 + $0x1e0] sm:$0xff]  ;;  %v876_v10 = vld [vmem:[#allocation8 + $0x228] sm:$0xff] }
  0xba   : > { %5323 = vmatmul.mubr.msk.bf16.gmra.mrb[4].mxu0 %vm540_vm0, %v6584_v60  ;;  %710 = vmatprep.subr.bf16.mxu1 %v5313_v1  ;;  %v864_v1 = vld [vmem:[#allocation8 + $0x1c8] sm:$0xff]  ;;  %v891_v22 = vld [vmem:[#allocation8 + $0x2a0] sm:$0xff] }
  0xbb   : > { %658 = vmatpush1.bf16.msra.mxu0 %v5310_v62  ;;  %685 = vmatprep.mubr.bf16.mxu0 %v6308_v0  ;;  %v5381_v62 = vcombine.high %v856_v56, %v860_v57  ;;  %v880_v17 = vld [vmem:[#allocation8 + $0x248] sm:$0xff]  ;;  %v895_v29 = vld [vmem:[#allocation8 + $0x2c0] sm:$0xff] }
  0xbc   : > { %659 = vmatprep.subr.bf16.mxu0 %v5319_v63  ;;  %5325 = vmatmul.mubr.msk.bf16.gmra.mrb[4].mxu1 %vm540_vm0, %v6584_v60  ;;  %v5378_v63 = vcombine.low %v855_v52, %v859_v53  ;;  %v884_v18 = vld [vmem:[#allocation8 + $0x268] sm:$0xff]  ;;  %v899_v30 = vld [vmem:[#allocation8 + $0x2e0] sm:$0xff] }
  0xbd   : > { %711 = vmatpush1.bf16.msra.mxu1 %v5312_v6  ;;  %738 = vmatprep.mubr.bf16.mxu1 %v6308_v0  ;;  %v875_v6 = vld [vmem:[#allocation8 + $0x220] sm:$0xff]  ;;  %v888_v25 = vld [vmem:[#allocation8 + $0x288] sm:$0xff] }
  0xbe   : > { %712 = vmatprep.subr.bf16.mxu1 %v5321_v8  ;;  %v5395_v11 = vcombine.high %v871_v5, %v875_v6  ;;  %v892_v26 = vld [vmem:[#allocation8 + $0x2a8] sm:$0xff]  ;;  %v903_v37 = vld [vmem:[#allocation8 + $0x300] sm:$0xff] }
  0xbf   : > { %660 = vmatpush1.bf16.msra.mxu0 %v5318_v7  ;;  %v5389_v7 = vcombine.high %v864_v1, %v868_v2  ;;  %v896_v33 = vld [vmem:[#allocation8 + $0x2c8] sm:$0xff]  ;;  %v907_v38 = vld [vmem:[#allocation8 + $0x320] sm:$0xff] }
  0xc0   : > { %3921 = vmatprep.subr.bf16.mxu0 %v5331_v9  ;;  %v872_v9 = vld [vmem:[#allocation8 + $0x208] sm:$0xff]  ;;  %v911_v44 = vld [vmem:[#allocation8 + $0x340] sm:$0xff] }
  0xc1   : > { %713 = vmatpush1.bf16.msra.mxu1 %v5320_v12  ;;  %v5388_v12 = vcombine.low %v864_v1, %v868_v2  ;;  %v900_v34 = vld [vmem:[#allocation8 + $0x2e8] sm:$0xff]  ;;  %v915_v45 = vld [vmem:[#allocation8 + $0x360] sm:$0xff] }
  0xc2   : > { %5326 = vmatmul.mubr.msk.bf16.vlgmr.msra.gmra.mrb[8].mxu0 %vm540_vm0, %v6575_v41  ;;  %4133 = vmatprep.subr.bf16.mxu1 %v5333_v15  ;;  %v5397_v15 = vcombine.high %v872_v9, %v876_v10  ;;  %v912_v48 = vld [vmem:[#allocation8 + $0x348] sm:$0xff]  ;;  %v5434_v53 = vcombine.low %v911_v44, %v915_v45  ;;  %v923_v56 = vld [vmem:[#allocation8 + $0x3a0] sm:$0xff] }
  0xc3   : > { %695 = vmatprep.mubr.bf16.mxu0 %v6308_v0  ;;  %3922 = vmatpush1.bf16.msra.mxu0 %v5330_v16  ;;  %v5394_v16 = vcombine.low %v871_v5, %v875_v6  ;;  %v916_v49 = vld [vmem:[#allocation8 + $0x368] sm:$0xff]  ;;  %v931_v1 = vld [vmem:[#allocation8 + $0x3e0] sm:$0xff] }
  0xc4   : > { %5328 = vmatmul.mubr.msk.bf16.vlgmr.msra.gmra.mrb[8].mxu1 %vm540_vm0, %v6575_v41  ;;  %3923 = vmatprep.subr.bf16.mxu0 %v5339_v19  ;;  %v844_v41 = vld [vmem:[#allocation8 + $0x128] sm:$0xff]  ;;  %v5403_v19 = vcombine.high %v879_v13, %v883_v14  ;;  %v5437_v52 = vcombine.high %v912_v48, %v916_v49 }
  0xc5   : > { %4134 = vmatpush1.bf16.msra.mxu1 %v5332_v20  ;;  %748 = vmatprep.mubr.bf16.mxu1 %v6308_v0  ;;  %v840_v0 = vld [vmem:[#allocation8 + $0x108] sm:$0xff]  ;;  %v5396_v20 = vcombine.low %v872_v9, %v876_v10  ;;  %v6605_v9 = vld [vmem:[#allocation8 + $0x420] sm:$0xff] }
  0xc6   : > { %4135 = vmatprep.subr.bf16.mxu1 %v5341_v23  ;;  %v5365_v46 = vcombine.high %v840_v0, %v844_v41  ;;  %v5364_v51 = vcombine.low %v840_v0, %v844_v41  ;;  %v5405_v23 = vcombine.high %v880_v17, %v884_v18  ;;  %v904_v0 = vld [vmem:[#allocation8 + $0x308] sm:$0xff] }
  0xc7   : > { %3924 = vmatpush1.bf16.msra.mxu0 %v5338_v24  ;;  %v5402_v24 = vcombine.low %v879_v13, %v883_v14  ;;  %v908_v41 = vld [vmem:[#allocation8 + $0x328] sm:$0xff] }
  0xc8   : > { %3925 = vmatprep.subr.bf16.mxu0 %v5347_v27  ;;  %v5411_v27 = vcombine.high %v887_v21, %v891_v22  ;;  %v920_v57 = vld [vmem:[#allocation8 + $0x388] sm:$0xff] }
  0xc9   : > { %4136 = vmatpush1.bf16.msra.mxu1 %v5340_v28  ;;  %v5404_v28 = vcombine.low %v880_v17, %v884_v18  ;;  %v928_v2 = vld [vmem:[#allocation8 + $0x3c8] sm:$0xff] }
  0xca   : > { %5327 = vmatmul.mubr.msk.bf16.gmra.mrb[12].mxu0 %vm540_vm0, %v6584_v60  ;;  %4137 = vmatprep.subr.bf16.mxu1 %v5349_v31  ;;  %v5413_v31 = vcombine.high %v888_v25, %v892_v26  ;;  %v6607_v10 = vld [vmem:[#allocation8 + $0x408] sm:$0xff] }
  0xcb   : > { %3926 = vmatpush1.bf16.msra.mxu0 %v5346_v32  ;;  %v5410_v32 = vcombine.low %v887_v21, %v891_v22 }
  0xcc   : > { %3927 = vmatprep.subr.bf16.mxu0 %v5355_v35  ;;  %5329 = vmatmul.mubr.msk.bf16.gmra.mrb[12].mxu1 %vm540_vm0, %v6584_v60  ;;  %v863_v60 = vld [vmem:[#allocation8 + $0x1c0] sm:$0xff]  ;;  %v5419_v35 = vcombine.high %v895_v29, %v899_v30 }
  0xcd   : > { %4138 = vmatpush1.bf16.msra.mxu1 %v5348_v36  ;;  %v5387_v3 = vcombine.high %v863_v60, %v867_v61  ;;  %v5386_v8 = vcombine.low %v863_v60, %v867_v61  ;;  %v5412_v36 = vcombine.low %v888_v25, %v892_v26 }
  0xce   : > { %4139 = vmatprep.subr.bf16.mxu1 %v5357_v39  ;;  %v5421_v39 = vcombine.high %v896_v33, %v900_v34 }
  0xcf   : > { %3928 = vmatpush1.bf16.msra.mxu0 %v5354_v40  ;;  %v5418_v40 = vcombine.low %v895_v29, %v899_v30 }
  0xd0   : > { %3929 = vmatprep.subr.bf16.mxu0 %v5363_v42  ;;  %v5427_v42 = vcombine.high %v903_v37, %v907_v38 }
  0xd1   : > { %4140 = vmatpush1.bf16.msra.mxu1 %v5356_v43  ;;  %v5420_v43 = vcombine.low %v896_v33, %v900_v34 }
  0xd2   : > { %4141 = vmatprep.subr.bf16.mxu1 %v5365_v46  ;;  %v5429_v46 = vcombine.high %v904_v0, %v908_v41 }
  0xd3   : > { %3930 = vmatpush1.bf16.msra.mxu0 %v5362_v47  ;;  %v5426_v47 = vcombine.low %v903_v37, %v907_v38 }
  0xd4   : > { %3931 = vmatprep.subr.bf16.mxu0 %v5371_v50  ;;  %v5435_v50 = vcombine.high %v911_v44, %v915_v45  ;;  %v6653_v45 = vld [vmem:[#allocation8 + $0x448] sm:$0xff] }
  0xd5   : > { %4142 = vmatpush1.bf16.msra.mxu1 %v5364_v51  ;;  %v5428_v51 = vcombine.low %v904_v0, %v908_v41  ;;  %v6650_v0 = vld [vmem:[#allocation8 + $0x460] sm:$0xff] }
  0xd6   : > { %4143 = vmatprep.subr.bf16.mxu1 %v5373_v54  ;;  %v5436_v54 = vcombine.low %v912_v48, %v916_v49 }
  0xd7   : > { %3932 = vmatpush1.bf16.msra.mxu0 %v5370_v55  ;;  %v919_v55 = vld [vmem:[#allocation8 + $0x380] sm:$0xff] }
  0xd8   : > { %3933 = vmatprep.subr.bf16.mxu0 %v5379_v58  ;;  %v5443_v58 = vcombine.high %v919_v55, %v923_v56  ;;  %v5442_v60 = vcombine.low %v919_v55, %v923_v56 }
  0xd9   : > { %4144 = vmatpush1.bf16.msra.mxu1 %v5372_v59  ;;  %v924_v59 = vld [vmem:[#allocation8 + $0x3a8] sm:$0xff] }
  0xda   : > { %4145 = vmatprep.subr.bf16.mxu1 %v5381_v62  ;;  %v5444_v61 = vcombine.low %v920_v57, %v924_v59  ;;  %v5445_v62 = vcombine.high %v920_v57, %v924_v59  ;;  %v6666_v59 = vld [vmem:[#allocation8 + $0x4a0] sm:$0xff] }
  0xdb   : > { %3934 = vmatpush1.bf16.msra.mxu0 %v5378_v63  ;;  %v927_v63 = vld [vmem:[#allocation8 + $0x3c0] sm:$0xff] }
  0xdc   : > { %3935 = vmatprep.subr.bf16.mxu0 %v5387_v3  ;;  %v932_v3 = vld [vmem:[#allocation8 + $0x3e8] sm:$0xff]  ;;  %v5451_v5 = vcombine.high %v927_v63, %v931_v1 }
  0xdd   : > { %4146 = vmatpush1.bf16.msra.mxu1 %v5380_v4  ;;  %v5450_v4 = vcombine.low %v927_v63, %v931_v1  ;;  %v5452_v6 = vcombine.low %v928_v2, %v932_v3 }
  0xde   : > { %4147 = vmatprep.subr.bf16.mxu1 %v5389_v7  ;;  %v5453_v7 = vcombine.high %v928_v2, %v932_v3  ;;  %v6675_v2 = vld [vmem:[#allocation8 + $0x488] sm:$0xff] }
  0xdf   : > { %3936 = vmatpush1.bf16.msra.mxu0 %v5386_v8  ;;  %v6603_v8 = vld [vmem:[#allocation8 + $0x400] sm:$0xff]  ;;  %v6677_v3 = vld [vmem:[#allocation8 + $0x4a8] sm:$0xff] }
  0xe0   : > { %3937 = vmatprep.subr.bf16.mxu0 %v5395_v11  ;;  %v5459_v11 = vcombine.high %v6603_v8, %v6605_v9  ;;  %v5458_v13 = vcombine.low %v6603_v8, %v6605_v9 }
  0xe1   : > { %4148 = vmatpush1.bf16.msra.mxu1 %v5388_v12  ;;  %v6611_v12 = vld [vmem:[#allocation8 + $0x428] sm:$0xff] }
  0xe2   : > { %4149 = vmatprep.subr.bf16.mxu1 %v5397_v15  ;;  %v5460_v14 = vcombine.low %v6607_v10, %v6611_v12  ;;  %v5461_v15 = vcombine.high %v6607_v10, %v6611_v12 }
  0xe3   : > { %3938 = vmatpush1.bf16.msra.mxu0 %v5394_v16  ;;  %v340_v16 = vlaneseq }
  0xe4   : > { %3939 = vmatprep.subr.bf16.mxu0 %v5403_v19  ;;  %v6624_v19 = vld [vmem:[#allocation7] sm:$0xff] }
  0xe5   : > { %4150 = vmatpush1.bf16.msra.mxu1 %v5396_v20  ;;  %v6619_v17 = vshrl.u32 %v340_v16, 7 }
  0xe6   : > { %4151 = vmatprep.subr.bf16.mxu1 %v5405_v23 }
  0xe7   : > { %3940 = vmatpush1.bf16.msra.mxu0 %v5402_v24  ;;  %v6622_v18 = vsub.s32 0, %v6619_v17  ;;  %v6627_v20 = vsub.s32 1, %v6619_v17  ;;  %v6630_v21 = vsub.s32 2, %v6619_v17  ;;  %v6635_v23 = vsub.s32 3, %v6619_v17 }
  0xe8   : > { %3941 = vmatprep.subr.bf16.mxu0 %v5411_v27  ;;  %v6669_v63 = vsub.s32 4, %v6619_v17 }
  0xe9   : > { %4152 = vmatpush1.bf16.msra.mxu1 %v5404_v28  ;;  %v343_v22 = vrot.slane %v6624_v19, %v6622_v18  ;;  %v347_v24 = vrot.slane %v6624_v19, %v6627_v20  ;;  %v6641_v26 = vrot.slane %v6624_v19, %v6630_v21  ;;  %v6645_v29 = vrot.slane %v6624_v19, %v6635_v23 }
  0xea   : > { %4153 = vmatprep.subr.bf16.mxu1 %v5413_v31  ;;  %v6705_v12 = vrot.slane %v6624_v19, %v6669_v63 }
  0xeb   : > { %3942 = vmatpush1.bf16.msra.mxu0 %v5410_v32 }
  0xec   : > { %3943 = vmatprep.subr.bf16.mxu0 %v5419_v35 }
  0xed   : > { %4154 = vmatpush1.bf16.msra.mxu1 %v5412_v36 }
  0xee   : > { %4155 = vmatprep.subr.bf16.mxu1 %v5421_v39 }
  0xef   : > { %3944 = vmatpush1.bf16.msra.mxu0 %v5418_v40  ;;  %v6648_v40 = vld [vmem:[#allocation8 + $0x440] sm:$0xff] }
  0xf0   : > { %3945 = vmatprep.subr.bf16.mxu0 %v5427_v42  ;;  %v5466_v1 = vcombine.low %v6648_v40, %v6650_v0 }
  0xf1   : > { %4156 = vmatpush1.bf16.msra.mxu1 %v5420_v43 }
  0xf2   : > { %4157 = vmatprep.subr.bf16.mxu1 %v5429_v46  ;;  %v948_v46 = vld [vmem:[#allocation8 + $0x468] sm:$0xff] }
  0xf3   : > { %3946 = vmatpush1.bf16.msra.mxu0 %v5426_v47  ;;  %v5469_v57 = vcombine.high %v6653_v45, %v948_v46 }
  0xf4   : > { %3947 = vmatprep.subr.bf16.mxu0 %v5435_v50 }
  0xf5   : > { %4158 = vmatpush1.bf16.msra.mxu1 %v5428_v51 }
  0xf6   : > { %4159 = vmatprep.subr.bf16.mxu1 %v5437_v52 }
  0xf7   : > { %3948 = vmatpush1.bf16.msra.mxu0 %v5434_v53 }
  0xf8   : > { %3949 = vmatprep.subr.bf16.mxu0 %v5443_v58  ;;  %v6664_v58 = vld [vmem:[#allocation8 + $0x480] sm:$0xff] }
  0xf9   : > { %4160 = vmatpush1.bf16.msra.mxu1 %v5436_v54  ;;  %v5467_v54 = vcombine.high %v6648_v40, %v6650_v0 }
  0xfa   : > { %4161 = vmatprep.subr.bf16.mxu1 %v5445_v62 }
  0xfb   : > { %3950 = vmatpush1.bf16.msra.mxu0 %v5442_v60 }
  0xfc   : > { %3951 = vmatprep.subr.bf16.mxu0 %v5451_v5 }
  0xfd   : > { %4162 = vmatpush1.bf16.msra.mxu1 %v5444_v61 }
  0xfe   : > { %4163 = vmatprep.subr.bf16.mxu1 %v5453_v7  ;;  %v6682_v7 = vsub.s32 5, %v6619_v17 }
  0xff   : > { %3952 = vmatpush1.bf16.msra.mxu0 %v5450_v4 }
 0x100   : > { %3974 = vmatprep.subr.bf16.mxu0 %v5459_v11  ;;  %v5468_v11 = vcombine.low %v6653_v45, %v948_v46  ;;  %v6710_v40 = vrot.slane %v6624_v19, %v6682_v7 }
 0x101   : > { %4164 = vmatpush1.bf16.msra.mxu1 %v5452_v6 }
 0x102   : > { %4186 = vmatprep.subr.bf16.mxu1 %v5461_v15 }
 0x185   : > { %v581_v25 = vpop.f32.mrb[0].mxu0  ;;  %v634_v34 = vpop.f32.mrb[0].mxu1 }
 0x186   : > { %v582_v27 = vadd.f32 %v581_v25, %v343_v22  ;;  %v583_v28 = vpop.f32.mrb[1].mxu0  ;;  %v635_v36 = vadd.f32 %v634_v34, %v6641_v26  ;;  %v636_v37 = vpop.f32.mrb[1].mxu1  ;;  %v5477_v34 = vcombine.high %v6675_v2, %v6677_v3 }
 0x187   : > { %v584_v30 = vadd.f32 %v583_v28, %v347_v24  ;;  %v585_v31 = vpop.f32.mrb[2].mxu0  ;;  %v637_v41 = vadd.f32 %v636_v37, %v6645_v29  ;;  %v638_v42 = vpop.f32.mrb[2].mxu1 }
 0x188   : > { %v586_v32 = vadd.f32 %v585_v31, %v343_v22  ;;  %v587_v33 = vpop.f32.mrb[3].mxu0  ;;  %v759_v38 = vmax.f32 %v582_v27, 0.0  ;;  %v761_v47 = vmax.f32 %v635_v36, 0.0  ;;  %v639_v48 = vadd.f32 %v638_v42, %v6641_v26  ;;  %v640_v49 = vpop.f32.mrb[3].mxu1 }
 0x189   : > { %v588_v35 = vadd.f32 %v587_v33, %v347_v24  ;;  %v760_v43 = vmax.f32 %v584_v30, 0.0  ;;  %v762_v51 = vmax.f32 %v637_v41, 0.0  ;;  %v641_v52 = vadd.f32 %v640_v49, %v6645_v29  ;;  %v967_v49 = vld [vmem:[#allocation8 + $0x500] sm:$0xff] }
 0x18a   : > { %v767_v39 = vmax.f32 %v586_v32, 0.0  ;;  %v769_v56 = vmax.f32 %v639_v48, 0.0  ;;  %v5475_v30 = vcombine.high %v6664_v58, %v6666_v59 }
 0x18b   : > { %v768_v44 = vmax.f32 %v588_v35, 0.0  ;;  %v770_v62 = vmax.f32 %v641_v52, 0.0  ;;  %v6700_v35 = vld [vmem:[#allocation8 + $0x4c0] sm:$0xff] }
 0x18c   : > { %v6656_v50 = vpack.c.bf16 %v767_v39, %v759_v38  ;;  %v6679_v6 = vpack.c.bf16 %v769_v56, %v761_v47  ;;  %v972_v56 = vld [vmem:[#allocation8 + $0x528] sm:$0xff] }
 0x18d   : > { %v6659_v53 = vpack.c.bf16 %v768_v44, %v760_v43  ;;  %v591_v55 = vpop.f32.mrb[4].mxu0  ;;  %v6687_v27 = vpack.c.bf16 %v770_v62, %v762_v51  ;;  %v5474_v43 = vcombine.low %v6664_v58, %v6666_v59  ;;  %v5476_v44 = vcombine.low %v6675_v2, %v6677_v3 }
 0x18e   : > { %v592_v60 = vadd.f32 %v591_v55, %v343_v22  ;;  %v593_v61 = vpop.f32.mrb[5].mxu0  ;;  %v968_v55 = vld [vmem:[#allocation8 + $0x508] sm:$0xff] }
 0x18f   : > { %3953 = vmatprep.mubr.bf16.mxu0 %v6659_v53  ;;  %4165 = vmatprep.mubr.bf16.mxu1 %v6659_v53  ;;  %v594_v4 = vadd.f32 %v593_v61, %v347_v24  ;;  %v595_v5 = vpop.f32.mrb[6].mxu0  ;;  %v644_v28 = vpop.f32.mrb[4].mxu1 }
 0x190   : > { %3954 = vmatmul.mubr.bf16.vlgmr.msra.gmra.mrb[16].mxu0 %v6656_v50  ;;  %4166 = vmatmul.mubr.bf16.vlgmr.msra.gmra.mrb[16].mxu1 %v6656_v50  ;;  %v775_v15 = vmax.f32 %v592_v60, 0.0  ;;  %v596_v16 = vadd.f32 %v595_v5, %v343_v22  ;;  %v597_v25 = vpop.f32.mrb[7].mxu0  ;;  %v645_v33 = vadd.f32 %v644_v28, %v6641_v26  ;;  %v646_v22 = vpop.f32.mrb[5].mxu1  ;;  %v979_v28 = vld [vmem:[#allocation8 + $0x560] sm:$0xff] }
 0x191   : > { %3975 = vmatpush1.bf16.msra.mxu0 %v5458_v13  ;;  %4187 = vmatpush1.bf16.msra.mxu1 %v5460_v14  ;;  %v776_v31 = vmax.f32 %v594_v4, 0.0  ;;  %v598_v32 = vadd.f32 %v597_v25, %v347_v24  ;;  %v647_v9 = vadd.f32 %v646_v22, %v6645_v29  ;;  %v648_v10 = vpop.f32.mrb[6].mxu1  ;;  %v963_v13 = vld [vmem:[#allocation8 + $0x4e0] sm:$0xff]  ;;  %v960_v14 = vld [vmem:[#allocation8 + $0x4c8] sm:$0xff] }
 0x192   : > { %3976 = vmatprep.subr.bf16.mxu0 %v5467_v54  ;;  %4188 = vmatprep.subr.bf16.mxu1 %v5469_v57  ;;  %v783_v8 = vmax.f32 %v596_v16, 0.0  ;;  %v964_v24 = vld [vmem:[#allocation8 + $0x4e8] sm:$0xff]  ;;  %v777_v37 = vmax.f32 %v645_v33, 0.0  ;;  %v649_v38 = vadd.f32 %v648_v10, %v6641_v26  ;;  %v650_v39 = vpop.f32.mrb[7].mxu1  ;;  %v5483_v47 = vcombine.high %v6700_v35, %v963_v13  ;;  %v971_v54 = vld [vmem:[#allocation8 + $0x520] sm:$0xff] }
 0x193   : > { %v784_v36 = vmax.f32 %v598_v32, 0.0  ;;  %v778_v41 = vmax.f32 %v647_v9, 0.0  ;;  %v651_v42 = vadd.f32 %v650_v39, %v6645_v29  ;;  %v5485_v48 = vcombine.high %v960_v14, %v964_v24  ;;  %v975_v16 = vld [vmem:[#allocation8 + $0x540] sm:$0xff] }
 0x194   : > { %v6712_v0 = vpack.c.bf16 %v783_v8, %v775_v15  ;;  %v785_v26 = vmax.f32 %v649_v38, 0.0  ;;  %v5482_v2 = vcombine.low %v6700_v35, %v963_v13  ;;  %v5484_v3 = vcombine.low %v960_v14, %v964_v24  ;;  %v983_v10 = vld [vmem:[#allocation8 + $0x580] sm:$0xff]  ;;  %v984_v14 = vld [vmem:[#allocation8 + $0x588] sm:$0xff] }
 0x195   : > { %3977 = vmatpush1.bf16.msra.mxu0 %v5466_v1  ;;  %4189 = vmatpush1.bf16.msra.mxu1 %v5468_v11  ;;  %v6719_v45 = vpack.c.bf16 %v784_v36, %v776_v31  ;;  %v687_v46 = vpop.f32.mrb[8].mxu0  ;;  %v786_v51 = vmax.f32 %v651_v42, 0.0  ;;  %v5491_v11 = vcombine.high %v967_v49, %v971_v54  ;;  %v5493_v15 = vcombine.high %v968_v55, %v972_v56  ;;  %v980_v31 = vld [vmem:[#allocation8 + $0x568] sm:$0xff]  ;;  %v987_v13 = vld [vmem:[#allocation8 + $0x5a0] sm:$0xff] }
 0x196   : > { %3978 = vmatprep.subr.bf16.mxu0 %v5475_v30  ;;  %4190 = vmatprep.subr.bf16.mxu1 %v5477_v34  ;;  %v688_v29 = vadd.f32 %v687_v46, %v6705_v12  ;;  %v689_v52 = vpop.f32.mrb[9].mxu0  ;;  %v6725_v57 = vpack.c.bf16 %v785_v26, %v777_v37  ;;  %v976_v30 = vld [vmem:[#allocation8 + $0x548] sm:$0xff]  ;;  %v5490_v22 = vcombine.low %v967_v49, %v971_v54  ;;  %v6741_v38 = vld [vmem:[#allocation8 + $0x5c0] sm:$0xff] }
 0x197   : > { %3963 = vmatprep.mubr.bf16.mxu0 %v6719_v45  ;;  %4175 = vmatprep.mubr.bf16.mxu1 %v6719_v45  ;;  %v690_v58 = vadd.f32 %v689_v52, %v6710_v40  ;;  %v691_v59 = vpop.f32.mrb[10].mxu0  ;;  %v6730_v60 = vpack.c.bf16 %v786_v51, %v778_v41  ;;  %v5492_v34 = vcombine.low %v968_v55, %v972_v56  ;;  %v988_v24 = vld [vmem:[#allocation8 + $0x5a8] sm:$0xff]  ;;  %v740_v49 = vpop.f32.mrb[8].mxu1 }
 0x198   : > { %3964 = vmatmul.mubr.bf16.gmra.mrb[20].mxu0 %v6712_v0  ;;  %4176 = vmatmul.mubr.bf16.gmra.mrb[20].mxu1 %v6712_v0  ;;  %v763_v61 = vmax.f32 %v688_v29, 0.0  ;;  %v692_v62 = vadd.f32 %v691_v59, %v6705_v12  ;;  %v693_v1 = vpop.f32.mrb[11].mxu0  ;;  %v5499_v8 = vcombine.high %v975_v16, %v979_v28  ;;  %v5501_v9 = vcombine.high %v976_v30, %v980_v31  ;;  %v996_v26 = vld [vmem:[#allocation8 + $0x5e8] sm:$0xff] }
 0x199   : > { %3979 = vmatpush1.bf16.msra.mxu0 %v5474_v43  ;;  %4191 = vmatpush1.bf16.msra.mxu1 %v5476_v44  ;;  %v764_v4 = vmax.f32 %v690_v58, 0.0  ;;  %v694_v5 = vadd.f32 %v693_v1, %v6710_v40  ;;  %v5498_v36 = vcombine.low %v975_v16, %v979_v28  ;;  %v5500_v37 = vcombine.low %v976_v30, %v980_v31  ;;  %v995_v43 = vld [vmem:[#allocation8 + $0x5e0] sm:$0xff]  ;;  %v992_v44 = vld [vmem:[#allocation8 + $0x5c8] sm:$0xff] }
 0x19a   : > { %3980 = vmatprep.subr.bf16.mxu0 %v5483_v47  ;;  %4192 = vmatprep.subr.bf16.mxu1 %v5485_v48  ;;  %v771_v25 = vmax.f32 %v692_v62, 0.0  ;;  %v5507_v41 = vcombine.high %v983_v10, %v987_v13  ;;  %v5509_v42 = vcombine.high %v984_v14, %v988_v24  ;;  %v6745_v48 = vsub.s32 6, %v6619_v17  ;;  %v1003_v16 = vld [vmem:[#allocation8 + $0x620] sm:$0xff]  ;;  %v1004_v28 = vld [vmem:[#allocation8 + $0x628] sm:$0xff] }
 0x19b   : > { %4006 = vmatprep.mubr.bf16.mxu0 %v6687_v27  ;;  %4218 = vmatprep.mubr.bf16.mxu1 %v6687_v27  ;;  %v772_v32 = vmax.f32 %v694_v5, 0.0  ;;  %v5506_v52 = vcombine.low %v983_v10, %v987_v13  ;;  %v5508_v58 = vcombine.low %v984_v14, %v988_v24  ;;  %v5515_v59 = vcombine.high %v6741_v38, %v995_v43  ;;  %v1007_v24 = vld [vmem:[#allocation8 + $0x640] sm:$0xff] }
 0x19c   : > { %v6737_v33 = vpack.c.bf16 %v771_v25, %v763_v61  ;;  %v6751_v56 = vrot.slane %v6624_v19, %v6745_v48  ;;  %v5517_v61 = vcombine.high %v992_v44, %v996_v26  ;;  %v6755_v1 = vsub.s32 7, %v6619_v17  ;;  %v1000_v25 = vld [vmem:[#allocation8 + $0x608] sm:$0xff] }
 0x19d   : > { %3981 = vmatpush1.bf16.msra.mxu0 %v5482_v2  ;;  %4193 = vmatpush1.bf16.msra.mxu1 %v5484_v3  ;;  %v6739_v35 = vpack.c.bf16 %v772_v32, %v764_v4  ;;  %v697_v39 = vpop.f32.mrb[12].mxu0  ;;  %v742_v2 = vpop.f32.mrb[9].mxu1  ;;  %v999_v3 = vld [vmem:[#allocation8 + $0x600] sm:$0xff]  ;;  %v5514_v32 = vcombine.low %v6741_v38, %v995_v43  ;;  %v5525_v14 = vcombine.high %v1000_v25, %v1004_v28  ;;  %v1008_v38 = vld [vmem:[#allocation8 + $0x648] sm:$0xff] }
 0x19e   : > { %3982 = vmatprep.subr.bf16.mxu0 %v5491_v11  ;;  %4194 = vmatprep.subr.bf16.mxu1 %v5493_v15  ;;  %v698_v46 = vadd.f32 %v697_v39, %v6705_v12  ;;  %v699_v47 = vpop.f32.mrb[13].mxu0  ;;  %v741_v5 = vadd.f32 %v740_v49, %v6751_v56  ;;  %v744_v15 = vpop.f32.mrb[10].mxu1  ;;  %v6761_v30 = vrot.slane %v6624_v19, %v6755_v1  ;;  %v1012_v39 = vld [vmem:[#allocation8 + $0x668] sm:$0xff] }
 0x19f   : > { %v700_v51 = vadd.f32 %v699_v47, %v6710_v40  ;;  %v701_v29 = vpop.f32.mrb[14].mxu0  ;;  %v745_v17 = vadd.f32 %v744_v15, %v6751_v56  ;;  %v746_v31 = vpop.f32.mrb[11].mxu1  ;;  %v5523_v19 = vcombine.high %v999_v3, %v1003_v16  ;;  %v5533_v49 = vcombine.high %v1008_v38, %v1012_v39 }
 0x1a0   : > { %v779_v54 = vmax.f32 %v698_v46, 0.0  ;;  %v702_v55 = vadd.f32 %v701_v29, %v6705_v12  ;;  %v703_v62 = vpop.f32.mrb[15].mxu0  ;;  %v747_v13 = vadd.f32 %v746_v31, %v6761_v30  ;;  %v1019_v29 = vld [vmem:[#allocation8 + $0x6a0] sm:$0xff] }
 0x1a1   : > { %3983 = vmatpush1.bf16.msra.mxu0 %v5490_v22  ;;  %4195 = vmatpush1.bf16.msra.mxu1 %v5492_v34  ;;  %v780_v4 = vmax.f32 %v700_v51, 0.0  ;;  %v704_v11 = vadd.f32 %v703_v62, %v6710_v40  ;;  %v765_v34 = vmax.f32 %v741_v5, 0.0  ;;  %v5516_v40 = vcombine.low %v992_v44, %v996_v26  ;;  %v1015_v51 = vld [vmem:[#allocation8 + $0x680] sm:$0xff] }
 0x1a2   : > { %3984 = vmatprep.subr.bf16.mxu0 %v5499_v8  ;;  %4196 = vmatprep.subr.bf16.mxu1 %v5501_v9  ;;  %v787_v12 = vmax.f32 %v702_v55, 0.0  ;;  %v743_v9 = vadd.f32 %v742_v2, %v6761_v30  ;;  %v773_v10 = vmax.f32 %v745_v17, 0.0  ;;  %v774_v43 = vmax.f32 %v747_v13, 0.0  ;;  %v1023_v62 = vld [vmem:[#allocation8 + $0x6c0] sm:$0xff]  ;;  %v1036_v17 = vld [vmem:[#allocation8 + $0x728] sm:$0xff] }
 0x1a3   : > { %v788_v8 = vmax.f32 %v704_v11, 0.0  ;;  %v5522_v44 = vcombine.low %v999_v3, %v1003_v16  ;;  %v5524_v26 = vcombine.low %v1000_v25, %v1004_v28  ;;  %v1027_v2 = vld [vmem:[#allocation8 + $0x6e0] sm:$0xff]  ;;  %v1024_v3 = vld [vmem:[#allocation8 + $0x6c8] sm:$0xff] }
 0x1a4   : > { %v6765_v22 = vpack.c.bf16 %v787_v12, %v779_v54  ;;  %v1020_v54 = vld [vmem:[#allocation8 + $0x6a8] sm:$0xff]  ;;  %v5538_v12 = vcombine.low %v1015_v51, %v1019_v29  ;;  %v5547_v11 = vcombine.high %v1023_v62, %v1027_v2  ;;  %v1031_v16 = vld [vmem:[#allocation8 + $0x700] sm:$0xff]  ;;  %v5546_v31 = vcombine.low %v1023_v62, %v1027_v2 }
 0x1a5   : > { %3985 = vmatpush1.bf16.msra.mxu0 %v5498_v36  ;;  %4197 = vmatpush1.bf16.msra.mxu1 %v5500_v37  ;;  %v6769_v36 = vpack.c.bf16 %v788_v8, %v780_v4  ;;  %v1011_v37 = vld [vmem:[#allocation8 + $0x660] sm:$0xff]  ;;  %v1028_v4 = vld [vmem:[#allocation8 + $0x6e8] sm:$0xff] }
 0x1a6   : > { %3986 = vmatprep.subr.bf16.mxu0 %v5507_v41  ;;  %4198 = vmatprep.subr.bf16.mxu1 %v5509_v42  ;;  %v766_v41 = vmax.f32 %v743_v9, 0.0  ;;  %v6771_v42 = vpack.c.bf16 %v773_v10, %v765_v34  ;;  %v5531_v47 = vcombine.high %v1007_v24, %v1011_v37  ;;  %v5530_v55 = vcombine.low %v1007_v24, %v1011_v37  ;;  %v1035_v25 = vld [vmem:[#allocation8 + $0x720] sm:$0xff]  ;;  %v1032_v28 = vld [vmem:[#allocation8 + $0x708] sm:$0xff] }
 0x1a7   : > { %v5549_v15 = vcombine.high %v1024_v3, %v1028_v4  ;;  %v5555_v34 = vcombine.high %v1031_v16, %v1035_v25  ;;  %v5557_v8 = vcombine.high %v1032_v28, %v1036_v17  ;;  %v1043_v9 = vld [vmem:[#allocation8 + $0x760] sm:$0xff]  ;;  %v1040_v10 = vld [vmem:[#allocation8 + $0x748] sm:$0xff] }
 0x1a8   : > { %v6773_v46 = vpack.c.bf16 %v774_v43, %v766_v41  ;;  %v1044_v13 = vld [vmem:[#allocation8 + $0x768] sm:$0xff]  ;;  %v1063_v62 = vld [vmem:[#allocation8 + $0x800] sm:$0xff] }
 0x1a9   : > { %3987 = vmatpush1.bf16.msra.mxu0 %v5506_v52  ;;  %4199 = vmatpush1.bf16.msra.mxu1 %v5508_v58  ;;  %v1016_v52 = vld [vmem:[#allocation8 + $0x688] sm:$0xff]  ;;  %v5532_v58 = vcombine.low %v1008_v38, %v1012_v39  ;;  %v5565_v37 = vcombine.high %v1040_v10, %v1044_v13  ;;  %v1047_v38 = vld [vmem:[#allocation8 + $0x780] sm:$0xff] }
 0x1aa   : > { %3988 = vmatprep.subr.bf16.mxu0 %v5515_v59  ;;  %4200 = vmatprep.subr.bf16.mxu1 %v5517_v61  ;;  %v5539_v59 = vcombine.high %v1015_v51, %v1019_v29  ;;  %v5541_v61 = vcombine.high %v1016_v52, %v1020_v54  ;;  %v5540_v5 = vcombine.low %v1016_v52, %v1020_v54  ;;  %v1051_v39 = vld [vmem:[#allocation8 + $0x7a0] sm:$0xff]  ;;  %v1048_v41 = vld [vmem:[#allocation8 + $0x788] sm:$0xff] }
 0x1ab   : > { %v1052_v43 = vld [vmem:[#allocation8 + $0x7a8] sm:$0xff]  ;;  %v1055_v51 = vld [vmem:[#allocation8 + $0x7c0] sm:$0xff] }
 0x1ac   : > { %v1059_v29 = vld [vmem:[#allocation8 + $0x7e0] sm:$0xff]  ;;  %v1056_v52 = vld [vmem:[#allocation8 + $0x7c8] sm:$0xff] }
 0x1ad   : > { %3989 = vmatpush1.bf16.msra.mxu0 %v5514_v32  ;;  %4201 = vmatpush1.bf16.msra.mxu1 %v5516_v40  ;;  %v5548_v32 = vcombine.low %v1024_v3, %v1028_v4  ;;  %v1039_v40 = vld [vmem:[#allocation8 + $0x740] sm:$0xff]  ;;  %v1060_v54 = vld [vmem:[#allocation8 + $0x7e8] sm:$0xff] }
 0x1ae   : > { %3990 = vmatprep.subr.bf16.mxu0 %v5523_v19  ;;  %4202 = vmatprep.subr.bf16.mxu1 %v5525_v14  ;;  %v5554_v19 = vcombine.low %v1031_v16, %v1035_v25  ;;  %v5556_v14 = vcombine.low %v1032_v28, %v1036_v17  ;;  %v5563_v24 = vcombine.high %v1039_v40, %v1043_v9  ;;  %v1067_v2 = vld [vmem:[#allocation8 + $0x820] sm:$0xff]  ;;  %v1064_v3 = vld [vmem:[#allocation8 + $0x808] sm:$0xff]  ;;  %v750_v25 = vpop.f32.mrb[12].mxu1 }
 0x1af   : > { %v1068_v4 = vld [vmem:[#allocation8 + $0x828] sm:$0xff]  ;;  %v1071_v16 = vld [vmem:[#allocation8 + $0x840] sm:$0xff] }
 0x1b0   : > { %v1075_v28 = vld [vmem:[#allocation8 + $0x860] sm:$0xff]  ;;  %v1072_v17 = vld [vmem:[#allocation8 + $0x848] sm:$0xff] }
 0x1b1   : > { %3991 = vmatpush1.bf16.msra.mxu0 %v5522_v44  ;;  %4203 = vmatpush1.bf16.msra.mxu1 %v5524_v26  ;;  %v5562_v44 = vcombine.low %v1039_v40, %v1043_v9  ;;  %v5564_v26 = vcombine.low %v1040_v10, %v1044_v13  ;;  %v752_v40 = vpop.f32.mrb[13].mxu1  ;;  %v5595_v9 = vcombine.high %v1071_v16, %v1075_v28  ;;  %v1079_v13 = vld [vmem:[#allocation8 + $0x880] sm:$0xff] }
 0x1b2   : > { %3992 = vmatprep.subr.bf16.mxu0 %v5531_v47  ;;  %4204 = vmatprep.subr.bf16.mxu1 %v5533_v49  ;;  %v5571_v47 = vcombine.high %v1047_v38, %v1051_v39  ;;  %v5573_v49 = vcombine.high %v1048_v41, %v1052_v43 }
 0x1b5   : > { %3993 = vmatpush1.bf16.msra.mxu0 %v5530_v55  ;;  %4205 = vmatpush1.bf16.msra.mxu1 %v5532_v58  ;;  %v5570_v55 = vcombine.low %v1047_v38, %v1051_v39  ;;  %v5572_v58 = vcombine.low %v1048_v41, %v1052_v43  ;;  %v1084_v38 = vld [vmem:[#allocation8 + $0x8a8] sm:$0xff] }
 0x1b6   : > { %3994 = vmatprep.subr.bf16.mxu0 %v5539_v59  ;;  %4206 = vmatprep.subr.bf16.mxu1 %v5541_v61  ;;  %v5579_v59 = vcombine.high %v1055_v51, %v1059_v29  ;;  %v5581_v61 = vcombine.high %v1056_v52, %v1060_v54 }
 0x1b9   : > { %3995 = vmatpush1.bf16.msra.mxu0 %v5538_v12  ;;  %4207 = vmatpush1.bf16.msra.mxu1 %v5540_v5  ;;  %v5578_v12 = vcombine.low %v1055_v51, %v1059_v29  ;;  %v5580_v5 = vcombine.low %v1056_v52, %v1060_v54  ;;  %v1087_v54 = vld [vmem:[#allocation8 + $0x8c0] sm:$0xff] }
 0x1ba   : > { %3996 = vmatprep.subr.bf16.mxu0 %v5547_v11  ;;  %4208 = vmatprep.subr.bf16.mxu1 %v5549_v15  ;;  %v5587_v11 = vcombine.high %v1063_v62, %v1067_v2  ;;  %v5589_v15 = vcombine.high %v1064_v3, %v1068_v4 }
 0x1bd   : > { %3997 = vmatpush1.bf16.msra.mxu0 %v5546_v31  ;;  %4209 = vmatpush1.bf16.msra.mxu1 %v5548_v32  ;;  %v1076_v31 = vld [vmem:[#allocation8 + $0x868] sm:$0xff]  ;;  %v751_v32 = vadd.f32 %v750_v25, %v6751_v56 }
 0x1be   : > { %3998 = vmatprep.subr.bf16.mxu0 %v5555_v34  ;;  %4210 = vmatprep.subr.bf16.mxu1 %v5557_v8  ;;  %v5586_v34 = vcombine.low %v1063_v62, %v1067_v2  ;;  %v5588_v8 = vcombine.low %v1064_v3, %v1068_v4  ;;  %v5597_v10 = vcombine.high %v1072_v17, %v1076_v31 }
 0x1bf   : > { %v781_v39 = vmax.f32 %v751_v32, 0.0  ;;  %v1107_v32 = vld [vmem:[#allocation8 + $0x960] sm:$0xff] }
 0x1c1   : > { %3999 = vmatpush1.bf16.msra.mxu0 %v5554_v19  ;;  %4211 = vmatpush1.bf16.msra.mxu1 %v5556_v14  ;;  %v753_v19 = vadd.f32 %v752_v40, %v6761_v30  ;;  %v754_v14 = vpop.f32.mrb[14].mxu1 }
 0x1c2   : > { %4000 = vmatprep.subr.bf16.mxu0 %v5563_v24  ;;  %4212 = vmatprep.subr.bf16.mxu1 %v5565_v37  ;;  %v1083_v24 = vld [vmem:[#allocation8 + $0x8a0] sm:$0xff]  ;;  %v1080_v37 = vld [vmem:[#allocation8 + $0x888] sm:$0xff]  ;;  %v755_v41 = vadd.f32 %v754_v14, %v6751_v56  ;;  %v756_v43 = vpop.f32.mrb[15].mxu1 }
 0x1c3   : > { %v5603_v29 = vcombine.high %v1079_v13, %v1083_v24  ;;  %v5605_v52 = vcombine.high %v1080_v37, %v1084_v38  ;;  %v1091_v56 = vld [vmem:[#allocation8 + $0x8e0] sm:$0xff]  ;;  %v5602_v62 = vcombine.low %v1079_v13, %v1083_v24  ;;  %v5604_v2 = vcombine.low %v1080_v37, %v1084_v38  ;;  %v1112_v24 = vld [vmem:[#allocation8 + $0x988] sm:$0xff] }
 0x1c4   : > { %v789_v51 = vmax.f32 %v755_v41, 0.0  ;;  %v5611_v3 = vcombine.high %v1087_v54, %v1091_v56  ;;  %v1115_v14 = vld [vmem:[#allocation8 + $0x9a0] sm:$0xff]  ;;  %v1116_v37 = vld [vmem:[#allocation8 + $0x9a8] sm:$0xff] }
 0x1c5   : > { %4001 = vmatpush1.bf16.msra.mxu0 %v5562_v44  ;;  %4213 = vmatpush1.bf16.msra.mxu1 %v5564_v26  ;;  %v782_v44 = vmax.f32 %v753_v19, 0.0  ;;  %v757_v26 = vadd.f32 %v756_v43, %v6761_v30  ;;  %v1111_v19 = vld [vmem:[#allocation8 + $0x980] sm:$0xff]  ;;  %v5637_v43 = vcombine.high %v1112_v24, %v1116_v37 }
 0x1c6   : > { %4002 = vmatprep.subr.bf16.mxu0 %v5571_v47  ;;  %4214 = vmatprep.subr.bf16.mxu1 %v5573_v49  ;;  %v5594_v47 = vcombine.low %v1071_v16, %v1075_v28  ;;  %v5596_v49 = vcombine.low %v1072_v17, %v1076_v31  ;;  %v5610_v16 = vcombine.low %v1087_v54, %v1091_v56  ;;  %v1103_v31 = vld [vmem:[#allocation8 + $0x940] sm:$0xff] }
 0x1c7   : > { %v5626_v38 = vcombine.low %v1103_v31, %v1107_v32  ;;  %v5635_v41 = vcombine.high %v1111_v19, %v1115_v14  ;;  %v1131_v56 = vld [vmem:[#allocation8 + $0xa20] sm:$0xff] }
 0x1c9   : > { %4003 = vmatpush1.bf16.msra.mxu0 %v5570_v55  ;;  %4215 = vmatpush1.bf16.msra.mxu1 %v5572_v58  ;;  %v790_v55 = vmax.f32 %v757_v26, 0.0  ;;  %v1088_v58 = vld [vmem:[#allocation8 + $0x8c8] sm:$0xff]  ;;  %v1123_v26 = vld [vmem:[#allocation8 + $0x9e0] sm:$0xff] }
 0x1ca   : > { %4004 = vmatprep.subr.bf16.mxu0 %v5579_v59  ;;  %4216 = vmatprep.subr.bf16.mxu1 %v5581_v61  ;;  %v1092_v59 = vld [vmem:[#allocation8 + $0x8e8] sm:$0xff]  ;;  %v6783_v61 = vpack.c.bf16 %v789_v51, %v781_v39  ;;  %v5634_v51 = vcombine.low %v1111_v19, %v1115_v14  ;;  %v1151_v19 = vld [vmem:[#allocation8 + $0xac0] sm:$0xff] }
 0x1cb   : > { %v6785_v30 = vpack.c.bf16 %v790_v55, %v782_v44  ;;  %v5613_v4 = vcombine.high %v1088_v58, %v1092_v59  ;;  %v5612_v25 = vcombine.low %v1088_v58, %v1092_v59  ;;  %v1119_v44 = vld [vmem:[#allocation8 + $0x9c0] sm:$0xff]  ;;  %v1128_v58 = vld [vmem:[#allocation8 + $0xa08] sm:$0xff] }
 0x1cc   : > { %v1127_v55 = vld [vmem:[#allocation8 + $0xa00] sm:$0xff]  ;;  %v1132_v59 = vld [vmem:[#allocation8 + $0xa28] sm:$0xff] }
 0x1cd   : > { %4005 = vmatpush1.bf16.msra.mxu0 %v5578_v12  ;;  %4217 = vmatpush1.bf16.msra.mxu1 %v5580_v5  ;;  %v1095_v12 = vld [vmem:[#allocation8 + $0x900] sm:$0xff] }
 0x1ce   : > { %4027 = vmatprep.subr.bf16.mxu0 %v5587_v11  ;;  %4239 = vmatprep.subr.bf16.mxu1 %v5589_v15  ;;  %v1099_v5 = vld [vmem:[#allocation8 + $0x920] sm:$0xff]  ;;  %v1096_v11 = vld [vmem:[#allocation8 + $0x908] sm:$0xff] }
 0x1cf   : > { %v1100_v15 = vld [vmem:[#allocation8 + $0x928] sm:$0xff]  ;;  %v5619_v28 = vcombine.high %v1095_v12, %v1099_v5  ;;  %v5618_v40 = vcombine.low %v1095_v12, %v1099_v5  ;;  %v1135_v12 = vld [vmem:[#allocation8 + $0xa40] sm:$0xff] }
 0x1d0   : > { %4007 = vmatmul.mubr.bf16.vlgmr.msra.gmra.mrb[16].mxu0 %v6679_v6  ;;  %4219 = vmatmul.mubr.bf16.vlgmr.msra.gmra.mrb[16].mxu1 %v6679_v6  ;;  %v5621_v17 = vcombine.high %v1096_v11, %v1100_v15  ;;  %v1139_v5 = vld [vmem:[#allocation8 + $0xa60] sm:$0xff] }
 0x1d1   : > { %4028 = vmatpush1.bf16.msra.mxu0 %v5586_v34  ;;  %4240 = vmatpush1.bf16.msra.mxu1 %v5588_v8  ;;  %v1104_v34 = vld [vmem:[#allocation8 + $0x948] sm:$0xff]  ;;  %v1155_v14 = vld [vmem:[#allocation8 + $0xae0] sm:$0xff] }
 0x1d2   : > { %4029 = vmatprep.subr.bf16.mxu0 %v5595_v9  ;;  %4241 = vmatprep.subr.bf16.mxu1 %v5597_v10  ;;  %v1108_v8 = vld [vmem:[#allocation8 + $0x968] sm:$0xff]  ;;  %v5620_v9 = vcombine.low %v1096_v11, %v1100_v15  ;;  %v5627_v10 = vcombine.high %v1103_v31, %v1107_v32  ;;  %v1143_v31 = vld [vmem:[#allocation8 + $0xa80] sm:$0xff] }
 0x1d3   : > { %4016 = vmatprep.mubr.bf16.mxu0 %v6730_v60  ;;  %4228 = vmatprep.mubr.bf16.mxu1 %v6730_v60  ;;  %v5629_v13 = vcombine.high %v1104_v34, %v1108_v8  ;;  %v5628_v39 = vcombine.low %v1104_v34, %v1108_v8  ;;  %v1136_v11 = vld [vmem:[#allocation8 + $0xa48] sm:$0xff]  ;;  %v1147_v32 = vld [vmem:[#allocation8 + $0xaa0] sm:$0xff] }
 0x1d4   : > { %v1140_v15 = vld [vmem:[#allocation8 + $0xa68] sm:$0xff] }
 0x1d5   : > { %4030 = vmatpush1.bf16.msra.mxu0 %v5594_v47  ;;  %4242 = vmatpush1.bf16.msra.mxu1 %v5596_v49  ;;  %v1120_v47 = vld [vmem:[#allocation8 + $0x9c8] sm:$0xff] }
 0x1d6   : > { %4031 = vmatprep.subr.bf16.mxu0 %v5603_v29  ;;  %4243 = vmatprep.subr.bf16.mxu1 %v5605_v52  ;;  %v1124_v49 = vld [vmem:[#allocation8 + $0x9e8] sm:$0xff]  ;;  %v5636_v29 = vcombine.low %v1112_v24, %v1116_v37  ;;  %v5643_v52 = vcombine.high %v1119_v44, %v1123_v26 }
 0x1d7   : > { %v5645_v54 = vcombine.high %v1120_v47, %v1124_v49  ;;  %v1144_v34 = vld [vmem:[#allocation8 + $0xa88] sm:$0xff] }
 0x1d8   : > { %4017 = vmatmul.mubr.bf16.gmra.mrb[20].mxu0 %v6725_v57  ;;  %4229 = vmatmul.mubr.bf16.gmra.mrb[20].mxu1 %v6725_v57  ;;  %v1148_v8 = vld [vmem:[#allocation8 + $0xaa8] sm:$0xff] }
 0x1d9   : > { %4032 = vmatpush1.bf16.msra.mxu0 %v5602_v62  ;;  %4244 = vmatpush1.bf16.msra.mxu1 %v5604_v2  ;;  %v5642_v62 = vcombine.low %v1119_v44, %v1123_v26  ;;  %v5644_v2 = vcombine.low %v1120_v47, %v1124_v49  ;;  %v1152_v24 = vld [vmem:[#allocation8 + $0xac8] sm:$0xff]  ;;  %v1159_v44 = vld [vmem:[#allocation8 + $0xb00] sm:$0xff] }
 0x1da   : > { %4033 = vmatprep.subr.bf16.mxu0 %v5611_v3  ;;  %4245 = vmatprep.subr.bf16.mxu1 %v5613_v4  ;;  %v5651_v3 = vcombine.high %v1127_v55, %v1131_v56  ;;  %v5653_v4 = vcombine.high %v1128_v58, %v1132_v59  ;;  %v1156_v37 = vld [vmem:[#allocation8 + $0xae8] sm:$0xff]  ;;  %v1163_v26 = vld [vmem:[#allocation8 + $0xb20] sm:$0xff] }
 0x1db   : > { %4059 = vmatprep.mubr.bf16.mxu0 %v6739_v35  ;;  %4271 = vmatprep.mubr.bf16.mxu1 %v6739_v35  ;;  %v1160_v47 = vld [vmem:[#allocation8 + $0xb08] sm:$0xff] }
 0x1dc   : > { %v1164_v49 = vld [vmem:[#allocation8 + $0xb28] sm:$0xff] }
 0x1dd   : > { %4034 = vmatpush1.bf16.msra.mxu0 %v5610_v16  ;;  %4246 = vmatpush1.bf16.msra.mxu1 %v5612_v25  ;;  %v5650_v16 = vcombine.low %v1127_v55, %v1131_v56  ;;  %v5652_v25 = vcombine.low %v1128_v58, %v1132_v59  ;;  %v1167_v55 = vld [vmem:[#allocation8 + $0xb40] sm:$0xff]  ;;  %v1168_v58 = vld [vmem:[#allocation8 + $0xb48] sm:$0xff] }
 0x1de   : > { %4035 = vmatprep.subr.bf16.mxu0 %v5619_v28  ;;  %4247 = vmatprep.subr.bf16.mxu1 %v5621_v17  ;;  %v5659_v28 = vcombine.high %v1135_v12, %v1139_v5  ;;  %v5661_v17 = vcombine.high %v1136_v11, %v1140_v15  ;;  %v1171_v56 = vld [vmem:[#allocation8 + $0xb60] sm:$0xff]  ;;  %v1172_v59 = vld [vmem:[#allocation8 + $0xb68] sm:$0xff] }
 0x1e1   : > { %4036 = vmatpush1.bf16.msra.mxu0 %v5618_v40  ;;  %4248 = vmatpush1.bf16.msra.mxu1 %v5620_v9  ;;  %v5658_v40 = vcombine.low %v1135_v12, %v1139_v5  ;;  %v5660_v9 = vcombine.low %v1136_v11, %v1140_v15  ;;  %v1175_v12 = vld [vmem:[#allocation8 + $0xb80] sm:$0xff]  ;;  %v1176_v11 = vld [vmem:[#allocation8 + $0xb88] sm:$0xff] }
 0x1e2   : > { %4037 = vmatprep.subr.bf16.mxu0 %v5627_v10  ;;  %4249 = vmatprep.subr.bf16.mxu1 %v5629_v13  ;;  %v5667_v10 = vcombine.high %v1143_v31, %v1147_v32  ;;  %v5669_v13 = vcombine.high %v1144_v34, %v1148_v8  ;;  %v1179_v5 = vld [vmem:[#allocation8 + $0xba0] sm:$0xff]  ;;  %v1180_v15 = vld [vmem:[#allocation8 + $0xba8] sm:$0xff] }
 0x1e5   : > { %4038 = vmatpush1.bf16.msra.mxu0 %v5626_v38  ;;  %4250 = vmatpush1.bf16.msra.mxu1 %v5628_v39  ;;  %v5666_v38 = vcombine.low %v1143_v31, %v1147_v32  ;;  %v5668_v39 = vcombine.low %v1144_v34, %v1148_v8  ;;  %v1183_v31 = vld [vmem:[#allocation8 + $0xbc0] sm:$0xff]  ;;  %v1184_v34 = vld [vmem:[#allocation8 + $0xbc8] sm:$0xff] }
 0x1e6   : > { %4039 = vmatprep.subr.bf16.mxu0 %v5635_v41  ;;  %4251 = vmatprep.subr.bf16.mxu1 %v5637_v43  ;;  %v5675_v41 = vcombine.high %v1151_v19, %v1155_v14  ;;  %v5677_v43 = vcombine.high %v1152_v24, %v1156_v37  ;;  %v1187_v32 = vld [vmem:[#allocation8 + $0xbe0] sm:$0xff]  ;;  %v1188_v8 = vld [vmem:[#allocation8 + $0xbe8] sm:$0xff] }
 0x1e9   : > { %4040 = vmatpush1.bf16.msra.mxu0 %v5634_v51  ;;  %4252 = vmatpush1.bf16.msra.mxu1 %v5636_v29  ;;  %v5674_v51 = vcombine.low %v1151_v19, %v1155_v14  ;;  %v5676_v29 = vcombine.low %v1152_v24, %v1156_v37  ;;  %v1191_v19 = vld [vmem:[#allocation8 + $0xc00] sm:$0xff]  ;;  %v1192_v24 = vld [vmem:[#allocation8 + $0xc08] sm:$0xff] }
 0x1ea   : > { %4041 = vmatprep.subr.bf16.mxu0 %v5643_v52  ;;  %4253 = vmatprep.subr.bf16.mxu1 %v5645_v54  ;;  %v5683_v52 = vcombine.high %v1159_v44, %v1163_v26  ;;  %v5685_v54 = vcombine.high %v1160_v47, %v1164_v49  ;;  %v1195_v14 = vld [vmem:[#allocation8 + $0xc20] sm:$0xff]  ;;  %v1196_v37 = vld [vmem:[#allocation8 + $0xc28] sm:$0xff] }
 0x1ed   : > { %4042 = vmatpush1.bf16.msra.mxu0 %v5642_v62  ;;  %4254 = vmatpush1.bf16.msra.mxu1 %v5644_v2  ;;  %v5682_v62 = vcombine.low %v1159_v44, %v1163_v26  ;;  %v5684_v2 = vcombine.low %v1160_v47, %v1164_v49  ;;  %v1199_v44 = vld [vmem:[#allocation8 + $0xc40] sm:$0xff]  ;;  %v1200_v47 = vld [vmem:[#allocation8 + $0xc48] sm:$0xff] }
 0x1ee   : > { %4043 = vmatprep.subr.bf16.mxu0 %v5651_v3  ;;  %4255 = vmatprep.subr.bf16.mxu1 %v5653_v4  ;;  %v5691_v3 = vcombine.high %v1167_v55, %v1171_v56  ;;  %v5693_v4 = vcombine.high %v1168_v58, %v1172_v59  ;;  %v1203_v26 = vld [vmem:[#allocation8 + $0xc60] sm:$0xff]  ;;  %v1204_v49 = vld [vmem:[#allocation8 + $0xc68] sm:$0xff] }
 0x1f1   : > { %4044 = vmatpush1.bf16.msra.mxu0 %v5650_v16  ;;  %4256 = vmatpush1.bf16.msra.mxu1 %v5652_v25  ;;  %v5690_v16 = vcombine.low %v1167_v55, %v1171_v56  ;;  %v5692_v25 = vcombine.low %v1168_v58, %v1172_v59  ;;  %v1207_v55 = vld [vmem:[#allocation8 + $0xc80] sm:$0xff]  ;;  %v1208_v58 = vld [vmem:[#allocation8 + $0xc88] sm:$0xff] }
 0x1f2   : > { %4045 = vmatprep.subr.bf16.mxu0 %v5659_v28  ;;  %4257 = vmatprep.subr.bf16.mxu1 %v5661_v17  ;;  %v5699_v28 = vcombine.high %v1175_v12, %v1179_v5  ;;  %v5701_v17 = vcombine.high %v1176_v11, %v1180_v15  ;;  %v1211_v56 = vld [vmem:[#allocation8 + $0xca0] sm:$0xff]  ;;  %v1212_v59 = vld [vmem:[#allocation8 + $0xca8] sm:$0xff] }
 0x1f5   : > { %4046 = vmatpush1.bf16.msra.mxu0 %v5658_v40  ;;  %4258 = vmatpush1.bf16.msra.mxu1 %v5660_v9  ;;  %v5698_v40 = vcombine.low %v1175_v12, %v1179_v5  ;;  %v5700_v9 = vcombine.low %v1176_v11, %v1180_v15  ;;  %v1215_v12 = vld [vmem:[#allocation8 + $0xcc0] sm:$0xff]  ;;  %v1216_v11 = vld [vmem:[#allocation8 + $0xcc8] sm:$0xff] }
 0x1f6   : > { %4047 = vmatprep.subr.bf16.mxu0 %v5667_v10  ;;  %4259 = vmatprep.subr.bf16.mxu1 %v5669_v13  ;;  %v5707_v10 = vcombine.high %v1183_v31, %v1187_v32  ;;  %v5709_v13 = vcombine.high %v1184_v34, %v1188_v8  ;;  %v1219_v5 = vld [vmem:[#allocation8 + $0xce0] sm:$0xff]  ;;  %v1220_v15 = vld [vmem:[#allocation8 + $0xce8] sm:$0xff] }
 0x1f9   : > { %4048 = vmatpush1.bf16.msra.mxu0 %v5666_v38  ;;  %4260 = vmatpush1.bf16.msra.mxu1 %v5668_v39  ;;  %v5706_v38 = vcombine.low %v1183_v31, %v1187_v32  ;;  %v5708_v39 = vcombine.low %v1184_v34, %v1188_v8  ;;  %v1223_v31 = vld [vmem:[#allocation8 + $0xd00] sm:$0xff]  ;;  %v1224_v34 = vld [vmem:[#allocation8 + $0xd08] sm:$0xff] }
 0x1fa   : > { %4049 = vmatprep.subr.bf16.mxu0 %v5675_v41  ;;  %4261 = vmatprep.subr.bf16.mxu1 %v5677_v43  ;;  %v5715_v41 = vcombine.high %v1191_v19, %v1195_v14  ;;  %v5717_v43 = vcombine.high %v1192_v24, %v1196_v37  ;;  %v1227_v32 = vld [vmem:[#allocation8 + $0xd20] sm:$0xff]  ;;  %v1228_v8 = vld [vmem:[#allocation8 + $0xd28] sm:$0xff] }
 0x1fd   : > { %4050 = vmatpush1.bf16.msra.mxu0 %v5674_v51  ;;  %4262 = vmatpush1.bf16.msra.mxu1 %v5676_v29  ;;  %v5714_v51 = vcombine.low %v1191_v19, %v1195_v14  ;;  %v5716_v29 = vcombine.low %v1192_v24, %v1196_v37  ;;  %v1231_v19 = vld [vmem:[#allocation8 + $0xd40] sm:$0xff]  ;;  %v1232_v24 = vld [vmem:[#allocation8 + $0xd48] sm:$0xff] }
 0x1fe   : > { %4051 = vmatprep.subr.bf16.mxu0 %v5683_v52  ;;  %4263 = vmatprep.subr.bf16.mxu1 %v5685_v54  ;;  %v5723_v52 = vcombine.high %v1199_v44, %v1203_v26  ;;  %v5725_v54 = vcombine.high %v1200_v47, %v1204_v49  ;;  %v1235_v14 = vld [vmem:[#allocation8 + $0xd60] sm:$0xff]  ;;  %v1236_v37 = vld [vmem:[#allocation8 + $0xd68] sm:$0xff] }
 0x201   : > { %4052 = vmatpush1.bf16.msra.mxu0 %v5682_v62  ;;  %4264 = vmatpush1.bf16.msra.mxu1 %v5684_v2  ;;  %v5722_v62 = vcombine.low %v1199_v44, %v1203_v26  ;;  %v5724_v2 = vcombine.low %v1200_v47, %v1204_v49  ;;  %v1239_v44 = vld [vmem:[#allocation8 + $0xd80] sm:$0xff]  ;;  %v1240_v47 = vld [vmem:[#allocation8 + $0xd88] sm:$0xff] }
 0x202   : > { %4053 = vmatprep.subr.bf16.mxu0 %v5691_v3  ;;  %4265 = vmatprep.subr.bf16.mxu1 %v5693_v4  ;;  %v5731_v3 = vcombine.high %v1207_v55, %v1211_v56  ;;  %v5733_v4 = vcombine.high %v1208_v58, %v1212_v59  ;;  %v1243_v26 = vld [vmem:[#allocation8 + $0xda0] sm:$0xff]  ;;  %v1244_v49 = vld [vmem:[#allocation8 + $0xda8] sm:$0xff] }
 0x205   : > { %4054 = vmatpush1.bf16.msra.mxu0 %v5690_v16  ;;  %4266 = vmatpush1.bf16.msra.mxu1 %v5692_v25  ;;  %v5730_v16 = vcombine.low %v1207_v55, %v1211_v56  ;;  %v5732_v25 = vcombine.low %v1208_v58, %v1212_v59  ;;  %v1247_v55 = vld [vmem:[#allocation8 + $0xdc0] sm:$0xff]  ;;  %v1248_v58 = vld [vmem:[#allocation8 + $0xdc8] sm:$0xff] }
 0x206   : > { %4055 = vmatprep.subr.bf16.mxu0 %v5699_v28  ;;  %4267 = vmatprep.subr.bf16.mxu1 %v5701_v17  ;;  %v5739_v28 = vcombine.high %v1215_v12, %v1219_v5  ;;  %v5741_v17 = vcombine.high %v1216_v11, %v1220_v15  ;;  %v1251_v56 = vld [vmem:[#allocation8 + $0xde0] sm:$0xff]  ;;  %v1252_v59 = vld [vmem:[#allocation8 + $0xde8] sm:$0xff] }
 0x209   : > { %4056 = vmatpush1.bf16.msra.mxu0 %v5698_v40  ;;  %4268 = vmatpush1.bf16.msra.mxu1 %v5700_v9  ;;  %v5738_v40 = vcombine.low %v1215_v12, %v1219_v5  ;;  %v5740_v9 = vcombine.low %v1216_v11, %v1220_v15  ;;  %v1255_v12 = vld [vmem:[#allocation8 + $0xe00] sm:$0xff]  ;;  %v1256_v11 = vld [vmem:[#allocation8 + $0xe08] sm:$0xff] }
 0x20a   : > { %4057 = vmatprep.subr.bf16.mxu0 %v5707_v10  ;;  %4269 = vmatprep.subr.bf16.mxu1 %v5709_v13  ;;  %v5747_v10 = vcombine.high %v1223_v31, %v1227_v32  ;;  %v5749_v13 = vcombine.high %v1224_v34, %v1228_v8  ;;  %v1259_v5 = vld [vmem:[#allocation8 + $0xe20] sm:$0xff]  ;;  %v1260_v15 = vld [vmem:[#allocation8 + $0xe28] sm:$0xff] }
 0x20d   : > { %4058 = vmatpush1.bf16.msra.mxu0 %v5706_v38  ;;  %4270 = vmatpush1.bf16.msra.mxu1 %v5708_v39  ;;  %v5746_v38 = vcombine.low %v1223_v31, %v1227_v32  ;;  %v5748_v39 = vcombine.low %v1224_v34, %v1228_v8  ;;  %v1263_v31 = vld [vmem:[#allocation8 + $0xe40] sm:$0xff]  ;;  %v1264_v34 = vld [vmem:[#allocation8 + $0xe48] sm:$0xff] }
 0x20e   : > { %4080 = vmatprep.subr.bf16.mxu0 %v5715_v41  ;;  %4292 = vmatprep.subr.bf16.mxu1 %v5717_v43  ;;  %v5755_v41 = vcombine.high %v1231_v19, %v1235_v14  ;;  %v5757_v43 = vcombine.high %v1232_v24, %v1236_v37  ;;  %v1267_v32 = vld [vmem:[#allocation8 + $0xe60] sm:$0xff]  ;;  %v1268_v8 = vld [vmem:[#allocation8 + $0xe68] sm:$0xff] }
 0x210   : > { %4060 = vmatmul.mubr.bf16.vlgmr.msra.gmra.mrb[16].mxu0 %v6737_v33  ;;  %4272 = vmatmul.mubr.bf16.vlgmr.msra.gmra.mrb[16].mxu1 %v6737_v33 }
 0x211   : > { %4081 = vmatpush1.bf16.msra.mxu0 %v5714_v51  ;;  %4293 = vmatpush1.bf16.msra.mxu1 %v5716_v29  ;;  %v5754_v51 = vcombine.low %v1231_v19, %v1235_v14  ;;  %v5756_v29 = vcombine.low %v1232_v24, %v1236_v37  ;;  %v1271_v19 = vld [vmem:[#allocation8 + $0xe80] sm:$0xff]  ;;  %v1272_v24 = vld [vmem:[#allocation8 + $0xe88] sm:$0xff] }
 0x212   : > { %4082 = vmatprep.subr.bf16.mxu0 %v5723_v52  ;;  %4294 = vmatprep.subr.bf16.mxu1 %v5725_v54  ;;  %v5763_v52 = vcombine.high %v1239_v44, %v1243_v26  ;;  %v5765_v54 = vcombine.high %v1240_v47, %v1244_v49  ;;  %v1275_v14 = vld [vmem:[#allocation8 + $0xea0] sm:$0xff]  ;;  %v1276_v37 = vld [vmem:[#allocation8 + $0xea8] sm:$0xff] }
 0x213   : > { %4069 = vmatprep.mubr.bf16.mxu0 %v6769_v36  ;;  %4281 = vmatprep.mubr.bf16.mxu1 %v6769_v36 }
 0x215   : > { %4083 = vmatpush1.bf16.msra.mxu0 %v5722_v62  ;;  %4295 = vmatpush1.bf16.msra.mxu1 %v5724_v2  ;;  %v5762_v62 = vcombine.low %v1239_v44, %v1243_v26  ;;  %v5764_v2 = vcombine.low %v1240_v47, %v1244_v49  ;;  %v1279_v44 = vld [vmem:[#allocation8 + $0xec0] sm:$0xff]  ;;  %v1280_v47 = vld [vmem:[#allocation8 + $0xec8] sm:$0xff] }
 0x216   : > { %4084 = vmatprep.subr.bf16.mxu0 %v5731_v3  ;;  %4296 = vmatprep.subr.bf16.mxu1 %v5733_v4  ;;  %v5771_v3 = vcombine.high %v1247_v55, %v1251_v56  ;;  %v5773_v4 = vcombine.high %v1248_v58, %v1252_v59  ;;  %v1283_v26 = vld [vmem:[#allocation8 + $0xee0] sm:$0xff]  ;;  %v1284_v49 = vld [vmem:[#allocation8 + $0xee8] sm:$0xff] }
 0x218   : > { %4070 = vmatmul.mubr.bf16.gmra.mrb[20].mxu0 %v6765_v22  ;;  %4282 = vmatmul.mubr.bf16.gmra.mrb[20].mxu1 %v6765_v22 }
 0x219   : > { %4085 = vmatpush1.bf16.msra.mxu0 %v5730_v16  ;;  %4297 = vmatpush1.bf16.msra.mxu1 %v5732_v25  ;;  %v5770_v16 = vcombine.low %v1247_v55, %v1251_v56  ;;  %v5772_v25 = vcombine.low %v1248_v58, %v1252_v59  ;;  %v1287_v55 = vld [vmem:[#allocation8 + $0xf00] sm:$0xff]  ;;  %v1288_v58 = vld [vmem:[#allocation8 + $0xf08] sm:$0xff] }
 0x21a   : > { %4086 = vmatprep.subr.bf16.mxu0 %v5739_v28  ;;  %4298 = vmatprep.subr.bf16.mxu1 %v5741_v17  ;;  %v5779_v28 = vcombine.high %v1255_v12, %v1259_v5  ;;  %v5781_v17 = vcombine.high %v1256_v11, %v1260_v15  ;;  %v1291_v56 = vld [vmem:[#allocation8 + $0xf20] sm:$0xff]  ;;  %v1292_v59 = vld [vmem:[#allocation8 + $0xf28] sm:$0xff] }
 0x21b   : > { %4112 = vmatprep.mubr.bf16.mxu0 %v6773_v46  ;;  %4324 = vmatprep.mubr.bf16.mxu1 %v6773_v46 }
 0x21d   : > { %4087 = vmatpush1.bf16.msra.mxu0 %v5738_v40  ;;  %4299 = vmatpush1.bf16.msra.mxu1 %v5740_v9  ;;  %v5778_v40 = vcombine.low %v1255_v12, %v1259_v5  ;;  %v5780_v9 = vcombine.low %v1256_v11, %v1260_v15  ;;  %v1295_v12 = vld [vmem:[#allocation8 + $0xf40] sm:$0xff]  ;;  %v1296_v11 = vld [vmem:[#allocation8 + $0xf48] sm:$0xff] }
 0x21e   : > { %4088 = vmatprep.subr.bf16.mxu0 %v5747_v10  ;;  %4300 = vmatprep.subr.bf16.mxu1 %v5749_v13  ;;  %v5787_v10 = vcombine.high %v1263_v31, %v1267_v32  ;;  %v5789_v13 = vcombine.high %v1264_v34, %v1268_v8  ;;  %v1299_v5 = vld [vmem:[#allocation8 + $0xf60] sm:$0xff]  ;;  %v1300_v15 = vld [vmem:[#allocation8 + $0xf68] sm:$0xff] }
 0x221   : > { %4089 = vmatpush1.bf16.msra.mxu0 %v5746_v38  ;;  %4301 = vmatpush1.bf16.msra.mxu1 %v5748_v39  ;;  %v5786_v38 = vcombine.low %v1263_v31, %v1267_v32  ;;  %v5788_v39 = vcombine.low %v1264_v34, %v1268_v8  ;;  %v1303_v31 = vld [vmem:[#allocation8 + $0xf80] sm:$0xff]  ;;  %v1304_v34 = vld [vmem:[#allocation8 + $0xf88] sm:$0xff] }
 0x222   : > { %4090 = vmatprep.subr.bf16.mxu0 %v5755_v41  ;;  %4302 = vmatprep.subr.bf16.mxu1 %v5757_v43  ;;  %v5795_v41 = vcombine.high %v1271_v19, %v1275_v14  ;;  %v5797_v43 = vcombine.high %v1272_v24, %v1276_v37  ;;  %v1307_v32 = vld [vmem:[#allocation8 + $0xfa0] sm:$0xff]  ;;  %v1308_v8 = vld [vmem:[#allocation8 + $0xfa8] sm:$0xff] }
 0x225   : > { %4091 = vmatpush1.bf16.msra.mxu0 %v5754_v51  ;;  %4303 = vmatpush1.bf16.msra.mxu1 %v5756_v29  ;;  %v5794_v51 = vcombine.low %v1271_v19, %v1275_v14  ;;  %v5796_v29 = vcombine.low %v1272_v24, %v1276_v37  ;;  %v1311_v19 = vld [vmem:[#allocation8 + $0xfc0] sm:$0xff]  ;;  %v1312_v24 = vld [vmem:[#allocation8 + $0xfc8] sm:$0xff] }
 0x226   : > { %4092 = vmatprep.subr.bf16.mxu0 %v5763_v52  ;;  %4304 = vmatprep.subr.bf16.mxu1 %v5765_v54  ;;  %v5803_v52 = vcombine.high %v1279_v44, %v1283_v26  ;;  %v5805_v54 = vcombine.high %v1280_v47, %v1284_v49  ;;  %v1315_v14 = vld [vmem:[#allocation8 + $0xfe0] sm:$0xff]  ;;  %v1316_v37 = vld [vmem:[#allocation8 + $0xfe8] sm:$0xff] }
 0x229   : > { %4093 = vmatpush1.bf16.msra.mxu0 %v5762_v62  ;;  %4305 = vmatpush1.bf16.msra.mxu1 %v5764_v2  ;;  %v5802_v62 = vcombine.low %v1279_v44, %v1283_v26  ;;  %v5804_v2 = vcombine.low %v1280_v47, %v1284_v49  ;;  %v809_v44 = vld [vmem:[#allocation8 + $0x10] sm:$0xff]  ;;  %v810_v47 = vld [vmem:[#allocation8 + $0x18] sm:$0xff] }
 0x22a   : > { %4094 = vmatprep.subr.bf16.mxu0 %v5771_v3  ;;  %4306 = vmatprep.subr.bf16.mxu1 %v5773_v4  ;;  %v5811_v3 = vcombine.high %v1287_v55, %v1291_v56  ;;  %v5813_v4 = vcombine.high %v1288_v58, %v1292_v59  ;;  %v813_v26 = vld [vmem:[#allocation8 + $0x30] sm:$0xff]  ;;  %v814_v49 = vld [vmem:[#allocation8 + $0x38] sm:$0xff] }
 0x22d   : > { %4095 = vmatpush1.bf16.msra.mxu0 %v5770_v16  ;;  %4307 = vmatpush1.bf16.msra.mxu1 %v5772_v25  ;;  %v5810_v16 = vcombine.low %v1287_v55, %v1291_v56  ;;  %v5812_v25 = vcombine.low %v1288_v58, %v1292_v59  ;;  %v817_v55 = vld [vmem:[#allocation8 + $0x50] sm:$0xff]  ;;  %v818_v58 = vld [vmem:[#allocation8 + $0x58] sm:$0xff] }
 0x22e   : > { %4096 = vmatprep.subr.bf16.mxu0 %v5779_v28  ;;  %4308 = vmatprep.subr.bf16.mxu1 %v5781_v17  ;;  %v5819_v28 = vcombine.high %v1295_v12, %v1299_v5  ;;  %v5821_v17 = vcombine.high %v1296_v11, %v1300_v15  ;;  %v821_v56 = vld [vmem:[#allocation8 + $0x70] sm:$0xff]  ;;  %v822_v59 = vld [vmem:[#allocation8 + $0x78] sm:$0xff] }
 0x231   : > { %4097 = vmatpush1.bf16.msra.mxu0 %v5778_v40  ;;  %4309 = vmatpush1.bf16.msra.mxu1 %v5780_v9  ;;  %v5818_v40 = vcombine.low %v1295_v12, %v1299_v5  ;;  %v5820_v9 = vcombine.low %v1296_v11, %v1300_v15  ;;  %v825_v12 = vld [vmem:[#allocation8 + $0x90] sm:$0xff]  ;;  %v826_v11 = vld [vmem:[#allocation8 + $0x98] sm:$0xff] }
 0x232   : > { %4098 = vmatprep.subr.bf16.mxu0 %v5787_v10  ;;  %4310 = vmatprep.subr.bf16.mxu1 %v5789_v13  ;;  %v5827_v10 = vcombine.high %v1303_v31, %v1307_v32  ;;  %v5829_v13 = vcombine.high %v1304_v34, %v1308_v8  ;;  %v829_v5 = vld [vmem:[#allocation8 + $0xb0] sm:$0xff]  ;;  %v830_v15 = vld [vmem:[#allocation8 + $0xb8] sm:$0xff] }
 0x235   : > { %4099 = vmatpush1.bf16.msra.mxu0 %v5786_v38  ;;  %4311 = vmatpush1.bf16.msra.mxu1 %v5788_v39  ;;  %v5826_v38 = vcombine.low %v1303_v31, %v1307_v32  ;;  %v5828_v39 = vcombine.low %v1304_v34, %v1308_v8  ;;  %v833_v31 = vld [vmem:[#allocation8 + $0xd0] sm:$0xff]  ;;  %v834_v34 = vld [vmem:[#allocation8 + $0xd8] sm:$0xff] }
 0x236   : > { %4100 = vmatprep.subr.bf16.mxu0 %v5795_v41  ;;  %4312 = vmatprep.subr.bf16.mxu1 %v5797_v43  ;;  %v5835_v41 = vcombine.high %v1311_v19, %v1315_v14  ;;  %v5837_v43 = vcombine.high %v1312_v24, %v1316_v37  ;;  %v837_v32 = vld [vmem:[#allocation8 + $0xf0] sm:$0xff]  ;;  %v838_v8 = vld [vmem:[#allocation8 + $0xf8] sm:$0xff] }
 0x239   : > { %4101 = vmatpush1.bf16.msra.mxu0 %v5794_v51  ;;  %4313 = vmatpush1.bf16.msra.mxu1 %v5796_v29  ;;  %v5834_v51 = vcombine.low %v1311_v19, %v1315_v14  ;;  %v5836_v29 = vcombine.low %v1312_v24, %v1316_v37  ;;  %v841_v19 = vld [vmem:[#allocation8 + $0x110] sm:$0xff]  ;;  %v842_v24 = vld [vmem:[#allocation8 + $0x118] sm:$0xff] }
 0x23a   : > { %4102 = vmatprep.subr.bf16.mxu0 %v5803_v52  ;;  %4314 = vmatprep.subr.bf16.mxu1 %v5805_v54  ;;  %v5335_v52 = vcombine.high %v809_v44, %v813_v26  ;;  %v5337_v54 = vcombine.high %v810_v47, %v814_v49  ;;  %v845_v14 = vld [vmem:[#allocation8 + $0x130] sm:$0xff]  ;;  %v846_v37 = vld [vmem:[#allocation8 + $0x138] sm:$0xff] }
 0x23d   : > { %4103 = vmatpush1.bf16.msra.mxu0 %v5802_v62  ;;  %4315 = vmatpush1.bf16.msra.mxu1 %v5804_v2  ;;  %v5334_v62 = vcombine.low %v809_v44, %v813_v26  ;;  %v5336_v2 = vcombine.low %v810_v47, %v814_v49  ;;  %v849_v44 = vld [vmem:[#allocation8 + $0x150] sm:$0xff]  ;;  %v850_v47 = vld [vmem:[#allocation8 + $0x158] sm:$0xff] }
 0x23e   : > { %4104 = vmatprep.subr.bf16.mxu0 %v5811_v3  ;;  %4316 = vmatprep.subr.bf16.mxu1 %v5813_v4  ;;  %v5343_v3 = vcombine.high %v817_v55, %v821_v56  ;;  %v5345_v4 = vcombine.high %v818_v58, %v822_v59  ;;  %v853_v26 = vld [vmem:[#allocation8 + $0x170] sm:$0xff]  ;;  %v854_v49 = vld [vmem:[#allocation8 + $0x178] sm:$0xff] }
 0x241   : > { %4105 = vmatpush1.bf16.msra.mxu0 %v5810_v16  ;;  %4317 = vmatpush1.bf16.msra.mxu1 %v5812_v25  ;;  %v5342_v16 = vcombine.low %v817_v55, %v821_v56  ;;  %v5344_v25 = vcombine.low %v818_v58, %v822_v59  ;;  %v857_v55 = vld [vmem:[#allocation8 + $0x190] sm:$0xff]  ;;  %v862_v58 = vld [vmem:[#allocation8 + $0x1b8] sm:$0xff]  ;;  %v5374_v59 = vcombine.low %v849_v44, %v853_v26 }
 0x242   : > { %4106 = vmatprep.subr.bf16.mxu0 %v5819_v28  ;;  %4318 = vmatprep.subr.bf16.mxu1 %v5821_v17  ;;  %v5351_v28 = vcombine.high %v825_v12, %v829_v5  ;;  %v5353_v17 = vcombine.high %v826_v11, %v830_v15  ;;  %v861_v56 = vld [vmem:[#allocation8 + $0x1b0] sm:$0xff] }
 0x245   : > { %4107 = vmatpush1.bf16.msra.mxu0 %v5818_v40  ;;  %4319 = vmatpush1.bf16.msra.mxu1 %v5820_v9  ;;  %v5350_v40 = vcombine.low %v825_v12, %v829_v5  ;;  %v5352_v9 = vcombine.low %v826_v11, %v830_v15  ;;  %v869_v12 = vld [vmem:[#allocation8 + $0x1f0] sm:$0xff]  ;;  %v866_v5 = vld [vmem:[#allocation8 + $0x1d8] sm:$0xff]  ;;  %v5382_v15 = vcombine.low %v857_v55, %v861_v56 }
 0x246   : > { %4108 = vmatprep.subr.bf16.mxu0 %v5827_v10  ;;  %4320 = vmatprep.subr.bf16.mxu1 %v5829_v13  ;;  %v5359_v10 = vcombine.high %v833_v31, %v837_v32  ;;  %v5361_v13 = vcombine.high %v834_v34, %v838_v8  ;;  %v870_v11 = vld [vmem:[#allocation8 + $0x1f8] sm:$0xff] }
 0x249   : > { %4109 = vmatpush1.bf16.msra.mxu0 %v5826_v38  ;;  %4321 = vmatpush1.bf16.msra.mxu1 %v5828_v39  ;;  %v5358_v38 = vcombine.low %v833_v31, %v837_v32  ;;  %v5360_v39 = vcombine.low %v834_v34, %v838_v8  ;;  %v877_v31 = vld [vmem:[#allocation8 + $0x230] sm:$0xff]  ;;  %v874_v32 = vld [vmem:[#allocation8 + $0x218] sm:$0xff] }
 0x24a   : > { %4110 = vmatprep.subr.bf16.mxu0 %v5835_v41  ;;  %4322 = vmatprep.subr.bf16.mxu1 %v5837_v43  ;;  %v5367_v41 = vcombine.high %v841_v19, %v845_v14  ;;  %v5369_v43 = vcombine.high %v842_v24, %v846_v37  ;;  %v878_v34 = vld [vmem:[#allocation8 + $0x238] sm:$0xff] }
 0x24d   : > { %4111 = vmatpush1.bf16.msra.mxu0 %v5834_v51  ;;  %4323 = vmatpush1.bf16.msra.mxu1 %v5836_v29  ;;  %v5366_v51 = vcombine.low %v841_v19, %v845_v14  ;;  %v5368_v29 = vcombine.low %v842_v24, %v846_v37  ;;  %v885_v19 = vld [vmem:[#allocation8 + $0x270] sm:$0xff]  ;;  %v882_v14 = vld [vmem:[#allocation8 + $0x258] sm:$0xff] }
 0x24e   : > { %4345 = vmatprep.subr.bf16.mxu0 %v5335_v52  ;;  %4557 = vmatprep.subr.bf16.mxu1 %v5337_v54  ;;  %v5375_v52 = vcombine.high %v849_v44, %v853_v26  ;;  %v5377_v54 = vcombine.high %v850_v47, %v854_v49  ;;  %v886_v24 = vld [vmem:[#allocation8 + $0x278] sm:$0xff]  ;;  %v893_v44 = vld [vmem:[#allocation8 + $0x2b0] sm:$0xff] }
 0x24f   : > { %v890_v26 = vld [vmem:[#allocation8 + $0x298] sm:$0xff] }
 0x250   : > { %4113 = vmatmul.mubr.bf16.vlgmr.msra.gmra.mrb[16].mxu0 %v6771_v42  ;;  %4325 = vmatmul.mubr.bf16.vlgmr.msra.gmra.mrb[16].mxu1 %v6771_v42 }
 0x251   : > { %4346 = vmatpush1.bf16.msra.mxu0 %v5334_v62  ;;  %4558 = vmatpush1.bf16.msra.mxu1 %v5336_v2  ;;  %v5376_v62 = vcombine.low %v850_v47, %v854_v49  ;;  %v5383_v2 = vcombine.high %v857_v55, %v861_v56  ;;  %v894_v47 = vld [vmem:[#allocation8 + $0x2b8] sm:$0xff]  ;;  %v901_v55 = vld [vmem:[#allocation8 + $0x2f0] sm:$0xff] }
 0x252   : > { %4347 = vmatprep.subr.bf16.mxu0 %v5343_v3  ;;  %4559 = vmatprep.subr.bf16.mxu1 %v5345_v4  ;;  %v865_v4 = vld [vmem:[#allocation8 + $0x1d0] sm:$0xff]  ;;  %v898_v56 = vld [vmem:[#allocation8 + $0x2d8] sm:$0xff] }
 0x253   : > { %4122 = vmatprep.mubr.bf16.mxu0 %v6785_v30  ;;  %4334 = vmatprep.mubr.bf16.mxu1 %v6785_v30  ;;  %v5390_v8 = vcombine.low %v865_v4, %v869_v12 }
 0x255   : > { %4348 = vmatpush1.bf16.msra.mxu0 %v5342_v16  ;;  %4560 = vmatpush1.bf16.msra.mxu1 %v5344_v25  ;;  %v5391_v25 = vcombine.high %v865_v4, %v869_v12  ;;  %v909_v4 = vld [vmem:[#allocation8 + $0x330] sm:$0xff]  ;;  %v906_v12 = vld [vmem:[#allocation8 + $0x318] sm:$0xff] }
 0x256   : > { %4349 = vmatprep.subr.bf16.mxu0 %v5351_v28  ;;  %4561 = vmatprep.subr.bf16.mxu1 %v5353_v17  ;;  %v5393_v28 = vcombine.high %v866_v5, %v870_v11  ;;  %v873_v17 = vld [vmem:[#allocation8 + $0x210] sm:$0xff] }
 0x257   : > { %v5398_v37 = vcombine.low %v873_v17, %v877_v31 }
 0x258   : > { %4123 = vmatmul.mubr.bf16.gmra.mrb[20].mxu0 %v6783_v61  ;;  %4335 = vmatmul.mubr.bf16.gmra.mrb[20].mxu1 %v6783_v61 }
 0x259   : > { %4350 = vmatpush1.bf16.msra.mxu0 %v5350_v40  ;;  %4377 = vmatprep.mubr.bf16.mxu0 %v6659_v53  ;;  %v5392_v40 = vcombine.low %v866_v5, %v870_v11  ;;  %v910_v5 = vld [vmem:[#allocation8 + $0x338] sm:$0xff] }
 0x25a   : > { %4562 = vmatpush1.bf16.msra.mxu1 %v5352_v9  ;;  %4589 = vmatprep.mubr.bf16.mxu1 %v6659_v53  ;;  %v858_v53 = vld [vmem:[#allocation8 + $0x198] sm:$0xff]  ;;  %v5399_v9 = vcombine.high %v873_v17, %v877_v31  ;;  %v917_v17 = vld [vmem:[#allocation8 + $0x370] sm:$0xff] }
 0x25b   : > { %4351 = vmatprep.subr.bf16.mxu0 %v5359_v10  ;;  %4563 = vmatprep.subr.bf16.mxu1 %v5361_v13  ;;  %v5385_v3 = vcombine.high %v858_v53, %v862_v58  ;;  %v5384_v16 = vcombine.low %v858_v53, %v862_v58  ;;  %v5401_v10 = vcombine.high %v874_v32, %v878_v34  ;;  %v881_v13 = vld [vmem:[#allocation8 + $0x250] sm:$0xff]  ;;  %v902_v53 = vld [vmem:[#allocation8 + $0x2f8] sm:$0xff] }
 0x25c   : > { %v5406_v49 = vcombine.low %v881_v13, %v885_v19  ;;  %v914_v31 = vld [vmem:[#allocation8 + $0x358] sm:$0xff] }
 0x25d   : > { %4352 = vmatpush1.bf16.msra.mxu0 %v5358_v38  ;;  %v5400_v38 = vcombine.low %v874_v32, %v878_v34  ;;  %v918_v32 = vld [vmem:[#allocation8 + $0x378] sm:$0xff] }
 0x25e   : > { %4564 = vmatpush1.bf16.msra.mxu1 %v5360_v39  ;;  %4353 = vmatprep.subr.bf16.mxu0 %v5367_v41  ;;  %v5407_v39 = vcombine.high %v881_v13, %v885_v19  ;;  %v5409_v41 = vcombine.high %v882_v14, %v886_v24  ;;  %v925_v13 = vld [vmem:[#allocation8 + $0x3b0] sm:$0xff]  ;;  %v922_v19 = vld [vmem:[#allocation8 + $0x398] sm:$0xff] }
 0x25f   : > { %4565 = vmatprep.subr.bf16.mxu1 %v5369_v43  ;;  %v889_v43 = vld [vmem:[#allocation8 + $0x290] sm:$0xff] }
 0x260   : > { %v5414_v58 = vcombine.low %v889_v43, %v893_v44 }
 0x261   : > { %4354 = vmatpush1.bf16.msra.mxu0 %v5366_v51  ;;  %v5408_v51 = vcombine.low %v882_v14, %v886_v24  ;;  %v926_v14 = vld [vmem:[#allocation8 + $0x3b8] sm:$0xff] }
 0x262   : > { %4566 = vmatpush1.bf16.msra.mxu1 %v5368_v29  ;;  %4355 = vmatprep.subr.bf16.mxu0 %v5375_v52  ;;  %v5415_v29 = vcombine.high %v889_v43, %v893_v44  ;;  %v5417_v52 = vcombine.high %v890_v26, %v894_v47  ;;  %v933_v43 = vld [vmem:[#allocation8 + $0x3f0] sm:$0xff]  ;;  %v930_v44 = vld [vmem:[#allocation8 + $0x3d8] sm:$0xff] }
 0x263   : > { %4567 = vmatprep.subr.bf16.mxu1 %v5377_v54  ;;  %v897_v54 = vld [vmem:[#allocation8 + $0x2d0] sm:$0xff] }
 0x264   : > { %v5422_v11 = vcombine.low %v897_v54, %v901_v55 }
 0x265   : > { %4356 = vmatpush1.bf16.msra.mxu0 %v5374_v59  ;;  %v5416_v59 = vcombine.low %v890_v26, %v894_v47  ;;  %v934_v26 = vld [vmem:[#allocation8 + $0x3f8] sm:$0xff] }
 0x266   : > { %4568 = vmatpush1.bf16.msra.mxu1 %v5376_v62  ;;  %4357 = vmatprep.subr.bf16.mxu0 %v5383_v2  ;;  %v5423_v62 = vcombine.high %v897_v54, %v901_v55  ;;  %v5425_v2 = vcombine.high %v898_v56, %v902_v53  ;;  %v941_v54 = vld [vmem:[#allocation8 + $0x430] sm:$0xff]  ;;  %v938_v55 = vld [vmem:[#allocation8 + $0x418] sm:$0xff] }
 0x267   : > { %4569 = vmatprep.subr.bf16.mxu1 %v5385_v3  ;;  %v905_v3 = vld [vmem:[#allocation8 + $0x310] sm:$0xff] }
 0x268   : > { %v5430_v34 = vcombine.low %v905_v3, %v909_v4 }
 0x269   : > { %4358 = vmatpush1.bf16.msra.mxu0 %v5382_v15  ;;  %v5424_v15 = vcombine.low %v898_v56, %v902_v53  ;;  %v942_v56 = vld [vmem:[#allocation8 + $0x438] sm:$0xff] }
 0x26a   : > { %4570 = vmatpush1.bf16.msra.mxu1 %v5384_v16  ;;  %4359 = vmatprep.subr.bf16.mxu0 %v5391_v25  ;;  %v5431_v16 = vcombine.high %v905_v3, %v909_v4  ;;  %v5433_v25 = vcombine.high %v906_v12, %v910_v5  ;;  %v949_v3 = vld [vmem:[#allocation8 + $0x470] sm:$0xff]  ;;  %v946_v4 = vld [vmem:[#allocation8 + $0x458] sm:$0xff] }
 0x26b   : > { %4571 = vmatprep.subr.bf16.mxu1 %v5393_v28  ;;  %v913_v28 = vld [vmem:[#allocation8 + $0x350] sm:$0xff] }
 0x26c   : > { %v5438_v24 = vcombine.low %v913_v28, %v917_v17 }
 0x26d   : > { %4360 = vmatpush1.bf16.msra.mxu0 %v5390_v8  ;;  %v5432_v8 = vcombine.low %v906_v12, %v910_v5  ;;  %v950_v12 = vld [vmem:[#allocation8 + $0x478] sm:$0xff] }
 0x26e   : > { %4572 = vmatpush1.bf16.msra.mxu1 %v5392_v40  ;;  %4361 = vmatprep.subr.bf16.mxu0 %v5399_v9  ;;  %v5439_v40 = vcombine.high %v913_v28, %v917_v17  ;;  %v5441_v9 = vcombine.high %v914_v31, %v918_v32  ;;  %v957_v28 = vld [vmem:[#allocation8 + $0x4b0] sm:$0xff]  ;;  %v954_v17 = vld [vmem:[#allocation8 + $0x498] sm:$0xff] }
 0x26f   : > { %4573 = vmatprep.subr.bf16.mxu1 %v5401_v10  ;;  %v921_v10 = vld [vmem:[#allocation8 + $0x390] sm:$0xff] }
 0x270   : > { %v5446_v47 = vcombine.low %v921_v10, %v925_v13 }
 0x271   : > { %4362 = vmatpush1.bf16.msra.mxu0 %v5398_v37  ;;  %v5440_v37 = vcombine.low %v914_v31, %v918_v32  ;;  %v958_v31 = vld [vmem:[#allocation8 + $0x4b8] sm:$0xff] }
 0x272   : > { %4574 = vmatpush1.bf16.msra.mxu1 %v5400_v38  ;;  %4363 = vmatprep.subr.bf16.mxu0 %v5407_v39  ;;  %v5447_v38 = vcombine.high %v921_v10, %v925_v13  ;;  %v5449_v39 = vcombine.high %v922_v19, %v926_v14  ;;  %v965_v10 = vld [vmem:[#allocation8 + $0x4f0] sm:$0xff]  ;;  %v962_v13 = vld [vmem:[#allocation8 + $0x4d8] sm:$0xff] }
 0x273   : > { %4575 = vmatprep.subr.bf16.mxu1 %v5409_v41  ;;  %v929_v41 = vld [vmem:[#allocation8 + $0x3d0] sm:$0xff] }
 0x274   : > { %v5454_v53 = vcombine.low %v929_v41, %v933_v43 }
 0x275   : > { %4364 = vmatpush1.bf16.msra.mxu0 %v5406_v49  ;;  %v5448_v49 = vcombine.low %v922_v19, %v926_v14  ;;  %v966_v19 = vld [vmem:[#allocation8 + $0x4f8] sm:$0xff]  ;;  %v5480_v14 = vcombine.low %v954_v17, %v958_v31 }
 0x276   : > { %4576 = vmatpush1.bf16.msra.mxu1 %v5408_v51  ;;  %4365 = vmatprep.subr.bf16.mxu0 %v5415_v29  ;;  %v5455_v51 = vcombine.high %v929_v41, %v933_v43  ;;  %v5457_v29 = vcombine.high %v930_v44, %v934_v26  ;;  %v974_v41 = vld [vmem:[#allocation8 + $0x538] sm:$0xff] }
 0x277   : > { %4577 = vmatprep.subr.bf16.mxu1 %v5417_v52  ;;  %v937_v52 = vld [vmem:[#allocation8 + $0x410] sm:$0xff] }
 0x278   : > { %v5462_v5 = vcombine.low %v937_v52, %v941_v54 }
 0x279   : > { %4366 = vmatpush1.bf16.msra.mxu0 %v5414_v58  ;;  %v5456_v58 = vcombine.low %v930_v44, %v934_v26  ;;  %v5488_v44 = vcombine.low %v962_v13, %v966_v19 }
 0x27a   : > { %4578 = vmatpush1.bf16.msra.mxu1 %v5416_v59  ;;  %4367 = vmatprep.subr.bf16.mxu0 %v5423_v62  ;;  %v5463_v59 = vcombine.high %v937_v52, %v941_v54  ;;  %v5465_v62 = vcombine.high %v938_v55, %v942_v56  ;;  %v982_v52 = vld [vmem:[#allocation8 + $0x578] sm:$0xff] }
 0x27b   : > { %4579 = vmatprep.subr.bf16.mxu1 %v5425_v2  ;;  %v945_v2 = vld [vmem:[#allocation8 + $0x450] sm:$0xff] }
 0x27c   : > { %v5470_v32 = vcombine.low %v945_v2, %v949_v3 }
 0x27d   : > { %4368 = vmatpush1.bf16.msra.mxu0 %v5422_v11  ;;  %v5464_v11 = vcombine.low %v938_v55, %v942_v56 }
 0x27e   : > { %4580 = vmatpush1.bf16.msra.mxu1 %v5424_v15  ;;  %4369 = vmatprep.subr.bf16.mxu0 %v5431_v16  ;;  %v5471_v15 = vcombine.high %v945_v2, %v949_v3  ;;  %v5473_v16 = vcombine.high %v946_v4, %v950_v12 }
 0x27f   : > { %4581 = vmatprep.subr.bf16.mxu1 %v5433_v25  ;;  %v953_v25 = vld [vmem:[#allocation8 + $0x490] sm:$0xff] }
 0x281   : > { %4370 = vmatpush1.bf16.msra.mxu0 %v5430_v34  ;;  %v5472_v34 = vcombine.low %v946_v4, %v950_v12  ;;  %v993_v12 = vld [vmem:[#allocation8 + $0x5d0] sm:$0xff] }
 0x282   : > { %4582 = vmatpush1.bf16.msra.mxu1 %v5432_v8  ;;  %4371 = vmatprep.subr.bf16.mxu0 %v5439_v40  ;;  %v5479_v8 = vcombine.high %v953_v25, %v957_v28  ;;  %v5481_v40 = vcombine.high %v954_v17, %v958_v31  ;;  %v1001_v31 = vld [vmem:[#allocation8 + $0x610] sm:$0xff] }
 0x283   : > { %4583 = vmatprep.subr.bf16.mxu1 %v5441_v9  ;;  %v961_v9 = vld [vmem:[#allocation8 + $0x4d0] sm:$0xff] }
 0x284   : > { %v5486_v43 = vcombine.low %v961_v9, %v965_v10 }
 0x285   : > { %4372 = vmatpush1.bf16.msra.mxu0 %v5438_v24  ;;  %v5487_v24 = vcombine.high %v961_v9, %v965_v10 }
 0x286   : > { %4584 = vmatpush1.bf16.msra.mxu1 %v5440_v37  ;;  %4373 = vmatprep.subr.bf16.mxu0 %v5447_v38  ;;  %v969_v37 = vld [vmem:[#allocation8 + $0x510] sm:$0xff] }
 0x287   : > { %4585 = vmatprep.subr.bf16.mxu1 %v5449_v39  ;;  %v973_v38 = vld [vmem:[#allocation8 + $0x530] sm:$0xff]  ;;  %v970_v39 = vld [vmem:[#allocation8 + $0x518] sm:$0xff] }
 0x288   : > { %v5495_v26 = vcombine.high %v969_v37, %v973_v38  ;;  %v5496_v54 = vcombine.low %v970_v39, %v974_v41 }
 0x289   : > { %4374 = vmatpush1.bf16.msra.mxu0 %v5446_v47  ;;  %v5497_v47 = vcombine.high %v970_v39, %v974_v41  ;;  %v1017_v41 = vld [vmem:[#allocation8 + $0x690] sm:$0xff] }
 0x28a   : > { %4586 = vmatpush1.bf16.msra.mxu1 %v5448_v49  ;;  %4375 = vmatprep.subr.bf16.mxu0 %v5455_v51  ;;  %v977_v49 = vld [vmem:[#allocation8 + $0x550] sm:$0xff] }
 0x28b   : > { %4587 = vmatprep.subr.bf16.mxu1 %v5457_v29  ;;  %v981_v51 = vld [vmem:[#allocation8 + $0x570] sm:$0xff]  ;;  %v978_v29 = vld [vmem:[#allocation8 + $0x558] sm:$0xff] }
 0x28c   : > { %v5503_v55 = vcombine.high %v977_v49, %v981_v51  ;;  %v5505_v56 = vcombine.high %v978_v29, %v982_v52  ;;  %v5504_v2 = vcombine.low %v978_v29, %v982_v52  ;;  %v1025_v52 = vld [vmem:[#allocation8 + $0x6d0] sm:$0xff] }
 0x28d   : > { %4376 = vmatpush1.bf16.msra.mxu0 %v5454_v53  ;;  %v989_v53 = vld [vmem:[#allocation8 + $0x5b0] sm:$0xff] }
 0x28e   : > { %4588 = vmatpush1.bf16.msra.mxu1 %v5456_v58  ;;  %4398 = vmatprep.subr.bf16.mxu0 %v5463_v59  ;;  %v986_v58 = vld [vmem:[#allocation8 + $0x598] sm:$0xff] }
 0x28f   : > { %4610 = vmatprep.subr.bf16.mxu1 %v5465_v62  ;;  %v990_v59 = vld [vmem:[#allocation8 + $0x5b8] sm:$0xff]  ;;  %v5502_v62 = vcombine.low %v977_v49, %v981_v51 }
 0x290   : > { %4378 = vmatmul.mubr.bf16.vlgmr.msra.gmra.mrb[24].mxu0 %v6656_v50  ;;  %v5513_v4 = vcombine.high %v986_v58, %v990_v59 }
 0x291   : > { %4590 = vmatmul.mubr.bf16.vlgmr.msra.gmra.mrb[24].mxu1 %v6656_v50  ;;  %4387 = vmatprep.mubr.bf16.mxu0 %v6719_v45  ;;  %v5478_v50 = vcombine.low %v953_v25, %v957_v28  ;;  %v5512_v25 = vcombine.low %v986_v58, %v990_v59  ;;  %v1033_v59 = vld [vmem:[#allocation8 + $0x710] sm:$0xff] }
 0x292   : > { %4399 = vmatpush1.bf16.msra.mxu0 %v5462_v5  ;;  %4599 = vmatprep.mubr.bf16.mxu1 %v6719_v45  ;;  %v5489_v45 = vcombine.high %v962_v13, %v966_v19  ;;  %v997_v5 = vld [vmem:[#allocation8 + $0x5f0] sm:$0xff] }
 0x293   : > { %4611 = vmatpush1.bf16.msra.mxu1 %v5464_v11  ;;  %4400 = vmatprep.subr.bf16.mxu0 %v5471_v15  ;;  %v994_v11 = vld [vmem:[#allocation8 + $0x5d8] sm:$0xff]  ;;  %v5519_v28 = vcombine.high %v993_v12, %v997_v5  ;;  %v1009_v19 = vld [vmem:[#allocation8 + $0x650] sm:$0xff] }
 0x294   : > { %4612 = vmatprep.subr.bf16.mxu1 %v5473_v16  ;;  %v998_v15 = vld [vmem:[#allocation8 + $0x5f8] sm:$0xff] }
 0x295   : > { %v5521_v17 = vcombine.high %v994_v11, %v998_v15  ;;  %v5520_v9 = vcombine.low %v994_v11, %v998_v15  ;;  %v1041_v15 = vld [vmem:[#allocation8 + $0x750] sm:$0xff] }
 0x296   : > { %4401 = vmatpush1.bf16.msra.mxu0 %v5470_v32  ;;  %v1005_v32 = vld [vmem:[#allocation8 + $0x630] sm:$0xff] }
 0x297   : > { %4613 = vmatpush1.bf16.msra.mxu1 %v5472_v34  ;;  %4402 = vmatprep.subr.bf16.mxu0 %v5479_v8  ;;  %v1002_v34 = vld [vmem:[#allocation8 + $0x618] sm:$0xff]  ;;  %v5527_v10 = vcombine.high %v1001_v31, %v1005_v32 }
 0x298   : > { %4388 = vmatmul.mubr.bf16.gmra.mrb[28].mxu0 %v6712_v0  ;;  %4614 = vmatprep.subr.bf16.mxu1 %v5481_v40  ;;  %v1006_v8 = vld [vmem:[#allocation8 + $0x638] sm:$0xff]  ;;  %v5518_v40 = vcombine.low %v993_v12, %v997_v5 }
 0x299   : > { %4600 = vmatmul.mubr.bf16.gmra.mrb[28].mxu1 %v6712_v0  ;;  %4430 = vmatprep.mubr.bf16.mxu0 %v6687_v27  ;;  %v5494_v0 = vcombine.low %v969_v37, %v973_v38  ;;  %v5529_v13 = vcombine.high %v1002_v34, %v1006_v8  ;;  %v5528_v37 = vcombine.low %v1002_v34, %v1006_v8  ;;  %v1049_v8 = vld [vmem:[#allocation8 + $0x790] sm:$0xff] }
 0x29a   : > { %4403 = vmatpush1.bf16.msra.mxu0 %v5478_v50  ;;  %4642 = vmatprep.mubr.bf16.mxu1 %v6687_v27  ;;  %v985_v27 = vld [vmem:[#allocation8 + $0x590] sm:$0xff] }
 0x29b   : > { %4615 = vmatpush1.bf16.msra.mxu1 %v5480_v14  ;;  %4404 = vmatprep.subr.bf16.mxu0 %v5487_v24  ;;  %v5511_v3 = vcombine.high %v985_v27, %v989_v53  ;;  %v5510_v16 = vcombine.low %v985_v27, %v989_v53  ;;  %v1013_v50 = vld [vmem:[#allocation8 + $0x670] sm:$0xff]  ;;  %v1010_v14 = vld [vmem:[#allocation8 + $0x658] sm:$0xff] }
 0x29c   : > { %4616 = vmatprep.subr.bf16.mxu1 %v5489_v45  ;;  %v1014_v24 = vld [vmem:[#allocation8 + $0x678] sm:$0xff]  ;;  %v5526_v45 = vcombine.low %v1001_v31, %v1005_v32  ;;  %v5535_v38 = vcombine.high %v1009_v19, %v1013_v50 }
 0x29d   : > { %v5537_v39 = vcombine.high %v1010_v14, %v1014_v24  ;;  %v5536_v49 = vcombine.low %v1010_v14, %v1014_v24  ;;  %v1057_v24 = vld [vmem:[#allocation8 + $0x7d0] sm:$0xff] }
 0x29e   : > { %4405 = vmatpush1.bf16.msra.mxu0 %v5486_v43  ;;  %v1021_v43 = vld [vmem:[#allocation8 + $0x6b0] sm:$0xff] }
 0x29f   : > { %4617 = vmatpush1.bf16.msra.mxu1 %v5488_v44  ;;  %4406 = vmatprep.subr.bf16.mxu0 %v5495_v26  ;;  %v1018_v44 = vld [vmem:[#allocation8 + $0x698] sm:$0xff]  ;;  %v5543_v51 = vcombine.high %v1017_v41, %v1021_v43 }
 0x2a0   : > { %4618 = vmatprep.subr.bf16.mxu1 %v5497_v47  ;;  %v1022_v26 = vld [vmem:[#allocation8 + $0x6b8] sm:$0xff]  ;;  %v5534_v47 = vcombine.low %v1009_v19, %v1013_v50 }
 0x2a1   : > { %v5545_v29 = vcombine.high %v1018_v44, %v1022_v26  ;;  %v5544_v27 = vcombine.low %v1018_v44, %v1022_v26  ;;  %v1065_v26 = vld [vmem:[#allocation8 + $0x810] sm:$0xff] }
 0x2a2   : > { %4407 = vmatpush1.bf16.msra.mxu0 %v5494_v0  ;;  %v1029_v0 = vld [vmem:[#allocation8 + $0x6f0] sm:$0xff] }
 0x2a3   : > { %4619 = vmatpush1.bf16.msra.mxu1 %v5496_v54  ;;  %4408 = vmatprep.subr.bf16.mxu0 %v5503_v55  ;;  %v1026_v54 = vld [vmem:[#allocation8 + $0x6d8] sm:$0xff]  ;;  %v5551_v53 = vcombine.high %v1025_v52, %v1029_v0 }
 0x2a4   : > { %4620 = vmatprep.subr.bf16.mxu1 %v5505_v56  ;;  %v1030_v55 = vld [vmem:[#allocation8 + $0x6f8] sm:$0xff]  ;;  %v5542_v56 = vcombine.low %v1017_v41, %v1021_v43 }
 0x2a5   : > { %v5553_v58 = vcombine.high %v1026_v54, %v1030_v55  ;;  %v5552_v12 = vcombine.low %v1026_v54, %v1030_v55  ;;  %v1073_v55 = vld [vmem:[#allocation8 + $0x850] sm:$0xff] }
 0x2a6   : > { %4409 = vmatpush1.bf16.msra.mxu0 %v5502_v62  ;;  %v1037_v62 = vld [vmem:[#allocation8 + $0x730] sm:$0xff] }
 0x2a7   : > { %4621 = vmatpush1.bf16.msra.mxu1 %v5504_v2  ;;  %4410 = vmatprep.subr.bf16.mxu0 %v5511_v3  ;;  %v1034_v2 = vld [vmem:[#allocation8 + $0x718] sm:$0xff]  ;;  %v5559_v5 = vcombine.high %v1033_v59, %v1037_v62 }
 0x2a8   : > { %4622 = vmatprep.subr.bf16.mxu1 %v5513_v4  ;;  %v1038_v3 = vld [vmem:[#allocation8 + $0x738] sm:$0xff]  ;;  %v5550_v4 = vcombine.low %v1025_v52, %v1029_v0 }
 0x2a9   : > { %v5561_v11 = vcombine.high %v1034_v2, %v1038_v3  ;;  %v5560_v31 = vcombine.low %v1034_v2, %v1038_v3  ;;  %v1081_v3 = vld [vmem:[#allocation8 + $0x890] sm:$0xff] }
 0x2aa   : > { %4411 = vmatpush1.bf16.msra.mxu0 %v5510_v16  ;;  %v1045_v16 = vld [vmem:[#allocation8 + $0x770] sm:$0xff] }
 0x2ab   : > { %4623 = vmatpush1.bf16.msra.mxu1 %v5512_v25  ;;  %4412 = vmatprep.subr.bf16.mxu0 %v5519_v28  ;;  %v1042_v25 = vld [vmem:[#allocation8 + $0x758] sm:$0xff]  ;;  %v5567_v32 = vcombine.high %v1041_v15, %v1045_v16 }
 0x2ac   : > { %4624 = vmatprep.subr.bf16.mxu1 %v5521_v17  ;;  %v1046_v28 = vld [vmem:[#allocation8 + $0x778] sm:$0xff]  ;;  %v5558_v17 = vcombine.low %v1033_v59, %v1037_v62 }
 0x2ad   : > { %v5569_v34 = vcombine.high %v1042_v25, %v1046_v28  ;;  %v5568_v19 = vcombine.low %v1042_v25, %v1046_v28  ;;  %v1089_v28 = vld [vmem:[#allocation8 + $0x8d0] sm:$0xff] }
 0x2ae   : > { %4413 = vmatpush1.bf16.msra.mxu0 %v5518_v40  ;;  %v1053_v40 = vld [vmem:[#allocation8 + $0x7b0] sm:$0xff] }
 0x2af   : > { %4625 = vmatpush1.bf16.msra.mxu1 %v5520_v9  ;;  %4414 = vmatprep.subr.bf16.mxu0 %v5527_v10  ;;  %v1050_v9 = vld [vmem:[#allocation8 + $0x798] sm:$0xff]  ;;  %v5575_v50 = vcombine.high %v1049_v8, %v1053_v40 }
 0x2b0   : > { %4626 = vmatprep.subr.bf16.mxu1 %v5529_v13  ;;  %v1054_v10 = vld [vmem:[#allocation8 + $0x7b8] sm:$0xff]  ;;  %v5566_v13 = vcombine.low %v1041_v15, %v1045_v16 }
 0x2b1   : > { %v5577_v14 = vcombine.high %v1050_v9, %v1054_v10  ;;  %v5576_v41 = vcombine.low %v1050_v9, %v1054_v10  ;;  %v1101_v9 = vld [vmem:[#allocation8 + $0x930] sm:$0xff]  ;;  %v1098_v10 = vld [vmem:[#allocation8 + $0x918] sm:$0xff] }
 0x2b2   : > { %4415 = vmatpush1.bf16.msra.mxu0 %v5526_v45  ;;  %v1061_v45 = vld [vmem:[#allocation8 + $0x7f0] sm:$0xff] }
 0x2b3   : > { %4627 = vmatpush1.bf16.msra.mxu1 %v5528_v37  ;;  %4416 = vmatprep.subr.bf16.mxu0 %v5535_v38  ;;  %v1058_v37 = vld [vmem:[#allocation8 + $0x7d8] sm:$0xff]  ;;  %v5583_v43 = vcombine.high %v1057_v24, %v1061_v45 }
 0x2b4   : > { %4628 = vmatprep.subr.bf16.mxu1 %v5537_v39  ;;  %v1062_v38 = vld [vmem:[#allocation8 + $0x7f8] sm:$0xff]  ;;  %v5574_v39 = vcombine.low %v1049_v8, %v1053_v40  ;;  %v1097_v40 = vld [vmem:[#allocation8 + $0x910] sm:$0xff] }
 0x2b5   : > { %v5585_v44 = vcombine.high %v1058_v37, %v1062_v38  ;;  %v5584_v52 = vcombine.low %v1058_v37, %v1062_v38  ;;  %v1109_v37 = vld [vmem:[#allocation8 + $0x970] sm:$0xff]  ;;  %v1106_v38 = vld [vmem:[#allocation8 + $0x958] sm:$0xff] }
 0x2b6   : > { %4417 = vmatpush1.bf16.msra.mxu0 %v5534_v47  ;;  %v1069_v47 = vld [vmem:[#allocation8 + $0x830] sm:$0xff] }
 0x2b7   : > { %4629 = vmatpush1.bf16.msra.mxu1 %v5536_v49  ;;  %4418 = vmatprep.subr.bf16.mxu0 %v5543_v51  ;;  %v1066_v49 = vld [vmem:[#allocation8 + $0x818] sm:$0xff]  ;;  %v5591_v0 = vcombine.high %v1065_v26, %v1069_v47 }
 0x2b8   : > { %4630 = vmatprep.subr.bf16.mxu1 %v5545_v29  ;;  %v1070_v51 = vld [vmem:[#allocation8 + $0x838] sm:$0xff]  ;;  %v5582_v29 = vcombine.low %v1057_v24, %v1061_v45  ;;  %v1105_v45 = vld [vmem:[#allocation8 + $0x950] sm:$0xff] }
 0x2b9   : > { %v5593_v54 = vcombine.high %v1066_v49, %v1070_v51  ;;  %v5592_v59 = vcombine.low %v1066_v49, %v1070_v51  ;;  %v1118_v49 = vld [vmem:[#allocation8 + $0x9b8] sm:$0xff]  ;;  %v5630_v51 = vcombine.low %v1105_v45, %v1109_v37 }
 0x2ba   : > { %4419 = vmatpush1.bf16.msra.mxu0 %v5542_v56  ;;  %v1077_v56 = vld [vmem:[#allocation8 + $0x870] sm:$0xff] }
 0x2bb   : > { %4631 = vmatpush1.bf16.msra.mxu1 %v5544_v27  ;;  %4420 = vmatprep.subr.bf16.mxu0 %v5551_v53  ;;  %v1074_v27 = vld [vmem:[#allocation8 + $0x858] sm:$0xff]  ;;  %v5599_v62 = vcombine.high %v1073_v55, %v1077_v56 }
 0x2bc   : > { %4632 = vmatprep.subr.bf16.mxu1 %v5553_v58  ;;  %v1078_v53 = vld [vmem:[#allocation8 + $0x878] sm:$0xff]  ;;  %v5590_v58 = vcombine.low %v1065_v26, %v1069_v47  ;;  %v1117_v26 = vld [vmem:[#allocation8 + $0x9b0] sm:$0xff] }
 0x2bd   : > { %v5601_v2 = vcombine.high %v1074_v27, %v1078_v53  ;;  %v5600_v15 = vcombine.low %v1074_v27, %v1078_v53  ;;  %v1114_v47 = vld [vmem:[#allocation8 + $0x998] sm:$0xff] }
 0x2be   : > { %4421 = vmatpush1.bf16.msra.mxu0 %v5550_v4  ;;  %v1085_v4 = vld [vmem:[#allocation8 + $0x8b0] sm:$0xff]  ;;  %v1126_v27 = vld [vmem:[#allocation8 + $0x9f8] sm:$0xff] }
 0x2bf   : > { %4633 = vmatpush1.bf16.msra.mxu1 %v5552_v12  ;;  %4422 = vmatprep.subr.bf16.mxu0 %v5559_v5  ;;  %v1082_v12 = vld [vmem:[#allocation8 + $0x898] sm:$0xff]  ;;  %v5607_v16 = vcombine.high %v1081_v3, %v1085_v4 }
 0x2c0   : > { %4634 = vmatprep.subr.bf16.mxu1 %v5561_v11  ;;  %v1086_v5 = vld [vmem:[#allocation8 + $0x8b8] sm:$0xff]  ;;  %v5598_v11 = vcombine.low %v1073_v55, %v1077_v56  ;;  %v1125_v55 = vld [vmem:[#allocation8 + $0x9f0] sm:$0xff] }
 0x2c1   : > { %v5609_v25 = vcombine.high %v1082_v12, %v1086_v5  ;;  %v1122_v56 = vld [vmem:[#allocation8 + $0x9d8] sm:$0xff] }
 0x2c2   : > { %4423 = vmatpush1.bf16.msra.mxu0 %v5558_v17  ;;  %v1093_v17 = vld [vmem:[#allocation8 + $0x8f0] sm:$0xff] }
 0x2c3   : > { %4635 = vmatpush1.bf16.msra.mxu1 %v5560_v31  ;;  %4424 = vmatprep.subr.bf16.mxu0 %v5567_v32  ;;  %v1090_v31 = vld [vmem:[#allocation8 + $0x8d8] sm:$0xff]  ;;  %v5615_v8 = vcombine.high %v1089_v28, %v1093_v17 }
 0x2c4   : > { %4636 = vmatprep.subr.bf16.mxu1 %v5569_v34  ;;  %v1094_v32 = vld [vmem:[#allocation8 + $0x8f8] sm:$0xff]  ;;  %v5608_v34 = vcombine.low %v1082_v12, %v1086_v5 }
 0x2c5   : > { %v1134_v12 = vld [vmem:[#allocation8 + $0xa38] sm:$0xff] }
 0x2c6   : > { %4425 = vmatpush1.bf16.msra.mxu0 %v5566_v13  ;;  %v1102_v13 = vld [vmem:[#allocation8 + $0x938] sm:$0xff] }
 0x2c7   : > { %4637 = vmatpush1.bf16.msra.mxu1 %v5568_v19  ;;  %4426 = vmatprep.subr.bf16.mxu0 %v5575_v50  ;;  %v5614_v19 = vcombine.low %v1089_v28, %v1093_v17  ;;  %v5616_v50 = vcombine.low %v1090_v31, %v1094_v32  ;;  %v5625_v24 = vcombine.high %v1098_v10, %v1102_v13  ;;  %v1141_v28 = vld [vmem:[#allocation8 + $0xa70] sm:$0xff]  ;;  %v1138_v17 = vld [vmem:[#allocation8 + $0xa58] sm:$0xff] }
 0x2c8   : > { %4638 = vmatprep.subr.bf16.mxu1 %v5577_v14  ;;  %v5623_v14 = vcombine.high %v1097_v40, %v1101_v9 }
 0x2ca   : > { %4427 = vmatpush1.bf16.msra.mxu0 %v5574_v39  ;;  %v1110_v39 = vld [vmem:[#allocation8 + $0x978] sm:$0xff] }
 0x2cb   : > { %4639 = vmatpush1.bf16.msra.mxu1 %v5576_v41  ;;  %4428 = vmatprep.subr.bf16.mxu0 %v5583_v43  ;;  %v5624_v41 = vcombine.low %v1098_v10, %v1102_v13  ;;  %v5631_v43 = vcombine.high %v1105_v45, %v1109_v37  ;;  %v1150_v10 = vld [vmem:[#allocation8 + $0xab8] sm:$0xff]  ;;  %v1157_v45 = vld [vmem:[#allocation8 + $0xaf0] sm:$0xff] }
 0x2cc   : > { %4640 = vmatprep.subr.bf16.mxu1 %v5585_v44  ;;  %v5633_v44 = vcombine.high %v1106_v38, %v1110_v39  ;;  %v1154_v37 = vld [vmem:[#allocation8 + $0xad8] sm:$0xff] }
 0x2ce   : > { %4429 = vmatpush1.bf16.msra.mxu0 %v5582_v29  ;;  %v5632_v29 = vcombine.low %v1106_v38, %v1110_v39  ;;  %v1158_v38 = vld [vmem:[#allocation8 + $0xaf8] sm:$0xff] }
 0x2cf   : > { %4641 = vmatpush1.bf16.msra.mxu1 %v5584_v52  ;;  %4451 = vmatprep.subr.bf16.mxu0 %v5591_v0  ;;  %v5641_v0 = vcombine.high %v1114_v47, %v1118_v49 }
 0x2d0   : > { %4663 = vmatprep.subr.bf16.mxu1 %v5593_v54  ;;  %v1121_v54 = vld [vmem:[#allocation8 + $0x9d0] sm:$0xff] }
 0x2d1   : > { %4431 = vmatmul.mubr.bf16.vlgmr.msra.gmra.mrb[24].mxu0 %v6679_v6  ;;  %v5646_v5 = vcombine.low %v1121_v54, %v1125_v55 }
 0x2d2   : > { %4643 = vmatmul.mubr.bf16.vlgmr.msra.gmra.mrb[24].mxu1 %v6679_v6  ;;  %4440 = vmatprep.mubr.bf16.mxu0 %v6730_v60  ;;  %v5606_v6 = vcombine.low %v1081_v3, %v1085_v4  ;;  %v1133_v3 = vld [vmem:[#allocation8 + $0xa30] sm:$0xff]  ;;  %v1130_v4 = vld [vmem:[#allocation8 + $0xa18] sm:$0xff] }
 0x2d3   : > { %4452 = vmatpush1.bf16.msra.mxu0 %v5590_v58  ;;  %4652 = vmatprep.mubr.bf16.mxu1 %v6730_v60  ;;  %v5617_v60 = vcombine.high %v1090_v31, %v1094_v32  ;;  %v5640_v58 = vcombine.low %v1114_v47, %v1118_v49  ;;  %v1142_v31 = vld [vmem:[#allocation8 + $0xa78] sm:$0xff] }
 0x2d4   : > { %4664 = vmatpush1.bf16.msra.mxu1 %v5592_v59  ;;  %4453 = vmatprep.subr.bf16.mxu0 %v5599_v62  ;;  %v5647_v59 = vcombine.high %v1121_v54, %v1125_v55  ;;  %v5649_v62 = vcombine.high %v1122_v56, %v1126_v27  ;;  %v1166_v47 = vld [vmem:[#allocation8 + $0xb38] sm:$0xff]  ;;  %v1173_v54 = vld [vmem:[#allocation8 + $0xb70] sm:$0xff] }
 0x2d5   : > { %4665 = vmatprep.subr.bf16.mxu1 %v5601_v2  ;;  %v1129_v2 = vld [vmem:[#allocation8 + $0xa10] sm:$0xff]  ;;  %v1170_v55 = vld [vmem:[#allocation8 + $0xb58] sm:$0xff] }
 0x2d6   : > { %v5654_v32 = vcombine.low %v1129_v2, %v1133_v3 }
 0x2d7   : > { %4454 = vmatpush1.bf16.msra.mxu0 %v5598_v11  ;;  %v5648_v11 = vcombine.low %v1122_v56, %v1126_v27  ;;  %v1174_v56 = vld [vmem:[#allocation8 + $0xb78] sm:$0xff] }
 0x2d8   : > { %4666 = vmatpush1.bf16.msra.mxu1 %v5600_v15  ;;  %4455 = vmatprep.subr.bf16.mxu0 %v5607_v16  ;;  %v5655_v15 = vcombine.high %v1129_v2, %v1133_v3  ;;  %v5657_v16 = vcombine.high %v1130_v4, %v1134_v12  ;;  %v1181_v2 = vld [vmem:[#allocation8 + $0xbb0] sm:$0xff]  ;;  %v1178_v3 = vld [vmem:[#allocation8 + $0xb98] sm:$0xff] }
 0x2d9   : > { %4441 = vmatmul.mubr.bf16.gmra.mrb[28].mxu0 %v6725_v57  ;;  %4667 = vmatprep.subr.bf16.mxu1 %v5609_v25  ;;  %v1137_v25 = vld [vmem:[#allocation8 + $0xa50] sm:$0xff] }
 0x2da   : > { %4653 = vmatmul.mubr.bf16.gmra.mrb[28].mxu1 %v6725_v57  ;;  %4483 = vmatprep.mubr.bf16.mxu0 %v6739_v35  ;;  %v5622_v57 = vcombine.low %v1097_v40, %v1101_v9  ;;  %v1149_v40 = vld [vmem:[#allocation8 + $0xab0] sm:$0xff]  ;;  %v1146_v9 = vld [vmem:[#allocation8 + $0xa98] sm:$0xff]  ;;  %v5662_v13 = vcombine.low %v1137_v25, %v1141_v28 }
 0x2db   : > { %4456 = vmatpush1.bf16.msra.mxu0 %v5606_v6  ;;  %4695 = vmatprep.mubr.bf16.mxu1 %v6739_v35  ;;  %v1113_v35 = vld [vmem:[#allocation8 + $0x990] sm:$0xff]  ;;  %v5656_v6 = vcombine.low %v1130_v4, %v1134_v12  ;;  %v1182_v4 = vld [vmem:[#allocation8 + $0xbb8] sm:$0xff] }
 0x2dc   : > { %4668 = vmatpush1.bf16.msra.mxu1 %v5608_v34  ;;  %4457 = vmatprep.subr.bf16.mxu0 %v5615_v8  ;;  %v5639_v52 = vcombine.high %v1113_v35, %v1117_v26  ;;  %v5638_v53 = vcombine.low %v1113_v35, %v1117_v26  ;;  %v5663_v34 = vcombine.high %v1137_v25, %v1141_v28  ;;  %v1165_v35 = vld [vmem:[#allocation8 + $0xb30] sm:$0xff]  ;;  %v1162_v26 = vld [vmem:[#allocation8 + $0xb18] sm:$0xff] }
 0x2dd   : > { %4669 = vmatprep.subr.bf16.mxu1 %v5617_v60  ;;  %v5665_v8 = vcombine.high %v1138_v17, %v1142_v31  ;;  %v1145_v60 = vld [vmem:[#allocation8 + $0xa90] sm:$0xff]  ;;  %v1186_v28 = vld [vmem:[#allocation8 + $0xbd8] sm:$0xff] }
 0x2de   : > { %v5670_v39 = vcombine.low %v1145_v60, %v1149_v40  ;;  %v1189_v25 = vld [vmem:[#allocation8 + $0xbf0] sm:$0xff] }
 0x2df   : > { %4458 = vmatpush1.bf16.msra.mxu0 %v5614_v19  ;;  %v5664_v19 = vcombine.low %v1138_v17, %v1142_v31  ;;  %v1190_v17 = vld [vmem:[#allocation8 + $0xbf8] sm:$0xff] }
 0x2e0   : > { %4670 = vmatpush1.bf16.msra.mxu1 %v5616_v50  ;;  %4459 = vmatprep.subr.bf16.mxu0 %v5623_v14  ;;  %v5671_v50 = vcombine.high %v1145_v60, %v1149_v40  ;;  %v5673_v14 = vcombine.high %v1146_v9, %v1150_v10  ;;  %v1197_v60 = vld [vmem:[#allocation8 + $0xc30] sm:$0xff]  ;;  %v1194_v40 = vld [vmem:[#allocation8 + $0xc18] sm:$0xff] }
 0x2e1   : > { %4671 = vmatprep.subr.bf16.mxu1 %v5625_v24  ;;  %v1153_v24 = vld [vmem:[#allocation8 + $0xad0] sm:$0xff] }
 0x2e2   : > { %v5678_v49 = vcombine.low %v1153_v24, %v1157_v45 }
 0x2e3   : > { %4460 = vmatpush1.bf16.msra.mxu0 %v5622_v57  ;;  %v5672_v57 = vcombine.low %v1146_v9, %v1150_v10  ;;  %v1198_v9 = vld [vmem:[#allocation8 + $0xc38] sm:$0xff] }
 0x2e4   : > { %4672 = vmatpush1.bf16.msra.mxu1 %v5624_v41  ;;  %4461 = vmatprep.subr.bf16.mxu0 %v5631_v43  ;;  %v5679_v41 = vcombine.high %v1153_v24, %v1157_v45  ;;  %v5681_v43 = vcombine.high %v1154_v37, %v1158_v38  ;;  %v1205_v24 = vld [vmem:[#allocation8 + $0xc70] sm:$0xff]  ;;  %v1202_v45 = vld [vmem:[#allocation8 + $0xc58] sm:$0xff] }
 0x2e5   : > { %4673 = vmatprep.subr.bf16.mxu1 %v5633_v44  ;;  %v1161_v44 = vld [vmem:[#allocation8 + $0xb10] sm:$0xff] }
 0x2e6   : > { %v5686_v27 = vcombine.low %v1161_v44, %v1165_v35 }
 0x2e7   : > { %4462 = vmatpush1.bf16.msra.mxu0 %v5630_v51  ;;  %v5680_v51 = vcombine.low %v1154_v37, %v1158_v38  ;;  %v1206_v37 = vld [vmem:[#allocation8 + $0xc78] sm:$0xff] }
 0x2e8   : > { %4674 = vmatpush1.bf16.msra.mxu1 %v5632_v29  ;;  %4463 = vmatprep.subr.bf16.mxu0 %v5639_v52  ;;  %v5687_v29 = vcombine.high %v1161_v44, %v1165_v35  ;;  %v5689_v52 = vcombine.high %v1162_v26, %v1166_v47  ;;  %v1213_v44 = vld [vmem:[#allocation8 + $0xcb0] sm:$0xff]  ;;  %v1210_v35 = vld [vmem:[#allocation8 + $0xc98] sm:$0xff] }
 0x2e9   : > { %4675 = vmatprep.subr.bf16.mxu1 %v5641_v0  ;;  %v1169_v0 = vld [vmem:[#allocation8 + $0xb50] sm:$0xff] }
 0x2ea   : > { %v5694_v12 = vcombine.low %v1169_v0, %v1173_v54 }
 0x2eb   : > { %4464 = vmatpush1.bf16.msra.mxu0 %v5638_v53  ;;  %v5688_v53 = vcombine.low %v1162_v26, %v1166_v47  ;;  %v1214_v26 = vld [vmem:[#allocation8 + $0xcb8] sm:$0xff] }
 0x2ec   : > { %4676 = vmatpush1.bf16.msra.mxu1 %v5640_v58  ;;  %4465 = vmatprep.subr.bf16.mxu0 %v5647_v59  ;;  %v5695_v58 = vcombine.high %v1169_v0, %v1173_v54  ;;  %v5697_v59 = vcombine.high %v1170_v55, %v1174_v56  ;;  %v1221_v0 = vld [vmem:[#allocation8 + $0xcf0] sm:$0xff]  ;;  %v1218_v54 = vld [vmem:[#allocation8 + $0xcd8] sm:$0xff] }
 0x2ed   : > { %4677 = vmatprep.subr.bf16.mxu1 %v5649_v62  ;;  %v1177_v62 = vld [vmem:[#allocation8 + $0xb90] sm:$0xff] }
 0x2ee   : > { %v5702_v31 = vcombine.low %v1177_v62, %v1181_v2 }
 0x2ef   : > { %4466 = vmatpush1.bf16.msra.mxu0 %v5646_v5  ;;  %v5696_v5 = vcombine.low %v1170_v55, %v1174_v56  ;;  %v1222_v55 = vld [vmem:[#allocation8 + $0xcf8] sm:$0xff]  ;;  %v5736_v56 = vcombine.low %v1210_v35, %v1214_v26 }
 0x2f0   : > { %4678 = vmatpush1.bf16.msra.mxu1 %v5648_v11  ;;  %4467 = vmatprep.subr.bf16.mxu0 %v5655_v15  ;;  %v5703_v11 = vcombine.high %v1177_v62, %v1181_v2  ;;  %v5705_v15 = vcombine.high %v1178_v3, %v1182_v4  ;;  %v1230_v62 = vld [vmem:[#allocation8 + $0xd38] sm:$0xff] }
 0x2f1   : > { %4679 = vmatprep.subr.bf16.mxu1 %v5657_v16  ;;  %v1185_v16 = vld [vmem:[#allocation8 + $0xbd0] sm:$0xff] }
 0x2f2   : > { %v5710_v10 = vcombine.low %v1185_v16, %v1189_v25 }
 0x2f3   : > { %4468 = vmatpush1.bf16.msra.mxu0 %v5654_v32  ;;  %v5704_v32 = vcombine.low %v1178_v3, %v1182_v4  ;;  %v5744_v3 = vcombine.low %v1218_v54, %v1222_v55 }
 0x2f4   : > { %4680 = vmatpush1.bf16.msra.mxu1 %v5656_v6  ;;  %4469 = vmatprep.subr.bf16.mxu0 %v5663_v34  ;;  %v5711_v6 = vcombine.high %v1185_v16, %v1189_v25  ;;  %v5713_v34 = vcombine.high %v1186_v28, %v1190_v17  ;;  %v1238_v16 = vld [vmem:[#allocation8 + $0xd78] sm:$0xff] }
 0x2f5   : > { %4681 = vmatprep.subr.bf16.mxu1 %v5665_v8  ;;  %v1193_v8 = vld [vmem:[#allocation8 + $0xc10] sm:$0xff] }
 0x2f6   : > { %v5718_v38 = vcombine.low %v1193_v8, %v1197_v60 }
 0x2f7   : > { %4470 = vmatpush1.bf16.msra.mxu0 %v5662_v13  ;;  %v5712_v13 = vcombine.low %v1186_v28, %v1190_v17 }
 0x2f8   : > { %4682 = vmatpush1.bf16.msra.mxu1 %v5664_v19  ;;  %4471 = vmatprep.subr.bf16.mxu0 %v5671_v50  ;;  %v5719_v19 = vcombine.high %v1193_v8, %v1197_v60  ;;  %v5721_v50 = vcombine.high %v1194_v40, %v1198_v9  ;;  %v1246_v8 = vld [vmem:[#allocation8 + $0xdb8] sm:$0xff] }
 0x2f9   : > { %4683 = vmatprep.subr.bf16.mxu1 %v5673_v14  ;;  %v1201_v14 = vld [vmem:[#allocation8 + $0xc50] sm:$0xff] }
 0x2fa   : > { %v5726_v47 = vcombine.low %v1201_v14, %v1205_v24 }
 0x2fb   : > { %4472 = vmatpush1.bf16.msra.mxu0 %v5670_v39  ;;  %v5720_v39 = vcombine.low %v1194_v40, %v1198_v9 }
 0x2fc   : > { %4684 = vmatpush1.bf16.msra.mxu1 %v5672_v57  ;;  %4473 = vmatprep.subr.bf16.mxu0 %v5679_v41  ;;  %v5727_v57 = vcombine.high %v1201_v14, %v1205_v24  ;;  %v5729_v41 = vcombine.high %v1202_v45, %v1206_v37 }
 0x2fd   : > { %4685 = vmatprep.subr.bf16.mxu1 %v5681_v43  ;;  %v1209_v43 = vld [vmem:[#allocation8 + $0xc90] sm:$0xff] }
 0x2ff   : > { %4474 = vmatpush1.bf16.msra.mxu0 %v5678_v49  ;;  %v5728_v49 = vcombine.low %v1202_v45, %v1206_v37  ;;  %v1249_v37 = vld [vmem:[#allocation8 + $0xdd0] sm:$0xff] }
 0x300   : > { %4686 = vmatpush1.bf16.msra.mxu1 %v5680_v51  ;;  %4475 = vmatprep.subr.bf16.mxu0 %v5687_v29  ;;  %v5735_v51 = vcombine.high %v1209_v43, %v1213_v44  ;;  %v5737_v29 = vcombine.high %v1210_v35, %v1214_v26  ;;  %v1257_v26 = vld [vmem:[#allocation8 + $0xe10] sm:$0xff] }
 0x301   : > { %4687 = vmatprep.subr.bf16.mxu1 %v5689_v52  ;;  %v1217_v52 = vld [vmem:[#allocation8 + $0xcd0] sm:$0xff] }
 0x302   : > { %v5742_v2 = vcombine.low %v1217_v52, %v1221_v0 }
 0x303   : > { %4476 = vmatpush1.bf16.msra.mxu0 %v5686_v27  ;;  %v5743_v27 = vcombine.high %v1217_v52, %v1221_v0  ;;  %v1262_v52 = vld [vmem:[#allocation8 + $0xe38] sm:$0xff] }
 0x304   : > { %4688 = vmatpush1.bf16.msra.mxu1 %v5688_v53  ;;  %4477 = vmatprep.subr.bf16.mxu0 %v5695_v58  ;;  %v1225_v53 = vld [vmem:[#allocation8 + $0xd10] sm:$0xff] }
 0x305   : > { %4689 = vmatprep.subr.bf16.mxu1 %v5697_v59  ;;  %v1229_v58 = vld [vmem:[#allocation8 + $0xd30] sm:$0xff]  ;;  %v1226_v59 = vld [vmem:[#allocation8 + $0xd18] sm:$0xff] }
 0x306   : > { %v5751_v4 = vcombine.high %v1225_v53, %v1229_v58  ;;  %v5752_v25 = vcombine.low %v1226_v59, %v1230_v62 }
 0x307   : > { %4478 = vmatpush1.bf16.msra.mxu0 %v5694_v12  ;;  %v5753_v12 = vcombine.high %v1226_v59, %v1230_v62  ;;  %v1265_v62 = vld [vmem:[#allocation8 + $0xe50] sm:$0xff] }
 0x308   : > { %4690 = vmatpush1.bf16.msra.mxu1 %v5696_v5  ;;  %4479 = vmatprep.subr.bf16.mxu0 %v5703_v11  ;;  %v1233_v5 = vld [vmem:[#allocation8 + $0xd50] sm:$0xff] }
 0x309   : > { %4691 = vmatprep.subr.bf16.mxu1 %v5705_v15  ;;  %v1237_v11 = vld [vmem:[#allocation8 + $0xd70] sm:$0xff]  ;;  %v1234_v15 = vld [vmem:[#allocation8 + $0xd58] sm:$0xff] }
 0x30a   : > { %v5759_v28 = vcombine.high %v1233_v5, %v1237_v11  ;;  %v5761_v17 = vcombine.high %v1234_v15, %v1238_v16  ;;  %v5758_v9 = vcombine.low %v1233_v5, %v1237_v11 }
 0x30b   : > { %4480 = vmatpush1.bf16.msra.mxu0 %v5702_v31 }
 0x30c   : > { %4692 = vmatpush1.bf16.msra.mxu1 %v5704_v32  ;;  %4481 = vmatprep.subr.bf16.mxu0 %v5711_v6  ;;  %v1245_v6 = vld [vmem:[#allocation8 + $0xdb0] sm:$0xff] }
 0x30d   : > { %4693 = vmatprep.subr.bf16.mxu1 %v5713_v34  ;;  %v1242_v34 = vld [vmem:[#allocation8 + $0xd98] sm:$0xff] }
 0x30e   : > { %v5769_v45 = vcombine.high %v1242_v34, %v1246_v8 }
 0x30f   : > { %4482 = vmatpush1.bf16.msra.mxu0 %v5710_v10  ;;  %v5760_v10 = vcombine.low %v1234_v15, %v1238_v16  ;;  %v1273_v16 = vld [vmem:[#allocation8 + $0xe90] sm:$0xff] }
 0x310   : > { %4694 = vmatpush1.bf16.msra.mxu1 %v5712_v13  ;;  %4504 = vmatprep.subr.bf16.mxu0 %v5719_v19 }
 0x311   : > { %4716 = vmatprep.subr.bf16.mxu1 %v5721_v50 }
 0x312   : > { %4484 = vmatmul.mubr.bf16.vlgmr.msra.gmra.mrb[24].mxu0 %v6737_v33 }
 0x313   : > { %4696 = vmatmul.mubr.bf16.vlgmr.msra.gmra.mrb[24].mxu1 %v6737_v33  ;;  %4493 = vmatprep.mubr.bf16.mxu0 %v6769_v36  ;;  %v5734_v33 = vcombine.low %v1209_v43, %v1213_v44  ;;  %v5768_v43 = vcombine.low %v1242_v34, %v1246_v8  ;;  %v1281_v8 = vld [vmem:[#allocation8 + $0xed0] sm:$0xff] }
 0x314   : > { %4505 = vmatpush1.bf16.msra.mxu0 %v5718_v38  ;;  %4705 = vmatprep.mubr.bf16.mxu1 %v6769_v36  ;;  %v5745_v36 = vcombine.high %v1218_v54, %v1222_v55  ;;  %v1253_v38 = vld [vmem:[#allocation8 + $0xdf0] sm:$0xff] }
 0x315   : > { %4717 = vmatpush1.bf16.msra.mxu1 %v5720_v39  ;;  %4506 = vmatprep.subr.bf16.mxu0 %v5727_v57  ;;  %v1250_v39 = vld [vmem:[#allocation8 + $0xdd8] sm:$0xff]  ;;  %v5775_v44 = vcombine.high %v1249_v37, %v1253_v38  ;;  %v5774_v55 = vcombine.low %v1249_v37, %v1253_v38 }
 0x316   : > { %4718 = vmatprep.subr.bf16.mxu1 %v5729_v41  ;;  %v1254_v57 = vld [vmem:[#allocation8 + $0xdf8] sm:$0xff] }
 0x317   : > { %v5777_v35 = vcombine.high %v1250_v39, %v1254_v57 }
 0x318   : > { %4507 = vmatpush1.bf16.msra.mxu0 %v5726_v47  ;;  %v1261_v47 = vld [vmem:[#allocation8 + $0xe30] sm:$0xff] }
 0x319   : > { %4719 = vmatpush1.bf16.msra.mxu1 %v5728_v49  ;;  %4508 = vmatprep.subr.bf16.mxu0 %v5735_v51 }
 0x31a   : > { %4494 = vmatmul.mubr.bf16.gmra.mrb[28].mxu0 %v6765_v22  ;;  %4720 = vmatprep.subr.bf16.mxu1 %v5737_v29  ;;  %v1258_v29 = vld [vmem:[#allocation8 + $0xe18] sm:$0xff] }
 0x31b   : > { %4706 = vmatmul.mubr.bf16.gmra.mrb[28].mxu1 %v6765_v22  ;;  %4536 = vmatprep.mubr.bf16.mxu0 %v6773_v46  ;;  %v5750_v22 = vcombine.low %v1225_v53, %v1229_v58  ;;  %v5785_v59 = vcombine.high %v1258_v29, %v1262_v52  ;;  %v5784_v5 = vcombine.low %v1258_v29, %v1262_v52  ;;  %v1297_v52 = vld [vmem:[#allocation8 + $0xf50] sm:$0xff] }
 0x31c   : > { %4509 = vmatpush1.bf16.msra.mxu0 %v5734_v33  ;;  %4748 = vmatprep.mubr.bf16.mxu1 %v6773_v46  ;;  %v1241_v46 = vld [vmem:[#allocation8 + $0xd90] sm:$0xff]  ;;  %v5776_v33 = vcombine.low %v1250_v39, %v1254_v57 }
 0x31d   : > { %4721 = vmatpush1.bf16.msra.mxu1 %v5736_v56  ;;  %4510 = vmatprep.subr.bf16.mxu0 %v5743_v27  ;;  %v5767_v24 = vcombine.high %v1241_v46, %v1245_v6  ;;  %v5766_v41 = vcombine.low %v1241_v46, %v1245_v6  ;;  %v1289_v57 = vld [vmem:[#allocation8 + $0xf10] sm:$0xff] }
 0x31e   : > { %4722 = vmatprep.subr.bf16.mxu1 %v5745_v36  ;;  %v5783_v36 = vcombine.high %v1257_v26, %v1261_v47 }
 0x320   : > { %4511 = vmatpush1.bf16.msra.mxu0 %v5742_v2  ;;  %v1269_v2 = vld [vmem:[#allocation8 + $0xe70] sm:$0xff] }
 0x321   : > { %4723 = vmatpush1.bf16.msra.mxu1 %v5744_v3  ;;  %4512 = vmatprep.subr.bf16.mxu0 %v5751_v4  ;;  %v1266_v3 = vld [vmem:[#allocation8 + $0xe58] sm:$0xff]  ;;  %v5791_v11 = vcombine.high %v1265_v62, %v1269_v2 }
 0x322   : > { %4724 = vmatprep.subr.bf16.mxu1 %v5753_v12  ;;  %v1270_v4 = vld [vmem:[#allocation8 + $0xe78] sm:$0xff]  ;;  %v5782_v12 = vcombine.low %v1257_v26, %v1261_v47 }
 0x323   : > { %v6831_v31 = vpop.f32.mrb[16].mxu0  ;;  %v6833_v32 = vpop.f32.mrb[16].mxu1  ;;  %v5793_v15 = vcombine.high %v1266_v3, %v1270_v4  ;;  %v5792_v46 = vcombine.low %v1266_v3, %v1270_v4  ;;  %v1305_v4 = vld [vmem:[#allocation8 + $0xf90] sm:$0xff] }
 0x324   : > { %4513 = vmatpush1.bf16.msra.mxu0 %v5750_v22  ;;  %v6835_v60 = vpop.f32.mrb[17].mxu0  ;;  %v6837_v40 = vpop.f32.mrb[17].mxu1  ;;  %v1277_v22 = vld [vmem:[#allocation8 + $0xeb0] sm:$0xff] }
 0x325   : > { %4725 = vmatpush1.bf16.msra.mxu1 %v5752_v25  ;;  %4514 = vmatprep.subr.bf16.mxu0 %v5759_v28  ;;  %v6839_v13 = vpop.f32.mrb[18].mxu0  ;;  %v6841_v19 = vpop.f32.mrb[18].mxu1  ;;  %v1274_v25 = vld [vmem:[#allocation8 + $0xe98] sm:$0xff]  ;;  %v5799_v6 = vcombine.high %v1273_v16, %v1277_v22 }
 0x326   : > { %4726 = vmatprep.subr.bf16.mxu1 %v5761_v17  ;;  %v6843_v50 = vpop.f32.mrb[19].mxu0  ;;  %v6845_v14 = vpop.f32.mrb[19].mxu1  ;;  %v1278_v28 = vld [vmem:[#allocation8 + $0xeb8] sm:$0xff]  ;;  %v5790_v17 = vcombine.low %v1265_v62, %v1269_v2 }
 0x327   : > { %v5801_v34 = vcombine.high %v1274_v25, %v1278_v28  ;;  %v5800_v37 = vcombine.low %v1274_v25, %v1278_v28  ;;  %v1313_v28 = vld [vmem:[#allocation8 + $0xfd0] sm:$0xff] }
 0x328   : > { %4515 = vmatpush1.bf16.msra.mxu0 %v5758_v9  ;;  %v1285_v9 = vld [vmem:[#allocation8 + $0xef0] sm:$0xff] }
 0x329   : > { %4727 = vmatpush1.bf16.msra.mxu1 %v5760_v10  ;;  %4516 = vmatprep.subr.bf16.mxu0 %v5767_v24  ;;  %v1282_v10 = vld [vmem:[#allocation8 + $0xed8] sm:$0xff]  ;;  %v5807_v38 = vcombine.high %v1281_v8, %v1285_v9 }
 0x32a   : > { %4728 = vmatprep.subr.bf16.mxu1 %v5769_v45  ;;  %v1286_v24 = vld [vmem:[#allocation8 + $0xef8] sm:$0xff]  ;;  %v5798_v45 = vcombine.low %v1273_v16, %v1277_v22 }
 0x32b   : > { %v6847_v49 = vpop.f32.mrb[20].mxu0  ;;  %v6849_v51 = vpop.f32.mrb[20].mxu1  ;;  %v5809_v39 = vcombine.high %v1282_v10, %v1286_v24  ;;  %v5808_v26 = vcombine.low %v1282_v10, %v1286_v24 }
 0x32c   : > { %4517 = vmatpush1.bf16.msra.mxu0 %v5766_v41  ;;  %v6851_v0 = vpop.f32.mrb[21].mxu0  ;;  %v6853_v54 = vpop.f32.mrb[21].mxu1  ;;  %v1293_v41 = vld [vmem:[#allocation8 + $0xf30] sm:$0xff] }
 0x32d   : > { %4729 = vmatpush1.bf16.msra.mxu1 %v5768_v43  ;;  %v6855_v56 = vpop.f32.mrb[22].mxu0  ;;  %v6857_v27 = vpop.f32.mrb[22].mxu1  ;;  %4518 = vmatprep.subr.bf16.mxu0 %v5775_v44  ;;  %v1290_v43 = vld [vmem:[#allocation8 + $0xf18] sm:$0xff]  ;;  %v5815_v47 = vcombine.high %v1289_v57, %v1293_v41 }
 0x32e   : > { %4730 = vmatprep.subr.bf16.mxu1 %v5777_v35  ;;  %v6859_v53 = vpop.f32.mrb[23].mxu0  ;;  %v6861_v58 = vpop.f32.mrb[23].mxu1  ;;  %v1294_v44 = vld [vmem:[#allocation8 + $0xf38] sm:$0xff]  ;;  %v5806_v35 = vcombine.low %v1281_v8, %v1285_v9 }
 0x32f   : > { %v5817_v29 = vcombine.high %v1290_v43, %v1294_v44  ;;  %v5816_v62 = vcombine.low %v1290_v43, %v1294_v44 }
 0x330   : > { %4519 = vmatpush1.bf16.msra.mxu0 %v5774_v55  ;;  %v1301_v55 = vld [vmem:[#allocation8 + $0xf70] sm:$0xff] }
 0x331   : > { %4731 = vmatpush1.bf16.msra.mxu1 %v5776_v33  ;;  %4520 = vmatprep.subr.bf16.mxu0 %v5783_v36  ;;  %v1298_v33 = vld [vmem:[#allocation8 + $0xf58] sm:$0xff]  ;;  %v5823_v2 = vcombine.high %v1297_v52, %v1301_v55 }
 0x332   : > { %4732 = vmatprep.subr.bf16.mxu1 %v5785_v59  ;;  %v1302_v36 = vld [vmem:[#allocation8 + $0xf78] sm:$0xff]  ;;  %v5814_v59 = vcombine.low %v1289_v57, %v1293_v41 }
 0x333   : > { %v5825_v3 = vcombine.high %v1298_v33, %v1302_v36  ;;  %v5824_v16 = vcombine.low %v1298_v33, %v1302_v36 }
 0x334   : > { %4521 = vmatpush1.bf16.msra.mxu0 %v5782_v12  ;;  %v1309_v12 = vld [vmem:[#allocation8 + $0xfb0] sm:$0xff] }
 0x335   : > { %4733 = vmatpush1.bf16.msra.mxu1 %v5784_v5  ;;  %4522 = vmatprep.subr.bf16.mxu0 %v5791_v11  ;;  %v1306_v5 = vld [vmem:[#allocation8 + $0xf98] sm:$0xff]  ;;  %v5831_v22 = vcombine.high %v1305_v4, %v1309_v12 }
 0x336   : > { %4734 = vmatprep.subr.bf16.mxu1 %v5793_v15  ;;  %v1310_v11 = vld [vmem:[#allocation8 + $0xfb8] sm:$0xff]  ;;  %v5822_v15 = vcombine.low %v1297_v52, %v1301_v55 }
 0x337   : > { %v5833_v25 = vcombine.high %v1306_v5, %v1310_v11  ;;  %v5832_v8 = vcombine.low %v1306_v5, %v1310_v11 }
 0x338   : > { %4523 = vmatpush1.bf16.msra.mxu0 %v5790_v17  ;;  %v1317_v17 = vld [vmem:[#allocation8 + $0xff0] sm:$0xff] }
 0x339   : > { %4735 = vmatpush1.bf16.msra.mxu1 %v5792_v46  ;;  %4524 = vmatprep.subr.bf16.mxu0 %v5799_v6  ;;  %v1314_v46 = vld [vmem:[#allocation8 + $0xfd8] sm:$0xff]  ;;  %v5839_v9 = vcombine.high %v1313_v28, %v1317_v17  ;;  %v5838_v24 = vcombine.low %v1313_v28, %v1317_v17 }
 0x33a   : > { %4736 = vmatprep.subr.bf16.mxu1 %v5801_v34  ;;  %v1318_v6 = vld [vmem:[#allocation8 + $0xff8] sm:$0xff]  ;;  %v5830_v34 = vcombine.low %v1305_v4, %v1309_v12 }
 0x33b   : > { %v5841_v10 = vcombine.high %v1314_v46, %v1318_v6 }
 0x33c   : > { %4525 = vmatpush1.bf16.msra.mxu0 %v5798_v45  ;;  %v5840_v45 = vcombine.low %v1314_v46, %v1318_v6 }
 0x33d   : > { %4737 = vmatpush1.bf16.msra.mxu1 %v5800_v37  ;;  %4526 = vmatprep.subr.bf16.mxu0 %v5807_v38  ;;  %v6869_v37 = vld [vmem:[#allocation10] ss:$4 sm:$0xff] }
 0x33e   : > { %4738 = vmatprep.subr.bf16.mxu1 %v5809_v39  ;;  %v1324_v38 = vrot.slane %v6869_v37, %v6622_v18  ;;  %v1328_v39 = vrot.slane %v6869_v37, %v6627_v20 }
 0x340   : > { %4527 = vmatpush1.bf16.msra.mxu0 %v5806_v35  ;;  %v6876_v57 = vadd.f32 %v6831_v31, %v1324_v38  ;;  %v6885_v41 = vadd.f32 %v6843_v50, %v1328_v39  ;;  %v1336_v50 = vrot.slane %v6869_v37, %v6635_v23  ;;  %v6910_v52 = vadd.f32 %v6847_v49, %v1324_v38 }
 0x341   : > { %4739 = vmatpush1.bf16.msra.mxu1 %v5808_v26  ;;  %4528 = vmatprep.subr.bf16.mxu0 %v5815_v47  ;;  %v6913_v55 = vadd.f32 %v6851_v0, %v1328_v39  ;;  %v6938_v12 = vadd.f32 %v6859_v53, %v1328_v39  ;;  %v6958_v53 = vrot.slane %v6869_v37, %v6682_v7 }
 0x342   : > { %4740 = vmatprep.subr.bf16.mxu1 %v5817_v29  ;;  %v4805_v43 = vmul.f32 %v6876_v57, %v6876_v57  ;;  %v6918_v36 = vadd.f32 %v6837_v40, %v1336_v50  ;;  %v4821_v0 = vmul.f32 %v6910_v52, %v6910_v52 }
 0x344   : > { %4529 = vmatpush1.bf16.msra.mxu0 %v5814_v59  ;;  %v4808_v5 = vmul.f32 %v6918_v36, %v6918_v36 }
 0x345   : > { %4741 = vmatpush1.bf16.msra.mxu1 %v5816_v62  ;;  %4530 = vmatprep.subr.bf16.mxu0 %v5823_v2 }
 0x346   : > { %4742 = vmatprep.subr.bf16.mxu1 %v5825_v3  ;;  %v4822_v3 = vmul.f32 %v6913_v55, %v6913_v55 }
 0x348   : > { %4531 = vmatpush1.bf16.msra.mxu0 %v5822_v15  ;;  %v6946_v15 = vrot.slane %v6869_v37, %v6669_v63  ;;  %v4855_v17 = vadd.f32 %v4822_v3, %v4821_v0 }
 0x349   : > { %4743 = vmatpush1.bf16.msra.mxu1 %v5824_v16  ;;  %4532 = vmatprep.subr.bf16.mxu0 %v5831_v22  ;;  %v6951_v16 = vadd.f32 %v6853_v54, %v1336_v50 }
 0x34a   : > { %4744 = vmatprep.subr.bf16.mxu1 %v5833_v25 }
 0x34c   : > { %4533 = vmatpush1.bf16.msra.mxu0 %v5830_v34 }
 0x34d   : > { %4745 = vmatpush1.bf16.msra.mxu1 %v5832_v8  ;;  %4534 = vmatprep.subr.bf16.mxu0 %v5839_v9  ;;  %v4830_v9 = vmul.f32 %v6938_v12, %v6938_v12 }
 0x34e   : > { %4746 = vmatprep.subr.bf16.mxu1 %v5841_v10 }
 0x350   : > { %4535 = vmatpush1.bf16.msra.mxu0 %v5838_v24  ;;  %v6978_v24 = vrot.slane %v6869_v37, %v6745_v48 }
 0x351   : > { %4747 = vmatpush1.bf16.msra.mxu1 %v5840_v45 }
 0x353   : > { %4537 = vmatmul.mubr.bf16.vlgmr.msra.gmra.mrb[24].mxu0 %v6771_v42 }
 0x354   : > { %4749 = vmatmul.mubr.bf16.vlgmr.msra.gmra.mrb[24].mxu1 %v6771_v42  ;;  %4546 = vmatprep.mubr.bf16.mxu0 %v6785_v30  ;;  %v6879_v42 = vadd.f32 %v6835_v60, %v1328_v39  ;;  %v4814_v60 = vmul.f32 %v6885_v41, %v6885_v41 }
 0x355   : > { %4758 = vmatprep.mubr.bf16.mxu1 %v6785_v30  ;;  %v6882_v30 = vadd.f32 %v6839_v13, %v1324_v38 }
 0x356   : > { %v4806_v44 = vmul.f32 %v6879_v42, %v6879_v42  ;;  %v4769_v35 = vadd.f32 %v6879_v42, %v6876_v57 }
 0x357   : > { %v4813_v31 = vmul.f32 %v6882_v30, %v6882_v30  ;;  %v4778_v29 = vadd.f32 %v6885_v41, %v6882_v30 }
 0x358   : > { %v4837_v47 = vadd.f32 %v4806_v44, %v4805_v43 }
 0x35b   : > { %4547 = vmatmul.mubr.bf16.gmra.mrb[28].mxu0 %v6783_v61 }
 0x35c   : > { %4759 = vmatmul.mubr.bf16.gmra.mrb[28].mxu1 %v6783_v61  ;;  %v1332_v61 = vrot.slane %v6869_v37, %v6630_v21 }
 0x35e   : > { %v6898_v13 = vadd.f32 %v6833_v32, %v1332_v61  ;;  %v6905_v26 = vadd.f32 %v6841_v19, %v1332_v61  ;;  %v4846_v32 = vadd.f32 %v4814_v60, %v4813_v31  ;;  %v6921_v19 = vadd.f32 %v6845_v14, %v1336_v50 }
 0x35f   : > { %v6932_v40 = vadd.f32 %v6849_v51, %v1332_v61  ;;  %v6935_v14 = vadd.f32 %v6855_v56, %v1324_v38  ;;  %v4787_v51 = vadd.f32 %v6913_v55, %v6910_v52  ;;  %v6954_v56 = vadd.f32 %v6857_v27, %v1332_v61 }
 0x360   : > { %v4807_v33 = vmul.f32 %v6898_v13, %v6898_v13  ;;  %v4770_v59 = vadd.f32 %v6898_v13, %v4769_v35  ;;  %v4815_v62 = vmul.f32 %v6905_v26, %v6905_v26  ;;  %v4779_v2 = vadd.f32 %v6905_v26, %v4778_v29 }
 0x361   : > { %v4816_v11 = vmul.f32 %v6921_v19, %v6921_v19  ;;  %v4823_v6 = vmul.f32 %v6932_v40, %v6932_v40  ;;  %v4796_v54 = vadd.f32 %v6938_v12, %v6935_v14  ;;  %v6967_v27 = vadd.f32 %v6861_v58, %v1336_v50 }
 0x362   : > { %v4838_v49 = vadd.f32 %v4837_v47, %v4807_v33  ;;  %v4847_v4 = vadd.f32 %v4846_v32, %v4815_v62  ;;  %v4771_v22 = vadd.f32 %v6918_v36, %v4770_v59  ;;  %v4780_v28 = vadd.f32 %v6921_v19, %v4779_v2 }
 0x363   : > { %v4829_v8 = vmul.f32 %v6935_v14, %v6935_v14  ;;  %v4788_v39 = vadd.f32 %v6932_v40, %v4787_v51  ;;  %v4824_v58 = vmul.f32 %v6951_v16, %v6951_v16  ;;  %v4831_v61 = vmul.f32 %v6954_v56, %v6954_v56 }
 0x364   : > { %v4839_v25 = vadd.f32 %v4838_v49, %v4808_v5  ;;  %v4848_v46 = vadd.f32 %v4847_v4, %v4816_v11  ;;  %v4856_v60 = vadd.f32 %v4855_v17, %v4823_v6  ;;  %v4797_v33 = vadd.f32 %v6954_v56, %v4796_v54 }
 0x365   : > { %v4832_v59 = vmul.f32 %v6967_v27, %v6967_v27  ;;  %v6999_v62 = vrot.slane %v6869_v37, %v6755_v1  ;;  %v4864_v0 = vadd.f32 %v4830_v9, %v4829_v8  ;;  %v4789_v17 = vadd.f32 %v6951_v16, %v4788_v39 }
 0x366   : > { %v4857_v6 = vadd.f32 %v4856_v60, %v4824_v58 }
 0x426   : > { %v4538_v34 = vpop.f32.mrb[24].mxu0 }
 0x427   : > { %v6974_v10 = vadd.f32 %v4538_v34, %v6946_v15  ;;  %v4750_v45 = vpop.f32.mrb[24].mxu1  ;;  %v4540_v38 = vpop.f32.mrb[25].mxu0 }
 0x428   : > { %v6986_v43 = vadd.f32 %v4540_v38, %v6958_v53  ;;  %v4752_v44 = vpop.f32.mrb[25].mxu1  ;;  %v4542_v31 = vpop.f32.mrb[26].mxu0  ;;  %v7005_v3 = vadd.f32 %v4750_v45, %v6978_v24  ;;  %v4865_v38 = vadd.f32 %v4864_v0, %v4831_v61 }
 0x429   : > { %v4772_v50 = vadd.f32 %v6974_v10, %v4771_v22  ;;  %v4809_v35 = vmul.f32 %v6974_v10, %v6974_v10  ;;  %v6992_v47 = vadd.f32 %v4542_v31, %v6946_v15  ;;  %v4754_v29 = vpop.f32.mrb[26].mxu1  ;;  %v4544_v32 = vpop.f32.mrb[27].mxu0  ;;  %v7019_v8 = vadd.f32 %v4752_v44, %v6999_v62 }
 0x42a   : > { %v7002_v49 = vadd.f32 %v4544_v32, %v6958_v53  ;;  %v4756_v2 = vpop.f32.mrb[27].mxu1  ;;  %v4810_v51 = vmul.f32 %v6986_v43, %v6986_v43  ;;  %v4811_v31 = vmul.f32 %v7005_v3, %v7005_v3 }
 0x42b   : > { %v4781_v4 = vadd.f32 %v6992_v47, %v4780_v28  ;;  %v4817_v5 = vmul.f32 %v6992_v47, %v6992_v47  ;;  %v4840_v11 = vadd.f32 %v4839_v25, %v4809_v35  ;;  %v4773_v22 = vadd.f32 %v6986_v43, %v4772_v50 }
 0x42c   : > { %v4818_v37 = vmul.f32 %v7002_v49, %v7002_v49  ;;  %v4798_v28 = vadd.f32 %v6967_v27, %v4797_v33  ;;  %v7022_v25 = vadd.f32 %v4754_v29, %v6978_v24  ;;  %v7028_v39 = vadd.f32 %v4756_v2, %v6999_v62 }
 0x42d   : > { %v4782_v54 = vadd.f32 %v7002_v49, %v4781_v4  ;;  %v4849_v34 = vadd.f32 %v4848_v46, %v4817_v5  ;;  %v4774_v45 = vadd.f32 %v7005_v3, %v4773_v22  ;;  %v4841_v61 = vadd.f32 %v4840_v11, %v4810_v51 }
 0x42e   : > { %v4548_v9 = vpop.f32.mrb[28].mxu0 }
 0x42f   : > { %v7031_v46 = vadd.f32 %v4548_v9, %v6946_v15  ;;  %v4760_v58 = vpop.f32.mrb[28].mxu1  ;;  %v4550_v60 = vpop.f32.mrb[29].mxu0  ;;  %v4775_v29 = vadd.f32 %v7019_v8, %v4774_v45  ;;  %v4850_v32 = vadd.f32 %v4849_v34, %v4818_v37  ;;  %v4783_v22 = vadd.f32 %v7022_v25, %v4782_v54 }
 0x430   : > { %v7034_v44 = vadd.f32 %v4550_v60, %v6958_v53  ;;  %v4762_v50 = vpop.f32.mrb[29].mxu1  ;;  %v4552_v35 = vpop.f32.mrb[30].mxu0  ;;  %v7045_v9 = vadd.f32 %v4760_v58, %v6978_v24  ;;  %v4819_v37 = vmul.f32 %v7022_v25, %v7022_v25  ;;  %v4866_v58 = vadd.f32 %v4865_v38, %v4832_v59 }
 0x431   : > { %v4790_v33 = vadd.f32 %v7031_v46, %v4789_v17  ;;  %v4825_v2 = vmul.f32 %v7031_v46, %v7031_v46  ;;  %v7041_v0 = vadd.f32 %v4552_v35, %v6946_v15  ;;  %v4764_v4 = vpop.f32.mrb[30].mxu1  ;;  %v4554_v5 = vpop.f32.mrb[31].mxu0  ;;  %4776 = vadd.xlane.f32.xlu0 %v4775_v29  ;;  %v4820_v60 = vmul.f32 %v7028_v39, %v7028_v39 }
 0x432   : > { %v4826_v45 = vmul.f32 %v7034_v44, %v7034_v44  ;;  %v7050_v11 = vadd.f32 %v4554_v5, %v6958_v53  ;;  %v4766_v51 = vpop.f32.mrb[31].mxu1  ;;  %v4851_v35 = vadd.f32 %v4850_v32, %v4819_v37  ;;  %v4842_v53 = vadd.f32 %v4841_v61, %v4811_v31 }
 0x433   : > { %7442 = vst [vmem:[#allocation16_spill] sm:$0xff] %v7041_v0  ;;  %v4858_v15 = vadd.f32 %v4857_v6, %v4825_v2  ;;  %v4791_v17 = vadd.f32 %v7034_v44, %v4790_v33  ;;  %v4799_v34 = vadd.f32 %v7041_v0, %v4798_v28  ;;  %v4833_v54 = vmul.f32 %v7041_v0, %v7041_v0 }
 0x434   : > { %v7061_v5 = vadd.f32 %v4762_v50, %v6999_v62  ;;  %v4834_v29 = vmul.f32 %v7050_v11, %v7050_v11  ;;  %v4784_v6 = vadd.f32 %v7028_v39, %v4783_v22  ;;  %v4852_v0 = vadd.f32 %v4851_v35, %v4820_v60 }
 0x435   : > { %v4792_v33 = vadd.f32 %v7045_v9, %v4791_v17  ;;  %v4867_v28 = vadd.f32 %v4866_v58, %v4833_v54  ;;  %v4800_v2 = vadd.f32 %v7050_v11, %v4799_v34  ;;  %v4859_v59 = vadd.f32 %v4858_v15, %v4826_v45 }
 0x436   : > { %v4827_v38 = vmul.f32 %v7045_v9, %v7045_v9  ;;  %4785 = vadd.xlane.f32.xlu0 %v4784_v6  ;;  %v4812_v31 = vmul.f32 %v7019_v8, %v7019_v8  ;;  %v7073_v50 = vadd.f32 %v4764_v4, %v6978_v24  ;;  %4853 = vadd.xlane.f32.xlu1 %v4852_v0 }
 0x437   : > { %v4793_v32 = vadd.f32 %v7061_v5, %v4792_v33  ;;  %v4868_v17 = vadd.f32 %v4867_v28, %v4834_v29  ;;  %v4828_v45 = vmul.f32 %v7061_v5, %v7061_v5  ;;  %v7082_v34 = vadd.f32 %v4766_v51, %v6999_v62  ;;  %v4966_v33 = vld [vmem:[#allocation10 + $0x1] ss:$4 sm:$0xff]  ;;  %v5041_v28 = vld [vmem:[#allocation10 + $0x2] ss:$4 sm:$0xff] }
 0x438   : > { %7443 = vst [vmem:[#allocation17_spill] sm:$0xff] %v7073_v50  ;;  %v4843_v61 = vadd.f32 %v4842_v53, %v4812_v31  ;;  %v4860_v22 = vadd.f32 %v4859_v59, %v4827_v38  ;;  %v4801_v37 = vadd.f32 %v7073_v50, %v4800_v2  ;;  %v4835_v15 = vmul.f32 %v7073_v50, %v7073_v50 }
 0x439   : > { %7444 = vst [vmem:[#allocation18_spill] sm:$0xff] %v7082_v34  ;;  %v4836_v54 = vmul.f32 %v7082_v34, %v7082_v34 }
 0x43a   : > { %4844 = vadd.xlane.f32.xlu0 %v4843_v61  ;;  %4794 = vadd.xlane.f32.xlu1 %v4793_v32  ;;  %v4861_v24 = vadd.f32 %v4860_v22, %v4828_v45  ;;  %v4802_v0 = vadd.f32 %v7082_v34, %v4801_v37  ;;  %v4869_v4 = vadd.f32 %v4868_v17, %v4835_v15 }
 0x43b   : > { %v7096_v61 = vrot.slane %v4966_v33, %v6622_v18  ;;  %v7099_v22 = vrot.slane %v5041_v28, %v6622_v18  ;;  %v7102_v45 = vrot.slane %v4966_v33, %v6627_v20  ;;  %v7105_v15 = vrot.slane %v5041_v28, %v6627_v20 }
 0x43c   : > { %v4870_v58 = vadd.f32 %v4869_v4, %v4836_v54  ;;  %v7113_v54 = vrot.slane %v5041_v28, %v6630_v21  ;;  %v7116_v18 = vrot.slane %v4966_v33, %v6635_v23  ;;  %v7122_v20 = vrot.slane %v4966_v33, %v6669_v63 }
 0x43e   : > { %4862 = vadd.xlane.f32.xlu0 %v4861_v24  ;;  %4803 = vadd.xlane.f32.xlu1 %v4802_v0  ;;  %v7108_v24 = vrot.slane %v4966_v33, %v6630_v21  ;;  %v7131_v21 = vrot.slane %v5041_v28, %v6682_v7 }
 0x442   : > { %4871 = vadd.xlane.f32.xlu1 %v4870_v58  ;;  %v7119_v58 = vrot.slane %v5041_v28, %v6635_v23 }
 0x4be   : > { %v4777_v60 = vpop.xlane.xlu0 %4776 }
 0x4bf   : > { %v7087_v53 = vmul.f32 0.0009765625, %v4777_v60 }
 0x4c1   : > { %v4881_v31 = vmul.f32 %v7087_v53, %v7087_v53 }
 0x4c3   : > { %v4786_v35 = vpop.xlane.xlu0 %4785  ;;  %v4854_v29 = vpop.xlane.xlu1 %4853 }
 0x4c4   : > { %v7089_v6 = vmul.f32 0.0009765625, %v4786_v35  ;;  %v4878_v62 = vmul.f32 0.0009765625, %v4854_v29  ;;  %v7125_v29 = vrot.slane %v5041_v28, %v6669_v63 }
 0x4c6   : > { %v4882_v51 = vmul.f32 %v7089_v6, %v7089_v6 }
 0x4c7   : > { %v4845_v2 = vpop.xlane.xlu0 %4844  ;;  %v4795_v38 = vpop.xlane.xlu1 %4794 }
 0x4c8   : > { %v4886_v59 = vsub.f32 %v4878_v62, %v4882_v51  ;;  %v4877_v32 = vmul.f32 0.0009765625, %v4845_v2  ;;  %v7110_v0 = vmul.f32 0.0009765625, %v4795_v38  ;;  %v7128_v62 = vrot.slane %v4966_v33, %v6682_v7 }
 0x4c9   : > { %v7139_v38 = vrot.slane %v5041_v28, %v6745_v48  ;;  %v7147_v7 = vrot.slane %v5041_v28, %v6755_v1 }
 0x4ca   : > { %v4890_v37 = vmax.f32 %v4886_v59, 0.0  ;;  %v4885_v17 = vsub.f32 %v4877_v32, %v4881_v31  ;;  %v7136_v59 = vrot.slane %v4966_v33, %v6745_v48  ;;  %v4883_v63 = vmul.f32 %v7110_v0, %v7110_v0 }
 0x4cb   : > { %v4863_v4 = vpop.xlane.xlu0 %4862  ;;  %v4804_v35 = vpop.xlane.xlu1 %4803  ;;  %v7144_v32 = vrot.slane %v4966_v33, %v6755_v1  ;;  %v4906_v48 = vsub.f32 %v7002_v49, %v7089_v6 }
 0x4cc   : > { %v4926_v60 = vadd.f32 1e-05, %v4890_v37  ;;  %v4889_v51 = vmax.f32 %v4885_v17, 0.0  ;;  %v7133_v2 = vmul.f32 0.0009765625, %v4804_v35  ;;  %v4879_v23 = vmul.f32 0.0009765625, %v4863_v4 }
 0x4cd   : > { %v4905_v17 = vsub.f32 %v6992_v47, %v7089_v6 }
 0x4ce   : > { %6073 = vrsqrt.f32 %v4926_v60  ;;  %v4925_v31 = vadd.f32 1e-05, %v4889_v51  ;;  %v4887_v35 = vsub.f32 %v4879_v23, %v4883_v63  ;;  %v4884_v28 = vmul.f32 %v7133_v2, %v7133_v2 }
 0x4cf   : > { %v4872_v4 = vpop.xlane.xlu1 %4871  ;;  %v4901_v60 = vsub.f32 %v6882_v30, %v7089_v6  ;;  %v4902_v23 = vsub.f32 %v6885_v41, %v7089_v6  ;;  %v4904_v63 = vsub.f32 %v6921_v19, %v7089_v6  ;;  %v4907_v30 = vsub.f32 %v7022_v25, %v7089_v6 }
 0x4d0   : > { %6075 = vrsqrt.f32 %v4925_v31  ;;  %v4880_v51 = vmul.f32 0.0009765625, %v4872_v4  ;;  %v4891_v37 = vmax.f32 %v4887_v35, 0.0  ;;  %v4903_v31 = vsub.f32 %v6905_v26, %v7089_v6 }
 0x4d1   : > { %v4908_v41 = vsub.f32 %v7028_v39, %v7089_v6 }
 0x4d2   : > { %v4888_v4 = vsub.f32 %v4880_v51, %v4884_v28  ;;  %v4927_v35 = vadd.f32 1e-05, %v4891_v37 }
 0x4d4   : > { %v4892_v28 = vmax.f32 %v4888_v4, 0.0  ;;  %6077 = vrsqrt.f32 %v4927_v35 }
 0x4d6   : > { %v7199_v4 = vadd.f32 1e-05, %v4892_v28 }
 0x4d8   : > { %v6074_v39 = vpop.eup %6073  ;;  %6079 = vrsqrt.f32 %v7199_v4  ;;  %v7461_v4 = vld [vmem:[#allocation16_spill] sm:$0xff] }
 0x4d9   : > { %v4941_v47 = vmul.f32 %v6074_v39, %v4901_v60  ;;  %v4942_v19 = vmul.f32 %v6074_v39, %v4902_v23  ;;  %v4943_v49 = vmul.f32 %v6074_v39, %v4903_v31  ;;  %v4944_v26 = vmul.f32 %v6074_v39, %v4904_v63 }
 0x4da   : > { %v4945_v1 = vmul.f32 %v6074_v39, %v4905_v17  ;;  %v4946_v25 = vmul.f32 %v6074_v39, %v4906_v48  ;;  %v4947_v33 = vmul.f32 %v6074_v39, %v4907_v30  ;;  %v4948_v34 = vmul.f32 %v6074_v39, %v4908_v41  ;;  %v6076_v35 = vpop.eup %6075 }
 0x4db   : > { %v5016_v37 = vmul.f32 %v7096_v61, %v4941_v47  ;;  %v5017_v50 = vmul.f32 %v7102_v45, %v4942_v19  ;;  %v5018_v6 = vmul.f32 %v7108_v24, %v4943_v49  ;;  %v5019_v51 = vmul.f32 %v7116_v18, %v4944_v26 }
 0x4dc   : > { %v5020_v28 = vmul.f32 %v7122_v20, %v4945_v1  ;;  %v5021_v60 = vmul.f32 %v7128_v62, %v4946_v25  ;;  %v5022_v23 = vmul.f32 %v7136_v59, %v4947_v33  ;;  %v5023_v17 = vmul.f32 %v7144_v32, %v4948_v34 }
 0x4dd   : > { %v5091_v48 = vadd.f32 %v7099_v22, %v5016_v37  ;;  %v5092_v31 = vadd.f32 %v7105_v15, %v5017_v50  ;;  %v5093_v63 = vadd.f32 %v7113_v54, %v5018_v6  ;;  %v5094_v30 = vadd.f32 %v7119_v58, %v5019_v51 }
 0x4de   : > { %v5095_v41 = vadd.f32 %v7125_v29, %v5020_v28  ;;  %v5096_v26 = vadd.f32 %v7131_v21, %v5021_v60  ;;  %v5097_v1 = vadd.f32 %v7139_v38, %v5022_v23  ;;  %v5098_v19 = vadd.f32 %v7147_v7, %v5023_v17 }
 0x4df   : > { %5123 = vst [vmem:[%s7218_s26 + $0x40] sm:$0xff] %v5091_v48  ;;  %5124 = vst [vmem:[%s7218_s26 + $0x48] sm:$0xff] %v5092_v31  ;;  %v7445_v50 = vsub.f32 %v6876_v57, %v7087_v53  ;;  %v7446_v33 = vsub.f32 %v6879_v42, %v7087_v53  ;;  %v7447_v49 = vsub.f32 %v6898_v13, %v7087_v53 }
 0x4e0   : > { %5125 = vst [vmem:[%s7218_s26 + $0x50] sm:$0xff] %v5093_v63  ;;  %5126 = vst [vmem:[%s7218_s26 + $0x58] sm:$0xff] %v5094_v30  ;;  %v7448_v37 = vsub.f32 %v6918_v36, %v7087_v53  ;;  %v7449_v57 = vsub.f32 %v6974_v10, %v7087_v53  ;;  %v7450_v42 = vsub.f32 %v6986_v43, %v7087_v53  ;;  %v6078_v43 = vpop.eup %6077 }
 0x4e1   : > { %v4933_v34 = vmul.f32 %v6076_v35, %v7445_v50  ;;  %v4934_v47 = vmul.f32 %v6076_v35, %v7446_v33  ;;  %v4935_v25 = vmul.f32 %v6076_v35, %v7447_v49  ;;  %5127 = vst [vmem:[%s7218_s26 + $0x60] sm:$0xff] %v5095_v41  ;;  %5128 = vst [vmem:[%s7218_s26 + $0x68] sm:$0xff] %v5096_v26 }
 0x4e2   : > { %v4936_v39 = vmul.f32 %v6076_v35, %v7448_v37  ;;  %5129 = vst [vmem:[%s7218_s26 + $0x70] sm:$0xff] %v5097_v1  ;;  %5130 = vst [vmem:[%s7218_s26 + $0x78] sm:$0xff] %v5098_v19  ;;  %v4937_v6 = vmul.f32 %v6076_v35, %v7449_v57  ;;  %v4938_v51 = vmul.f32 %v6076_v35, %v7450_v42 }
 0x4e3   : > { %v7451_v13 = vsub.f32 %v7005_v3, %v7087_v53  ;;  %v7452_v36 = vsub.f32 %v7019_v8, %v7087_v53  ;;  %v5008_v23 = vmul.f32 %v7096_v61, %v4933_v34  ;;  %v5009_v17 = vmul.f32 %v7102_v45, %v4934_v47 }
 0x4e4   : > { %v5010_v10 = vmul.f32 %v7108_v24, %v4935_v25  ;;  %v5011_v48 = vmul.f32 %v7116_v18, %v4936_v39  ;;  %v5012_v3 = vmul.f32 %v7122_v20, %v4937_v6  ;;  %v5013_v31 = vmul.f32 %v7128_v62, %v4938_v51 }
 0x4e5   : > { %v4939_v28 = vmul.f32 %v6076_v35, %v7451_v13  ;;  %v4940_v60 = vmul.f32 %v6076_v35, %v7452_v36  ;;  %v5083_v35 = vadd.f32 %v7099_v22, %v5008_v23  ;;  %v5084_v63 = vadd.f32 %v7105_v15, %v5009_v17 }
 0x4e6   : > { %v5085_v30 = vadd.f32 %v7113_v54, %v5010_v10  ;;  %v5086_v41 = vadd.f32 %v7119_v58, %v5011_v48  ;;  %v5087_v26 = vadd.f32 %v7125_v29, %v5012_v3  ;;  %v5088_v1 = vadd.f32 %v7131_v21, %v5013_v31 }
 0x4e7   : > { %v5014_v8 = vmul.f32 %v7136_v59, %v4939_v28  ;;  %v5015_v53 = vmul.f32 %v7144_v32, %v4940_v60  ;;  %5115 = vst [vmem:[%s7218_s26] sm:$0xff] %v5083_v35  ;;  %5116 = vst [vmem:[%s7218_s26 + $0x8] sm:$0xff] %v5084_v63  ;;  %v7453_v34 = vsub.f32 %v6910_v52, %v7110_v0 }
 0x4e8   : > { %5117 = vst [vmem:[%s7218_s26 + $0x10] sm:$0xff] %v5085_v30  ;;  %5118 = vst [vmem:[%s7218_s26 + $0x18] sm:$0xff] %v5086_v41  ;;  %v7454_v47 = vsub.f32 %v6913_v55, %v7110_v0  ;;  %v7455_v25 = vsub.f32 %v6932_v40, %v7110_v0  ;;  %v7456_v39 = vsub.f32 %v6951_v16, %v7110_v0  ;;  %v6080_v41 = vpop.eup %6079 }
 0x4e9   : > { %v5089_v19 = vadd.f32 %v7139_v38, %v5014_v8  ;;  %v5090_v50 = vadd.f32 %v7147_v7, %v5015_v53  ;;  %v4949_v33 = vmul.f32 %v6078_v43, %v7453_v34  ;;  %5119 = vst [vmem:[%s7218_s26 + $0x20] sm:$0xff] %v5087_v26  ;;  %5120 = vst [vmem:[%s7218_s26 + $0x28] sm:$0xff] %v5088_v1 }
 0x4ea   : > { %v4950_v49 = vmul.f32 %v6078_v43, %v7454_v47  ;;  %v4951_v37 = vmul.f32 %v6078_v43, %v7455_v25  ;;  %v4952_v57 = vmul.f32 %v6078_v43, %v7456_v39  ;;  %v7457_v52 = vsub.f32 %v7031_v46, %v7110_v0 }
 0x4eb   : > { %5121 = vst [vmem:[%s7218_s26 + $0x30] sm:$0xff] %v5089_v19  ;;  %5122 = vst [vmem:[%s7218_s26 + $0x38] sm:$0xff] %v5090_v50  ;;  %v7458_v55 = vsub.f32 %v7034_v44, %v7110_v0  ;;  %v7459_v40 = vsub.f32 %v7045_v9, %v7110_v0  ;;  %v7460_v16 = vsub.f32 %v7061_v5, %v7110_v0 }
 0x4ec   : > { %v4953_v6 = vmul.f32 %v6078_v43, %v7457_v52  ;;  %v5024_v28 = vmul.f32 %v7096_v61, %v4949_v33  ;;  %v5025_v36 = vmul.f32 %v7102_v45, %v4950_v49  ;;  %v5026_v46 = vmul.f32 %v7108_v24, %v4951_v37 }
 0x4ed   : > { %v4954_v42 = vmul.f32 %v6078_v43, %v7458_v55  ;;  %v4955_v51 = vmul.f32 %v6078_v43, %v7459_v40  ;;  %v4956_v13 = vmul.f32 %v6078_v43, %v7460_v16  ;;  %v5027_v44 = vmul.f32 %v7116_v18, %v4952_v57 }
 0x4ee   : > { %v5028_v60 = vmul.f32 %v7122_v20, %v4953_v6  ;;  %v5099_v23 = vadd.f32 %v7099_v22, %v5024_v28  ;;  %v5100_v17 = vadd.f32 %v7105_v15, %v5025_v36  ;;  %v5101_v10 = vadd.f32 %v7113_v54, %v5026_v46 }
 0x4ef   : > { %v5029_v9 = vmul.f32 %v7128_v62, %v4954_v42  ;;  %v5030_v5 = vmul.f32 %v7136_v59, %v4955_v51  ;;  %v5031_v0 = vmul.f32 %v7144_v32, %v4956_v13  ;;  %v5102_v48 = vadd.f32 %v7119_v58, %v5027_v44 }
 0x4f0   : > { %v5103_v43 = vadd.f32 %v7125_v29, %v5028_v60  ;;  %5131 = vst [vmem:[%s7218_s26 + $0x80] sm:$0xff] %v5099_v23  ;;  %5132 = vst [vmem:[%s7218_s26 + $0x88] sm:$0xff] %v5100_v17  ;;  %v4917_v53 = vsub.f32 %v6935_v14, %v7133_v2  ;;  %v4918_v35 = vsub.f32 %v6938_v12, %v7133_v2  ;;  %v7462_v14 = vld [vmem:[#allocation17_spill] sm:$0xff]  ;;  %v7463_v12 = vld [vmem:[#allocation18_spill] sm:$0xff] }
 0x4f1   : > { %v5104_v3 = vadd.f32 %v7131_v21, %v5029_v9  ;;  %v5105_v31 = vadd.f32 %v7139_v38, %v5030_v5  ;;  %v5106_v8 = vadd.f32 %v7147_v7, %v5031_v0  ;;  %5133 = vst [vmem:[%s7218_s26 + $0x90] sm:$0xff] %v5101_v10  ;;  %5134 = vst [vmem:[%s7218_s26 + $0x98] sm:$0xff] %v5102_v48 }
 0x4f2   : > { %5135 = vst [vmem:[%s7218_s26 + $0xa0] sm:$0xff] %v5103_v43  ;;  %v4919_v63 = vsub.f32 %v6954_v56, %v7133_v2  ;;  %v4920_v30 = vsub.f32 %v6967_v27, %v7133_v2  ;;  %v4921_v26 = vsub.f32 %v7461_v4, %v7133_v2  ;;  %v4922_v1 = vsub.f32 %v7050_v11, %v7133_v2 }
 0x4f3   : > { %5136 = vst [vmem:[%s7218_s26 + $0xa8] sm:$0xff] %v5104_v3  ;;  %5137 = vst [vmem:[%s7218_s26 + $0xb0] sm:$0xff] %v5105_v31  ;;  %v4923_v19 = vsub.f32 %v7462_v14, %v7133_v2  ;;  %v4924_v50 = vsub.f32 %v7463_v12, %v7133_v2  ;;  %v4957_v34 = vmul.f32 %v6080_v41, %v4917_v53 }
 0x4f4   : > { %5138 = vst [vmem:[%s7218_s26 + $0xb8] sm:$0xff] %v5106_v8  ;;  %v4958_v33 = vmul.f32 %v6080_v41, %v4918_v35  ;;  %v4959_v56 = vmul.f32 %v6080_v41, %v4919_v63  ;;  %v4960_v47 = vmul.f32 %v6080_v41, %v4920_v30  ;;  %v4961_v49 = vmul.f32 %v6080_v41, %v4921_v26 }
 0x4f5   : > { %v4962_v25 = vmul.f32 %v6080_v41, %v4922_v1  ;;  %v4963_v27 = vmul.f32 %v6080_v41, %v4923_v19  ;;  %v4964_v37 = vmul.f32 %v6080_v41, %v4924_v50  ;;  %v5032_v39 = vmul.f32 %v7096_v61, %v4957_v34 }
 0x4f6   : > { %v5033_v11 = vmul.f32 %v7102_v45, %v4958_v33  ;;  %v5034_v57 = vmul.f32 %v7108_v24, %v4959_v56  ;;  %v5035_v52 = vmul.f32 %v7116_v18, %v4960_v47  ;;  %v5036_v2 = vmul.f32 %v7122_v20, %v4961_v49 }
 0x4f7   : > { %v5037_v6 = vmul.f32 %v7128_v62, %v4962_v25  ;;  %v5038_v55 = vmul.f32 %v7136_v59, %v4963_v27  ;;  %v5039_v42 = vmul.f32 %v7144_v32, %v4964_v37  ;;  %v5107_v61 = vadd.f32 %v7099_v22, %v5032_v39 }
 0x4f8   : > { %v5108_v45 = vadd.f32 %v7105_v15, %v5033_v11  ;;  %v5109_v24 = vadd.f32 %v7113_v54, %v5034_v57  ;;  %v5110_v18 = vadd.f32 %v7119_v58, %v5035_v52  ;;  %v5111_v22 = vadd.f32 %v7125_v29, %v5036_v2 }
 0x4f9   : > { %v5112_v15 = vadd.f32 %v7131_v21, %v5037_v6  ;;  %v5113_v20 = vadd.f32 %v7139_v38, %v5038_v55  ;;  %v5114_v54 = vadd.f32 %v7147_v7, %v5039_v42  ;;  %5139 = vst [vmem:[%s7218_s26 + $0xc0] sm:$0xff] %v5107_v61 }
 0x4fa   : > { %5140 = vst [vmem:[%s7218_s26 + $0xc8] sm:$0xff] %v5108_v45  ;;  %5141 = vst [vmem:[%s7218_s26 + $0xd0] sm:$0xff] %v5109_v24 }
 0x4fb   : > { %5142 = vst [vmem:[%s7218_s26 + $0xd8] sm:$0xff] %v5110_v18  ;;  %5143 = vst [vmem:[%s7218_s26 + $0xe0] sm:$0xff] %v5111_v22 }
 0x4fc   : > { %5144 = vst [vmem:[%s7218_s26 + $0xe8] sm:$0xff] %v5112_v15  ;;  %5145 = vst [vmem:[%s7218_s26 + $0xf0] sm:$0xff] %v5113_v20 }
 0x4fd   : > { %5146 = vst [vmem:[%s7218_s26 + $0xf8] sm:$0xff] %v5114_v54 }
 0x4fe   : > { %6236 = shalt.err (!%p6233_p13)
}
 0x4ff   : > { %s6237_s15 = scalar_lea.hbm %s7358_s8, 4096  ;;  %s6241_s28 = scalar_lea.hbm %s7421_s5, 8192 }
 0x500   : > { %p6238_p9 = scmp.ne.s32.totalorder %s7358_s8, %s6237_s15  ;;  %p6242_p6 = scmp.lt.u32.totalorder %s7358_s8, %s7421_s5 }
 0x501   : > { %p6243_p4 = scmp.lt.u32.totalorder %s6241_s28, %s6237_s15  ;;  %p6245_p3 = scmp.lt.u32.totalorder %s6237_s15, %s7358_s8 }
 0x502   : > { %p6239_p0 = pnand %p6238_p9, %p6501_p10 }
 0x503   : > { %p6244_p8 = por %p6243_p4, %p6242_p6 }
 0x504   : > { %p6240_p11 = pneg %p6239_p0 }
 0x505   : > { %p6246_p5 = por %p6245_p3, %p6244_p8 }
 0x507   : > { %p6247_p7 = pnand %p6246_p5, %p6240_p11 }
 0x509   : > { %6250 = shalt.err (!%p6247_p7)
}
 0x50a   : > { %s6310_s9 = smov 1024   ;;  %s6311_s22 = smov 64  }
 0x50b   : > { %5997 = dma.vmem_to_hbm [thread:$0]  (%p6501_p10), %s7360_s11, 4096, %s7358_s8, %s5148_s27, %s6310_s9, %s6310_s9, %s6311_s22  }
 0x50c PF: > { %s5177_s12 = sand.u32 1, %s6285_s18   ;;  %p7464_p12 = scmp.ne.s32.totalorder %s7429_s25, 0 }
 0x50d   : > { %p7465_p2 = scmp.ge.s32.totalorder %s6297_s21, 2  ;;  %s5178_s30 = scalar_lea.sflag [#allocation4], %s5177_s12 }
 0x50f   : > { %p6017_p1 = pnand %p7465_p2, %p7464_p12 }
 0x511   : > { %6280 = dma.done.wait (!%p6017_p1), %s5178_s30, 4096  }
 0x512   : > { %6282 = vsyncadd (!%p6017_p1), %s5178_s30, 4294963200  ;;  %p20_p13 = scmp.ge.s32.totalorder %s6491_s14, 4   ;;  %s7466_s18 = smov %s6289_s19 }
 0x513   : > { %s7467_s19 = smov %s6293_s20  ;;  %s7468_s20 = smov %s6507_s23 }
 0x514   : > { %s7469_s21 = smov %s6491_s14  ;;  %22 = sbr.rel (!%p20_p13) target bundleno = 7 (0x7), region = 103 }
 0x51b   :  { %5183 = vsyncpa [#allocation3], 1 }
 0x51c   :  { %5185 = vsyncpa [#allocation3 + $0x1], 1 }
 0x51d   :  { %5186 = vsyncpa [#allocation6], 1 }
 0x51e   :  { %5187 = vsyncpa [#allocation9], 1 }
 0x51f   :  { %5188 = vsyncpa [#allocation4], 1 }
 0x520   :  { %5190 = vsyncpa [#allocation4 + $0x1], 1 }

</bundles_post_ra>
